<compile_context>
chip_gen: v5e
topology: v5e:2x2
jax: 0.10.0
libtpu: 0.0.40
codegen_flags: <defaults>
</compile_context>

<pallas_src>
import functools

import jax
import jax.numpy as jnp
from jax import lax
from jax.experimental import pallas as pl
from jax.experimental.pallas import tpu as pltpu


A_VAL = 2.0   # make_res_block_decoder defaults (the ctor's a/b are unused in forward)
B_VAL = 0.3

# (stride, padding) per residual block; kernel_size=4, dilation=1, output_padding=0.
BLOCK_CFG = ((1, 0), (2, 1), (2, 1), (2, 1), (2, 1), (2, 1))


def _round8(n):
    return (n + 7) // 8 * 8


# -----------------------------------------------------------------------------
# Host-side parameter preparation (done ONCE): BN folding, conv2∘conv3
# composition, and packing everything into one lane/sublane-aligned array.
# -----------------------------------------------------------------------------
def _fold_block(raw):
    """Eval-mode folding for one residual block."""
    s_up, t_up = raw["up_bn"]
    up_w = raw["up_w"] * s_up[None, :, None]                  # BN folded into ConvT
    up_b = raw["up_b"] * s_up + t_up
    s1, t1 = raw["bn1"]
    s2, t2 = raw["bn2"]
    w1 = raw["w1"][:, :, 0] * s2[None, :]                     # bn2 folded into conv1 (1x1)
    b1 = raw["b1"] * s2 + t2
    w3 = raw["w3"][:, :, 0]                                   # (Cin, Cout)
    hi = lax.Precision.HIGHEST
    mn_w = jnp.einsum("ick,co->iok", raw["w2"], w3, precision=hi)   # conv3 composed into conv2
    mn_b = raw["b3"] + jnp.einsum("c,co->o", raw["b2"], w3, precision=hi)
    return dict(up_w=up_w, up_b=up_b, bn1_s=s1, bn1_b=t1, w1=w1, b1=b1,
                mn_w=mn_w, mn_b=mn_b)


def _pad_taps(w, cpad):
    """(Cin, Cout, 4) torch ConvT weight -> (Cin, 4*cpad): tap k in lane-aligned
    column block [k*cpad, k*cpad+Cout), zero elsewhere."""
    cin, cout, k = w.shape
    assert k == 4 and cout <= cpad
    out = jnp.zeros((cin, 4 * cpad), jnp.float32)
    for kk in range(k):
        out = out.at[:, kk * cpad: kk * cpad + cout].set(w[:, :, kk])
    return out


def _pad_mat(w, width):
    """(Cin, Cout) -> (Cin, width) zero-padded."""
    cin, cout = w.shape
    assert cout <= width
    return jnp.zeros((cin, width), jnp.float32).at[:, :cout].set(w)


def _pad_rows(w):
    """Pad the leading (row) dim up to a multiple of 8 with zeros."""
    r = w.shape[0]
    r8 = _round8(r)
    if r8 == r:
        return w
    return jnp.concatenate(
        [w, jnp.zeros((r8 - r,) + w.shape[1:], w.dtype)], axis=0)


def prepare_params(raw_blocks, final_w, final_b, *, dim_text, num_features,
                   param_dtype=jnp.float32):
    """Fold eval-mode params and pack them into ONE (rows, 4*cpad) array.

    Every chunk starts at an 8-aligned row; weights keep their real K (= Cin,
    rounded to 8) rows; per-channel vectors of a block share one 8-row chunk.
    Returns (packed_array, meta) where meta holds only static python ints.
    """
    chans = [5 * dim_text, 5 * dim_text, 5 * dim_text, 4 * dim_text,
             3 * dim_text, 2 * dim_text, dim_text]
    lengths = [1]
    for (s, p) in BLOCK_CFG:
        lengths.append((lengths[-1] - 1) * s - 2 * p + 4)
    l_final = (lengths[-1] - 1) * 2 - 2 + 4

    cpad = 128 * max(1, -(-max(max(chans), num_features) // 128))
    width = 4 * cpad

    chunks, cur = [], 0

    def _add(arr):
        nonlocal cur
        arr = _pad_rows(arr)
        off = cur
        chunks.append(arr)
        cur += arr.shape[0]
        return off

    block_meta, flops = [], 0
    for i, (raw, (stride, pad)) in enumerate(zip(raw_blocks, BLOCK_CFG)):
        cin, cout, l_in = chans[i], chans[i + 1], lengths[i]
        assert cin <= cpad and cout <= cpad
        if stride == 1:
            # the in-kernel stride-1 path assumes padding == 0 and L_in == 1
            assert pad == 0 and l_in == 1
        f = _fold_block(raw)
        o_up = _add(_pad_taps(f["up_w"], cpad))
        o_w1 = _add(_pad_mat(f["w1"], width))
        o_mn = _add(_pad_taps(f["mn_w"], cpad))
        vec = jnp.zeros((8, width), jnp.float32)
        vec = vec.at[0, :cout].set(f["up_b"])
        vec = vec.at[1, :cin].set(f["bn1_s"])
        vec = vec.at[2, :cin].set(f["bn1_b"])
        vec = vec.at[3, :cin].set(f["b1"])
        vec = vec.at[4, :cout].set(f["mn_b"])
        o_vec = _add(vec)
        block_meta.append(dict(cin8=_round8(cin), stride=stride, l_in=l_in,
                               o_up=o_up, o_w1=o_w1, o_mn=o_mn, o_vec=o_vec))
        flops += 2 * l_in * cin * (8 * cout + cin)

    o_fw = _add(_pad_taps(final_w, cpad))
    fvec = jnp.zeros((8, width), jnp.float32).at[0, :num_features].set(final_b)
    o_fv = _add(fvec)
    flops += 2 * lengths[-1] * dim_text * 4 * num_features

    packed = jnp.concatenate(chunks, axis=0).astype(param_dtype)
    meta = dict(blocks=block_meta, cpad=cpad, l_last=lengths[-1],
                fin=dict(cin8=_round8(dim_text), o_w=o_fw, o_vec=o_fv),
                num_features=num_features, l_final=l_final,
                flops_per_item=flops)
    return packed, meta


# -----------------------------------------------------------------------------
# In-kernel math: operates on flattened (B_blk*L, cpad) channels-last values.
# -----------------------------------------------------------------------------
def _shift_rows(t, down, seg_len, n_seg):
    """Shift rows by one within each contiguous `seg_len`-row segment (one
    segment per batch item of the flattened activation), zero-filled at segment
    boundaries.  down=True -> out[m] = t[m-1]; else out[m] = t[m+1]."""
    m, c = t.shape
    zrow = jnp.zeros((1, c), t.dtype)
    if down:
        shifted = jnp.concatenate([zrow, t[:-1]], axis=0)
    else:
        shifted = jnp.concatenate([t[1:], zrow], axis=0)
    if n_seg > 1:
        rows = lax.broadcasted_iota(jnp.int32, (m, 1), 0)
        if seg_len & (seg_len - 1) == 0:
            pos = jnp.bitwise_and(rows, seg_len - 1)
        else:
            pos = rows % seg_len
        bad = pos == (0 if down else seg_len - 1)
        shifted = jnp.where(bad, 0.0, shifted)
    return shifted


def _convt_k4(x, w, b, *, stride, kdim, cpad, seg_len, n_seg):
    """ConvTranspose1d(K=4) in merged-tap polyphase form.

    x: (n_seg*seg_len, cpad) channels-last (padded lanes are 0).
    w: (kdim, 4*cpad), tap k in lane-aligned cols [k*cpad, (k+1)*cpad).
    b: (1, cpad).  Output: (n_seg*L_out, cpad)."""
    m = x.shape[0]
    lhs = x[:, :kdim].astype(w.dtype)                         # offset-0 lane slice
    t = jnp.dot(lhs, w, preferred_element_type=jnp.float32)   # ONE MXU matmul
    if stride == 1:
        # only used for L_in == 1, padding == 0: out[4*i + k] = x[i] @ W_k
        out = t.reshape(4 * m, cpad)
    else:
        # stride=2, padding=1:
        #   even rows:  E[m] = T1[m] + T3[m-1]
        #   odd  rows:  O[m] = T0[m+1] + T2[m]
        e = t[:, cpad:2 * cpad] + _shift_rows(t[:, 3 * cpad:4 * cpad],
                                              True, seg_len, n_seg)
        o = _shift_rows(t[:, 0:cpad], False, seg_len, n_seg) + t[:, 2 * cpad:3 * cpad]
        # lane-aligned interleave: row m of [E|O] -> output rows 2m, 2m+1
        out = jnp.concatenate([e, o], axis=1).reshape(2 * m, cpad)
    return out + b


def _block_fwd(x, p_ref, bm, cpad, n_seg):
    cin8 = bm["cin8"]
    vec = p_ref[pl.ds(bm["o_vec"], 8), pl.ds(0, cpad)]
    up_b, bn1_s, bn1_b, b1, mn_b = (vec[r:r + 1, :] for r in range(5))
    w_up = p_ref[pl.ds(bm["o_up"], cin8), :]
    w_1 = p_ref[pl.ds(bm["o_w1"], cin8), pl.ds(0, cpad)]
    w_mn = p_ref[pl.ds(bm["o_mn"], cin8), :]

    res = _convt_k4(x, w_up, up_b, stride=bm["stride"], kdim=cin8, cpad=cpad,
                    seg_len=bm["l_in"], n_seg=n_seg)          # upsample branch (BN folded)
    y = jnp.maximum(x * bn1_s + bn1_b, 0.0)                   # bn1 + relu
    h = jnp.dot(y[:, :cin8].astype(w_1.dtype), w_1,
                preferred_element_type=jnp.float32) + b1      # conv1 (+bn2 folded)
    h = jnp.maximum(h, 0.0)
    mn = _convt_k4(h, w_mn, mn_b, stride=bm["stride"], kdim=cin8, cpad=cpad,
                   seg_len=bm["l_in"], n_seg=n_seg)           # conv2 ∘ conv3
    return A_VAL * res + B_VAL * mn


def _make_kernel(meta, b_blk):
    cpad = meta["cpad"]
    nf = meta["num_features"]
    l_last = meta["l_last"]
    l_final = meta["l_final"]
    fin = meta["fin"]

    def kernel(x_ref, p_ref, o_ref):
        x = x_ref[...].astype(jnp.float32)                    # (b_blk, cpad) flattened L=1
        for bm in meta["blocks"]:                             # 6 blocks, unrolled at trace
            x = _block_fwd(x, p_ref, bm, cpad, b_blk)

        # final ConvTranspose1d(K=4, s=2, p=1) fused with LogSoftmax over channels
        w_f = p_ref[pl.ds(fin["o_w"], fin["cin8"]), :]
        b_f = p_ref[pl.ds(fin["o_vec"], 1), pl.ds(0, cpad)]
        z = _convt_k4(x, w_f, b_f, stride=2, kdim=fin["cin8"], cpad=cpad,
                      seg_len=l_last, n_seg=b_blk)            # (b_blk*l_final, cpad)
        zf = z[:, :nf]
        mx = jnp.max(zf, axis=-1, keepdims=True)
        ls = zf - (mx + jnp.log(jnp.sum(jnp.exp(zf - mx), axis=-1, keepdims=True)))
        for bi in range(b_blk):                               # lane-dense NCL store
            o_ref[bi] = ls[bi * l_final:(bi + 1) * l_final, :].T

    return kernel


# -----------------------------------------------------------------------------
# Fused forward wrapper (single pallas_call for the whole network).
# -----------------------------------------------------------------------------
def data_generator_text(feats_ncl, packed, *, meta, b_blk=None):
    """(B, 5*DIM_text, 1) NCL -> (B, num_features, 256) NCL log-probs, eval mode."""
    b, c0, l0 = feats_ncl.shape
    assert l0 == 1, "DataGeneratorText expects input length 1"
    cpad = meta["cpad"]
    nf, l_final = meta["num_features"], meta["l_final"]
    assert c0 <= cpad

    if b_blk is None:
        # keep >= 2 grid steps whenever B >= 2 (both v7x TCs busy), cap block at 8
        b_blk = min(8, max(1, (b + 1) // 2))
    nblk = -(-b // b_blk)
    b_pad = nblk * b_blk

    x = feats_ncl.reshape(b, c0).astype(jnp.float32)
    x = jnp.pad(x, ((0, b_pad - b), (0, cpad - c0)))          # batch pad + lane pad (zeros)
    x = x.reshape(nblk, b_blk, cpad)

    cost = pl.CostEstimate(
        flops=int(b_pad * meta["flops_per_item"]),
        transcendentals=int(b_pad * nf * l_final),
        bytes_accessed=int(4 * (x.size + packed.size + b_pad * nf * l_final)),
    )

    out = pl.pallas_call(
        _make_kernel(meta, b_blk),
        out_shape=jax.ShapeDtypeStruct((b_pad, nf, l_final), jnp.float32),
        grid=(nblk,),
        in_specs=[
            pl.BlockSpec((None, b_blk, cpad), lambda i: (i, 0, 0)),
            pl.BlockSpec(packed.shape, lambda i: (0, 0)),     # one resident param DMA
        ],
        out_specs=pl.BlockSpec((b_blk, nf, l_final), lambda i: (i, 0, 0)),
        compiler_params=pltpu.CompilerParams(dimension_semantics=("parallel",)),
        cost_estimate=cost,
    )(x, packed)
    return out[:b]


# -----------------------------------------------------------------------------
# Parameter init (deterministic) and pure-JAX references for validation.
# -----------------------------------------------------------------------------
def init_convt(key, cin, cout, k):
    k1, k2 = jax.random.split(key)
    bound = 1.0 / jnp.sqrt(jnp.float32(cin * k))
    w = jax.random.uniform(k1, (cin, cout, k), jnp.float32, -bound, bound)
    b = jax.random.uniform(k2, (cout,), jnp.float32, -bound, bound)
    return w, b


def init_bn(key, c, eps=1e-5):
    # BatchNorm1d in eval mode folded to per-channel (scale, shift).
    k1, k2, k3, k4 = jax.random.split(key, 4)
    gamma = 1.0 + 0.1 * jax.random.normal(k1, (c,), jnp.float32)
    beta = 0.1 * jax.random.normal(k2, (c,), jnp.float32)
    mean = 0.1 * jax.random.normal(k3, (c,), jnp.float32)
    var = 0.5 + jax.random.uniform(k4, (c,), jnp.float32)
    scale = gamma / jnp.sqrt(var + eps)
    shift = beta - mean * scale
    return scale, shift


def init_res_block_raw(key, cin, cout, k=4):
    ks = jax.random.split(key, 7)
    up_w, up_b = init_convt(ks[0], cin, cout, k)
    w1, b1 = init_convt(ks[1], cin, cin, 1)
    w2, b2 = init_convt(ks[2], cin, cin, k)
    w3, b3 = init_convt(ks[3], cin, cout, 1)
    return dict(up_w=up_w, up_b=up_b, up_bn=init_bn(ks[4], cout),
                bn1=init_bn(ks[5], cin), bn2=init_bn(ks[6], cin),
                w1=w1, b1=b1, w2=w2, b2=b2, w3=w3, b3=b3)


def convt1d_ref(x, w, b, stride, padding):
    """Reference ConvTranspose1d, channels-last x: (B, L, Cin); torch weight (Cin, Cout, K)."""
    bsz, l, cin = x.shape
    _, cout, k = w.shape
    l_out = (l - 1) * stride - 2 * padding + k
    ext = jnp.zeros((bsz, (l - 1) * stride + k, cout), jnp.float32)
    for kk in range(k):
        c = jnp.einsum("blc,cd->bld", x, w[:, :, kk],
                       precision=lax.Precision.HIGHEST)
        ext = ext.at[:, kk:kk + (l - 1) * stride + 1:stride, :].add(c)
    return ext[:, padding:padding + l_out, :] + b


def convt_ref_direct(x, w, b, stride, padding):
    """Slow direct scatter loop (validates convt1d_ref)."""
    bsz, l, cin = x.shape
    _, cout, k = w.shape
    l_out = (l - 1) * stride - 2 * padding + k
    out = jnp.zeros((bsz, l_out, cout), jnp.float32) + b
    for j in range(l):
        for kk in range(k):
            lo = j * stride + kk - padding
            if 0 <= lo < l_out:
                out = out.at[:, lo, :].add(
                    jnp.einsum("bc,cd->bd", x[:, j, :], w[:, :, kk],
                               precision=lax.Precision.HIGHEST))
    return out


def model_ref(feats_ncl, raw_blocks, final_w, final_b):
    """Pure-JAX eval-mode forward with UNfolded params (independent of the kernel math)."""
    x = jnp.transpose(feats_ncl, (0, 2, 1)).astype(jnp.float32)
    for raw, (s, p) in zip(raw_blocks, BLOCK_CFG):
        s_up, t_up = raw["up_bn"]
        res = convt1d_ref(x, raw["up_w"], raw["up_b"], s, p) * s_up + t_up
        s1, t1 = raw["bn1"]
        s2, t2 = raw["bn2"]
        y = jnp.maximum(x * s1 + t1, 0.0)
        y = convt1d_ref(y, raw["w1"], raw["b1"], 1, 0)
        y = jnp.maximum(y * s2 + t2, 0.0)
        y = convt1d_ref(y, raw["w2"], raw["b2"], s, p)
        y = convt1d_ref(y, raw["w3"], raw["b3"], 1, 0)
        x = A_VAL * res + B_VAL * y
    z = convt1d_ref(x, final_w, final_b, 2, 1)
    z = jax.nn.log_softmax(z, axis=-1)
    return jnp.transpose(z, (0, 2, 1))


if __name__ == "__main__":
    DIM_text = 8          # args.DIM_text
    num_features = 16     # args.num_features
    B = 5                 # exercises batch blocking, segment masking AND batch padding

    key = jax.random.PRNGKey(0)
    keys = jax.random.split(key, 9)

    chans = [5 * DIM_text, 5 * DIM_text, 5 * DIM_text, 4 * DIM_text,
             3 * DIM_text, 2 * DIM_text, DIM_text]
    raw_blocks = [init_res_block_raw(keys[i], chans[i], chans[i + 1]) for i in range(6)]
    final_w, final_b = init_convt(keys[6], DIM_text, num_features, 4)
    feats = jax.random.normal(keys[7], (B, 5 * DIM_text, 1), jnp.float32)

    # sanity: vectorized reference ConvT matches the direct scatter loop
    xs = jax.random.normal(keys[8], (2, 5, 8), jnp.float32)
    ws, bs = init_convt(keys[8], 8, 6, 4)
    assert jnp.allclose(convt1d_ref(xs, ws, bs, 2, 1),
                        convt_ref_direct(xs, ws, bs, 2, 1), atol=1e-4), "ref mismatch"

    # fold + pack parameters once (eval mode) into the single array the kernel expects
    packed, meta = prepare_params(raw_blocks, final_w, final_b,
                                  dim_text=DIM_text, num_features=num_features)

    fwd = jax.jit(functools.partial(data_generator_text, meta=meta))
    out = jax.block_until_ready(fwd(feats, packed))

    assert out.shape == (B, num_features, meta["l_final"]), out.shape
    assert bool(jnp.all(jnp.isfinite(out)))
    # LogSoftmax(dim=1): exp sums to 1 over the channel axis
    assert jnp.allclose(jnp.sum(jnp.exp(out), axis=1), 1.0, atol=1e-4)

    # full-model check against the pure-JAX (unfolded) reference
    ref = model_ref(feats, raw_blocks, final_w, final_b)
    err = float(jnp.max(jnp.abs(out - ref)))
    assert jnp.allclose(out, ref, atol=2e-2, rtol=2e-2), f"max|diff|={err}"

    print("KERNEL_OK")
</pallas_src>

<mosaic_0001>
module attributes {stable_mosaic.version = 11 : i64} {
  func.func @kernel(%arg0: i32, %arg1: memref<1x3x128xf32, #tpu.memory_space<vmem>>, %arg2: memref<640x512xf32, #tpu.memory_space<vmem>>, %arg3: memref<3x16x256xf32, #tpu.memory_space<vmem>>) attributes {dimension_semantics = [#tpu.dimension_semantics<parallel>], iteration_bounds = array<i64: 2>, scalar_prefetch = 0 : i64, scratch_operands = 0 : i64, tpu.core_type = #tpu.core_type<tc>, window_params = [{transform_indices = @transform_0, window_bounds = array<i64: 1, 3, 128>}, {pipeline_mode = #tpu.pipeline_mode<synchronous>, transform_indices = @transform_1, window_bounds = array<i64: 640, 512>}, {transform_indices = @transform_2, window_bounds = array<i64: 3, 16, 256>}]} {
    %c0 = arith.constant 0 : index
    %c0_0 = arith.constant 0 : index
    %c0_1 = arith.constant 0 : index
    %0 = vector.load %arg1[%c0, %c0_0, %c0_1] : memref<1x3x128xf32, #tpu.memory_space<vmem>>, vector<1x3x128xf32>
    %1 = vector.shape_cast %0 : vector<1x3x128xf32> to vector<3x128xf32>
    %c120 = arith.constant 120 : index
    %c0_2 = arith.constant 0 : index
    %2 = vector.load %arg2[%c120, %c0_2] : memref<640x512xf32, #tpu.memory_space<vmem>>, vector<8x128xf32>
    %3 = vector.extract_strided_slice %2 {offsets = [0, 0], sizes = [1, 128], strides = [1, 1]} : vector<8x128xf32> to vector<1x128xf32>
    %4 = vector.extract_strided_slice %2 {offsets = [1, 0], sizes = [1, 128], strides = [1, 1]} : vector<8x128xf32> to vector<1x128xf32>
    %5 = vector.extract_strided_slice %2 {offsets = [2, 0], sizes = [1, 128], strides = [1, 1]} : vector<8x128xf32> to vector<1x128xf32>
    %6 = vector.extract_strided_slice %2 {offsets = [3, 0], sizes = [1, 128], strides = [1, 1]} : vector<8x128xf32> to vector<1x128xf32>
    %7 = vector.extract_strided_slice %2 {offsets = [4, 0], sizes = [1, 128], strides = [1, 1]} : vector<8x128xf32> to vector<1x128xf32>
    %c0_3 = arith.constant 0 : index
    %c0_4 = arith.constant 0 : index
    %8 = vector.load %arg2[%c0_3, %c0_4] : memref<640x512xf32, #tpu.memory_space<vmem>>, vector<40x512xf32>
    %c40 = arith.constant 40 : index
    %c0_5 = arith.constant 0 : index
    %9 = vector.load %arg2[%c40, %c0_5] : memref<640x512xf32, #tpu.memory_space<vmem>>, vector<40x128xf32>
    %c80 = arith.constant 80 : index
    %c0_6 = arith.constant 0 : index
    %10 = vector.load %arg2[%c80, %c0_6] : memref<640x512xf32, #tpu.memory_space<vmem>>, vector<40x512xf32>
    %11 = vector.extract_strided_slice %1 {offsets = [0, 0], sizes = [3, 40], strides = [1, 1]} : vector<3x128xf32> to vector<3x40xf32>
    %cst = arith.constant dense<0.000000e+00> : vector<3x512xf32>
    %12 = tpu.matmul %11, %8, %cst {dimension_numbers = #tpu.dot_dimension_numbers<[1], [0], [0], [1], [0, 0, 1, 1], [], []>} : vector<3x40xf32>, vector<40x512xf32>, vector<3x512xf32> -> vector<3x512xf32>
    %13 = vector.shape_cast %12 : vector<3x512xf32> to vector<12x128xf32>
    %14 = vector.broadcast %3 : vector<1x128xf32> to vector<12x128xf32>
    %15 = arith.addf %13, %14 : vector<12x128xf32>
    %16 = vector.broadcast %4 : vector<1x128xf32> to vector<3x128xf32>
    %17 = arith.mulf %1, %16 : vector<3x128xf32>
    %18 = vector.broadcast %5 : vector<1x128xf32> to vector<3x128xf32>
    %19 = arith.addf %17, %18 : vector<3x128xf32>
    %cst_7 = arith.constant 0.000000e+00 : f32
    %20 = vector.broadcast %cst_7 : f32 to vector<3x128xf32>
    %21 = arith.maximumf %19, %20 : vector<3x128xf32>
    %22 = vector.extract_strided_slice %21 {offsets = [0, 0], sizes = [3, 40], strides = [1, 1]} : vector<3x128xf32> to vector<3x40xf32>
    %cst_8 = arith.constant dense<0.000000e+00> : vector<3x128xf32>
    %23 = tpu.matmul %22, %9, %cst_8 {dimension_numbers = #tpu.dot_dimension_numbers<[1], [0], [0], [1], [0, 0, 1, 1], [], []>} : vector<3x40xf32>, vector<40x128xf32>, vector<3x128xf32> -> vector<3x128xf32>
    %24 = vector.broadcast %6 : vector<1x128xf32> to vector<3x128xf32>
    %25 = arith.addf %23, %24 : vector<3x128xf32>
    %cst_9 = arith.constant 0.000000e+00 : f32
    %26 = vector.broadcast %cst_9 : f32 to vector<3x128xf32>
    %27 = arith.maximumf %25, %26 : vector<3x128xf32>
    %28 = vector.extract_strided_slice %27 {offsets = [0, 0], sizes = [3, 40], strides = [1, 1]} : vector<3x128xf32> to vector<3x40xf32>
    %cst_10 = arith.constant dense<0.000000e+00> : vector<3x512xf32>
    %29 = tpu.matmul %28, %10, %cst_10 {dimension_numbers = #tpu.dot_dimension_numbers<[1], [0], [0], [1], [0, 0, 1, 1], [], []>} : vector<3x40xf32>, vector<40x512xf32>, vector<3x512xf32> -> vector<3x512xf32>
    %30 = vector.shape_cast %29 : vector<3x512xf32> to vector<12x128xf32>
    %31 = vector.broadcast %7 : vector<1x128xf32> to vector<12x128xf32>
    %32 = arith.addf %30, %31 : vector<12x128xf32>
    %cst_11 = arith.constant 2.000000e+00 : f32
    %33 = vector.broadcast %cst_11 : f32 to vector<12x128xf32>
    %34 = arith.mulf %33, %15 : vector<12x128xf32>
    %cst_12 = arith.constant 3.000000e-01 : f32
    %35 = vector.broadcast %cst_12 : f32 to vector<12x128xf32>
    %36 = arith.mulf %35, %32 : vector<12x128xf32>
    %37 = arith.addf %34, %36 : vector<12x128xf32>
    %c248 = arith.constant 248 : index
    %c0_13 = arith.constant 0 : index
    %38 = vector.load %arg2[%c248, %c0_13] : memref<640x512xf32, #tpu.memory_space<vmem>>, vector<8x128xf32>
    %39 = vector.extract_strided_slice %38 {offsets = [0, 0], sizes = [1, 128], strides = [1, 1]} : vector<8x128xf32> to vector<1x128xf32>
    %40 = vector.extract_strided_slice %38 {offsets = [1, 0], sizes = [1, 128], strides = [1, 1]} : vector<8x128xf32> to vector<1x128xf32>
    %41 = vector.extract_strided_slice %38 {offsets = [2, 0], sizes = [1, 128], strides = [1, 1]} : vector<8x128xf32> to vector<1x128xf32>
    %42 = vector.extract_strided_slice %38 {offsets = [3, 0], sizes = [1, 128], strides = [1, 1]} : vector<8x128xf32> to vector<1x128xf32>
    %43 = vector.extract_strided_slice %38 {offsets = [4, 0], sizes = [1, 128], strides = [1, 1]} : vector<8x128xf32> to vector<1x128xf32>
    %c128 = arith.constant 128 : index
    %c0_14 = arith.constant 0 : index
    %44 = vector.load %arg2[%c128, %c0_14] : memref<640x512xf32, #tpu.memory_space<vmem>>, vector<40x512xf32>
    %c168 = arith.constant 168 : index
    %c0_15 = arith.constant 0 : index
    %45 = vector.load %arg2[%c168, %c0_15] : memref<640x512xf32, #tpu.memory_space<vmem>>, vector<40x128xf32>
    %c208 = arith.constant 208 : index
    %c0_16 = arith.constant 0 : index
    %46 = vector.load %arg2[%c208, %c0_16] : memref<640x512xf32, #tpu.memory_space<vmem>>, vector<40x512xf32>
    %47 = vector.extract_strided_slice %37 {offsets = [0, 0], sizes = [12, 40], strides = [1, 1]} : vector<12x128xf32> to vector<12x40xf32>
    %cst_17 = arith.constant dense<0.000000e+00> : vector<12x512xf32>
    %48 = tpu.matmul %47, %44, %cst_17 {dimension_numbers = #tpu.dot_dimension_numbers<[1], [0], [0], [1], [0, 0, 1, 1], [], []>} : vector<12x40xf32>, vector<40x512xf32>, vector<12x512xf32> -> vector<12x512xf32>
    %49 = vector.extract_strided_slice %48 {offsets = [0, 128], sizes = [12, 128], strides = [1, 1]} : vector<12x512xf32> to vector<12x128xf32>
    %50 = vector.extract_strided_slice %48 {offsets = [0, 384], sizes = [12, 128], strides = [1, 1]} : vector<12x512xf32> to vector<12x128xf32>
    %cst_18 = arith.constant 0.000000e+00 : f32
    %51 = vector.broadcast %cst_18 : f32 to vector<1x128xf32>
    %52 = vector.extract_strided_slice %50 {offsets = [0, 0], sizes = [11, 128], strides = [1, 1]} : vector<12x128xf32> to vector<11x128xf32>
    %53 = tpu.concatenate %51, %52 in 0 : vector<1x128xf32>, vector<11x128xf32> -> vector<12x128xf32>
    %54 = tpu.iota {dimensions = array<i32: 0>} : vector<12x1xi32>
    %c3_i32 = arith.constant 3 : i32
    %55 = vector.broadcast %c3_i32 : i32 to vector<12x1xi32>
    %56 = arith.andi %54, %55 : vector<12x1xi32>
    %c0_i32 = arith.constant 0 : i32
    %57 = vector.broadcast %c0_i32 : i32 to vector<12x1xi32>
    %58 = arith.cmpi eq, %56, %57 : vector<12x1xi32>
    %cst_19 = arith.constant 0.000000e+00 : f32
    %59 = vector.shape_cast %58 : vector<12x1xi1> to vector<12x1xi1>
    %60 = vector.broadcast %59 : vector<12x1xi1> to vector<12x128xi1>
    %61 = vector.broadcast %cst_19 : f32 to vector<12x128xf32>
    %62 = arith.select %60, %61, %53 : vector<12x128xi1>, vector<12x128xf32>
    %63 = arith.addf %49, %62 : vector<12x128xf32>
    %64 = vector.extract_strided_slice %48 {offsets = [0, 0], sizes = [12, 128], strides = [1, 1]} : vector<12x512xf32> to vector<12x128xf32>
    %cst_20 = arith.constant 0.000000e+00 : f32
    %65 = vector.broadcast %cst_20 : f32 to vector<1x128xf32>
    %66 = vector.extract_strided_slice %64 {offsets = [1, 0], sizes = [11, 128], strides = [1, 1]} : vector<12x128xf32> to vector<11x128xf32>
    %67 = tpu.concatenate %66, %65 in 0 : vector<11x128xf32>, vector<1x128xf32> -> vector<12x128xf32>
    %68 = tpu.iota {dimensions = array<i32: 0>} : vector<12x1xi32>
    %c3_i32_21 = arith.constant 3 : i32
    %69 = vector.broadcast %c3_i32_21 : i32 to vector<12x1xi32>
    %70 = arith.andi %68, %69 : vector<12x1xi32>
    %c3_i32_22 = arith.constant 3 : i32
    %71 = vector.broadcast %c3_i32_22 : i32 to vector<12x1xi32>
    %72 = arith.cmpi eq, %70, %71 : vector<12x1xi32>
    %cst_23 = arith.constant 0.000000e+00 : f32
    %73 = vector.shape_cast %72 : vector<12x1xi1> to vector<12x1xi1>
    %74 = vector.broadcast %73 : vector<12x1xi1> to vector<12x128xi1>
    %75 = vector.broadcast %cst_23 : f32 to vector<12x128xf32>
    %76 = arith.select %74, %75, %67 : vector<12x128xi1>, vector<12x128xf32>
    %77 = vector.extract_strided_slice %48 {offsets = [0, 256], sizes = [12, 128], strides = [1, 1]} : vector<12x512xf32> to vector<12x128xf32>
    %78 = arith.addf %76, %77 : vector<12x128xf32>
    %79 = tpu.concatenate %63, %78 in 1 : vector<12x128xf32>, vector<12x128xf32> -> vector<12x256xf32>
    %80 = vector.shape_cast %79 : vector<12x256xf32> to vector<24x128xf32>
    %81 = vector.broadcast %39 : vector<1x128xf32> to vector<24x128xf32>
    %82 = arith.addf %80, %81 : vector<24x128xf32>
    %83 = vector.broadcast %40 : vector<1x128xf32> to vector<12x128xf32>
    %84 = arith.mulf %37, %83 : vector<12x128xf32>
    %85 = vector.broadcast %41 : vector<1x128xf32> to vector<12x128xf32>
    %86 = arith.addf %84, %85 : vector<12x128xf32>
    %cst_24 = arith.constant 0.000000e+00 : f32
    %87 = vector.broadcast %cst_24 : f32 to vector<12x128xf32>
    %88 = arith.maximumf %86, %87 : vector<12x128xf32>
    %89 = vector.extract_strided_slice %88 {offsets = [0, 0], sizes = [12, 40], strides = [1, 1]} : vector<12x128xf32> to vector<12x40xf32>
    %cst_25 = arith.constant dense<0.000000e+00> : vector<12x128xf32>
    %90 = tpu.matmul %89, %45, %cst_25 {dimension_numbers = #tpu.dot_dimension_numbers<[1], [0], [0], [1], [0, 0, 1, 1], [], []>} : vector<12x40xf32>, vector<40x128xf32>, vector<12x128xf32> -> vector<12x128xf32>
    %91 = vector.broadcast %42 : vector<1x128xf32> to vector<12x128xf32>
    %92 = arith.addf %90, %91 : vector<12x128xf32>
    %cst_26 = arith.constant 0.000000e+00 : f32
    %93 = vector.broadcast %cst_26 : f32 to vector<12x128xf32>
    %94 = arith.maximumf %92, %93 : vector<12x128xf32>
    %95 = vector.extract_strided_slice %94 {offsets = [0, 0], sizes = [12, 40], strides = [1, 1]} : vector<12x128xf32> to vector<12x40xf32>
    %cst_27 = arith.constant dense<0.000000e+00> : vector<12x512xf32>
    %96 = tpu.matmul %95, %46, %cst_27 {dimension_numbers = #tpu.dot_dimension_numbers<[1], [0], [0], [1], [0, 0, 1, 1], [], []>} : vector<12x40xf32>, vector<40x512xf32>, vector<12x512xf32> -> vector<12x512xf32>
    %97 = vector.extract_strided_slice %96 {offsets = [0, 128], sizes = [12, 128], strides = [1, 1]} : vector<12x512xf32> to vector<12x128xf32>
    %98 = vector.extract_strided_slice %96 {offsets = [0, 384], sizes = [12, 128], strides = [1, 1]} : vector<12x512xf32> to vector<12x128xf32>
    %cst_28 = arith.constant 0.000000e+00 : f32
    %99 = vector.broadcast %cst_28 : f32 to vector<1x128xf32>
    %100 = vector.extract_strided_slice %98 {offsets = [0, 0], sizes = [11, 128], strides = [1, 1]} : vector<12x128xf32> to vector<11x128xf32>
    %101 = tpu.concatenate %99, %100 in 0 : vector<1x128xf32>, vector<11x128xf32> -> vector<12x128xf32>
    %102 = tpu.iota {dimensions = array<i32: 0>} : vector<12x1xi32>
    %c3_i32_29 = arith.constant 3 : i32
    %103 = vector.broadcast %c3_i32_29 : i32 to vector<12x1xi32>
    %104 = arith.andi %102, %103 : vector<12x1xi32>
    %c0_i32_30 = arith.constant 0 : i32
    %105 = vector.broadcast %c0_i32_30 : i32 to vector<12x1xi32>
    %106 = arith.cmpi eq, %104, %105 : vector<12x1xi32>
    %cst_31 = arith.constant 0.000000e+00 : f32
    %107 = vector.shape_cast %106 : vector<12x1xi1> to vector<12x1xi1>
    %108 = vector.broadcast %107 : vector<12x1xi1> to vector<12x128xi1>
    %109 = vector.broadcast %cst_31 : f32 to vector<12x128xf32>
    %110 = arith.select %108, %109, %101 : vector<12x128xi1>, vector<12x128xf32>
    %111 = arith.addf %97, %110 : vector<12x128xf32>
    %112 = vector.extract_strided_slice %96 {offsets = [0, 0], sizes = [12, 128], strides = [1, 1]} : vector<12x512xf32> to vector<12x128xf32>
    %cst_32 = arith.constant 0.000000e+00 : f32
    %113 = vector.broadcast %cst_32 : f32 to vector<1x128xf32>
    %114 = vector.extract_strided_slice %112 {offsets = [1, 0], sizes = [11, 128], strides = [1, 1]} : vector<12x128xf32> to vector<11x128xf32>
    %115 = tpu.concatenate %114, %113 in 0 : vector<11x128xf32>, vector<1x128xf32> -> vector<12x128xf32>
    %116 = tpu.iota {dimensions = array<i32: 0>} : vector<12x1xi32>
    %c3_i32_33 = arith.constant 3 : i32
    %117 = vector.broadcast %c3_i32_33 : i32 to vector<12x1xi32>
    %118 = arith.andi %116, %117 : vector<12x1xi32>
    %c3_i32_34 = arith.constant 3 : i32
    %119 = vector.broadcast %c3_i32_34 : i32 to vector<12x1xi32>
    %120 = arith.cmpi eq, %118, %119 : vector<12x1xi32>
    %cst_35 = arith.constant 0.000000e+00 : f32
    %121 = vector.shape_cast %120 : vector<12x1xi1> to vector<12x1xi1>
    %122 = vector.broadcast %121 : vector<12x1xi1> to vector<12x128xi1>
    %123 = vector.broadcast %cst_35 : f32 to vector<12x128xf32>
    %124 = arith.select %122, %123, %115 : vector<12x128xi1>, vector<12x128xf32>
    %125 = vector.extract_strided_slice %96 {offsets = [0, 256], sizes = [12, 128], strides = [1, 1]} : vector<12x512xf32> to vector<12x128xf32>
    %126 = arith.addf %124, %125 : vector<12x128xf32>
    %127 = tpu.concatenate %111, %126 in 1 : vector<12x128xf32>, vector<12x128xf32> -> vector<12x256xf32>
    %128 = vector.shape_cast %127 : vector<12x256xf32> to vector<24x128xf32>
    %129 = vector.broadcast %43 : vector<1x128xf32> to vector<24x128xf32>
    %130 = arith.addf %128, %129 : vector<24x128xf32>
    %cst_36 = arith.constant 2.000000e+00 : f32
    %131 = vector.broadcast %cst_36 : f32 to vector<24x128xf32>
    %132 = arith.mulf %131, %82 : vector<24x128xf32>
    %cst_37 = arith.constant 3.000000e-01 : f32
    %133 = vector.broadcast %cst_37 : f32 to vector<24x128xf32>
    %134 = arith.mulf %133, %130 : vector<24x128xf32>
    %135 = arith.addf %132, %134 : vector<24x128xf32>
    %c376 = arith.constant 376 : index
    %c0_38 = arith.constant 0 : index
    %136 = vector.load %arg2[%c376, %c0_38] : memref<640x512xf32, #tpu.memory_space<vmem>>, vector<8x128xf32>
    %137 = vector.extract_strided_slice %136 {offsets = [0, 0], sizes = [1, 128], strides = [1, 1]} : vector<8x128xf32> to vector<1x128xf32>
    %138 = vector.extract_strided_slice %136 {offsets = [1, 0], sizes = [1, 128], strides = [1, 1]} : vector<8x128xf32> to vector<1x128xf32>
    %139 = vector.extract_strided_slice %136 {offsets = [2, 0], sizes = [1, 128], strides = [1, 1]} : vector<8x128xf32> to vector<1x128xf32>
    %140 = vector.extract_strided_slice %136 {offsets = [3, 0], sizes = [1, 128], strides = [1, 1]} : vector<8x128xf32> to vector<1x128xf32>
    %141 = vector.extract_strided_slice %136 {offsets = [4, 0], sizes = [1, 128], strides = [1, 1]} : vector<8x128xf32> to vector<1x128xf32>
    %c256 = arith.constant 256 : index
    %c0_39 = arith.constant 0 : index
    %142 = vector.load %arg2[%c256, %c0_39] : memref<640x512xf32, #tpu.memory_space<vmem>>, vector<40x512xf32>
    %c296 = arith.constant 296 : index
    %c0_40 = arith.constant 0 : index
    %143 = vector.load %arg2[%c296, %c0_40] : memref<640x512xf32, #tpu.memory_space<vmem>>, vector<40x128xf32>
    %c336 = arith.constant 336 : index
    %c0_41 = arith.constant 0 : index
    %144 = vector.load %arg2[%c336, %c0_41] : memref<640x512xf32, #tpu.memory_space<vmem>>, vector<40x512xf32>
    %145 = vector.extract_strided_slice %135 {offsets = [0, 0], sizes = [24, 40], strides = [1, 1]} : vector<24x128xf32> to vector<24x40xf32>
    %cst_42 = arith.constant dense<0.000000e+00> : vector<24x512xf32>
    %146 = tpu.matmul %145, %142, %cst_42 {dimension_numbers = #tpu.dot_dimension_numbers<[1], [0], [0], [1], [0, 0, 1, 1], [], []>} : vector<24x40xf32>, vector<40x512xf32>, vector<24x512xf32> -> vector<24x512xf32>
    %147 = vector.extract_strided_slice %146 {offsets = [0, 128], sizes = [24, 128], strides = [1, 1]} : vector<24x512xf32> to vector<24x128xf32>
    %148 = vector.extract_strided_slice %146 {offsets = [0, 384], sizes = [24, 128], strides = [1, 1]} : vector<24x512xf32> to vector<24x128xf32>
    %cst_43 = arith.constant 0.000000e+00 : f32
    %149 = vector.broadcast %cst_43 : f32 to vector<1x128xf32>
    %150 = vector.extract_strided_slice %148 {offsets = [0, 0], sizes = [23, 128], strides = [1, 1]} : vector<24x128xf32> to vector<23x128xf32>
    %151 = tpu.concatenate %149, %150 in 0 : vector<1x128xf32>, vector<23x128xf32> -> vector<24x128xf32>
    %152 = tpu.iota {dimensions = array<i32: 0>} : vector<24x1xi32>
    %c7_i32 = arith.constant 7 : i32
    %153 = vector.broadcast %c7_i32 : i32 to vector<24x1xi32>
    %154 = arith.andi %152, %153 : vector<24x1xi32>
    %c0_i32_44 = arith.constant 0 : i32
    %155 = vector.broadcast %c0_i32_44 : i32 to vector<24x1xi32>
    %156 = arith.cmpi eq, %154, %155 : vector<24x1xi32>
    %cst_45 = arith.constant 0.000000e+00 : f32
    %157 = vector.shape_cast %156 : vector<24x1xi1> to vector<24x1xi1>
    %158 = vector.broadcast %157 : vector<24x1xi1> to vector<24x128xi1>
    %159 = vector.broadcast %cst_45 : f32 to vector<24x128xf32>
    %160 = arith.select %158, %159, %151 : vector<24x128xi1>, vector<24x128xf32>
    %161 = arith.addf %147, %160 : vector<24x128xf32>
    %162 = vector.extract_strided_slice %146 {offsets = [0, 0], sizes = [24, 128], strides = [1, 1]} : vector<24x512xf32> to vector<24x128xf32>
    %cst_46 = arith.constant 0.000000e+00 : f32
    %163 = vector.broadcast %cst_46 : f32 to vector<1x128xf32>
    %164 = vector.extract_strided_slice %162 {offsets = [1, 0], sizes = [23, 128], strides = [1, 1]} : vector<24x128xf32> to vector<23x128xf32>
    %165 = tpu.concatenate %164, %163 in 0 : vector<23x128xf32>, vector<1x128xf32> -> vector<24x128xf32>
    %166 = tpu.iota {dimensions = array<i32: 0>} : vector<24x1xi32>
    %c7_i32_47 = arith.constant 7 : i32
    %167 = vector.broadcast %c7_i32_47 : i32 to vector<24x1xi32>
    %168 = arith.andi %166, %167 : vector<24x1xi32>
    %c7_i32_48 = arith.constant 7 : i32
    %169 = vector.broadcast %c7_i32_48 : i32 to vector<24x1xi32>
    %170 = arith.cmpi eq, %168, %169 : vector<24x1xi32>
    %cst_49 = arith.constant 0.000000e+00 : f32
    %171 = vector.shape_cast %170 : vector<24x1xi1> to vector<24x1xi1>
    %172 = vector.broadcast %171 : vector<24x1xi1> to vector<24x128xi1>
    %173 = vector.broadcast %cst_49 : f32 to vector<24x128xf32>
    %174 = arith.select %172, %173, %165 : vector<24x128xi1>, vector<24x128xf32>
    %175 = vector.extract_strided_slice %146 {offsets = [0, 256], sizes = [24, 128], strides = [1, 1]} : vector<24x512xf32> to vector<24x128xf32>
    %176 = arith.addf %174, %175 : vector<24x128xf32>
    %177 = tpu.concatenate %161, %176 in 1 : vector<24x128xf32>, vector<24x128xf32> -> vector<24x256xf32>
    %178 = vector.shape_cast %177 : vector<24x256xf32> to vector<48x128xf32>
    %179 = vector.broadcast %137 : vector<1x128xf32> to vector<48x128xf32>
    %180 = arith.addf %178, %179 : vector<48x128xf32>
    %181 = vector.broadcast %138 : vector<1x128xf32> to vector<24x128xf32>
    %182 = arith.mulf %135, %181 : vector<24x128xf32>
    %183 = vector.broadcast %139 : vector<1x128xf32> to vector<24x128xf32>
    %184 = arith.addf %182, %183 : vector<24x128xf32>
    %cst_50 = arith.constant 0.000000e+00 : f32
    %185 = vector.broadcast %cst_50 : f32 to vector<24x128xf32>
    %186 = arith.maximumf %184, %185 : vector<24x128xf32>
    %187 = vector.extract_strided_slice %186 {offsets = [0, 0], sizes = [24, 40], strides = [1, 1]} : vector<24x128xf32> to vector<24x40xf32>
    %cst_51 = arith.constant dense<0.000000e+00> : vector<24x128xf32>
    %188 = tpu.matmul %187, %143, %cst_51 {dimension_numbers = #tpu.dot_dimension_numbers<[1], [0], [0], [1], [0, 0, 1, 1], [], []>} : vector<24x40xf32>, vector<40x128xf32>, vector<24x128xf32> -> vector<24x128xf32>
    %189 = vector.broadcast %140 : vector<1x128xf32> to vector<24x128xf32>
    %190 = arith.addf %188, %189 : vector<24x128xf32>
    %cst_52 = arith.constant 0.000000e+00 : f32
    %191 = vector.broadcast %cst_52 : f32 to vector<24x128xf32>
    %192 = arith.maximumf %190, %191 : vector<24x128xf32>
    %193 = vector.extract_strided_slice %192 {offsets = [0, 0], sizes = [24, 40], strides = [1, 1]} : vector<24x128xf32> to vector<24x40xf32>
    %cst_53 = arith.constant dense<0.000000e+00> : vector<24x512xf32>
    %194 = tpu.matmul %193, %144, %cst_53 {dimension_numbers = #tpu.dot_dimension_numbers<[1], [0], [0], [1], [0, 0, 1, 1], [], []>} : vector<24x40xf32>, vector<40x512xf32>, vector<24x512xf32> -> vector<24x512xf32>
    %195 = vector.extract_strided_slice %194 {offsets = [0, 128], sizes = [24, 128], strides = [1, 1]} : vector<24x512xf32> to vector<24x128xf32>
    %196 = vector.extract_strided_slice %194 {offsets = [0, 384], sizes = [24, 128], strides = [1, 1]} : vector<24x512xf32> to vector<24x128xf32>
    %cst_54 = arith.constant 0.000000e+00 : f32
    %197 = vector.broadcast %cst_54 : f32 to vector<1x128xf32>
    %198 = vector.extract_strided_slice %196 {offsets = [0, 0], sizes = [23, 128], strides = [1, 1]} : vector<24x128xf32> to vector<23x128xf32>
    %199 = tpu.concatenate %197, %198 in 0 : vector<1x128xf32>, vector<23x128xf32> -> vector<24x128xf32>
    %200 = tpu.iota {dimensions = array<i32: 0>} : vector<24x1xi32>
    %c7_i32_55 = arith.constant 7 : i32
    %201 = vector.broadcast %c7_i32_55 : i32 to vector<24x1xi32>
    %202 = arith.andi %200, %201 : vector<24x1xi32>
    %c0_i32_56 = arith.constant 0 : i32
    %203 = vector.broadcast %c0_i32_56 : i32 to vector<24x1xi32>
    %204 = arith.cmpi eq, %202, %203 : vector<24x1xi32>
    %cst_57 = arith.constant 0.000000e+00 : f32
    %205 = vector.shape_cast %204 : vector<24x1xi1> to vector<24x1xi1>
    %206 = vector.broadcast %205 : vector<24x1xi1> to vector<24x128xi1>
    %207 = vector.broadcast %cst_57 : f32 to vector<24x128xf32>
    %208 = arith.select %206, %207, %199 : vector<24x128xi1>, vector<24x128xf32>
    %209 = arith.addf %195, %208 : vector<24x128xf32>
    %210 = vector.extract_strided_slice %194 {offsets = [0, 0], sizes = [24, 128], strides = [1, 1]} : vector<24x512xf32> to vector<24x128xf32>
    %cst_58 = arith.constant 0.000000e+00 : f32
    %211 = vector.broadcast %cst_58 : f32 to vector<1x128xf32>
    %212 = vector.extract_strided_slice %210 {offsets = [1, 0], sizes = [23, 128], strides = [1, 1]} : vector<24x128xf32> to vector<23x128xf32>
    %213 = tpu.concatenate %212, %211 in 0 : vector<23x128xf32>, vector<1x128xf32> -> vector<24x128xf32>
    %214 = tpu.iota {dimensions = array<i32: 0>} : vector<24x1xi32>
    %c7_i32_59 = arith.constant 7 : i32
    %215 = vector.broadcast %c7_i32_59 : i32 to vector<24x1xi32>
    %216 = arith.andi %214, %215 : vector<24x1xi32>
    %c7_i32_60 = arith.constant 7 : i32
    %217 = vector.broadcast %c7_i32_60 : i32 to vector<24x1xi32>
    %218 = arith.cmpi eq, %216, %217 : vector<24x1xi32>
    %cst_61 = arith.constant 0.000000e+00 : f32
    %219 = vector.shape_cast %218 : vector<24x1xi1> to vector<24x1xi1>
    %220 = vector.broadcast %219 : vector<24x1xi1> to vector<24x128xi1>
    %221 = vector.broadcast %cst_61 : f32 to vector<24x128xf32>
    %222 = arith.select %220, %221, %213 : vector<24x128xi1>, vector<24x128xf32>
    %223 = vector.extract_strided_slice %194 {offsets = [0, 256], sizes = [24, 128], strides = [1, 1]} : vector<24x512xf32> to vector<24x128xf32>
    %224 = arith.addf %222, %223 : vector<24x128xf32>
    %225 = tpu.concatenate %209, %224 in 1 : vector<24x128xf32>, vector<24x128xf32> -> vector<24x256xf32>
    %226 = vector.shape_cast %225 : vector<24x256xf32> to vector<48x128xf32>
    %227 = vector.broadcast %141 : vector<1x128xf32> to vector<48x128xf32>
    %228 = arith.addf %226, %227 : vector<48x128xf32>
    %cst_62 = arith.constant 2.000000e+00 : f32
    %229 = vector.broadcast %cst_62 : f32 to vector<48x128xf32>
    %230 = arith.mulf %229, %180 : vector<48x128xf32>
    %cst_63 = arith.constant 3.000000e-01 : f32
    %231 = vector.broadcast %cst_63 : f32 to vector<48x128xf32>
    %232 = arith.mulf %231, %228 : vector<48x128xf32>
    %233 = arith.addf %230, %232 : vector<48x128xf32>
    %c480 = arith.constant 480 : index
    %c0_64 = arith.constant 0 : index
    %234 = vector.load %arg2[%c480, %c0_64] : memref<640x512xf32, #tpu.memory_space<vmem>>, vector<8x128xf32>
    %235 = vector.extract_strided_slice %234 {offsets = [0, 0], sizes = [1, 128], strides = [1, 1]} : vector<8x128xf32> to vector<1x128xf32>
    %236 = vector.extract_strided_slice %234 {offsets = [1, 0], sizes = [1, 128], strides = [1, 1]} : vector<8x128xf32> to vector<1x128xf32>
    %237 = vector.extract_strided_slice %234 {offsets = [2, 0], sizes = [1, 128], strides = [1, 1]} : vector<8x128xf32> to vector<1x128xf32>
    %238 = vector.extract_strided_slice %234 {offsets = [3, 0], sizes = [1, 128], strides = [1, 1]} : vector<8x128xf32> to vector<1x128xf32>
    %239 = vector.extract_strided_slice %234 {offsets = [4, 0], sizes = [1, 128], strides = [1, 1]} : vector<8x128xf32> to vector<1x128xf32>
    %c384 = arith.constant 384 : index
    %c0_65 = arith.constant 0 : index
    %240 = vector.load %arg2[%c384, %c0_65] : memref<640x512xf32, #tpu.memory_space<vmem>>, vector<32x512xf32>
    %c416 = arith.constant 416 : index
    %c0_66 = arith.constant 0 : index
    %241 = vector.load %arg2[%c416, %c0_66] : memref<640x512xf32, #tpu.memory_space<vmem>>, vector<32x128xf32>
    %c448 = arith.constant 448 : index
    %c0_67 = arith.constant 0 : index
    %242 = vector.load %arg2[%c448, %c0_67] : memref<640x512xf32, #tpu.memory_space<vmem>>, vector<32x512xf32>
    %243 = vector.extract_strided_slice %233 {offsets = [0, 0], sizes = [48, 32], strides = [1, 1]} : vector<48x128xf32> to vector<48x32xf32>
    %cst_68 = arith.constant dense<0.000000e+00> : vector<48x512xf32>
    %244 = tpu.matmul %243, %240, %cst_68 {dimension_numbers = #tpu.dot_dimension_numbers<[1], [0], [0], [1], [0, 0, 1, 1], [], []>} : vector<48x32xf32>, vector<32x512xf32>, vector<48x512xf32> -> vector<48x512xf32>
    %245 = vector.extract_strided_slice %244 {offsets = [0, 128], sizes = [48, 128], strides = [1, 1]} : vector<48x512xf32> to vector<48x128xf32>
    %246 = vector.extract_strided_slice %244 {offsets = [0, 384], sizes = [48, 128], strides = [1, 1]} : vector<48x512xf32> to vector<48x128xf32>
    %cst_69 = arith.constant 0.000000e+00 : f32
    %247 = vector.broadcast %cst_69 : f32 to vector<1x128xf32>
    %248 = vector.extract_strided_slice %246 {offsets = [0, 0], sizes = [47, 128], strides = [1, 1]} : vector<48x128xf32> to vector<47x128xf32>
    %249 = tpu.concatenate %247, %248 in 0 : vector<1x128xf32>, vector<47x128xf32> -> vector<48x128xf32>
    %250 = tpu.iota {dimensions = array<i32: 0>} : vector<48x1xi32>
    %c15_i32 = arith.constant 15 : i32
    %251 = vector.broadcast %c15_i32 : i32 to vector<48x1xi32>
    %252 = arith.andi %250, %251 : vector<48x1xi32>
    %c0_i32_70 = arith.constant 0 : i32
    %253 = vector.broadcast %c0_i32_70 : i32 to vector<48x1xi32>
    %254 = arith.cmpi eq, %252, %253 : vector<48x1xi32>
    %cst_71 = arith.constant 0.000000e+00 : f32
    %255 = vector.shape_cast %254 : vector<48x1xi1> to vector<48x1xi1>
    %256 = vector.broadcast %255 : vector<48x1xi1> to vector<48x128xi1>
    %257 = vector.broadcast %cst_71 : f32 to vector<48x128xf32>
    %258 = arith.select %256, %257, %249 : vector<48x128xi1>, vector<48x128xf32>
    %259 = arith.addf %245, %258 : vector<48x128xf32>
    %260 = vector.extract_strided_slice %244 {offsets = [0, 0], sizes = [48, 128], strides = [1, 1]} : vector<48x512xf32> to vector<48x128xf32>
    %cst_72 = arith.constant 0.000000e+00 : f32
    %261 = vector.broadcast %cst_72 : f32 to vector<1x128xf32>
    %262 = vector.extract_strided_slice %260 {offsets = [1, 0], sizes = [47, 128], strides = [1, 1]} : vector<48x128xf32> to vector<47x128xf32>
    %263 = tpu.concatenate %262, %261 in 0 : vector<47x128xf32>, vector<1x128xf32> -> vector<48x128xf32>
    %264 = tpu.iota {dimensions = array<i32: 0>} : vector<48x1xi32>
    %c15_i32_73 = arith.constant 15 : i32
    %265 = vector.broadcast %c15_i32_73 : i32 to vector<48x1xi32>
    %266 = arith.andi %264, %265 : vector<48x1xi32>
    %c15_i32_74 = arith.constant 15 : i32
    %267 = vector.broadcast %c15_i32_74 : i32 to vector<48x1xi32>
    %268 = arith.cmpi eq, %266, %267 : vector<48x1xi32>
    %cst_75 = arith.constant 0.000000e+00 : f32
    %269 = vector.shape_cast %268 : vector<48x1xi1> to vector<48x1xi1>
    %270 = vector.broadcast %269 : vector<48x1xi1> to vector<48x128xi1>
    %271 = vector.broadcast %cst_75 : f32 to vector<48x128xf32>
    %272 = arith.select %270, %271, %263 : vector<48x128xi1>, vector<48x128xf32>
    %273 = vector.extract_strided_slice %244 {offsets = [0, 256], sizes = [48, 128], strides = [1, 1]} : vector<48x512xf32> to vector<48x128xf32>
    %274 = arith.addf %272, %273 : vector<48x128xf32>
    %275 = tpu.concatenate %259, %274 in 1 : vector<48x128xf32>, vector<48x128xf32> -> vector<48x256xf32>
    %276 = vector.shape_cast %275 : vector<48x256xf32> to vector<96x128xf32>
    %277 = vector.broadcast %235 : vector<1x128xf32> to vector<96x128xf32>
    %278 = arith.addf %276, %277 : vector<96x128xf32>
    %279 = vector.broadcast %236 : vector<1x128xf32> to vector<48x128xf32>
    %280 = arith.mulf %233, %279 : vector<48x128xf32>
    %281 = vector.broadcast %237 : vector<1x128xf32> to vector<48x128xf32>
    %282 = arith.addf %280, %281 : vector<48x128xf32>
    %cst_76 = arith.constant 0.000000e+00 : f32
    %283 = vector.broadcast %cst_76 : f32 to vector<48x128xf32>
    %284 = arith.maximumf %282, %283 : vector<48x128xf32>
    %285 = vector.extract_strided_slice %284 {offsets = [0, 0], sizes = [48, 32], strides = [1, 1]} : vector<48x128xf32> to vector<48x32xf32>
    %cst_77 = arith.constant dense<0.000000e+00> : vector<48x128xf32>
    %286 = tpu.matmul %285, %241, %cst_77 {dimension_numbers = #tpu.dot_dimension_numbers<[1], [0], [0], [1], [0, 0, 1, 1], [], []>} : vector<48x32xf32>, vector<32x128xf32>, vector<48x128xf32> -> vector<48x128xf32>
    %287 = vector.broadcast %238 : vector<1x128xf32> to vector<48x128xf32>
    %288 = arith.addf %286, %287 : vector<48x128xf32>
    %cst_78 = arith.constant 0.000000e+00 : f32
    %289 = vector.broadcast %cst_78 : f32 to vector<48x128xf32>
    %290 = arith.maximumf %288, %289 : vector<48x128xf32>
    %291 = vector.extract_strided_slice %290 {offsets = [0, 0], sizes = [48, 32], strides = [1, 1]} : vector<48x128xf32> to vector<48x32xf32>
    %cst_79 = arith.constant dense<0.000000e+00> : vector<48x512xf32>
    %292 = tpu.matmul %291, %242, %cst_79 {dimension_numbers = #tpu.dot_dimension_numbers<[1], [0], [0], [1], [0, 0, 1, 1], [], []>} : vector<48x32xf32>, vector<32x512xf32>, vector<48x512xf32> -> vector<48x512xf32>
    %293 = vector.extract_strided_slice %292 {offsets = [0, 128], sizes = [48, 128], strides = [1, 1]} : vector<48x512xf32> to vector<48x128xf32>
    %294 = vector.extract_strided_slice %292 {offsets = [0, 384], sizes = [48, 128], strides = [1, 1]} : vector<48x512xf32> to vector<48x128xf32>
    %cst_80 = arith.constant 0.000000e+00 : f32
    %295 = vector.broadcast %cst_80 : f32 to vector<1x128xf32>
    %296 = vector.extract_strided_slice %294 {offsets = [0, 0], sizes = [47, 128], strides = [1, 1]} : vector<48x128xf32> to vector<47x128xf32>
    %297 = tpu.concatenate %295, %296 in 0 : vector<1x128xf32>, vector<47x128xf32> -> vector<48x128xf32>
    %298 = tpu.iota {dimensions = array<i32: 0>} : vector<48x1xi32>
    %c15_i32_81 = arith.constant 15 : i32
    %299 = vector.broadcast %c15_i32_81 : i32 to vector<48x1xi32>
    %300 = arith.andi %298, %299 : vector<48x1xi32>
    %c0_i32_82 = arith.constant 0 : i32
    %301 = vector.broadcast %c0_i32_82 : i32 to vector<48x1xi32>
    %302 = arith.cmpi eq, %300, %301 : vector<48x1xi32>
    %cst_83 = arith.constant 0.000000e+00 : f32
    %303 = vector.shape_cast %302 : vector<48x1xi1> to vector<48x1xi1>
    %304 = vector.broadcast %303 : vector<48x1xi1> to vector<48x128xi1>
    %305 = vector.broadcast %cst_83 : f32 to vector<48x128xf32>
    %306 = arith.select %304, %305, %297 : vector<48x128xi1>, vector<48x128xf32>
    %307 = arith.addf %293, %306 : vector<48x128xf32>
    %308 = vector.extract_strided_slice %292 {offsets = [0, 0], sizes = [48, 128], strides = [1, 1]} : vector<48x512xf32> to vector<48x128xf32>
    %cst_84 = arith.constant 0.000000e+00 : f32
    %309 = vector.broadcast %cst_84 : f32 to vector<1x128xf32>
    %310 = vector.extract_strided_slice %308 {offsets = [1, 0], sizes = [47, 128], strides = [1, 1]} : vector<48x128xf32> to vector<47x128xf32>
    %311 = tpu.concatenate %310, %309 in 0 : vector<47x128xf32>, vector<1x128xf32> -> vector<48x128xf32>
    %312 = tpu.iota {dimensions = array<i32: 0>} : vector<48x1xi32>
    %c15_i32_85 = arith.constant 15 : i32
    %313 = vector.broadcast %c15_i32_85 : i32 to vector<48x1xi32>
    %314 = arith.andi %312, %313 : vector<48x1xi32>
    %c15_i32_86 = arith.constant 15 : i32
    %315 = vector.broadcast %c15_i32_86 : i32 to vector<48x1xi32>
    %316 = arith.cmpi eq, %314, %315 : vector<48x1xi32>
    %cst_87 = arith.constant 0.000000e+00 : f32
    %317 = vector.shape_cast %316 : vector<48x1xi1> to vector<48x1xi1>
    %318 = vector.broadcast %317 : vector<48x1xi1> to vector<48x128xi1>
    %319 = vector.broadcast %cst_87 : f32 to vector<48x128xf32>
    %320 = arith.select %318, %319, %311 : vector<48x128xi1>, vector<48x128xf32>
    %321 = vector.extract_strided_slice %292 {offsets = [0, 256], sizes = [48, 128], strides = [1, 1]} : vector<48x512xf32> to vector<48x128xf32>
    %322 = arith.addf %320, %321 : vector<48x128xf32>
    %323 = tpu.concatenate %307, %322 in 1 : vector<48x128xf32>, vector<48x128xf32> -> vector<48x256xf32>
    %324 = vector.shape_cast %323 : vector<48x256xf32> to vector<96x128xf32>
    %325 = vector.broadcast %239 : vector<1x128xf32> to vector<96x128xf32>
    %326 = arith.addf %324, %325 : vector<96x128xf32>
    %cst_88 = arith.constant 2.000000e+00 : f32
    %327 = vector.broadcast %cst_88 : f32 to vector<96x128xf32>
    %328 = arith.mulf %327, %278 : vector<96x128xf32>
    %cst_89 = arith.constant 3.000000e-01 : f32
    %329 = vector.broadcast %cst_89 : f32 to vector<96x128xf32>
    %330 = arith.mulf %329, %326 : vector<96x128xf32>
    %331 = arith.addf %328, %330 : vector<96x128xf32>
    %c560 = arith.constant 560 : index
    %c0_90 = arith.constant 0 : index
    %332 = vector.load %arg2[%c560, %c0_90] : memref<640x512xf32, #tpu.memory_space<vmem>>, vector<8x128xf32>
    %333 = vector.extract_strided_slice %332 {offsets = [0, 0], sizes = [1, 128], strides = [1, 1]} : vector<8x128xf32> to vector<1x128xf32>
    %334 = vector.extract_strided_slice %332 {offsets = [1, 0], sizes = [1, 128], strides = [1, 1]} : vector<8x128xf32> to vector<1x128xf32>
    %335 = vector.extract_strided_slice %332 {offsets = [2, 0], sizes = [1, 128], strides = [1, 1]} : vector<8x128xf32> to vector<1x128xf32>
    %336 = vector.extract_strided_slice %332 {offsets = [3, 0], sizes = [1, 128], strides = [1, 1]} : vector<8x128xf32> to vector<1x128xf32>
    %337 = vector.extract_strided_slice %332 {offsets = [4, 0], sizes = [1, 128], strides = [1, 1]} : vector<8x128xf32> to vector<1x128xf32>
    %c488 = arith.constant 488 : index
    %c0_91 = arith.constant 0 : index
    %338 = vector.load %arg2[%c488, %c0_91] : memref<640x512xf32, #tpu.memory_space<vmem>>, vector<24x512xf32>
    %c512 = arith.constant 512 : index
    %c0_92 = arith.constant 0 : index
    %339 = vector.load %arg2[%c512, %c0_92] : memref<640x512xf32, #tpu.memory_space<vmem>>, vector<24x128xf32>
    %c536 = arith.constant 536 : index
    %c0_93 = arith.constant 0 : index
    %340 = vector.load %arg2[%c536, %c0_93] : memref<640x512xf32, #tpu.memory_space<vmem>>, vector<24x512xf32>
    %341 = vector.extract_strided_slice %331 {offsets = [0, 0], sizes = [96, 24], strides = [1, 1]} : vector<96x128xf32> to vector<96x24xf32>
    %cst_94 = arith.constant dense<0.000000e+00> : vector<96x512xf32>
    %342 = tpu.matmul %341, %338, %cst_94 {dimension_numbers = #tpu.dot_dimension_numbers<[1], [0], [0], [1], [0, 0, 1, 1], [], []>} : vector<96x24xf32>, vector<24x512xf32>, vector<96x512xf32> -> vector<96x512xf32>
    %343 = vector.extract_strided_slice %342 {offsets = [0, 128], sizes = [96, 128], strides = [1, 1]} : vector<96x512xf32> to vector<96x128xf32>
    %344 = vector.extract_strided_slice %342 {offsets = [0, 384], sizes = [96, 128], strides = [1, 1]} : vector<96x512xf32> to vector<96x128xf32>
    %cst_95 = arith.constant 0.000000e+00 : f32
    %345 = vector.broadcast %cst_95 : f32 to vector<1x128xf32>
    %346 = vector.extract_strided_slice %344 {offsets = [0, 0], sizes = [95, 128], strides = [1, 1]} : vector<96x128xf32> to vector<95x128xf32>
    %347 = tpu.concatenate %345, %346 in 0 : vector<1x128xf32>, vector<95x128xf32> -> vector<96x128xf32>
    %348 = tpu.iota {dimensions = array<i32: 0>} : vector<96x1xi32>
    %c31_i32 = arith.constant 31 : i32
    %349 = vector.broadcast %c31_i32 : i32 to vector<96x1xi32>
    %350 = arith.andi %348, %349 : vector<96x1xi32>
    %c0_i32_96 = arith.constant 0 : i32
    %351 = vector.broadcast %c0_i32_96 : i32 to vector<96x1xi32>
    %352 = arith.cmpi eq, %350, %351 : vector<96x1xi32>
    %cst_97 = arith.constant 0.000000e+00 : f32
    %353 = vector.shape_cast %352 : vector<96x1xi1> to vector<96x1xi1>
    %354 = vector.broadcast %353 : vector<96x1xi1> to vector<96x128xi1>
    %355 = vector.broadcast %cst_97 : f32 to vector<96x128xf32>
    %356 = arith.select %354, %355, %347 : vector<96x128xi1>, vector<96x128xf32>
    %357 = arith.addf %343, %356 : vector<96x128xf32>
    %358 = vector.extract_strided_slice %342 {offsets = [0, 0], sizes = [96, 128], strides = [1, 1]} : vector<96x512xf32> to vector<96x128xf32>
    %cst_98 = arith.constant 0.000000e+00 : f32
    %359 = vector.broadcast %cst_98 : f32 to vector<1x128xf32>
    %360 = vector.extract_strided_slice %358 {offsets = [1, 0], sizes = [95, 128], strides = [1, 1]} : vector<96x128xf32> to vector<95x128xf32>
    %361 = tpu.concatenate %360, %359 in 0 : vector<95x128xf32>, vector<1x128xf32> -> vector<96x128xf32>
    %362 = tpu.iota {dimensions = array<i32: 0>} : vector<96x1xi32>
    %c31_i32_99 = arith.constant 31 : i32
    %363 = vector.broadcast %c31_i32_99 : i32 to vector<96x1xi32>
    %364 = arith.andi %362, %363 : vector<96x1xi32>
    %c31_i32_100 = arith.constant 31 : i32
    %365 = vector.broadcast %c31_i32_100 : i32 to vector<96x1xi32>
    %366 = arith.cmpi eq, %364, %365 : vector<96x1xi32>
    %cst_101 = arith.constant 0.000000e+00 : f32
    %367 = vector.shape_cast %366 : vector<96x1xi1> to vector<96x1xi1>
    %368 = vector.broadcast %367 : vector<96x1xi1> to vector<96x128xi1>
    %369 = vector.broadcast %cst_101 : f32 to vector<96x128xf32>
    %370 = arith.select %368, %369, %361 : vector<96x128xi1>, vector<96x128xf32>
    %371 = vector.extract_strided_slice %342 {offsets = [0, 256], sizes = [96, 128], strides = [1, 1]} : vector<96x512xf32> to vector<96x128xf32>
    %372 = arith.addf %370, %371 : vector<96x128xf32>
    %373 = tpu.concatenate %357, %372 in 1 : vector<96x128xf32>, vector<96x128xf32> -> vector<96x256xf32>
    %374 = vector.shape_cast %373 : vector<96x256xf32> to vector<192x128xf32>
    %375 = vector.broadcast %333 : vector<1x128xf32> to vector<192x128xf32>
    %376 = arith.addf %374, %375 : vector<192x128xf32>
    %377 = vector.broadcast %334 : vector<1x128xf32> to vector<96x128xf32>
    %378 = arith.mulf %331, %377 : vector<96x128xf32>
    %379 = vector.broadcast %335 : vector<1x128xf32> to vector<96x128xf32>
    %380 = arith.addf %378, %379 : vector<96x128xf32>
    %cst_102 = arith.constant 0.000000e+00 : f32
    %381 = vector.broadcast %cst_102 : f32 to vector<96x128xf32>
    %382 = arith.maximumf %380, %381 : vector<96x128xf32>
    %383 = vector.extract_strided_slice %382 {offsets = [0, 0], sizes = [96, 24], strides = [1, 1]} : vector<96x128xf32> to vector<96x24xf32>
    %cst_103 = arith.constant dense<0.000000e+00> : vector<96x128xf32>
    %384 = tpu.matmul %383, %339, %cst_103 {dimension_numbers = #tpu.dot_dimension_numbers<[1], [0], [0], [1], [0, 0, 1, 1], [], []>} : vector<96x24xf32>, vector<24x128xf32>, vector<96x128xf32> -> vector<96x128xf32>
    %385 = vector.broadcast %336 : vector<1x128xf32> to vector<96x128xf32>
    %386 = arith.addf %384, %385 : vector<96x128xf32>
    %cst_104 = arith.constant 0.000000e+00 : f32
    %387 = vector.broadcast %cst_104 : f32 to vector<96x128xf32>
    %388 = arith.maximumf %386, %387 : vector<96x128xf32>
    %389 = vector.extract_strided_slice %388 {offsets = [0, 0], sizes = [96, 24], strides = [1, 1]} : vector<96x128xf32> to vector<96x24xf32>
    %cst_105 = arith.constant dense<0.000000e+00> : vector<96x512xf32>
    %390 = tpu.matmul %389, %340, %cst_105 {dimension_numbers = #tpu.dot_dimension_numbers<[1], [0], [0], [1], [0, 0, 1, 1], [], []>} : vector<96x24xf32>, vector<24x512xf32>, vector<96x512xf32> -> vector<96x512xf32>
    %391 = vector.extract_strided_slice %390 {offsets = [0, 128], sizes = [96, 128], strides = [1, 1]} : vector<96x512xf32> to vector<96x128xf32>
    %392 = vector.extract_strided_slice %390 {offsets = [0, 384], sizes = [96, 128], strides = [1, 1]} : vector<96x512xf32> to vector<96x128xf32>
    %cst_106 = arith.constant 0.000000e+00 : f32
    %393 = vector.broadcast %cst_106 : f32 to vector<1x128xf32>
    %394 = vector.extract_strided_slice %392 {offsets = [0, 0], sizes = [95, 128], strides = [1, 1]} : vector<96x128xf32> to vector<95x128xf32>
    %395 = tpu.concatenate %393, %394 in 0 : vector<1x128xf32>, vector<95x128xf32> -> vector<96x128xf32>
    %396 = tpu.iota {dimensions = array<i32: 0>} : vector<96x1xi32>
    %c31_i32_107 = arith.constant 31 : i32
    %397 = vector.broadcast %c31_i32_107 : i32 to vector<96x1xi32>
    %398 = arith.andi %396, %397 : vector<96x1xi32>
    %c0_i32_108 = arith.constant 0 : i32
    %399 = vector.broadcast %c0_i32_108 : i32 to vector<96x1xi32>
    %400 = arith.cmpi eq, %398, %399 : vector<96x1xi32>
    %cst_109 = arith.constant 0.000000e+00 : f32
    %401 = vector.shape_cast %400 : vector<96x1xi1> to vector<96x1xi1>
    %402 = vector.broadcast %401 : vector<96x1xi1> to vector<96x128xi1>
    %403 = vector.broadcast %cst_109 : f32 to vector<96x128xf32>
    %404 = arith.select %402, %403, %395 : vector<96x128xi1>, vector<96x128xf32>
    %405 = arith.addf %391, %404 : vector<96x128xf32>
    %406 = vector.extract_strided_slice %390 {offsets = [0, 0], sizes = [96, 128], strides = [1, 1]} : vector<96x512xf32> to vector<96x128xf32>
    %cst_110 = arith.constant 0.000000e+00 : f32
    %407 = vector.broadcast %cst_110 : f32 to vector<1x128xf32>
    %408 = vector.extract_strided_slice %406 {offsets = [1, 0], sizes = [95, 128], strides = [1, 1]} : vector<96x128xf32> to vector<95x128xf32>
    %409 = tpu.concatenate %408, %407 in 0 : vector<95x128xf32>, vector<1x128xf32> -> vector<96x128xf32>
    %410 = tpu.iota {dimensions = array<i32: 0>} : vector<96x1xi32>
    %c31_i32_111 = arith.constant 31 : i32
    %411 = vector.broadcast %c31_i32_111 : i32 to vector<96x1xi32>
    %412 = arith.andi %410, %411 : vector<96x1xi32>
    %c31_i32_112 = arith.constant 31 : i32
    %413 = vector.broadcast %c31_i32_112 : i32 to vector<96x1xi32>
    %414 = arith.cmpi eq, %412, %413 : vector<96x1xi32>
    %cst_113 = arith.constant 0.000000e+00 : f32
    %415 = vector.shape_cast %414 : vector<96x1xi1> to vector<96x1xi1>
    %416 = vector.broadcast %415 : vector<96x1xi1> to vector<96x128xi1>
    %417 = vector.broadcast %cst_113 : f32 to vector<96x128xf32>
    %418 = arith.select %416, %417, %409 : vector<96x128xi1>, vector<96x128xf32>
    %419 = vector.extract_strided_slice %390 {offsets = [0, 256], sizes = [96, 128], strides = [1, 1]} : vector<96x512xf32> to vector<96x128xf32>
    %420 = arith.addf %418, %419 : vector<96x128xf32>
    %421 = tpu.concatenate %405, %420 in 1 : vector<96x128xf32>, vector<96x128xf32> -> vector<96x256xf32>
    %422 = vector.shape_cast %421 : vector<96x256xf32> to vector<192x128xf32>
    %423 = vector.broadcast %337 : vector<1x128xf32> to vector<192x128xf32>
    %424 = arith.addf %422, %423 : vector<192x128xf32>
    %cst_114 = arith.constant 2.000000e+00 : f32
    %425 = vector.broadcast %cst_114 : f32 to vector<192x128xf32>
    %426 = arith.mulf %425, %376 : vector<192x128xf32>
    %cst_115 = arith.constant 3.000000e-01 : f32
    %427 = vector.broadcast %cst_115 : f32 to vector<192x128xf32>
    %428 = arith.mulf %427, %424 : vector<192x128xf32>
    %429 = arith.addf %426, %428 : vector<192x128xf32>
    %c616 = arith.constant 616 : index
    %c0_116 = arith.constant 0 : index
    %430 = vector.load %arg2[%c616, %c0_116] : memref<640x512xf32, #tpu.memory_space<vmem>>, vector<8x128xf32>
    %431 = vector.extract_strided_slice %430 {offsets = [0, 0], sizes = [1, 128], strides = [1, 1]} : vector<8x128xf32> to vector<1x128xf32>
    %432 = vector.extract_strided_slice %430 {offsets = [1, 0], sizes = [1, 128], strides = [1, 1]} : vector<8x128xf32> to vector<1x128xf32>
    %433 = vector.extract_strided_slice %430 {offsets = [2, 0], sizes = [1, 128], strides = [1, 1]} : vector<8x128xf32> to vector<1x128xf32>
    %434 = vector.extract_strided_slice %430 {offsets = [3, 0], sizes = [1, 128], strides = [1, 1]} : vector<8x128xf32> to vector<1x128xf32>
    %435 = vector.extract_strided_slice %430 {offsets = [4, 0], sizes = [1, 128], strides = [1, 1]} : vector<8x128xf32> to vector<1x128xf32>
    %c568 = arith.constant 568 : index
    %c0_117 = arith.constant 0 : index
    %436 = vector.load %arg2[%c568, %c0_117] : memref<640x512xf32, #tpu.memory_space<vmem>>, vector<16x512xf32>
    %c584 = arith.constant 584 : index
    %c0_118 = arith.constant 0 : index
    %437 = vector.load %arg2[%c584, %c0_118] : memref<640x512xf32, #tpu.memory_space<vmem>>, vector<16x128xf32>
    %c600 = arith.constant 600 : index
    %c0_119 = arith.constant 0 : index
    %438 = vector.load %arg2[%c600, %c0_119] : memref<640x512xf32, #tpu.memory_space<vmem>>, vector<16x512xf32>
    %439 = vector.extract_strided_slice %429 {offsets = [0, 0], sizes = [192, 16], strides = [1, 1]} : vector<192x128xf32> to vector<192x16xf32>
    %cst_120 = arith.constant dense<0.000000e+00> : vector<192x512xf32>
    %440 = tpu.matmul %439, %436, %cst_120 {dimension_numbers = #tpu.dot_dimension_numbers<[1], [0], [0], [1], [0, 0, 1, 1], [], []>} : vector<192x16xf32>, vector<16x512xf32>, vector<192x512xf32> -> vector<192x512xf32>
    %441 = vector.extract_strided_slice %440 {offsets = [0, 128], sizes = [192, 128], strides = [1, 1]} : vector<192x512xf32> to vector<192x128xf32>
    %442 = vector.extract_strided_slice %440 {offsets = [0, 384], sizes = [192, 128], strides = [1, 1]} : vector<192x512xf32> to vector<192x128xf32>
    %cst_121 = arith.constant 0.000000e+00 : f32
    %443 = vector.broadcast %cst_121 : f32 to vector<1x128xf32>
    %444 = vector.extract_strided_slice %442 {offsets = [0, 0], sizes = [191, 128], strides = [1, 1]} : vector<192x128xf32> to vector<191x128xf32>
    %445 = tpu.concatenate %443, %444 in 0 : vector<1x128xf32>, vector<191x128xf32> -> vector<192x128xf32>
    %446 = tpu.iota {dimensions = array<i32: 0>} : vector<192x1xi32>
    %c63_i32 = arith.constant 63 : i32
    %447 = vector.broadcast %c63_i32 : i32 to vector<192x1xi32>
    %448 = arith.andi %446, %447 : vector<192x1xi32>
    %c0_i32_122 = arith.constant 0 : i32
    %449 = vector.broadcast %c0_i32_122 : i32 to vector<192x1xi32>
    %450 = arith.cmpi eq, %448, %449 : vector<192x1xi32>
    %cst_123 = arith.constant 0.000000e+00 : f32
    %451 = vector.shape_cast %450 : vector<192x1xi1> to vector<192x1xi1>
    %452 = vector.broadcast %451 : vector<192x1xi1> to vector<192x128xi1>
    %453 = vector.broadcast %cst_123 : f32 to vector<192x128xf32>
    %454 = arith.select %452, %453, %445 : vector<192x128xi1>, vector<192x128xf32>
    %455 = arith.addf %441, %454 : vector<192x128xf32>
    %456 = vector.extract_strided_slice %440 {offsets = [0, 0], sizes = [192, 128], strides = [1, 1]} : vector<192x512xf32> to vector<192x128xf32>
    %cst_124 = arith.constant 0.000000e+00 : f32
    %457 = vector.broadcast %cst_124 : f32 to vector<1x128xf32>
    %458 = vector.extract_strided_slice %456 {offsets = [1, 0], sizes = [191, 128], strides = [1, 1]} : vector<192x128xf32> to vector<191x128xf32>
    %459 = tpu.concatenate %458, %457 in 0 : vector<191x128xf32>, vector<1x128xf32> -> vector<192x128xf32>
    %460 = tpu.iota {dimensions = array<i32: 0>} : vector<192x1xi32>
    %c63_i32_125 = arith.constant 63 : i32
    %461 = vector.broadcast %c63_i32_125 : i32 to vector<192x1xi32>
    %462 = arith.andi %460, %461 : vector<192x1xi32>
    %c63_i32_126 = arith.constant 63 : i32
    %463 = vector.broadcast %c63_i32_126 : i32 to vector<192x1xi32>
    %464 = arith.cmpi eq, %462, %463 : vector<192x1xi32>
    %cst_127 = arith.constant 0.000000e+00 : f32
    %465 = vector.shape_cast %464 : vector<192x1xi1> to vector<192x1xi1>
    %466 = vector.broadcast %465 : vector<192x1xi1> to vector<192x128xi1>
    %467 = vector.broadcast %cst_127 : f32 to vector<192x128xf32>
    %468 = arith.select %466, %467, %459 : vector<192x128xi1>, vector<192x128xf32>
    %469 = vector.extract_strided_slice %440 {offsets = [0, 256], sizes = [192, 128], strides = [1, 1]} : vector<192x512xf32> to vector<192x128xf32>
    %470 = arith.addf %468, %469 : vector<192x128xf32>
    %471 = tpu.concatenate %455, %470 in 1 : vector<192x128xf32>, vector<192x128xf32> -> vector<192x256xf32>
    %472 = vector.shape_cast %471 : vector<192x256xf32> to vector<384x128xf32>
    %473 = vector.broadcast %431 : vector<1x128xf32> to vector<384x128xf32>
    %474 = arith.addf %472, %473 : vector<384x128xf32>
    %475 = vector.broadcast %432 : vector<1x128xf32> to vector<192x128xf32>
    %476 = arith.mulf %429, %475 : vector<192x128xf32>
    %477 = vector.broadcast %433 : vector<1x128xf32> to vector<192x128xf32>
    %478 = arith.addf %476, %477 : vector<192x128xf32>
    %cst_128 = arith.constant 0.000000e+00 : f32
    %479 = vector.broadcast %cst_128 : f32 to vector<192x128xf32>
    %480 = arith.maximumf %478, %479 : vector<192x128xf32>
    %481 = vector.extract_strided_slice %480 {offsets = [0, 0], sizes = [192, 16], strides = [1, 1]} : vector<192x128xf32> to vector<192x16xf32>
    %cst_129 = arith.constant dense<0.000000e+00> : vector<192x128xf32>
    %482 = tpu.matmul %481, %437, %cst_129 {dimension_numbers = #tpu.dot_dimension_numbers<[1], [0], [0], [1], [0, 0, 1, 1], [], []>} : vector<192x16xf32>, vector<16x128xf32>, vector<192x128xf32> -> vector<192x128xf32>
    %483 = vector.broadcast %434 : vector<1x128xf32> to vector<192x128xf32>
    %484 = arith.addf %482, %483 : vector<192x128xf32>
    %cst_130 = arith.constant 0.000000e+00 : f32
    %485 = vector.broadcast %cst_130 : f32 to vector<192x128xf32>
    %486 = arith.maximumf %484, %485 : vector<192x128xf32>
    %487 = vector.extract_strided_slice %486 {offsets = [0, 0], sizes = [192, 16], strides = [1, 1]} : vector<192x128xf32> to vector<192x16xf32>
    %cst_131 = arith.constant dense<0.000000e+00> : vector<192x512xf32>
    %488 = tpu.matmul %487, %438, %cst_131 {dimension_numbers = #tpu.dot_dimension_numbers<[1], [0], [0], [1], [0, 0, 1, 1], [], []>} : vector<192x16xf32>, vector<16x512xf32>, vector<192x512xf32> -> vector<192x512xf32>
    %489 = vector.extract_strided_slice %488 {offsets = [0, 128], sizes = [192, 128], strides = [1, 1]} : vector<192x512xf32> to vector<192x128xf32>
    %490 = vector.extract_strided_slice %488 {offsets = [0, 384], sizes = [192, 128], strides = [1, 1]} : vector<192x512xf32> to vector<192x128xf32>
    %cst_132 = arith.constant 0.000000e+00 : f32
    %491 = vector.broadcast %cst_132 : f32 to vector<1x128xf32>
    %492 = vector.extract_strided_slice %490 {offsets = [0, 0], sizes = [191, 128], strides = [1, 1]} : vector<192x128xf32> to vector<191x128xf32>
    %493 = tpu.concatenate %491, %492 in 0 : vector<1x128xf32>, vector<191x128xf32> -> vector<192x128xf32>
    %494 = tpu.iota {dimensions = array<i32: 0>} : vector<192x1xi32>
    %c63_i32_133 = arith.constant 63 : i32
    %495 = vector.broadcast %c63_i32_133 : i32 to vector<192x1xi32>
    %496 = arith.andi %494, %495 : vector<192x1xi32>
    %c0_i32_134 = arith.constant 0 : i32
    %497 = vector.broadcast %c0_i32_134 : i32 to vector<192x1xi32>
    %498 = arith.cmpi eq, %496, %497 : vector<192x1xi32>
    %cst_135 = arith.constant 0.000000e+00 : f32
    %499 = vector.shape_cast %498 : vector<192x1xi1> to vector<192x1xi1>
    %500 = vector.broadcast %499 : vector<192x1xi1> to vector<192x128xi1>
    %501 = vector.broadcast %cst_135 : f32 to vector<192x128xf32>
    %502 = arith.select %500, %501, %493 : vector<192x128xi1>, vector<192x128xf32>
    %503 = arith.addf %489, %502 : vector<192x128xf32>
    %504 = vector.extract_strided_slice %488 {offsets = [0, 0], sizes = [192, 128], strides = [1, 1]} : vector<192x512xf32> to vector<192x128xf32>
    %cst_136 = arith.constant 0.000000e+00 : f32
    %505 = vector.broadcast %cst_136 : f32 to vector<1x128xf32>
    %506 = vector.extract_strided_slice %504 {offsets = [1, 0], sizes = [191, 128], strides = [1, 1]} : vector<192x128xf32> to vector<191x128xf32>
    %507 = tpu.concatenate %506, %505 in 0 : vector<191x128xf32>, vector<1x128xf32> -> vector<192x128xf32>
    %508 = tpu.iota {dimensions = array<i32: 0>} : vector<192x1xi32>
    %c63_i32_137 = arith.constant 63 : i32
    %509 = vector.broadcast %c63_i32_137 : i32 to vector<192x1xi32>
    %510 = arith.andi %508, %509 : vector<192x1xi32>
    %c63_i32_138 = arith.constant 63 : i32
    %511 = vector.broadcast %c63_i32_138 : i32 to vector<192x1xi32>
    %512 = arith.cmpi eq, %510, %511 : vector<192x1xi32>
    %cst_139 = arith.constant 0.000000e+00 : f32
    %513 = vector.shape_cast %512 : vector<192x1xi1> to vector<192x1xi1>
    %514 = vector.broadcast %513 : vector<192x1xi1> to vector<192x128xi1>
    %515 = vector.broadcast %cst_139 : f32 to vector<192x128xf32>
    %516 = arith.select %514, %515, %507 : vector<192x128xi1>, vector<192x128xf32>
    %517 = vector.extract_strided_slice %488 {offsets = [0, 256], sizes = [192, 128], strides = [1, 1]} : vector<192x512xf32> to vector<192x128xf32>
    %518 = arith.addf %516, %517 : vector<192x128xf32>
    %519 = tpu.concatenate %503, %518 in 1 : vector<192x128xf32>, vector<192x128xf32> -> vector<192x256xf32>
    %520 = vector.shape_cast %519 : vector<192x256xf32> to vector<384x128xf32>
    %521 = vector.broadcast %435 : vector<1x128xf32> to vector<384x128xf32>
    %522 = arith.addf %520, %521 : vector<384x128xf32>
    %cst_140 = arith.constant 2.000000e+00 : f32
    %523 = vector.broadcast %cst_140 : f32 to vector<384x128xf32>
    %524 = arith.mulf %523, %474 : vector<384x128xf32>
    %cst_141 = arith.constant 3.000000e-01 : f32
    %525 = vector.broadcast %cst_141 : f32 to vector<384x128xf32>
    %526 = arith.mulf %525, %522 : vector<384x128xf32>
    %527 = arith.addf %524, %526 : vector<384x128xf32>
    %c624 = arith.constant 624 : index
    %c0_142 = arith.constant 0 : index
    %528 = vector.load %arg2[%c624, %c0_142] : memref<640x512xf32, #tpu.memory_space<vmem>>, vector<8x512xf32>
    %c632 = arith.constant 632 : index
    %c0_143 = arith.constant 0 : index
    %529 = vector.load %arg2[%c632, %c0_143] : memref<640x512xf32, #tpu.memory_space<vmem>>, vector<1x128xf32>
    %530 = vector.extract_strided_slice %527 {offsets = [0, 0], sizes = [384, 8], strides = [1, 1]} : vector<384x128xf32> to vector<384x8xf32>
    %cst_144 = arith.constant dense<0.000000e+00> : vector<384x512xf32>
    %531 = tpu.matmul %530, %528, %cst_144 {dimension_numbers = #tpu.dot_dimension_numbers<[1], [0], [0], [1], [0, 0, 1, 1], [], []>} : vector<384x8xf32>, vector<8x512xf32>, vector<384x512xf32> -> vector<384x512xf32>
    %532 = vector.extract_strided_slice %531 {offsets = [0, 128], sizes = [384, 128], strides = [1, 1]} : vector<384x512xf32> to vector<384x128xf32>
    %533 = vector.extract_strided_slice %531 {offsets = [0, 384], sizes = [384, 128], strides = [1, 1]} : vector<384x512xf32> to vector<384x128xf32>
    %cst_145 = arith.constant 0.000000e+00 : f32
    %534 = vector.broadcast %cst_145 : f32 to vector<1x128xf32>
    %535 = vector.extract_strided_slice %533 {offsets = [0, 0], sizes = [383, 128], strides = [1, 1]} : vector<384x128xf32> to vector<383x128xf32>
    %536 = tpu.concatenate %534, %535 in 0 : vector<1x128xf32>, vector<383x128xf32> -> vector<384x128xf32>
    %537 = tpu.iota {dimensions = array<i32: 0>} : vector<384x1xi32>
    %c127_i32 = arith.constant 127 : i32
    %538 = vector.broadcast %c127_i32 : i32 to vector<384x1xi32>
    %539 = arith.andi %537, %538 : vector<384x1xi32>
    %c0_i32_146 = arith.constant 0 : i32
    %540 = vector.broadcast %c0_i32_146 : i32 to vector<384x1xi32>
    %541 = arith.cmpi eq, %539, %540 : vector<384x1xi32>
    %cst_147 = arith.constant 0.000000e+00 : f32
    %542 = vector.shape_cast %541 : vector<384x1xi1> to vector<384x1xi1>
    %543 = vector.broadcast %542 : vector<384x1xi1> to vector<384x128xi1>
    %544 = vector.broadcast %cst_147 : f32 to vector<384x128xf32>
    %545 = arith.select %543, %544, %536 : vector<384x128xi1>, vector<384x128xf32>
    %546 = arith.addf %532, %545 : vector<384x128xf32>
    %547 = vector.extract_strided_slice %531 {offsets = [0, 0], sizes = [384, 128], strides = [1, 1]} : vector<384x512xf32> to vector<384x128xf32>
    %cst_148 = arith.constant 0.000000e+00 : f32
    %548 = vector.broadcast %cst_148 : f32 to vector<1x128xf32>
    %549 = vector.extract_strided_slice %547 {offsets = [1, 0], sizes = [383, 128], strides = [1, 1]} : vector<384x128xf32> to vector<383x128xf32>
    %550 = tpu.concatenate %549, %548 in 0 : vector<383x128xf32>, vector<1x128xf32> -> vector<384x128xf32>
    %551 = tpu.iota {dimensions = array<i32: 0>} : vector<384x1xi32>
    %c127_i32_149 = arith.constant 127 : i32
    %552 = vector.broadcast %c127_i32_149 : i32 to vector<384x1xi32>
    %553 = arith.andi %551, %552 : vector<384x1xi32>
    %c127_i32_150 = arith.constant 127 : i32
    %554 = vector.broadcast %c127_i32_150 : i32 to vector<384x1xi32>
    %555 = arith.cmpi eq, %553, %554 : vector<384x1xi32>
    %cst_151 = arith.constant 0.000000e+00 : f32
    %556 = vector.shape_cast %555 : vector<384x1xi1> to vector<384x1xi1>
    %557 = vector.broadcast %556 : vector<384x1xi1> to vector<384x128xi1>
    %558 = vector.broadcast %cst_151 : f32 to vector<384x128xf32>
    %559 = arith.select %557, %558, %550 : vector<384x128xi1>, vector<384x128xf32>
    %560 = vector.extract_strided_slice %531 {offsets = [0, 256], sizes = [384, 128], strides = [1, 1]} : vector<384x512xf32> to vector<384x128xf32>
    %561 = arith.addf %559, %560 : vector<384x128xf32>
    %562 = tpu.concatenate %546, %561 in 1 : vector<384x128xf32>, vector<384x128xf32> -> vector<384x256xf32>
    %563 = vector.shape_cast %562 : vector<384x256xf32> to vector<768x128xf32>
    %564 = vector.broadcast %529 : vector<1x128xf32> to vector<768x128xf32>
    %565 = arith.addf %563, %564 : vector<768x128xf32>
    %566 = vector.extract_strided_slice %565 {offsets = [0, 0], sizes = [768, 16], strides = [1, 1]} : vector<768x128xf32> to vector<768x16xf32>
    %cst_152 = arith.constant dense<0xFF800000> : vector<768xf32>
    %567 = vector.multi_reduction <maximumf>, %566, %cst_152 [1] : vector<768x16xf32> to vector<768xf32>
    %568 = vector.shape_cast %567 : vector<768xf32> to vector<768x1xf32>
    %569 = vector.broadcast %568 : vector<768x1xf32> to vector<768x16xf32>
    %570 = arith.subf %566, %569 : vector<768x16xf32>
    %571 = math.exp %570 : vector<768x16xf32>
    %cst_153 = arith.constant dense<0.000000e+00> : vector<768xf32>
    %572 = vector.multi_reduction <add>, %571, %cst_153 [1] : vector<768x16xf32> to vector<768xf32>
    %573 = vector.shape_cast %572 : vector<768xf32> to vector<768x1xf32>
    %574 = math.log %573 : vector<768x1xf32>
    %575 = arith.addf %568, %574 : vector<768x1xf32>
    %576 = vector.broadcast %575 : vector<768x1xf32> to vector<768x16xf32>
    %577 = arith.subf %566, %576 : vector<768x16xf32>
    %578 = vector.extract_strided_slice %577 {offsets = [0, 0], sizes = [256, 16], strides = [1, 1]} : vector<768x16xf32> to vector<256x16xf32>
    %579 = tpu.transpose %578, [1, 0] : vector<256x16xf32> -> vector<16x256xf32>
    %c0_154 = arith.constant 0 : index
    %c0_155 = arith.constant 0 : index
    %c0_156 = arith.constant 0 : index
    %580 = vector.load %arg3[%c0_154, %c0_155, %c0_156] : memref<3x16x256xf32, #tpu.memory_space<vmem>>, vector<1x16x256xf32>
    %581 = vector.shape_cast %580 : vector<1x16x256xf32> to vector<16x256xf32>
    %582 = vector.shape_cast %579 : vector<16x256xf32> to vector<1x16x256xf32>
    tpu.vector_store %arg3[%c0_154, %c0_155, %c0_156], %582 {strides = array<i32>} : memref<3x16x256xf32, #tpu.memory_space<vmem>>, vector<1x16x256xf32>,
    %583 = vector.extract_strided_slice %577 {offsets = [256, 0], sizes = [256, 16], strides = [1, 1]} : vector<768x16xf32> to vector<256x16xf32>
    %584 = tpu.transpose %583, [1, 0] : vector<256x16xf32> -> vector<16x256xf32>
    %c1 = arith.constant 1 : index
    %c0_157 = arith.constant 0 : index
    %c0_158 = arith.constant 0 : index
    %585 = vector.load %arg3[%c1, %c0_157, %c0_158] : memref<3x16x256xf32, #tpu.memory_space<vmem>>, vector<1x16x256xf32>
    %586 = vector.shape_cast %585 : vector<1x16x256xf32> to vector<16x256xf32>
    %587 = vector.shape_cast %584 : vector<16x256xf32> to vector<1x16x256xf32>
    tpu.vector_store %arg3[%c1, %c0_157, %c0_158], %587 {strides = array<i32>} : memref<3x16x256xf32, #tpu.memory_space<vmem>>, vector<1x16x256xf32>,
    %588 = vector.extract_strided_slice %577 {offsets = [512, 0], sizes = [256, 16], strides = [1, 1]} : vector<768x16xf32> to vector<256x16xf32>
    %589 = tpu.transpose %588, [1, 0] : vector<256x16xf32> -> vector<16x256xf32>
    %c2 = arith.constant 2 : index
    %c0_159 = arith.constant 0 : index
    %c0_160 = arith.constant 0 : index
    %590 = vector.load %arg3[%c2, %c0_159, %c0_160] : memref<3x16x256xf32, #tpu.memory_space<vmem>>, vector<1x16x256xf32>
    %591 = vector.shape_cast %590 : vector<1x16x256xf32> to vector<16x256xf32>
    %592 = vector.shape_cast %589 : vector<16x256xf32> to vector<1x16x256xf32>
    tpu.vector_store %arg3[%c2, %c0_159, %c0_160], %592 {strides = array<i32>} : memref<3x16x256xf32, #tpu.memory_space<vmem>>, vector<1x16x256xf32>,
    return
  }
  func.func @transform_0(%arg0: i32) -> (i32, i32, i32) {
    %c0_i32 = arith.constant 0 : i32
    %c0_i32_0 = arith.constant 0 : i32
    %c0_i32_1 = arith.constant 0 : i32
    return %arg0, %c0_i32, %c0_i32_0 : i32, i32, i32
  }
  func.func @transform_1(%arg0: i32) -> (i32, i32) {
    %c0_i32 = arith.constant 0 : i32
    %c0_i32_0 = arith.constant 0 : i32
    %c0_i32_1 = arith.constant 0 : i32
    return %c0_i32, %c0_i32_0 : i32, i32
  }
  func.func @transform_2(%arg0: i32) -> (i32, i32, i32) {
    %c0_i32 = arith.constant 0 : i32
    %c0_i32_0 = arith.constant 0 : i32
    %c0_i32_1 = arith.constant 0 : i32
    return %arg0, %c0_i32, %c0_i32_0 : i32, i32, i32
  }
}

</mosaic_0001>

<bundles_post_ra>
// kernel: data_generator_text.1
= control target key start
LH: loop header
LB: loop body
LE: loop exit
PB: predicated region body
PF: predicated region fallthrough
CT: control target
= control target key end

     0   :  { %7 = vsyncpa [#allocation3], 0  ;;  %s11999_s9 = smov 0   ;;  %s18171_s0 = inlined_call_operand.vmem [shape: f32[2,3,128], index: 0, kind: input, shape index: {}]   ;;  %s18172_s1 = inlined_call_operand.hbm [shape: f32[640,512], index: 1, kind: input, shape index: {}]   ;;  %s18173_s2 = inlined_call_operand.vmem [shape: f32[6,16,256], index: 2, kind: output, shape index: {}]  }
   0x1 LB: > { %s102_s12 = sshll.u32 %s18172_s1, 4  ;;  %s12008_s13 = sadd.s32 4294967295, %s11977_s9   ;;  %s11977_s9 = sphi %s11999_s9, %s13_s9   ;;  %s103_s12 = int_to_ptr.hbm [resolvable:$true] %s102_s12 }
   0x2   : > { %p10880_p0 = scmp.ge.s32.totalorder %s11977_s9, 1  ;;  %p91_p1 = scmp.lt.s32.totalorder %s11977_s9, 3 }
   0x3   : > { %p11535_p2 = scmp.eq.s32.totalorder %s12008_s13, 0  ;;  %s11979_s14 = smov [#allocation2]  }
   0x4   : > { %p92_p3 = pnand %p10880_p0, %p91_p1  ;;  %s104_s15 = sshll.u32 %s11979_s14, 4  ;;  %s105_s15 = int_to_ptr.vmem [resolvable:$true] %s104_s15 }
   0x5   : > { %s11980_s16 = smov 512   ;;  %s11981_s17 = smov 32  }
   0x6   : > { %p11531_p4 = pneg %p92_p3  ;;  %127 = sbr.rel (%p92_p3) target bundleno = 3458 (0xd82), region = 28 }
   0x8   : > { %p11532_p5 = pnand %p11535_p2, %p11531_p4 }
   0xa   : > { %11534 = dma.hbm_to_vmem [thread:$0]  (!%p11532_p5), %s103_s12, 40960, %s105_s15, [#allocation3], %s11980_s16, %s11980_s16, %s11981_s17  }
   0xb   : > { %11972 = dma.done.wait (%p11535_p2), [#allocation3], 40960  }
   0xc   : > { %11974 = vsyncadd (%p11535_p2), [#allocation3], 4294926336  ;;  %p150_p6 = scmp.lt.s32.totalorder %s12008_s13, 1  ;;  %v187_v0 = vld [vmem:[#allocation2 + $0x120] sm:$0xff]  ;;  %v181_v11 = vld [vmem:[#allocation2 + $0x90] sm:$0xff]  ;;  %vm208_vm0 = vcmask 326656  }
   0xd   : > { %v186_v1 = vld [vmem:[#allocation2 + $0x100] sm:$0xff]  ;;  %345 = vmatpush.msra.mxu0 %v187_v0  ;;  %v177_v13 = vld [vmem:[#allocation2 + $0x70] sm:$0xff]  ;;  %263 = vmatpush.msra.mxu2 %v181_v11  ;;  %v180_v16 = vld [vmem:[#allocation2 + $0x88] sm:$0xff]  ;;  %vm305_vm1 = vcmask 1043458   ;;  %vm307_vm2 = vcmask 1045504   ;;  %vm299_vm3 = vcmask 1041408  }
   0xe   : > { %s151_s18 = scalar_select %p150_p6, %s12008_s13, 1  ;;  %v185_v2 = vld [vmem:[#allocation2 + $0xe0] sm:$0xff]  ;;  %v173_v18 = vld [vmem:[#allocation2 + $0x50] sm:$0xff]  ;;  %v176_v19 = vld [vmem:[#allocation2 + $0x68] sm:$0xff]  ;;  %243 = vmatpush.msra.mxu1 %v180_v16  ;;  %vm301_vm4 = vcmask 1045508   ;;  %vm309_vm5 = vcmask 1045506  }
   0xf   : > { %v12020_v4 = vld [vmem:[#allocation2 + $0x1e0] sm:$0xff]  ;;  %346 = vmatpush.msra.mxu0 %v186_v1  ;;  %264 = vmatpush.msra.mxu2 %v177_v13  ;;  %v182_v22 = vld [vmem:[#allocation2 + $0x98] sm:$0xff]  ;;  %v169_v23 = vld [vmem:[#allocation2 + $0x30] sm:$0xff]  ;;  %vm303_vm6 = vcmask 1043456   ;;  %vm641_vm7 = vcmask 1046528   ;;  %vm617_vm9 = vcmask 1040384  }
  0x10   : > { %s10885_s19 = sshll.u32 %s151_s18, 2  ;;  %v179_v5 = vld [vmem:[#allocation2 + $0x80] sm:$0xff]  ;;  %v325_v7 = vperm.slane %v12020_v4, 1  ;;  %v327_v8 = vperm.slane %v12020_v4, 2  ;;  %244 = vmatpush.msra.mxu1 %v176_v19  ;;  %v172_v24 = vld [vmem:[#allocation2 + $0x48] sm:$0xff]  ;;  %v178_v25 = vld [vmem:[#allocation2 + $0x78] sm:$0xff] }
  0x11   : > { %s153_s22 = scalar_lea.vmem %s18171_s0, %s10885_s19  ;;  %v175_v6 = vld [vmem:[#allocation2 + $0x60] sm:$0xff]  ;;  %223 = vmatpush.msra.mxu3 %v179_v5  ;;  %347 = vmatpush.msra.mxu0 %v185_v2  ;;  %v165_v26 = vld [vmem:[#allocation2 + $0x10] sm:$0xff]  ;;  %v168_v27 = vld [vmem:[#allocation2 + $0x28] sm:$0xff]  ;;  %v330_v52 = vperm.slane %v12020_v4, 3  ;;  %vm647_vm11 = vcmask 1042432   ;;  %s154_s23 = smul.u32 3, %s12008_s13 }
  0x12   : > { %v12018_v3 = vld [vmem:[%s153_s22] sm:$0x7]  ;;  %265 = vmatpush.msra.mxu2 %v173_v18  ;;  %v174_v28 = vld [vmem:[#allocation2 + $0x58] sm:$0xff]  ;;  %245 = vmatpush.msra.mxu1 %v172_v24  ;;  %v205_v29 = vld [vmem:[#allocation2 + $0x1c8] sm:$0xff] }
  0x13   : > { %v184_v9 = vld [vmem:[#allocation2 + $0xc0] sm:$0xff]  ;;  %v326_v12 = vmul.f32 %v325_v7, %v12018_v3  ;;  %224 = vmatpush.msra.mxu3 %v175_v6  ;;  %v164_v30 = vld [vmem:[#allocation2 + $0x8] sm:$0xff]  ;;  %v207_v31 = vld [vmem:[#allocation2 + $0x1d8] sm:$0xff]  ;;  %p155_p7 = scmp.lt.s32.totalorder %s154_s23, 5 }
  0x14   : > { %v171_v10 = vld [vmem:[#allocation2 + $0x40] sm:$0xff]  ;;  %348 = vmatpush.msra.mxu0 %v184_v9  ;;  %266 = vmatpush.msra.mxu2 %v169_v23  ;;  %v170_v32 = vld [vmem:[#allocation2 + $0x38] sm:$0xff]  ;;  %v201_v34 = vld [vmem:[#allocation2 + $0x1a8] sm:$0xff] }
  0x15   : > { %v183_v14 = vld [vmem:[#allocation2 + $0xa0] sm:$0xff]  ;;  %v328_v17 = vadd.f32 %v327_v8, %v326_v12  ;;  %225 = vmatpush.msra.mxu3 %v171_v10  ;;  %246 = vmatpush.msra.mxu1 %v168_v27  ;;  %v166_v35 = vld [vmem:[#allocation2 + $0x18] sm:$0xff]  ;;  %v206_v38 = vld [vmem:[#allocation2 + $0x1d0] sm:$0xff]  ;;  %s19321_s23 = smov (!%p155_p7, %s154_s23), 5 }
  0x16   : > { %v167_v15 = vld [vmem:[#allocation2 + $0x20] sm:$0xff]  ;;  %349 = vmatpush.msra.mxu0 %v183_v14  ;;  %267 = vmatpush.msra.mxu2 %v165_v26  ;;  %v203_v36 = vld [vmem:[#allocation2 + $0x1b8] sm:$0xff]  ;;  %v202_v39 = vld [vmem:[#allocation2 + $0x1b0] sm:$0xff]  ;;  %v11982_v26 = vmov 1966171168   ;;  %s11522_s24 = sshll.u32 %s19321_s23, 5 }
  0x17   : > { %v163_v20 = vld [vmem:[#allocation2] sm:$0xff]  ;;  %v329_v21 = vmax.f32 %v328_v17, 0.0  ;;  %226 = vmatpush.msra.mxu3 %v167_v15  ;;  %10890 = vmatmul.msk.f32.vlgmr.msra.gmra.mxu2 %vm208_vm0, %v12018_v3  ;;  %v197_v41 = vld [vmem:[#allocation2 + $0x188] sm:$0xff]  ;;  %v198_v42 = vld [vmem:[#allocation2 + $0x190] sm:$0xff]  ;;  %v315_v27 = vunpack.c.l.s4 %v11982_v26  ;;  %s18004_s27 = scalar_lea.vmem %s18173_s2, %s11522_s24 }
  0x18   : > { %v204_v33 = vld [vmem:[#allocation2 + $0x1c0] sm:$0xff]  ;;  %389 = vmatpush.msrb.mxu2 %v205_v29  ;;  %247 = vmatpush.msra.mxu1 %v164_v30  ;;  %v199_v43 = vld [vmem:[#allocation2 + $0x198] sm:$0xff]  ;;  %v193_v45 = vld [vmem:[#allocation2 + $0x168] sm:$0xff] }
  0x19   : > { %10892 = vmatmul.msk.f32.vlgmr.msra.gmra.mxu0 %vm208_vm0, %v329_v21  ;;  %227 = vmatpush.msra.mxu3 %v163_v20  ;;  %v200_v37 = vld [vmem:[#allocation2 + $0x1a0] sm:$0xff]  ;;  %v194_v46 = vld [vmem:[#allocation2 + $0x170] sm:$0xff]  ;;  %v195_v47 = vld [vmem:[#allocation2 + $0x178] sm:$0xff] }
  0x1a   : > { %10888 = vmatmul.msk.f32.vlgmr.msra.gmra.mxu3 %vm208_vm0, %v12018_v3  ;;  %429 = vmatpush.msrb.mxu0 %v207_v31  ;;  %v196_v40 = vld [vmem:[#allocation2 + $0x180] sm:$0xff]  ;;  %v189_v49 = vld [vmem:[#allocation2 + $0x148] sm:$0xff]  ;;  %v190_v50 = vld [vmem:[#allocation2 + $0x150] sm:$0xff] }
  0x1b   : > { %283 = vmatpush.msrb.mxu3 %v182_v22  ;;  %10889 = vmatmul.msk.f32.vlgmr.msra.gmra.mxu1 %vm208_vm0, %v12018_v3  ;;  %v192_v44 = vld [vmem:[#allocation2 + $0x160] sm:$0xff]  ;;  %v191_v51 = vld [vmem:[#allocation2 + $0x158] sm:$0xff]  ;;  %v490_v57 = vld [vmem:[#allocation2 + $0x290] sm:$0xff] }
  0x1c   : > { %369 = vmatpush.msrb.mxu1 %v204_v33  ;;  %390 = vmatpush.msrb.mxu2 %v201_v34  ;;  %v188_v48 = vld [vmem:[#allocation2 + $0x140] sm:$0xff]  ;;  %v491_v58 = vld [vmem:[#allocation2 + $0x298] sm:$0xff]  ;;  %v486_v60 = vld [vmem:[#allocation2 + $0x270] sm:$0xff] }
  0x1d   : > { %284 = vmatpush.msrb.mxu3 %v178_v25  ;;  %430 = vmatpush.msrb.mxu0 %v203_v36  ;;  %v488_v56 = vld [vmem:[#allocation2 + $0x280] sm:$0xff]  ;;  %v487_v61 = vld [vmem:[#allocation2 + $0x278] sm:$0xff]  ;;  %v482_v63 = vld [vmem:[#allocation2 + $0x250] sm:$0xff] }
  0x1e   : > { %370 = vmatpush.msrb.mxu1 %v200_v37  ;;  %391 = vmatpush.msrb.mxu2 %v197_v41  ;;  %v484_v59 = vld [vmem:[#allocation2 + $0x260] sm:$0xff]  ;;  %v483_v0 = vld [vmem:[#allocation2 + $0x258] sm:$0xff]  ;;  %v474_v8 = vld [vmem:[#allocation2 + $0x210] sm:$0xff] }
  0x1f   : > { %285 = vmatpush.msrb.mxu3 %v174_v28  ;;  %431 = vmatpush.msrb.mxu0 %v199_v43  ;;  %v480_v62 = vld [vmem:[#allocation2 + $0x240] sm:$0xff]  ;;  %v479_v5 = vld [vmem:[#allocation2 + $0x238] sm:$0xff]  ;;  %v489_v17 = vld [vmem:[#allocation2 + $0x288] sm:$0xff] }
  0x20   : > { %371 = vmatpush.msrb.mxu1 %v196_v40  ;;  %392 = vmatpush.msrb.mxu2 %v193_v45  ;;  %v476_v2 = vld [vmem:[#allocation2 + $0x220] sm:$0xff]  ;;  %v475_v9 = vld [vmem:[#allocation2 + $0x218] sm:$0xff]  ;;  %v485_v21 = vld [vmem:[#allocation2 + $0x268] sm:$0xff]  ;;  %v322_v40 = vperm.slane %v12020_v4, 0 }
  0x21   : > { %286 = vmatpush.msrb.mxu3 %v170_v32  ;;  %432 = vmatpush.msrb.mxu0 %v195_v47  ;;  %v496_v6 = vld [vmem:[#allocation2 + $0x320] sm:$0xff]  ;;  %v481_v22 = vld [vmem:[#allocation2 + $0x248] sm:$0xff]  ;;  %v316_v32 = vunpack.c.0.s8 %v315_v27 }
  0x22   : > { %372 = vmatpush.msrb.mxu1 %v192_v44  ;;  %393 = vmatpush.msrb.mxu2 %v189_v49  ;;  %v472_v7 = vld [vmem:[#allocation2 + $0x200] sm:$0xff]  ;;  %v477_v23 = vld [vmem:[#allocation2 + $0x228] sm:$0xff]  ;;  %v462_v49 = vperm.slane %v12020_v4, 4 }
  0x23   : > { %287 = vmatpush.msrb.mxu3 %v166_v35  ;;  %433 = vmatpush.msrb.mxu0 %v191_v51  ;;  %v495_v10 = vld [vmem:[#allocation2 + $0x300] sm:$0xff]  ;;  %v473_v30 = vld [vmem:[#allocation2 + $0x208] sm:$0xff] }
  0x24   : > { %10891 = vmatmul.msk.f32.vlgmr.msrb.gmra.mxu3 %vm208_vm0, %v12018_v3  ;;  %373 = vmatpush.msrb.mxu1 %v188_v48  ;;  %v478_v3 = vld [vmem:[#allocation2 + $0x230] sm:$0xff]  ;;  %v494_v11 = vld [vmem:[#allocation2 + $0x2e0] sm:$0xff]  ;;  %v498_v27 = vld [vmem:[#allocation2 + $0x348] sm:$0xff] }
  0x25   : > { %409 = vmatpush.msra.mxu3 %v206_v38  ;;  %534 = vmatpush.msra.mxu2 %v488_v56  ;;  %v493_v12 = vld [vmem:[#allocation2 + $0x2c0] sm:$0xff] }
  0x26   : > { %603 = vmatpush.msra.mxu0 %v491_v58  ;;  %714 = vmatpush.msra.mxu1 %v496_v6  ;;  %v492_v13 = vld [vmem:[#allocation2 + $0x2a0] sm:$0xff] }
  0x27   : > { %410 = vmatpush.msra.mxu3 %v202_v39  ;;  %535 = vmatpush.msra.mxu2 %v484_v59  ;;  %v509_v6 = vld [vmem:[#allocation2 + $0x3a0] sm:$0xff] }
  0x28   : > { %604 = vmatpush.msra.mxu0 %v487_v61  ;;  %715 = vmatpush.msra.mxu1 %v495_v10  ;;  %v497_v26 = vld [vmem:[#allocation2 + $0x340] sm:$0xff] }
  0x29   : > { %411 = vmatpush.msra.mxu3 %v198_v42  ;;  %536 = vmatpush.msra.mxu2 %v480_v62 }
  0x2a   : > { %605 = vmatpush.msra.mxu0 %v483_v0  ;;  %716 = vmatpush.msra.mxu1 %v494_v11 }
  0x2b   : > { %412 = vmatpush.msra.mxu3 %v194_v46  ;;  %537 = vmatpush.msra.mxu2 %v476_v2  ;;  %v513_v2 = vld [vmem:[#allocation2 + $0x3c0] sm:$0xff] }
  0x2c   : > { %606 = vmatpush.msra.mxu0 %v479_v5  ;;  %717 = vmatpush.msra.mxu1 %v493_v12  ;;  %v505_v12 = vld [vmem:[#allocation2 + $0x380] sm:$0xff] }
  0x2d   : > { %413 = vmatpush.msra.mxu3 %v190_v50  ;;  %538 = vmatpush.msra.mxu2 %v472_v7 }
  0x2e   : > { %607 = vmatpush.msra.mxu0 %v475_v9  ;;  %718 = vmatpush.msra.mxu1 %v492_v13  ;;  %v514_v13 = vld [vmem:[#allocation2 + $0x3c8] sm:$0xff] }
  0x2f   : > { %580 = vmatpush.msrb.mxu3 %v490_v57 }
  0x31   : > { %581 = vmatpush.msrb.mxu3 %v486_v60 }
  0x33   : > { %582 = vmatpush.msrb.mxu3 %v482_v63 }
  0x35   : > { %583 = vmatpush.msrb.mxu3 %v478_v3 }
  0x37   : > { %584 = vmatpush.msrb.mxu3 %v474_v8 }
  0x96   : > { %v351_v53 = vpop.f32.mrf.mxu0 }
  0x97   : > { %v352_v54 = vadd.f32 %v351_v53, %v330_v52 }
  0x98   : > { %v249_v14 = vpop.f32.mrf.mxu1 }
  0x99   : > { %v354_v55 = vmax.f32 %v352_v54, 0.0  ;;  %v296_v18 = vrot.slane %v249_v14, 6  ;;  %v515_v14 = vld [vmem:[#allocation2 + $0x3d0] sm:$0xff] }
  0x9a   : > { %v269_v15 = vpop.f32.mrf.mxu2 }
  0x9b   : > { %10893 = vmatmul.msk.f32.vlgmr.msrb.gmra.mxu1 %vm208_vm0, %v354_v55  ;;  %10894 = vmatmul.msk.f32.vlgmr.msrb.gmra.mxu2 %vm208_vm0, %v354_v55  ;;  %v297_v19 = vrot.slane %v269_v15, 4  ;;  %v516_v15 = vld [vmem:[#allocation2 + $0x3d8] sm:$0xff] }
  0x9c   : > { %10895 = vmatmul.msk.f32.vlgmr.msra.gmra.mxu3 %vm208_vm0, %v354_v55  ;;  %10896 = vmatmul.msk.f32.vlgmr.msrb.gmra.mxu0 %vm208_vm0, %v354_v55  ;;  %v12053_v55 = vld [vmem:[#allocation2 + $0x3e0] sm:$0xff] }
  0x9d   : > { %v229_v1 = vpop.f32.mrf.mxu3  ;;  %557 = vmatpush.msrb.mxu2 %v489_v17  ;;  %v688_v62 = vperm.slane %v12053_v55, 1  ;;  %768 = vmatpush.msra.mxu3 %v514_v13  ;;  %v511_v17 = vld [vmem:[#allocation2 + $0x3b0] sm:$0xff] }
  0x9e   : > { %v306_v24 = vsel %vm305_vm1, %v229_v1, %v296_v18  ;;  %v300_v28 = vsel %vm299_vm3, %v229_v1, %v296_v18  ;;  %v691_v1 = vperm.slane %v12053_v55, 2  ;;  %791 = vmatpush.msrb.mxu0 %v515_v14  ;;  %814 = vmatpush.msrb.mxu1 %v516_v15  ;;  %v512_v18 = vld [vmem:[#allocation2 + $0x3b8] sm:$0xff] }
  0x9f   : > { %558 = vmatpush.msrb.mxu2 %v485_v21  ;;  %v507_v21 = vld [vmem:[#allocation2 + $0x390] sm:$0xff] }
  0xa0   : > { %792 = vmatpush.msrb.mxu0 %v511_v17  ;;  %815 = vmatpush.msrb.mxu1 %v512_v18  ;;  %v911_v17 = vld [vmem:[#allocation2 + $0x4e0] sm:$0xff] }
  0xa1   : > { %559 = vmatpush.msrb.mxu2 %v481_v22  ;;  %v508_v22 = vld [vmem:[#allocation2 + $0x398] sm:$0xff]  ;;  %v910_v18 = vld [vmem:[#allocation2 + $0x4c0] sm:$0xff] }
  0xa2   : > { %793 = vmatpush.msrb.mxu0 %v507_v21  ;;  %816 = vmatpush.msrb.mxu1 %v508_v22  ;;  %v11983_v22 = vmov 1935823168  }
  0xa3   : > { %560 = vmatpush.msrb.mxu2 %v477_v23  ;;  %v502_v23 = vld [vmem:[#allocation2 + $0x368] sm:$0xff] }
  0xa5   : > { %561 = vmatpush.msrb.mxu2 %v473_v30  ;;  %v696_v30 = vperm.slane %v12053_v55, 3 }
  0xa7   : > { %v289_v16 = vpop.f32.mrf.mxu3 }
  0xa8   : > { %v298_v20 = vrot.slane %v289_v16, 2  ;;  %v510_v16 = vld [vmem:[#allocation2 + $0x3a8] sm:$0xff] }
  0xa9   : > { %769 = vmatpush.msra.mxu3 %v510_v16 }
  0xaa   : > { %v308_v25 = vsel %vm307_vm2, %v298_v20, %v297_v19  ;;  %v302_v29 = vsel %vm301_vm4, %v297_v19, %v298_v20  ;;  %v501_v19 = vld [vmem:[#allocation2 + $0x360] sm:$0xff]  ;;  %v506_v20 = vld [vmem:[#allocation2 + $0x388] sm:$0xff] }
  0xab   : > { %v310_v31 = vsel %vm309_vm5, %v306_v24, %v308_v25  ;;  %v304_v33 = vsel %vm303_vm6, %v300_v28, %v302_v29  ;;  %770 = vmatpush.msra.mxu3 %v506_v20  ;;  %v503_v24 = vld [vmem:[#allocation2 + $0x370] sm:$0xff]  ;;  %v504_v25 = vld [vmem:[#allocation2 + $0x378] sm:$0xff] }
  0xac   : > { %v311_v35 = vrot.slane %v310_v31, 2  ;;  %v317_v39 = vperm.slane %v304_v33, %v316_v32  ;;  %794 = vmatpush.msrb.mxu0 %v503_v24  ;;  %817 = vmatpush.msrb.mxu1 %v504_v25  ;;  %v499_v28 = vld [vmem:[#allocation2 + $0x350] sm:$0xff]  ;;  %v500_v29 = vld [vmem:[#allocation2 + $0x358] sm:$0xff] }
  0xad   : > { %771 = vmatpush.msra.mxu3 %v502_v23  ;;  %v673_v23 = vunpack.c.l.s4 %v11983_v22 }
  0xae   : > { %v321_v46 = vperm.slane %v311_v35, %v316_v32  ;;  %v323_v52 = vadd.f32 %v322_v40, %v317_v39  ;;  %795 = vmatpush.msrb.mxu0 %v499_v28  ;;  %818 = vmatpush.msrb.mxu1 %v500_v29 }
  0xaf   : > { %772 = vmatpush.msra.mxu3 %v498_v27 }
  0xb0   : > { %v324_v56 = vadd.f32 %v322_v40, %v321_v46  ;;  %v465_v59 = vmul.f32 2.0, %v323_v52  ;;  %v905_v40 = vld [vmem:[#allocation2 + $0x480] sm:$0xff]  ;;  %v903_v46 = vld [vmem:[#allocation2 + $0x470] sm:$0xff] }
  0xb1   : > { %v899_v52 = vld [vmem:[#allocation2 + $0x450] sm:$0xff] }
  0xb2   : > { %v466_v63 = vmul.f32 2.0, %v324_v56  ;;  %v894_v56 = vld [vmem:[#allocation2 + $0x428] sm:$0xff] }
 0x118   : > { %v375_v41 = vpop.f32.mrf.mxu1 }
 0x119   : > { %v435_v34 = vpop.f32.mrf.mxu0 }
 0x11a   : > { %v444_v42 = vrot.slane %v435_v34, 2 }
 0x11e   : > { %v395_v36 = vpop.f32.mrf.mxu2 }
 0x11f   : > { %v442_v37 = vrot.slane %v395_v36, 6  ;;  %v415_v38 = vpop.f32.mrf.mxu3 }
 0x120   : > { %v443_v43 = vrot.slane %v415_v38, 4 }
 0x121   : > { %v445_v44 = vsel %vm299_vm3, %v375_v41, %v442_v37  ;;  %v448_v45 = vsel %vm305_vm1, %v375_v41, %v442_v37  ;;  %v906_v41 = vld [vmem:[#allocation2 + $0x488] sm:$0xff] }
 0x122   : > { %v446_v47 = vsel %vm301_vm4, %v443_v43, %v444_v42  ;;  %v449_v48 = vsel %vm307_vm2, %v444_v42, %v443_v43  ;;  %v907_v42 = vld [vmem:[#allocation2 + $0x490] sm:$0xff]  ;;  %v908_v43 = vld [vmem:[#allocation2 + $0x498] sm:$0xff]  ;;  %vm1469_vm2 = vcmask 261120  }
 0x123   : > { %v447_v50 = vsel %vm303_vm6, %v445_v44, %v446_v47  ;;  %v450_v51 = vsel %vm309_vm5, %v448_v45, %v449_v48  ;;  %v901_v44 = vld [vmem:[#allocation2 + $0x460] sm:$0xff]  ;;  %v902_v45 = vld [vmem:[#allocation2 + $0x468] sm:$0xff]  ;;  %v904_v48 = vld [vmem:[#allocation2 + $0x478] sm:$0xff] }
 0x124   : > { %v451_v53 = vrot.slane %v450_v51, 2  ;;  %v457_v54 = vperm.slane %v447_v50, %v316_v32  ;;  %v897_v50 = vld [vmem:[#allocation2 + $0x440] sm:$0xff]  ;;  %v898_v51 = vld [vmem:[#allocation2 + $0x448] sm:$0xff] }
 0x126   : > { %v461_v57 = vperm.slane %v451_v53, %v316_v32  ;;  %v463_v58 = vadd.f32 %v462_v49, %v457_v54  ;;  %v900_v53 = vld [vmem:[#allocation2 + $0x458] sm:$0xff]  ;;  %v893_v54 = vld [vmem:[#allocation2 + $0x420] sm:$0xff] }
 0x128   : > { %v464_v60 = vadd.f32 %v462_v49, %v461_v57  ;;  %v467_v61 = vmul.f32 0.3, %v463_v58  ;;  %v624_v49 = vlaneseq  ;;  %v895_v57 = vld [vmem:[#allocation2 + $0x430] sm:$0xff] }
 0x12a   : > { %v468_v0 = vmul.f32 0.3, %v464_v60  ;;  %v469_v4 = vadd.f32 %v467_v61, %v465_v59  ;;  %v889_v60 = vld [vmem:[#allocation2 + $0x400] sm:$0xff]  ;;  %v896_v61 = vld [vmem:[#allocation2 + $0x438] sm:$0xff] }
 0x12c   : > { %10897 = vmatmul.msk.f32.vlgmr.msra.gmra.mxu2 %vm208_vm0, %v469_v4  ;;  %10901 = vmatmul.msk.f32.vlgmr.msrb.gmra.mxu3 %vm208_vm0, %v469_v4  ;;  %v689_v3 = vmul.f32 %v688_v62, %v469_v4  ;;  %v470_v5 = vadd.f32 %v468_v0, %v466_v63  ;;  %v12084_v63 = vshrl.u32 %v624_v49, 7  ;;  %v891_v0 = vld [vmem:[#allocation2 + $0x410] sm:$0xff] }
 0x12d   : > { %10903 = vmatmul.msk.f32.vlgmr.msra.gmra.mxu0 %vm208_vm0, %v469_v4  ;;  %745 = vmatpush.msra.mxu2 %v513_v2  ;;  %v913_v2 = vld [vmem:[#allocation2 + $0x520] sm:$0xff] }
 0x12e   : > { %v692_v7 = vadd.f32 %v691_v1, %v689_v3  ;;  %v690_v9 = vmul.f32 %v688_v62, %v470_v5  ;;  %980 = vmatpush.msrb.mxu3 %v906_v41  ;;  %1006 = vmatpush.msra.mxu0 %v907_v42  ;;  %v890_v62 = vld [vmem:[#allocation2 + $0x408] sm:$0xff]  ;;  %18464 = vst [vmem:[#allocation5_spill] sm:$0xff] %v12084_v63  ;;  %v912_v3 = vld [vmem:[#allocation2 + $0x500] sm:$0xff]  ;;  %v12102_v20 = vadd.s32 8, %v12084_v63 }
 0x12f   : > { %746 = vmatpush.msra.mxu2 %v509_v6  ;;  %v627_v6 = vand.u32 3, %v12084_v63 }
 0x130   : > { %v694_v8 = vmax.f32 %v692_v7, 0.0  ;;  %v693_v10 = vadd.f32 %v691_v1, %v690_v9  ;;  %981 = vmatpush.msrb.mxu3 %v902_v45  ;;  %1007 = vmatpush.msra.mxu0 %v903_v46 }
 0x131   : > { %747 = vmatpush.msra.mxu2 %v505_v12  ;;  %vm12090_vm8 = vcmp.eq.s32.totalorder %v627_v6, 3  ;;  %vm12097_vm10 = vcmp.eq.s32.totalorder %v627_v6, 0 }
 0x132   : > { %10905 = vmatmul.msk.f32.vlgmr.msra.gmra.mxu1 %vm208_vm0, %v694_v8  ;;  %v695_v11 = vmax.f32 %v693_v10, 0.0  ;;  %982 = vmatpush.msrb.mxu3 %v898_v51 }
 0x133   : > { %748 = vmatpush.msra.mxu2 %v501_v19  ;;  %1032 = vmatpush.msra.mxu1 %v908_v43  ;;  %v684_v43 = vperm.slane %v12053_v55, 0 }
 0x134   : > { %10898 = vmatmul.msk.f32.gmra.mxu2 %vm208_vm0, %v470_v5  ;;  %10902 = vmatmul.msk.f32.gmra.mxu3 %vm208_vm0, %v470_v5 }
 0x135   : > { %10904 = vmatmul.msk.f32.gmra.mxu0 %vm208_vm0, %v470_v5  ;;  %749 = vmatpush.msra.mxu2 %v497_v26 }
 0x136   : > { %1033 = vmatpush.msra.mxu1 %v904_v48  ;;  %1008 = vmatpush.msra.mxu0 %v899_v52 }
 0x137   : > { %983 = vmatpush.msrb.mxu3 %v894_v56 }
 0x138   : > { %1034 = vmatpush.msra.mxu1 %v900_v53  ;;  %1009 = vmatpush.msra.mxu0 %v895_v57  ;;  %v875_v57 = vperm.slane %v12053_v55, 4 }
 0x139   : > { %984 = vmatpush.msrb.mxu3 %v890_v62 }
 0x13a   : > { %10906 = vmatmul.msk.f32.gmra.mxu1 %vm208_vm0, %v695_v11  ;;  %1010 = vmatpush.msra.mxu0 %v891_v0 }
 0x13b   : > { %1035 = vmatpush.msra.mxu1 %v896_v61 }
 0x13c   : > { %10899 = vmatmul.msk.f32.vlgmr.msrb.gmra.mxu2 %vm208_vm0, %v469_v4  ;;  %v892_v4 = vld [vmem:[#allocation2 + $0x418] sm:$0xff] }
 0x13d   : > { %954 = vmatpush.msrb.mxu2 %v905_v40  ;;  %1036 = vmatpush.msra.mxu1 %v892_v4 }
 0x13f   : > { %955 = vmatpush.msrb.mxu2 %v901_v44 }
 0x141   : > { %956 = vmatpush.msrb.mxu2 %v897_v50 }
 0x143   : > { %957 = vmatpush.msrb.mxu2 %v893_v54  ;;  %v923_v54 = vld [vmem:[#allocation2 + $0x588] sm:$0xff] }
 0x144   : > { %10900 = vmatmul.msk.f32.gmra.mxu2 %vm208_vm0, %v470_v5 }
 0x145   : > { %958 = vmatpush.msrb.mxu2 %v889_v60 }
 0x1aa   : > { %v12080_v47 = vpop.f32.mrf.mxu0 }
 0x1ab   : > { %v618_v8 = vrot.slane %v12080_v47, 7 }
 0x1ad   : > { %v623_v15 = vsel %vm617_vm9, 0.0, %v618_v8 }
 0x1ae   : > { %v635_v21 = vsel %vm12097_vm10, 0.0, %v623_v15 }
 0x1af   : > { %v720_v31 = vpop.f32.mrf.mxu1  ;;  %v540_v37 = vpop.f32.mrf.mxu2 }
 0x1b0   : > { %v721_v32 = vadd.f32 %v720_v31, %v696_v30  ;;  %v586_v58 = vpop.f32.mrf.mxu3  ;;  %v642_v5 = vrot.slane %v540_v37, 1  ;;  %v628_v31 = vand.u32 3, %v12102_v20 }
 0x1b2   : > { %v726_v33 = vmax.f32 %v721_v32, 0.0  ;;  %v612_v7 = vpop.f32.mrf.mxu0  ;;  %v12108_v32 = vunpack.c.0.s8 %v673_v23  ;;  %vm12115_vm12 = vcmp.eq.s32.totalorder %v628_v31, 3  ;;  %vm12127_vm13 = vcmp.eq.s32.totalorder %v628_v31, 0 }
 0x1b4   : > { %10907 = vmatmul.msk.f32.vlgmr.msra.gmra.mxu2 %vm208_vm0, %v726_v33  ;;  %10909 = vmatmul.msk.f32.vlgmr.msra.gmra.mxu3 %vm208_vm0, %v726_v33 }
 0x1b5   : > { %10911 = vmatmul.msk.f32.vlgmr.msrb.gmra.mxu0 %vm208_vm0, %v726_v33  ;;  %10913 = vmatmul.msk.f32.vlgmr.msrb.gmra.mxu1 %vm208_vm0, %v726_v33 }
 0x1b6   : > { %1192 = vmatpush.msra.mxu2 %v913_v2 }
 0x1b7   : > { %v723_v34 = vpop.f32.mrf.mxu1  ;;  %v12076_v38 = vpop.f32.mrf.mxu2 }
 0x1b8   : > { %v724_v35 = vadd.f32 %v723_v34, %v696_v30  ;;  %v643_v1 = vrot.slane %v12076_v38, 1  ;;  %1193 = vmatpush.msra.mxu2 %v912_v3  ;;  %v589_v12 = vpop.f32.mrf.mxu3  ;;  %v909_v38 = vld [vmem:[#allocation2 + $0x4a0] sm:$0xff] }
 0x1ba   : > { %v727_v36 = vmax.f32 %v724_v35, 0.0  ;;  %v644_v9 = vsel %vm641_vm7, %v642_v5, %v643_v1  ;;  %1194 = vmatpush.msra.mxu2 %v911_v17  ;;  %v648_v45 = vsel %vm647_vm11, %v643_v1, 0.0 }
 0x1bb   : > { %v655_v13 = vsel %vm12090_vm8, 0.0, %v644_v9 }
 0x1bc   : > { %10908 = vmatmul.msk.f32.gmra.mxu2 %vm208_vm0, %v727_v36  ;;  %10910 = vmatmul.msk.f32.gmra.mxu3 %vm208_vm0, %v727_v36  ;;  %v657_v19 = vadd.f32 %v655_v13, %v586_v58  ;;  %v656_v58 = vsel %vm12115_vm12, 0.0, %v648_v45  ;;  %v930_v45 = vld [vmem:[#allocation2 + $0x5c0] sm:$0xff] }
 0x1bd   : > { %10912 = vmatmul.msk.f32.gmra.mxu0 %vm208_vm0, %v727_v36  ;;  %10914 = vmatmul.msk.f32.gmra.mxu1 %vm208_vm0, %v727_v36  ;;  %v658_v55 = vadd.f32 %v656_v58, %v589_v12  ;;  %v918_v58 = vld [vmem:[#allocation2 + $0x560] sm:$0xff] }
 0x1be   : > { %1195 = vmatpush.msra.mxu2 %v910_v18  ;;  %v663_v28 = vrot.slane %v657_v19, 4  ;;  %1230 = vmatpush.msra.mxu3 %v930_v45 }
 0x1bf   : > { %v12078_v39 = vpop.f32.mrf.mxu2  ;;  %v664_v19 = vrot.slane %v658_v55, 4 }
 0x1c0   : > { %v637_v25 = vadd.f32 %v635_v21, %v12078_v39  ;;  %v619_v39 = vrot.slane %v612_v7, 7  ;;  %1196 = vmatpush.msra.mxu2 %v909_v38 }
 0x1c2   : > { %v665_v34 = vsel %vm303_vm6, %v637_v25, %v663_v28  ;;  %v666_v49 = vsel %vm303_vm6, %v663_v28, %v637_v25  ;;  %v620_v53 = vsel %vm617_vm9, %v618_v8, %v619_v39  ;;  %v12153_v28 = vld [vmem:[#allocation2 + $0x5e0] sm:$0xff] }
 0x1c3   : > { %v675_v46 = vperm.slane %v665_v34, %v12108_v32  ;;  %v667_v0 = vrot.slane %v666_v49, 4  ;;  %v636_v8 = vsel %vm12127_vm13, 0.0, %v620_v53  ;;  %v1160_v31 = vperm.slane %v12153_v28, 1  ;;  %v931_v49 = vld [vmem:[#allocation2 + $0x5c8] sm:$0xff]  ;;  %v928_v53 = vld [vmem:[#allocation2 + $0x5b0] sm:$0xff] }
 0x1c4   : > { %1256 = vmatpush.msrb.mxu0 %v931_v49 }
 0x1c5   : > { %v685_v4 = vadd.f32 %v684_v43, %v675_v46  ;;  %v679_v10 = vperm.slane %v667_v0, %v12108_v32  ;;  %v926_v46 = vld [vmem:[#allocation2 + $0x5a0] sm:$0xff] }
 0x1c6   : > { %1231 = vmatpush.msra.mxu3 %v926_v46  ;;  %v914_v0 = vld [vmem:[#allocation2 + $0x540] sm:$0xff] }
 0x1c7   : > { %v12082_v59 = vpop.f32.mrf.mxu2  ;;  %v686_v12 = vadd.f32 %v684_v43, %v679_v10 }
 0x1c8   : > { %v638_v15 = vadd.f32 %v636_v8, %v12082_v59 }
 0x1ca   : > { %v668_v22 = vsel %vm303_vm6, %v638_v15, %v664_v19 }
 0x1cb   : > { %v683_v25 = vperm.slane %v668_v22, %v12108_v32  ;;  %v1446_v22 = vld [vmem:[#allocation2 + $0x668] sm:$0xff] }
 0x232   : > { %v820_v14 = vpop.f32.mrf.mxu1  ;;  %v797_v24 = vpop.f32.mrf.mxu0 }
 0x233   : > { %v828_v26 = vrot.slane %v820_v14, 7 }
 0x235   : > { %v833_v35 = vsel %vm617_vm9, 0.0, %v828_v26 }
 0x236   : > { %v834_v47 = vsel %vm12097_vm10, 0.0, %v833_v35 }
 0x237   : > { %v751_v11 = vpop.f32.mrf.mxu2  ;;  %v774_v33 = vpop.f32.mrf.mxu3 }
 0x238   : > { %v840_v29 = vrot.slane %v751_v11, 1  ;;  %v836_v50 = vadd.f32 %v834_v47, %v774_v33  ;;  %v879_v11 = vmul.f32 2.0, %v685_v4  ;;  %v922_v47 = vld [vmem:[#allocation2 + $0x580] sm:$0xff]  ;;  %v915_v4 = vld [vmem:[#allocation2 + $0x548] sm:$0xff] }
 0x239   : > { %1232 = vmatpush.msra.mxu3 %v922_v47 }
 0x23a   : > { %v823_v40 = vpop.f32.mrf.mxu1  ;;  %v800_v56 = vpop.f32.mrf.mxu0 }
 0x23b   : > { %v829_v51 = vrot.slane %v823_v40, 7  ;;  %1233 = vmatpush.msra.mxu3 %v918_v58 }
 0x23d   : > { %v830_v3 = vsel %vm617_vm9, %v828_v26, %v829_v51  ;;  %v929_v51 = vld [vmem:[#allocation2 + $0x5b8] sm:$0xff]  ;;  %1234 = vmatpush.msra.mxu3 %v914_v0 }
 0x23e   : > { %v835_v13 = vsel %vm12127_vm13, 0.0, %v830_v3 }
 0x23f   : > { %v754_v27 = vpop.f32.mrf.mxu2  ;;  %v777_v6 = vpop.f32.mrf.mxu3 }
 0x240   : > { %v841_v30 = vrot.slane %v754_v27, 1  ;;  %v837_v16 = vadd.f32 %v835_v13, %v777_v6 }
 0x242   : > { %v842_v36 = vsel %vm641_vm7, %v840_v29, %v841_v30  ;;  %v845_v37 = vsel %vm647_vm11, %v841_v30, 0.0  ;;  %v687_v29 = vadd.f32 %v684_v43, %v683_v25  ;;  %v1437_v25 = vld [vmem:[#allocation2 + $0x620] sm:$0xff] }
 0x243   : > { %v846_v41 = vsel %vm12090_vm8, 0.0, %v842_v36  ;;  %v847_v48 = vsel %vm12115_vm12, 0.0, %v845_v37  ;;  %v1164_v36 = vperm.slane %v12153_v28, 2  ;;  %vm2337_vm12 = vcmask 195584  }
 0x244   : > { %v848_v44 = vadd.f32 %v846_v41, %v797_v24  ;;  %v849_v60 = vadd.f32 %v847_v48, %v800_v56  ;;  %v880_v24 = vmul.f32 2.0, %v686_v12  ;;  %v881_v33 = vmul.f32 2.0, %v687_v29  ;;  %v933_v48 = vld [vmem:[#allocation2 + $0x5d8] sm:$0xff]  ;;  %v924_v56 = vld [vmem:[#allocation2 + $0x590] sm:$0xff] }
 0x245   : > { %v1444_v29 = vld [vmem:[#allocation2 + $0x658] sm:$0xff] }
 0x246   : > { %v854_v52 = vrot.slane %v848_v44, 4  ;;  %v855_v9 = vrot.slane %v849_v60, 4  ;;  %v919_v60 = vld [vmem:[#allocation2 + $0x568] sm:$0xff] }
 0x248   : > { %v856_v61 = vsel %vm303_vm6, %v836_v50, %v854_v52  ;;  %v857_v62 = vsel %vm303_vm6, %v854_v52, %v836_v50  ;;  %v859_v21 = vsel %vm303_vm6, %v837_v16, %v855_v9  ;;  %v932_v50 = vld [vmem:[#allocation2 + $0x5d0] sm:$0xff]  ;;  %v927_v52 = vld [vmem:[#allocation2 + $0x5a8] sm:$0xff] }
 0x249   : > { %v858_v1 = vrot.slane %v857_v62, 4  ;;  %v866_v2 = vperm.slane %v856_v61, %v12108_v32  ;;  %v874_v23 = vperm.slane %v859_v21, %v12108_v32  ;;  %1282 = vmatpush.msrb.mxu1 %v932_v50  ;;  %1257 = vmatpush.msrb.mxu0 %v927_v52  ;;  %v920_v61 = vld [vmem:[#allocation2 + $0x570] sm:$0xff]  ;;  %v921_v62 = vld [vmem:[#allocation2 + $0x578] sm:$0xff] }
 0x24b   : > { %v870_v5 = vperm.slane %v858_v1, %v12108_v32  ;;  %v876_v7 = vadd.f32 %v875_v57, %v866_v2  ;;  %v878_v26 = vadd.f32 %v875_v57, %v874_v23  ;;  %1283 = vmatpush.msrb.mxu1 %v928_v53  ;;  %1258 = vmatpush.msrb.mxu0 %v923_v54  ;;  %v916_v1 = vld [vmem:[#allocation2 + $0x550] sm:$0xff]  ;;  %v917_v2 = vld [vmem:[#allocation2 + $0x558] sm:$0xff] }
 0x24c   : > { %v1447_v23 = vld [vmem:[#allocation2 + $0x670] sm:$0xff] }
 0x24d   : > { %v882_v14 = vmul.f32 0.3, %v876_v7  ;;  %v877_v18 = vadd.f32 %v875_v57, %v870_v5  ;;  %v884_v30 = vmul.f32 0.3, %v878_v26  ;;  %v925_v57 = vld [vmem:[#allocation2 + $0x598] sm:$0xff]  ;;  %1284 = vmatpush.msrb.mxu1 %v924_v56  ;;  %1259 = vmatpush.msrb.mxu0 %v919_v60  ;;  %v1171_v7 = vperm.slane %v12153_v28, 3 }
 0x24e   : > { %v1442_v26 = vld [vmem:[#allocation2 + $0x648] sm:$0xff]  ;;  %v12276_v56 = vadd.s32 16, %v12084_v63 }
 0x24f   : > { %v885_v17 = vadd.f32 %v882_v14, %v879_v11  ;;  %v883_v59 = vmul.f32 0.3, %v877_v18  ;;  %v887_v34 = vadd.f32 %v884_v30, %v881_v33  ;;  %1285 = vmatpush.msrb.mxu1 %v920_v61  ;;  %1260 = vmatpush.msrb.mxu0 %v915_v4  ;;  %v1445_v18 = vld [vmem:[#allocation2 + $0x660] sm:$0xff]  ;;  %v1438_v30 = vld [vmem:[#allocation2 + $0x628] sm:$0xff]  ;;  %v1440_v33 = vld [vmem:[#allocation2 + $0x638] sm:$0xff] }
 0x251   : > { %10915 = vmatmul.msk.f32.vlgmr.msrb.gmra.mxu2 %vm208_vm0, %v885_v17  ;;  %10918 = vmatmul.msk.f32.vlgmr.msrb.gmra.mxu3 %vm208_vm0, %v885_v17  ;;  %v886_v27 = vadd.f32 %v883_v59, %v880_v24  ;;  %v1161_v35 = vmul.f32 %v1160_v31, %v885_v17  ;;  %v1163_v42 = vmul.f32 %v1160_v31, %v887_v34  ;;  %v1448_v59 = vld [vmem:[#allocation2 + $0x678] sm:$0xff]  ;;  %v1441_v24 = vld [vmem:[#allocation2 + $0x640] sm:$0xff] }
 0x252   : > { %10921 = vmatmul.msk.f32.vlgmr.msra.gmra.mxu0 %vm208_vm0, %v885_v17  ;;  %10924 = vmatmul.msk.f32.vlgmr.msra.gmra.mxu1 %vm208_vm0, %v885_v17 }
 0x253   : > { %v1165_v37 = vadd.f32 %v1164_v36, %v1161_v35  ;;  %v1162_v39 = vmul.f32 %v1160_v31, %v886_v27  ;;  %v1167_v43 = vadd.f32 %v1164_v36, %v1163_v42  ;;  %1308 = vmatpush.msrb.mxu2 %v933_v48  ;;  %1286 = vmatpush.msrb.mxu1 %v916_v1  ;;  %v1439_v31 = vld [vmem:[#allocation2 + $0x630] sm:$0xff] }
 0x254   : > { %1500 = vmatpush.msrb.mxu3 %v1445_v18  ;;  %1535 = vmatpush.msra.mxu0 %v1446_v22  ;;  %v12244_v18 = vperm.slane %v12153_v28, 0 }
 0x255   : > { %v1168_v38 = vmax.f32 %v1165_v37, 0.0  ;;  %v1166_v40 = vadd.f32 %v1164_v36, %v1162_v39  ;;  %v1170_v44 = vmax.f32 %v1167_v43, 0.0  ;;  %1309 = vmatpush.msrb.mxu2 %v929_v51  ;;  %1570 = vmatpush.msra.mxu1 %v1447_v23  ;;  %v1433_v36 = vld [vmem:[#allocation2 + $0x600] sm:$0xff]  ;;  %v1434_v37 = vld [vmem:[#allocation2 + $0x608] sm:$0xff]  ;;  %v1436_v39 = vld [vmem:[#allocation2 + $0x618] sm:$0xff]  ;;  %v1060_v43 = vand.u32 7, %v12084_v63 }
 0x256   : > { %1501 = vmatpush.msrb.mxu3 %v1441_v24  ;;  %1536 = vmatpush.msra.mxu0 %v1442_v26 }
 0x257   : > { %v1169_v41 = vmax.f32 %v1166_v40, 0.0  ;;  %1310 = vmatpush.msrb.mxu2 %v925_v57  ;;  %vm12202_vm14 = vcmp.eq.s32.totalorder %v1060_v43, 7  ;;  %vm12215_vm15 = vcmp.eq.s32.totalorder %v1060_v43, 0 }
 0x258   : > { %1502 = vmatpush.msrb.mxu3 %v1437_v25  ;;  %1537 = vmatpush.msra.mxu0 %v1438_v30 }
 0x259   : > { %10916 = vmatmul.msk.f32.gmra.mxu2 %vm208_vm0, %v886_v27  ;;  %10919 = vmatmul.msk.f32.gmra.mxu3 %vm208_vm0, %v886_v27 }
 0x25a   : > { %10922 = vmatmul.msk.f32.gmra.mxu0 %vm208_vm0, %v886_v27  ;;  %10925 = vmatmul.msk.f32.gmra.mxu1 %vm208_vm0, %v886_v27  ;;  %v1443_v27 = vld [vmem:[#allocation2 + $0x650] sm:$0xff] }
 0x25b   : > { %1311 = vmatpush.msrb.mxu2 %v921_v62  ;;  %1571 = vmatpush.msra.mxu1 %v1443_v27 }
 0x25c   : > { %1503 = vmatpush.msrb.mxu3 %v1433_v36  ;;  %1538 = vmatpush.msra.mxu0 %v1434_v37 }
 0x25d   : > { %1312 = vmatpush.msrb.mxu2 %v917_v2  ;;  %1572 = vmatpush.msra.mxu1 %v1439_v31 }
 0x261   : > { %10917 = vmatmul.msk.f32.gmra.mxu2 %vm208_vm0, %v887_v34  ;;  %10920 = vmatmul.msk.f32.gmra.mxu3 %vm208_vm0, %v887_v34 }
 0x262   : > { %10923 = vmatmul.msk.f32.gmra.mxu0 %vm208_vm0, %v887_v34  ;;  %10926 = vmatmul.msk.f32.gmra.mxu1 %vm208_vm0, %v887_v34 }
 0x269   : > { %10927 = vmatmul.msk.f32.vlgmr.msra.gmra.mxu2 %vm208_vm0, %v1168_v38  ;;  %v1435_v38 = vld [vmem:[#allocation2 + $0x610] sm:$0xff] }
 0x26a   : > { %1605 = vmatpush.msra.mxu2 %v1448_v59  ;;  %1573 = vmatpush.msra.mxu1 %v1435_v38 }
 0x26c   : > { %1606 = vmatpush.msra.mxu2 %v1444_v29 }
 0x26e   : > { %1607 = vmatpush.msra.mxu2 %v1440_v33 }
 0x270   : > { %1608 = vmatpush.msra.mxu2 %v1436_v39 }
 0x271   : > { %10928 = vmatmul.msk.f32.gmra.mxu2 %vm208_vm0, %v1169_v41 }
 0x279   : > { %10929 = vmatmul.msk.f32.gmra.mxu2 %vm208_vm0, %v1170_v44 }
 0x2cf   : > { %v12189_v19 = vpop.f32.mrf.mxu1  ;;  %v1012_v12 = vpop.f32.mrf.mxu0 }
 0x2d0   : > { %v1050_v50 = vrot.slane %v12189_v19, 7 }
 0x2d2   : > { %v1058_v54 = vsel %vm617_vm9, 0.0, %v1050_v50 }
 0x2d3   : > { %v1072_v4 = vsel %vm12215_vm15, 0.0, %v1058_v54 }
 0x2d4   : > { %v12168_v3 = vpop.f32.mrf.mxu2  ;;  %v12187_v17 = vpop.f32.mrf.mxu3 }
 0x2d5   : > { %v1081_v42 = vrot.slane %v12168_v3, 1  ;;  %v1075_v2 = vadd.f32 %v1072_v4, %v12187_v17 }
 0x2d7   : > { %v12193_v34 = vpop.f32.mrf.mxu1  ;;  %v12197_v40 = vpop.f32.mrf.mxu0 }
 0x2d8   : > { %v1051_v30 = vrot.slane %v12193_v34, 7 }
 0x2dc   : > { %v12170_v5 = vpop.f32.mrf.mxu2  ;;  %v12191_v21 = vpop.f32.mrf.mxu3 }
 0x2dd   : > { %v1082_v41 = vrot.slane %v12170_v5, 1 }
 0x2df   : > { %v1083_v45 = vsel %vm641_vm7, %v1081_v42, %v1082_v41  ;;  %v12207_v47 = vpop.f32.mrf.mxu1  ;;  %v12212_v53 = vpop.f32.mrf.mxu0 }
 0x2e0   : > { %v1099_v49 = vsel %vm12202_vm14, 0.0, %v1083_v45 }
 0x2e1   : > { %v1102_v52 = vadd.f32 %v1099_v49, %v1012_v12 }
 0x2e3   : > { %v1111_v62 = vrot.slane %v1102_v52, 4 }
 0x2e4   : > { %v12172_v6 = vpop.f32.mrf.mxu2  ;;  %v12195_v35 = vpop.f32.mrf.mxu3 }
 0x2e5   : > { %v1084_v3 = vrot.slane %v12172_v6, 1  ;;  %v1115_v25 = vsel %vm303_vm6, %v1111_v62, %v1075_v2 }
 0x2e6   : > { %v1116_v37 = vrot.slane %v1115_v25, 4 }
 0x2e7   : > { %v1085_v17 = vsel %vm641_vm7, %v1082_v41, %v1084_v3 }
 0x2ec   : > { %v1198_v55 = vpop.f32.mrf.mxu2 }
 0x2ed   : > { %v1199_v8 = vadd.f32 %v1198_v55, %v1171_v7 }
 0x2ef   : > { %v1207_v9 = vmax.f32 %v1199_v8, 0.0 }
 0x2f1   : > { %10930 = vmatmul.msk.f32.vlgmr.msra.gmra.mxu3 %vm208_vm0, %v1207_v9  ;;  %10933 = vmatmul.msk.f32.vlgmr.msrb.gmra.mxu0 %vm208_vm0, %v1207_v9 }
 0x2f2   : > { %10936 = vmatmul.msk.f32.vlgmr.msrb.gmra.mxu1 %vm208_vm0, %v1207_v9  ;;  %10939 = vmatmul.msk.f32.vlgmr.msrb.gmra.mxu2 %vm208_vm0, %v1207_v9  ;;  %v1114_v9 = vsel %vm303_vm6, %v1075_v2, %v1111_v62 }
 0x2f3   : > { %11523 = vmatpush.msra.mxu3 %v1448_v59  ;;  %v1132_v22 = vperm.slane %v1114_v9, %v12108_v32 }
 0x2f4   : > { %v1201_v10 = vpop.f32.mrf.mxu2 }
 0x2f5   : > { %v1202_v11 = vadd.f32 %v1201_v10, %v1171_v7  ;;  %11524 = vmatpush.msra.mxu3 %v1444_v29  ;;  %v1061_v10 = vand.u32 7, %v12102_v20 }
 0x2f7   : > { %v1208_v13 = vmax.f32 %v1202_v11, 0.0  ;;  %11525 = vmatpush.msra.mxu3 %v1440_v33  ;;  %vm12263_vm1 = vcmp.eq.s32.totalorder %v1061_v10, 0 }
 0x2f9   : > { %10931 = vmatmul.msk.f32.gmra.mxu3 %vm208_vm0, %v1208_v13  ;;  %10934 = vmatmul.msk.f32.gmra.mxu0 %vm208_vm0, %v1208_v13 }
 0x2fa   : > { %10937 = vmatmul.msk.f32.gmra.mxu1 %vm208_vm0, %v1208_v13  ;;  %10940 = vmatmul.msk.f32.gmra.mxu2 %vm208_vm0, %v1208_v13  ;;  %v12234_v13 = vperm.slane %v12153_v28, 4 }
 0x2fb   : > { %11526 = vmatpush.msra.mxu3 %v1436_v39  ;;  %v1154_v39 = vadd.f32 %v12244_v18, %v1132_v22 }
 0x2fc   : > { %v1204_v14 = vpop.f32.mrf.mxu2 }
 0x2fd   : > { %v1205_v15 = vadd.f32 %v1204_v14, %v1171_v7  ;;  %v1414_v54 = vmul.f32 2.0, %v1154_v39 }
 0x2ff   : > { %v1209_v16 = vmax.f32 %v1205_v15, 0.0 }
 0x301   : > { %10932 = vmatmul.msk.f32.gmra.mxu3 %vm208_vm0, %v1209_v16  ;;  %10935 = vmatmul.msk.f32.gmra.mxu0 %vm208_vm0, %v1209_v16 }
 0x302   : > { %10938 = vmatmul.msk.f32.gmra.mxu1 %vm208_vm0, %v1209_v16  ;;  %10941 = vmatmul.msk.f32.gmra.mxu2 %vm208_vm0, %v1209_v16  ;;  %vm12236_vm0 = vcmp.eq.s32.totalorder %v1061_v10, 7 }
 0x303   : > { %v1100_v27 = vsel %vm12236_vm0, 0.0, %v1085_v17 }
 0x304   : > { %v1103_v43 = vadd.f32 %v1100_v27, %v12197_v40 }
 0x36e   : > { %v1262_v11 = vpop.f32.mrf.mxu0 }
 0x36f   : > { %v1288_v0 = vpop.f32.mrf.mxu1 }
 0x374   : > { %v1236_v46 = vpop.f32.mrf.mxu3 }
 0x375   : > { %v1314_v48 = vpop.f32.mrf.mxu2  ;;  %v1344_v58 = vrot.slane %v1236_v46, 1 }
 0x376   : > { %v1326_v51 = vrot.slane %v1314_v48, 7  ;;  %v1052_v48 = vsel %vm617_vm9, %v1050_v50, %v1051_v30  ;;  %v1265_v52 = vpop.f32.mrf.mxu0 }
 0x377   : > { %v1291_v31 = vpop.f32.mrf.mxu1 }
 0x378   : > { %v1334_v60 = vsel %vm617_vm9, 0.0, %v1326_v51 }
 0x379   : > { %v1335_v5 = vsel %vm12215_vm15, 0.0, %v1334_v60 }
 0x37a   : > { %v1338_v14 = vadd.f32 %v1335_v5, %v1262_v11 }
 0x37c   : > { %v1239_v57 = vpop.f32.mrf.mxu3 }
 0x37d   : > { %v1345_v61 = vrot.slane %v1239_v57, 1  ;;  %v12229_v8 = vpop.f32.mrf.mxu2  ;;  %v1112_v57 = vrot.slane %v1103_v43, 4 }
 0x37e   : > { %v1327_v19 = vrot.slane %v12229_v8, 7 }
 0x37f   : > { %v1346_v1 = vsel %vm641_vm7, %v1344_v58, %v1345_v61  ;;  %v1073_v58 = vsel %vm12263_vm1, 0.0, %v1052_v48 }
 0x380   : > { %v1353_v7 = vsel %vm12202_vm14, 0.0, %v1346_v1  ;;  %v1328_v33 = vsel %vm617_vm9, %v1326_v51, %v1327_v19  ;;  %v1136_v51 = vperm.slane %v1116_v37, %v12108_v32  ;;  %v1076_v50 = vadd.f32 %v1073_v58, %v12191_v21 }
 0x381   : > { %v1356_v55 = vadd.f32 %v1353_v7, %v1288_v0  ;;  %v1336_v45 = vsel %vm12263_vm1, 0.0, %v1328_v33  ;;  %v1062_v1 = vand.u32 7, %v12276_v56 }
 0x382   : > { %v1339_v40 = vadd.f32 %v1336_v45, %v1265_v52  ;;  %v1155_v4 = vadd.f32 %v12244_v18, %v1136_v51  ;;  %v1117_v2 = vsel %vm303_vm6, %v1076_v50, %v1112_v57  ;;  %v1118_v17 = vsel %vm303_vm6, %v1112_v57, %v1076_v50  ;;  %v1451_v50 = vld [vmem:[#allocation2 + $0x6c0] sm:$0xff] }
 0x383   : > { %v1365_v15 = vrot.slane %v1356_v55, 4  ;;  %v1089_v55 = vsel %vm641_vm7, %v1084_v3, 0.0  ;;  %vm12301_vm3 = vcmp.eq.s32.totalorder %v1062_v1, 7  ;;  %vm1065_vm4 = vcmp.eq.s32.totalorder %v1062_v1, 0 }
 0x384   : > { %v1242_v12 = vpop.f32.mrf.mxu3  ;;  %v1415_v16 = vmul.f32 2.0, %v1155_v4  ;;  %v1101_v6 = vsel %vm12301_vm3, 0.0, %v1089_v55 }
 0x385   : > { %v1368_v23 = vsel %vm303_vm6, %v1338_v14, %v1365_v15  ;;  %v1369_v59 = vsel %vm303_vm6, %v1365_v15, %v1338_v14  ;;  %v1347_v24 = vrot.slane %v1242_v12, 1  ;;  %v1320_v0 = vpop.f32.mrf.mxu2  ;;  %v1140_v14 = vperm.slane %v1117_v2, %v12108_v32  ;;  %v1294_v12 = vpop.f32.mrf.mxu1 }
 0x386   : > { %v1386_v26 = vperm.slane %v1368_v23, %v12108_v32  ;;  %v1370_v29 = vrot.slane %v1369_v59, 4  ;;  %v1329_v11 = vrot.slane %v1320_v0, 7  ;;  %v1053_v59 = vrot.slane %v12207_v47, 7 }
 0x387   : > { %v1348_v28 = vsel %vm641_vm7, %v1345_v61, %v1347_v24  ;;  %v1352_v5 = vsel %vm641_vm7, %v1347_v24, 0.0  ;;  %v1156_v27 = vadd.f32 %v12244_v18, %v1140_v14 }
 0x388   : > { %v1354_v36 = vsel %vm12236_vm0, 0.0, %v1348_v28  ;;  %v1408_v41 = vadd.f32 %v12234_v13, %v1386_v26  ;;  %v1390_v44 = vperm.slane %v1370_v29, %v12108_v32  ;;  %v1355_v15 = vsel %vm12301_vm3, 0.0, %v1352_v5 }
 0x389   : > { %v1357_v38 = vadd.f32 %v1354_v36, %v1291_v31  ;;  %v1358_v24 = vadd.f32 %v1355_v15, %v1294_v12  ;;  %v1330_v25 = vsel %vm617_vm9, %v1327_v19, %v1329_v11  ;;  %v1119_v26 = vrot.slane %v1118_v17, 4  ;;  %v1268_v36 = vpop.f32.mrf.mxu0  ;;  %v1449_v11 = vld [vmem:[#allocation2 + $0x680] sm:$0xff] }
 0x38a   : > { %v1420_v46 = vmul.f32 0.3, %v1408_v41  ;;  %v1409_v61 = vadd.f32 %v12234_v13, %v1390_v44  ;;  %v1104_v29 = vadd.f32 %v1101_v6, %v12212_v53  ;;  %v1337_v8 = vsel %vm1065_vm4, 0.0, %v1330_v25 }
 0x38b   : > { %v1366_v49 = vrot.slane %v1357_v38, 4  ;;  %v1054_v19 = vsel %vm617_vm9, %v1051_v30, %v1053_v59  ;;  %v1367_v31 = vrot.slane %v1358_v24, 4  ;;  %v1144_v33 = vperm.slane %v1119_v26, %v12108_v32  ;;  %v1452_v30 = vld [vmem:[#allocation2 + $0x6e0] sm:$0xff] }
 0x38c   : > { %v12280_v60 = vadd.f32 %v1420_v46, %v1414_v54  ;;  %v1421_v7 = vmul.f32 0.3, %v1409_v61  ;;  %v1416_v37 = vmul.f32 2.0, %v1156_v27  ;;  %v1113_v38 = vrot.slane %v1104_v29, 4 }
 0x38d   : > { %v1371_v62 = vsel %vm303_vm6, %v1339_v40, %v1366_v49  ;;  %v1372_v10 = vsel %vm303_vm6, %v1366_v49, %v1339_v40  ;;  %v1340_v39 = vadd.f32 %v1337_v8, %v1268_v36  ;;  %v1074_v53 = vsel %vm1065_vm4, 0.0, %v1054_v19 }
 0x38e   : > { %10942 = vmatmul.msk.f32.vlgmr.msrb.gmra.mxu3 %vm1469_vm2, %v12280_v60  ;;  %10948 = vmatmul.msk.f32.vlgmr.msra.gmra.mxu0 %vm1469_vm2, %v12280_v60  ;;  %v1394_v21 = vperm.slane %v1371_v62, %v12108_v32  ;;  %v1373_v3 = vrot.slane %v1372_v10, 4  ;;  %v12312_v22 = vadd.f32 %v1421_v7, %v1415_v16  ;;  %v1077_v43 = vadd.f32 %v1074_v53, %v12195_v35  ;;  %v1450_v7 = vld [vmem:[#allocation2 + $0x6a0] sm:$0xff] }
 0x38f   : > { %10954 = vmatmul.msk.f32.vlgmr.msra.gmra.mxu1 %vm1469_vm2, %v12280_v60  ;;  %10960 = vmatmul.msk.f32.vlgmr.msra.gmra.mxu2 %vm1469_vm2, %v12280_v60  ;;  %v1374_v44 = vsel %vm303_vm6, %v1340_v39, %v1367_v31  ;;  %v1157_v34 = vadd.f32 %v12244_v18, %v1144_v33  ;;  %v1375_v49 = vsel %vm303_vm6, %v1367_v31, %v1340_v39  ;;  %v1465_v33 = vld [vmem:[#allocation2 + $0x760] sm:$0xff]  ;;  %vm3877_vm0 = vcmask 130048  }
 0x390   : > { %v1410_v23 = vadd.f32 %v12234_v13, %v1394_v21  ;;  %v1398_v47 = vperm.slane %v1373_v3, %v12108_v32  ;;  %v1120_v45 = vsel %vm303_vm6, %v1077_v43, %v1113_v38  ;;  %1905 = vmatpush.msrb.mxu3 %v1452_v30  ;;  %v1402_v46 = vperm.slane %v1374_v44, %v12108_v32  ;;  %v1461_v53 = vld [vmem:[#allocation2 + $0x740] sm:$0xff] }
 0x391   : > { %v1148_v35 = vperm.slane %v1120_v45, %v12108_v32  ;;  %v1417_v51 = vmul.f32 2.0, %v1157_v34  ;;  %v1121_v52 = vsel %vm303_vm6, %v1113_v38, %v1077_v43  ;;  %v1376_v54 = vrot.slane %v1375_v49, 4  ;;  %1964 = vmatpush.msrb.mxu0 %v1465_v33  ;;  %v1468_v38 = vld [vmem:[#allocation2 + $0x778] sm:$0xff]  ;;  %v1457_v44 = vld [vmem:[#allocation2 + $0x720] sm:$0xff]  ;;  %v1462_v34 = vld [vmem:[#allocation2 + $0x748] sm:$0xff] }
 0x392   : > { %v1422_v28 = vmul.f32 0.3, %v1410_v23  ;;  %v1411_v42 = vadd.f32 %v12234_v13, %v1398_v47  ;;  %v1412_v40 = vadd.f32 %v12234_v13, %v1402_v46  ;;  %v1122_v58 = vrot.slane %v1121_v52, 4  ;;  %1906 = vmatpush.msrb.mxu3 %v1451_v50  ;;  %v1460_v45 = vld [vmem:[#allocation2 + $0x738] sm:$0xff]  ;;  %v1453_v46 = vld [vmem:[#allocation2 + $0x700] sm:$0xff]  ;;  %v1463_v52 = vld [vmem:[#allocation2 + $0x750] sm:$0xff] }
 0x393   : > { %v1158_v61 = vadd.f32 %v12244_v18, %v1148_v35  ;;  %v1406_v62 = vperm.slane %v1376_v54, %v12108_v32  ;;  %1965 = vmatpush.msrb.mxu0 %v1461_v53  ;;  %v1456_v49 = vld [vmem:[#allocation2 + $0x718] sm:$0xff]  ;;  %v1467_v35 = vld [vmem:[#allocation2 + $0x770] sm:$0xff]  ;;  %v2315_v53 = vld [vmem:[#allocation2 + $0x7c8] sm:$0xff] }
 0x394   : > { %v1428_v41 = vadd.f32 %v1422_v28, %v1416_v37  ;;  %v1423_v48 = vmul.f32 0.3, %v1411_v42  ;;  %v1424_v0 = vmul.f32 0.3, %v1412_v40  ;;  %v1152_v4 = vperm.slane %v1122_v58, %v12108_v32  ;;  %1907 = vmatpush.msrb.mxu3 %v1450_v7  ;;  %v1464_v42 = vld [vmem:[#allocation2 + $0x758] sm:$0xff]  ;;  %2034 = vmatpush.msrb.mxu2 %v1467_v35  ;;  %v1459_v54 = vld [vmem:[#allocation2 + $0x730] sm:$0xff] }
 0x395   : > { %v1418_v1 = vmul.f32 2.0, %v1158_v61  ;;  %v1413_v5 = vadd.f32 %v12234_v13, %v1406_v62  ;;  %v12363_v13 = vld [vmem:[#allocation2 + $0x780] sm:$0xff]  ;;  %1966 = vmatpush.msrb.mxu0 %v1457_v44  ;;  %v1455_v40 = vld [vmem:[#allocation2 + $0x710] sm:$0xff]  ;;  %v2321_v33 = vld [vmem:[#allocation2 + $0x7f8] sm:$0xff] }
 0x396   : > { %10943 = vmatmul.msk.f32.gmra.mxu3 %vm1469_vm2, %v12312_v22  ;;  %10949 = vmatmul.msk.f32.gmra.mxu0 %vm1469_vm2, %v12312_v22  ;;  %v1429_v57 = vadd.f32 %v1423_v48, %v1417_v51  ;;  %v1159_v21 = vadd.f32 %v12244_v18, %v1152_v4  ;;  %v1854_v18 = vperm.slane %v12363_v13, 1  ;;  %v1861_v15 = vperm.slane %v12363_v13, 2  ;;  %v1458_v48 = vld [vmem:[#allocation2 + $0x728] sm:$0xff]  ;;  %v2318_v7 = vld [vmem:[#allocation2 + $0x7e0] sm:$0xff] }
 0x397   : > { %10955 = vmatmul.msk.f32.gmra.mxu1 %vm1469_vm2, %v12312_v22  ;;  %v1430_v2 = vadd.f32 %v1424_v0, %v1418_v1  ;;  %v1425_v55 = vmul.f32 0.3, %v1413_v5  ;;  %1908 = vmatpush.msrb.mxu3 %v1449_v11  ;;  %v1874_v62 = vperm.slane %v12363_v13, 3 }
 0x398   : > { %v1419_v9 = vmul.f32 2.0, %v1159_v21  ;;  %v1855_v14 = vmul.f32 %v1854_v18, %v12280_v60  ;;  %v1856_v6 = vmul.f32 %v1854_v18, %v12312_v22  ;;  %v1857_v23 = vmul.f32 %v1854_v18, %v1428_v41  ;;  %1967 = vmatpush.msrb.mxu0 %v1453_v46  ;;  %2035 = vmatpush.msrb.mxu2 %v1463_v52  ;;  %v2311_v46 = vld [vmem:[#allocation2 + $0x7a8] sm:$0xff] }
 0x399   : > { %v1858_v25 = vmul.f32 %v1854_v18, %v1429_v57  ;;  %v1859_v27 = vmul.f32 %v1854_v18, %v1430_v2  ;;  %v1655_v52 = vand.u32 15, %v12084_v63 }
 0x39a   : > { %v1431_v10 = vadd.f32 %v1425_v55, %v1419_v9  ;;  %v1862_v16 = vadd.f32 %v1861_v15, %v1855_v14  ;;  %v1863_v12 = vadd.f32 %v1861_v15, %v1856_v6  ;;  %v1864_v59 = vadd.f32 %v1861_v15, %v1857_v23  ;;  %2036 = vmatpush.msrb.mxu2 %v1459_v54  ;;  %v2314_v55 = vld [vmem:[#allocation2 + $0x7c0] sm:$0xff] }
 0x39b   : > { %v1865_v60 = vadd.f32 %v1861_v15, %v1858_v25  ;;  %v1866_v29 = vadd.f32 %v1861_v15, %v1859_v27  ;;  %2387 = vmatpush.msra.mxu0 %v2318_v7  ;;  %vm12449_vm5 = vcmp.eq.s32.totalorder %v1655_v52, 0 }
 0x39c   : > { %v1868_v17 = vmax.f32 %v1862_v16, 0.0  ;;  %v1869_v3 = vmax.f32 %v1863_v12, 0.0  ;;  %v1870_v24 = vmax.f32 %v1864_v59, 0.0  ;;  %2037 = vmatpush.msrb.mxu2 %v1455_v40 }
 0x39d   : > { %v1871_v26 = vmax.f32 %v1865_v60, 0.0  ;;  %v1872_v47 = vmax.f32 %v1866_v29, 0.0  ;;  %2388 = vmatpush.msra.mxu0 %v2314_v55 }
 0x39e   : > { %10944 = vmatmul.msk.f32.gmra.mxu3 %vm1469_vm2, %v1428_v41  ;;  %10950 = vmatmul.msk.f32.gmra.mxu0 %vm1469_vm2, %v1428_v41 }
 0x39f   : > { %10956 = vmatmul.msk.f32.gmra.mxu1 %vm1469_vm2, %v1428_v41 }
 0x3a6   : > { %10945 = vmatmul.msk.f32.gmra.mxu3 %vm1469_vm2, %v1429_v57  ;;  %10951 = vmatmul.msk.f32.gmra.mxu0 %vm1469_vm2, %v1429_v57 }
 0x3a7   : > { %10957 = vmatmul.msk.f32.gmra.mxu1 %vm1469_vm2, %v1429_v57 }
 0x3ae   : > { %10946 = vmatmul.msk.f32.gmra.mxu3 %vm1469_vm2, %v1430_v2  ;;  %10952 = vmatmul.msk.f32.gmra.mxu0 %vm1469_vm2, %v1430_v2 }
 0x3af   : > { %10958 = vmatmul.msk.f32.gmra.mxu1 %vm1469_vm2, %v1430_v2 }
 0x3b6   : > { %10947 = vmatmul.msk.f32.gmra.mxu3 %vm1469_vm2, %v1431_v10  ;;  %10953 = vmatmul.msk.f32.gmra.mxu0 %vm1469_vm2, %v1431_v10 }
 0x3b7   : > { %10959 = vmatmul.msk.f32.gmra.mxu1 %vm1469_vm2, %v1431_v10 }
 0x3be   : > { %10961 = vmatmul.msk.f32.vlgmr.msra.gmra.mxu3 %vm1469_vm2, %v12312_v22  ;;  %v1860_v22 = vmul.f32 %v1854_v18, %v1431_v10 }
 0x3bf   : > { %2069 = vmatpush.msra.mxu3 %v1468_v38  ;;  %v2310_v38 = vld [vmem:[#allocation2 + $0x7a0] sm:$0xff] }
 0x3c0   : > { %v1867_v8 = vadd.f32 %v1861_v15, %v1860_v22  ;;  %2389 = vmatpush.msra.mxu0 %v2310_v38 }
 0x3c1   : > { %2070 = vmatpush.msra.mxu3 %v1464_v42 }
 0x3c2   : > { %v1873_v28 = vmax.f32 %v1867_v8, 0.0 }
 0x3c3   : > { %2071 = vmatpush.msra.mxu3 %v1460_v45 }
 0x3c5   : > { %2072 = vmatpush.msra.mxu3 %v1456_v49 }
 0x3c6   : > { %10962 = vmatmul.msk.f32.gmra.mxu3 %vm1469_vm2, %v1428_v41  ;;  %v1466_v41 = vld [vmem:[#allocation2 + $0x768] sm:$0xff] }
 0x3c7   : > { %1999 = vmatpush.msrb.mxu1 %v1466_v41  ;;  %v2317_v41 = vld [vmem:[#allocation2 + $0x7d8] sm:$0xff] }
 0x3c9   : > { %2000 = vmatpush.msrb.mxu1 %v1462_v34 }
 0x3cb   : > { %2001 = vmatpush.msrb.mxu1 %v1458_v48  ;;  %v2313_v48 = vld [vmem:[#allocation2 + $0x7b8] sm:$0xff] }
 0x3ce   : > { %10963 = vmatmul.msk.f32.gmra.mxu3 %vm1469_vm2, %v1429_v57  ;;  %v1454_v57 = vld [vmem:[#allocation2 + $0x708] sm:$0xff] }
 0x3cf   : > { %2002 = vmatpush.msrb.mxu1 %v1454_v57 }
 0x3d6   : > { %10964 = vmatmul.msk.f32.gmra.mxu3 %vm1469_vm2, %v1430_v2 }
 0x3de   : > { %10965 = vmatmul.msk.f32.gmra.mxu3 %vm1469_vm2, %v1431_v10 }
 0x3e6   : > { %10966 = vmatmul.msk.f32.vlgmr.msrb.gmra.mxu3 %vm1469_vm2, %v1868_v17 }
 0x3e7   : > { %2546 = vmatpush.msrb.mxu3 %v2321_v33 }
 0x3e9   : > { %2547 = vmatpush.msrb.mxu3 %v2317_v41  ;;  %v12480_v41 = vperm.slane %v12363_v13, 4 }
 0x3eb   : > { %2548 = vmatpush.msrb.mxu3 %v2313_v48 }
 0x3ee   : > { %10967 = vmatmul.msk.f32.gmra.mxu3 %vm1469_vm2, %v1869_v3 }
 0x3f6   : > { %10968 = vmatmul.msk.f32.gmra.mxu3 %vm1469_vm2, %v1870_v24 }
 0x3fe   : > { %10969 = vmatmul.msk.f32.gmra.mxu3 %vm1469_vm2, %v1871_v26 }
 0x406   : > { %10970 = vmatmul.msk.f32.gmra.mxu3 %vm1469_vm2, %v1872_v47 }
 0x40b   : > { %v1540_v59 = vpop.f32.mrf.mxu0 }
 0x40c   : > { %v1575_v24 = vpop.f32.mrf.mxu1 }
 0x40e   : > { %10971 = vmatmul.msk.f32.gmra.mxu3 %vm1469_vm2, %v1873_v28  ;;  %v2319_v28 = vld [vmem:[#allocation2 + $0x7e8] sm:$0xff] }
 0x40f   : > { %2440 = vmatpush.msra.mxu2 %v2319_v28 }
 0x411   : > { %v12377_v19 = vpop.f32.mrf.mxu3  ;;  %2441 = vmatpush.msra.mxu2 %v2315_v53 }
 0x412   : > { %v1610_v42 = vpop.f32.mrf.mxu2  ;;  %v1697_v49 = vrot.slane %v12377_v19, 1 }
 0x413   : > { %v12424_v25 = vpop.f32.mrf.mxu0  ;;  %2442 = vmatpush.msra.mxu2 %v2311_v46  ;;  %v1634_v35 = vrot.slane %v1610_v42, 7 }
 0x414   : > { %v12426_v60 = vpop.f32.mrf.mxu1 }
 0x415   : > { %v1651_v57 = vsel %vm617_vm9, 0.0, %v1634_v35 }
 0x419   : > { %v12379_v31 = vpop.f32.mrf.mxu3 }
 0x41a   : > { %v1698_v44 = vrot.slane %v12379_v31, 1 }
 0x41b   : > { %v12428_v26 = vpop.f32.mrf.mxu0 }
 0x41c   : > { %v12430_v27 = vpop.f32.mrf.mxu1  ;;  %v1699_v54 = vsel %vm641_vm7, %v1697_v49, %v1698_v44 }
 0x41d   : > { %v1739_v40 = vadd.f32 %v1699_v54, %v1575_v24 }
 0x41f   : > { %v1757_v19 = vrot.slane %v1739_v40, 4 }
 0x421   : > { %v12381_v36 = vpop.f32.mrf.mxu3 }
 0x423   : > { %v12432_v29 = vpop.f32.mrf.mxu0 }
 0x424   : > { %v12434_v47 = vpop.f32.mrf.mxu1 }
 0x429   : > { %v12383_v37 = vpop.f32.mrf.mxu3 }
 0x42a   : > { %v1702_v48 = vrot.slane %v12383_v37, 1 }
 0x42b   : > { %v12436_v22 = vpop.f32.mrf.mxu0 }
 0x42c   : > { %v12438_v8 = vpop.f32.mrf.mxu1 }
 0x431   : > { %v12385_v39 = vpop.f32.mrf.mxu3 }
 0x433   : > { %v12441_v34 = vpop.f32.mrf.mxu0 }
 0x434   : > { %v12443_v45 = vpop.f32.mrf.mxu1 }
 0x439   : > { %v12387_v43 = vpop.f32.mrf.mxu3 }
 0x441   : > { %v12389_v30 = vpop.f32.mrf.mxu3 }
 0x442   : > { %v1635_v28 = vrot.slane %v12389_v30, 7  ;;  %v1657_v30 = vand.u32 15, %v12276_v56 }
 0x444   : > { %vm12511_vm11 = vcmp.eq.s32.totalorder %v1657_v30, 0 }
 0x449   : > { %v12391_v51 = vpop.f32.mrf.mxu3 }
 0x451   : > { %v12393_v58 = vpop.f32.mrf.mxu3 }
 0x459   : > { %v12395_v61 = vpop.f32.mrf.mxu3 }
 0x461   : > { %v12397_v50 = vpop.f32.mrf.mxu3 }
 0x469   : > { %v1910_v0 = vpop.f32.mrf.mxu3 }
 0x46a   : > { %v1911_v4 = vadd.f32 %v1910_v0, %v1874_v62 }
 0x46c   : > { %v1928_v1 = vmax.f32 %v1911_v4, 0.0  ;;  %v1679_v4 = vsel %vm12449_vm5, 0.0, %v1651_v57  ;;  %v1636_v57 = vsel %vm617_vm9, %v1634_v35, %v1635_v28 }
 0x46e   : > { %10972 = vmatmul.msk.f32.vlgmr.msrb.gmra.mxu0 %vm1469_vm2, %v1928_v1  ;;  %10978 = vmatmul.msk.f32.vlgmr.msrb.gmra.mxu1 %vm1469_vm2, %v1928_v1 }
 0x46f   : > { %10984 = vmatmul.msk.f32.vlgmr.msrb.gmra.mxu2 %vm1469_vm2, %v1928_v1  ;;  %10990 = vmatmul.msk.f32.vlgmr.msra.gmra.mxu3 %vm1469_vm2, %v1928_v1  ;;  %v1656_v1 = vand.u32 15, %v12102_v20 }
 0x471   : > { %v1913_v2 = vpop.f32.mrf.mxu3  ;;  %vm12459_vm8 = vcmp.eq.s32.totalorder %v1656_v1, 15 }
 0x472   : > { %v1914_v5 = vadd.f32 %v1913_v2, %v1874_v62  ;;  %v1700_v2 = vrot.slane %v12381_v36, 1 }
 0x474   : > { %v1929_v21 = vmax.f32 %v1914_v5, 0.0  ;;  %v2324_v5 = vld [vmem:[#allocation2 + $0x840] sm:$0xff]  ;;  %v1701_v55 = vsel %vm641_vm7, %v1698_v44, %v1700_v2 }
 0x475   : > { %3125 = vmatpush.msrb.mxu0 %v2324_v5 }
 0x476   : > { %10973 = vmatmul.msk.f32.gmra.mxu0 %vm1469_vm2, %v1929_v21  ;;  %10979 = vmatmul.msk.f32.gmra.mxu1 %vm1469_vm2, %v1929_v21 }
 0x477   : > { %10985 = vmatmul.msk.f32.gmra.mxu2 %vm1469_vm2, %v1929_v21  ;;  %10991 = vmatmul.msk.f32.gmra.mxu3 %vm1469_vm2, %v1929_v21  ;;  %v1685_v21 = vadd.f32 %v1679_v4, %v1540_v59  ;;  %v1654_v59 = vadd.s32 40, %v12084_v63 }
 0x479   : > { %v1916_v9 = vpop.f32.mrf.mxu3  ;;  %v1763_v7 = vsel %vm303_vm6, %v1685_v21, %v1757_v19  ;;  %v1764_v20 = vsel %vm303_vm6, %v1757_v19, %v1685_v21 }
 0x47a   : > { %v1917_v10 = vadd.f32 %v1916_v9, %v1874_v62  ;;  %v1765_v24 = vrot.slane %v1764_v20, 4 }
 0x47c   : > { %v1930_v11 = vmax.f32 %v1917_v10, 0.0  ;;  %v1800_v54 = vperm.slane %v1765_v24, %v12108_v32  ;;  %v1704_v24 = vrot.slane %v12385_v39, 1 }
 0x47e   : > { %10974 = vmatmul.msk.f32.gmra.mxu0 %vm1469_vm2, %v1930_v11  ;;  %10980 = vmatmul.msk.f32.gmra.mxu1 %vm1469_vm2, %v1930_v11 }
 0x47f   : > { %10986 = vmatmul.msk.f32.gmra.mxu2 %vm1469_vm2, %v1930_v11  ;;  %10992 = vmatmul.msk.f32.gmra.mxu3 %vm1469_vm2, %v1930_v11 }
 0x481   : > { %v1919_v18 = vpop.f32.mrf.mxu3 }
 0x482   : > { %v1920_v14 = vadd.f32 %v1919_v18, %v1874_v62  ;;  %v12464_v18 = vperm.slane %v12363_v13, 0  ;;  %v1637_v13 = vrot.slane %v12391_v51, 7 }
 0x484   : > { %v1931_v15 = vmax.f32 %v1920_v14, 0.0  ;;  %v1638_v20 = vsel %vm617_vm9, %v1635_v28, %v1637_v13  ;;  %v1706_v28 = vrot.slane %v12387_v43, 1 }
 0x486   : > { %10975 = vmatmul.msk.f32.gmra.mxu0 %vm1469_vm2, %v1931_v15  ;;  %10981 = vmatmul.msk.f32.gmra.mxu1 %vm1469_vm2, %v1931_v15 }
 0x487   : > { %10987 = vmatmul.msk.f32.gmra.mxu2 %vm1469_vm2, %v1931_v15  ;;  %10993 = vmatmul.msk.f32.gmra.mxu3 %vm1469_vm2, %v1931_v15  ;;  %v1796_v15 = vperm.slane %v1763_v7, %v12108_v32  ;;  %v1703_v7 = vsel %vm641_vm7, %v1700_v2, %v1702_v48 }
 0x488   : > { %v12542_v43 = vadd.f32 %v1703_v7, %v12430_v27  ;;  %v1714_v7 = vsel %vm641_vm7, %v1706_v28, 0.0 }
 0x489   : > { %v1922_v16 = vpop.f32.mrf.mxu3  ;;  %v1842_v42 = vadd.f32 %v12464_v18, %v1796_v15 }
 0x48a   : > { %v1923_v17 = vadd.f32 %v1922_v16, %v1874_v62  ;;  %v12469_v16 = vadd.s32 24, %v12084_v63 }
 0x48b   : > { %v2273_v19 = vmul.f32 2.0, %v1842_v42  ;;  %v1639_v42 = vrot.slane %v12393_v58, 7 }
 0x48c   : > { %v1932_v6 = vmax.f32 %v1923_v17, 0.0  ;;  %v1658_v46 = vand.u32 15, %v12469_v16 }
 0x48e   : > { %10976 = vmatmul.msk.f32.gmra.mxu0 %vm1469_vm2, %v1932_v6  ;;  %10982 = vmatmul.msk.f32.gmra.mxu1 %vm1469_vm2, %v1932_v6  ;;  %vm12506_vm10 = vcmp.eq.s32.totalorder %v1658_v46, 15 }
 0x48f   : > { %10988 = vmatmul.msk.f32.gmra.mxu2 %vm1469_vm2, %v1932_v6  ;;  %10994 = vmatmul.msk.f32.gmra.mxu3 %vm1469_vm2, %v1932_v6 }
 0x491   : > { %v1925_v12 = vpop.f32.mrf.mxu3 }
 0x492   : > { %v1926_v3 = vadd.f32 %v1925_v12, %v1874_v62  ;;  %v1734_v12 = vsel %vm12459_vm8, 0.0, %v1701_v55 }
 0x493   : > { %v12484_v44 = vadd.f32 %v1734_v12, %v12426_v60  ;;  %v12495_v60 = vadd.s32 32, %v12084_v63 }
 0x494   : > { %v1933_v23 = vmax.f32 %v1926_v3, 0.0 }
 0x495   : > { %v1758_v21 = vrot.slane %v12484_v44, 4  ;;  %v1659_v12 = vand.u32 15, %v12495_v60 }
 0x496   : > { %10977 = vmatmul.msk.f32.gmra.mxu0 %vm1469_vm2, %v1933_v23  ;;  %10983 = vmatmul.msk.f32.gmra.mxu1 %vm1469_vm2, %v1933_v23 }
 0x497   : > { %10989 = vmatmul.msk.f32.gmra.mxu2 %vm1469_vm2, %v1933_v23  ;;  %10995 = vmatmul.msk.f32.gmra.mxu3 %vm1469_vm2, %v1933_v23  ;;  %vm12549_vm13 = vcmp.eq.s32.totalorder %v1659_v12, 0 }
 0x4eb   : > { %v1969_v62 = vpop.f32.mrf.mxu0  ;;  %v2004_v0 = vpop.f32.mrf.mxu1 }
 0x4ec   : > { %v2134_v17 = vrot.slane %v1969_v62, 1  ;;  %v1660_v62 = vand.u32 15, %v1654_v59 }
 0x4ee   : > { %vm12555_vm14 = vcmp.eq.s32.totalorder %v1660_v62, 15 }
 0x4f2   : > { %v2039_v10 = vpop.f32.mrf.mxu2  ;;  %v2074_v11 = vpop.f32.mrf.mxu3 }
 0x4f3   : > { %v2098_v14 = vrot.slane %v2074_v11, 7  ;;  %v1972_v36 = vpop.f32.mrf.mxu0  ;;  %v2007_v23 = vpop.f32.mrf.mxu1 }
 0x4f4   : > { %v2135_v6 = vrot.slane %v1972_v36, 1 }
 0x4f5   : > { %v2115_v3 = vsel %vm617_vm9, 0.0, %v2098_v14 }
 0x4f6   : > { %v2116_v33 = vsel %vm12449_vm5, 0.0, %v2115_v3  ;;  %v2136_v38 = vsel %vm641_vm7, %v2134_v17, %v2135_v6  ;;  %v1641_v17 = vrot.slane %v12395_v61, 7 }
 0x4f7   : > { %v2158_v53 = vadd.f32 %v2136_v38, %v2039_v10  ;;  %v2122_v49 = vadd.f32 %v2116_v33, %v2004_v0  ;;  %v1686_v10 = vadd.f32 %v1636_v57, %v12424_v25 }
 0x4f9   : > { %v2176_v52 = vrot.slane %v2158_v53, 4  ;;  %v1681_v53 = vsel %vm12511_vm11, 0.0, %v1638_v20  ;;  %v1766_v62 = vsel %vm303_vm6, %v1686_v10, %v1758_v21 }
 0x4fa   : > { %v2042_v31 = vpop.f32.mrf.mxu2  ;;  %v12492_v40 = vpop.f32.mrf.mxu3 }
 0x4fb   : > { %v2182_v4 = vsel %vm303_vm6, %v2122_v49, %v2176_v52  ;;  %v2183_v37 = vsel %vm303_vm6, %v2176_v52, %v2122_v49  ;;  %v2099_v56 = vrot.slane %v12492_v40, 7  ;;  %v12500_v0 = vpop.f32.mrf.mxu0  ;;  %v12528_v59 = vpop.f32.mrf.mxu1  ;;  %v1642_v49 = vsel %vm617_vm9, %v1639_v42, %v1641_v17 }
 0x4fc   : > { %v2184_v1 = vrot.slane %v2183_v37, 4  ;;  %v2215_v35 = vperm.slane %v2182_v4, %v12108_v32  ;;  %v2137_v5 = vrot.slane %v12500_v0, 1  ;;  %v1843_v37 = vadd.f32 %v12464_v18, %v1800_v54 }
 0x4fd   : > { %v2100_v25 = vsel %vm617_vm9, %v2098_v14, %v2099_v56  ;;  %v1705_v0 = vsel %vm641_vm7, %v1702_v48, %v1704_v24  ;;  %v1683_v20 = vsel %vm12549_vm13, 0.0, %v1642_v49  ;;  %v1759_v48 = vrot.slane %v12542_v43, 4 }
 0x4fe   : > { %v2219_v36 = vperm.slane %v2184_v1, %v12108_v32  ;;  %v2261_v15 = vadd.f32 %v12480_v41, %v2215_v35  ;;  %v2138_v2 = vsel %vm641_vm7, %v2135_v6, %v2137_v5  ;;  %v1767_v6 = vsel %vm303_vm6, %v1758_v21, %v1686_v10  ;;  %v2323_v35 = vld [vmem:[#allocation2 + $0x820] sm:$0xff] }
 0x4ff   : > { %v2153_v3 = vsel %vm12459_vm8, 0.0, %v2138_v2  ;;  %v2123_v14 = vadd.f32 %v2100_v25, %v2007_v23  ;;  %v1687_v1 = vadd.f32 %v1681_v53, %v12428_v26  ;;  %3126 = vmatpush.msrb.mxu0 %v2323_v35  ;;  %v1736_v10 = vsel %vm12506_vm10, 0.0, %v1705_v0 }
 0x500   : > { %v2285_v33 = vmul.f32 0.3, %v2261_v15  ;;  %v2159_v38 = vadd.f32 %v2153_v3, %v2042_v31  ;;  %v2262_v39 = vadd.f32 %v12480_v41, %v2219_v36  ;;  %v1707_v31 = vsel %vm641_vm7, %v1704_v24, %v1706_v28 }
 0x501   : > { %v1743_v54 = vadd.f32 %v1707_v31, %v12438_v8  ;;  %v1804_v2 = vperm.slane %v1766_v62, %v12108_v32  ;;  %v2274_v25 = vmul.f32 2.0, %v1843_v37  ;;  %v1770_v24 = vsel %vm303_vm6, %v1759_v48, %v1687_v1 }
 0x502   : > { %v2177_v44 = vrot.slane %v2159_v38, 4  ;;  %v2045_v9 = vpop.f32.mrf.mxu2  ;;  %v12536_v46 = vpop.f32.mrf.mxu3  ;;  %v12538_v30 = vadd.f32 %v2285_v33, %v2273_v19  ;;  %v1768_v19 = vrot.slane %v1767_v6, 4  ;;  %v2286_v15 = vmul.f32 0.3, %v2262_v39 }
 0x503   : > { %v12553_v23 = vpop.f32.mrf.mxu0  ;;  %v2101_v26 = vrot.slane %v12536_v46, 7  ;;  %v1689_v8 = vadd.f32 %v1683_v20, %v12436_v22  ;;  %v12589_v28 = vpop.f32.mrf.mxu1  ;;  %v1738_v33 = vsel %vm12555_vm14, 0.0, %v1714_v7  ;;  %v1643_v38 = vrot.slane %v12397_v50, 7 }
 0x504   : > { %v2185_v27 = vsel %vm303_vm6, %v2123_v14, %v2177_v44  ;;  %v2139_v4 = vrot.slane %v12553_v23, 1  ;;  %10996 = vmatmul.msk.f32.vlgmr.msra.gmra.mxu0 %vm2337_vm12, %v12538_v30  ;;  %11008 = vmatmul.msk.f32.vlgmr.msra.gmra.mxu2 %vm2337_vm12, %v12538_v30  ;;  %v2186_v21 = vsel %vm303_vm6, %v2177_v44, %v2123_v14  ;;  %v1808_v3 = vperm.slane %v1768_v19, %v12108_v32 }
 0x505   : > { %11032 = vmatmul.msk.f32.vlgmr.msrb.gmra.mxu3 %vm2337_vm12, %v12538_v30  ;;  %v2223_v36 = vperm.slane %v2185_v27, %v12108_v32  ;;  %v2187_v6 = vrot.slane %v2186_v21, 4  ;;  %v12602_v39 = vadd.f32 %v1736_v10, %v12434_v47  ;;  %v1761_v22 = vrot.slane %v1743_v54, 4 }
 0x506   : > { %v2140_v12 = vsel %vm641_vm7, %v2137_v5, %v2139_v4  ;;  %v12598_v5 = vadd.f32 %v2286_v15, %v2274_v25  ;;  %v2102_v43 = vsel %vm617_vm9, %v2099_v56, %v2101_v26  ;;  %v1844_v31 = vadd.f32 %v12464_v18, %v1804_v2  ;;  %v2320_v56 = vld [vmem:[#allocation2 + $0x7f0] sm:$0xff] }
 0x507   : > { %v2263_v44 = vadd.f32 %v12480_v41, %v2223_v36  ;;  %v2160_v50 = vadd.f32 %v2140_v12, %v2045_v9  ;;  %v1744_v47 = vadd.f32 %v1738_v33, %v12443_v45  ;;  %v1771_v27 = vrot.slane %v1770_v24, 4  ;;  %2493 = vmatpush.msrb.mxu2 %v2320_v56 }
 0x508   : > { %v1776_v37 = vsel %vm303_vm6, %v1761_v22, %v1689_v8  ;;  %v1845_v40 = vadd.f32 %v12464_v18, %v1808_v3  ;;  %v1644_v9 = vsel %vm617_vm9, %v1641_v17, %v1643_v38  ;;  %v2227_v0 = vperm.slane %v2187_v6, %v12108_v32 }
 0x509   : > { %v2118_v62 = vsel %vm12511_vm11, 0.0, %v2102_v43  ;;  %v2287_v19 = vmul.f32 0.3, %v2263_v44  ;;  %v1760_v45 = vrot.slane %v12602_v39, 4  ;;  %v1769_v35 = vsel %vm303_vm6, %v1687_v1, %v1759_v48 }
 0x50a   : > { %v12594_v53 = vpop.f32.mrf.mxu2  ;;  %v12596_v14 = vpop.f32.mrf.mxu3  ;;  %v2178_v7 = vrot.slane %v2160_v50, 4  ;;  %v1777_v20 = vrot.slane %v1776_v37, 4  ;;  %v2275_v15 = vmul.f32 2.0, %v1844_v31  ;;  %v1762_v54 = vrot.slane %v1744_v47, 4 }
 0x50b   : > { %v1981_v49 = vpop.f32.mrf.mxu0  ;;  %v1775_v61 = vsel %vm303_vm6, %v1689_v8, %v1761_v22  ;;  %v1690_v17 = vadd.f32 %v1644_v9, %v12441_v34  ;;  %v2124_v21 = vadd.f32 %v2118_v62, %v12528_v59  ;;  %v2276_v10 = vmul.f32 2.0, %v1845_v40  ;;  %v2016_v24 = vpop.f32.mrf.mxu1 }
 0x50c   : > { %10997 = vmatmul.msk.f32.gmra.mxu0 %vm2337_vm12, %v12598_v5  ;;  %11009 = vmatmul.msk.f32.gmra.mxu2 %vm2337_vm12, %v12598_v5  ;;  %v2141_v36 = vrot.slane %v1981_v49, 1  ;;  %v1812_v11 = vperm.slane %v1769_v35, %v12108_v32  ;;  %v12632_v2 = vperm.slane %v1771_v27, %v12108_v32  ;;  %v12634_v1 = vadd.f32 %v2287_v19, %v2275_v15 }
 0x50d   : > { %11033 = vmatmul.msk.f32.gmra.mxu3 %vm2337_vm12, %v12598_v5  ;;  %v2264_v48 = vadd.f32 %v12480_v41, %v2227_v0  ;;  %v1640_v34 = vsel %vm617_vm9, %v1637_v13, %v1639_v42  ;;  %v2188_v59 = vsel %vm303_vm6, %v2124_v21, %v2178_v7  ;;  %v2103_v3 = vrot.slane %v12596_v14, 7 }
 0x50e   : > { %v1828_v38 = vperm.slane %v1775_v61, %v12108_v32  ;;  %v1832_v6 = vperm.slane %v1777_v20, %v12108_v32  ;;  %v2142_v44 = vsel %vm641_vm7, %v2139_v4, %v2141_v36  ;;  %v2189_v51 = vsel %vm303_vm6, %v2178_v7, %v2124_v21 }
 0x50f   : > { %v1778_v42 = vsel %vm303_vm6, %v1690_v17, %v1762_v54  ;;  %v1779_v23 = vsel %vm303_vm6, %v1762_v54, %v1690_v17  ;;  %v2231_v4 = vperm.slane %v2188_v59, %v12108_v32  ;;  %v2288_v43 = vmul.f32 0.3, %v2264_v48 }
 0x510   : > { %v2155_v50 = vsel %vm12506_vm10, 0.0, %v2142_v44  ;;  %v1846_v47 = vadd.f32 %v12464_v18, %v1812_v11  ;;  %v12668_v27 = vadd.f32 %v1640_v34, %v12432_v29  ;;  %v1780_v37 = vrot.slane %v1779_v23, 4 }
 0x511   : > { %v1850_v40 = vadd.f32 %v12464_v18, %v1828_v38  ;;  %v1851_v52 = vadd.f32 %v12464_v18, %v1832_v6  ;;  %v2190_v56 = vrot.slane %v2189_v51, 4  ;;  %v1836_v62 = vperm.slane %v1778_v42, %v12108_v32  ;;  %v12697_v38 = vld [vmem:[#allocation2 + $0x8c0] sm:$0xff] }
 0x512   : > { %v2051_v12 = vpop.f32.mrf.mxu2  ;;  %v2086_v25 = vpop.f32.mrf.mxu3  ;;  %v12674_v55 = vadd.f32 %v2155_v50, %v12594_v53  ;;  %v12678_v29 = vadd.f32 %v2288_v43, %v2276_v10  ;;  %v2265_v20 = vadd.f32 %v12480_v41, %v2231_v4  ;;  %v2277_v57 = vmul.f32 2.0, %v1846_v47 }
 0x513   : > { %v2105_v8 = vrot.slane %v2086_v25, 7  ;;  %v1984_v33 = vpop.f32.mrf.mxu0  ;;  %v2281_v53 = vmul.f32 2.0, %v1850_v40  ;;  %v2235_v10 = vperm.slane %v2190_v56, %v12108_v32  ;;  %v2104_v11 = vsel %vm617_vm9, %v2101_v26, %v2103_v3 }
 0x514   : > { %v2143_v58 = vrot.slane %v1984_v33, 1  ;;  %10998 = vmatmul.msk.f32.gmra.mxu0 %vm2337_vm12, %v12634_v1  ;;  %11010 = vmatmul.msk.f32.gmra.mxu2 %vm2337_vm12, %v12634_v1  ;;  %v2179_v6 = vrot.slane %v12674_v55, 4  ;;  %v1840_v46 = vperm.slane %v1780_v37, %v12108_v32  ;;  %v1852_v26 = vadd.f32 %v12464_v18, %v1836_v62 }
 0x515   : > { %v2106_v13 = vsel %vm617_vm9, %v2103_v3, %v2105_v8  ;;  %11034 = vmatmul.msk.f32.gmra.mxu3 %vm2337_vm12, %v12634_v1  ;;  %v2282_v3 = vmul.f32 2.0, %v1851_v52  ;;  %v12708_v4 = vperm.slane %v12697_v38, 1  ;;  %v1847_v37 = vadd.f32 %v12464_v18, %v12632_v2 }
 0x516   : > { %v2120_v14 = vsel %vm12549_vm13, 0.0, %v2106_v13  ;;  %v2144_v22 = vsel %vm641_vm7, %v2141_v36, %v2143_v58  ;;  %v2151_v31 = vsel %vm641_vm7, %v2143_v58, 0.0  ;;  %v2125_v13 = vadd.f32 %v2104_v11, %v12589_v28 }
 0x517   : > { %v2162_v49 = vadd.f32 %v2144_v22, %v2051_v12  ;;  %v2126_v9 = vadd.f32 %v2120_v14, %v2016_v24  ;;  %v2157_v35 = vsel %vm12555_vm14, 0.0, %v2151_v31  ;;  %v2019_v12 = vpop.f32.mrf.mxu1  ;;  %v2289_v24 = vmul.f32 0.3, %v2265_v20 }
 0x518   : > { %v2266_v22 = vadd.f32 %v12480_v41, %v2235_v10  ;;  %v1853_v28 = vadd.f32 %v12464_v18, %v1840_v46  ;;  %v12728_v52 = vperm.slane %v12697_v38, 2  ;;  %v2283_v62 = vmul.f32 2.0, %v1852_v26 }
 0x519   : > { %v2180_v0 = vrot.slane %v2162_v49, 4  ;;  %v12710_v14 = vadd.f32 %v2289_v24, %v2277_v57  ;;  %v2191_v49 = vsel %vm303_vm6, %v2125_v13, %v2179_v6  ;;  %vm6765_vm10 = vcmask 64512  }
 0x51a   : > { %v2054_v19 = vpop.f32.mrf.mxu2  ;;  %v2089_v7 = vpop.f32.mrf.mxu3 }
 0x51b   : > { %v2194_v36 = vsel %vm303_vm6, %v2126_v9, %v2180_v0  ;;  %v2195_v15 = vsel %vm303_vm6, %v2180_v0, %v2126_v9  ;;  %v2163_v54 = vadd.f32 %v2157_v35, %v2054_v19  ;;  %v2107_v61 = vrot.slane %v2089_v7, 7  ;;  %v2322_v0 = vld [vmem:[#allocation2 + $0x800] sm:$0xff] }
 0x51c   : > { %v2196_v17 = vrot.slane %v2195_v15, 4  ;;  %v2247_v21 = vperm.slane %v2194_v36, %v12108_v32  ;;  %10999 = vmatmul.msk.f32.gmra.mxu0 %vm2337_vm12, %v12678_v29  ;;  %11011 = vmatmul.msk.f32.gmra.mxu2 %vm2337_vm12, %v12678_v29  ;;  %v1772_v9 = vsel %vm303_vm6, %v12668_v27, %v1760_v45  ;;  %v2239_v19 = vperm.slane %v2191_v49, %v12108_v32 }
 0x51d   : > { %v2181_v25 = vrot.slane %v2163_v54, 4  ;;  %v2108_v48 = vsel %vm617_vm9, %v2105_v8, %v2107_v61  ;;  %11035 = vmatmul.msk.f32.gmra.mxu3 %vm2337_vm12, %v12678_v29  ;;  %v2290_v35 = vmul.f32 0.3, %v2266_v22  ;;  %3127 = vmatpush.msrb.mxu0 %v2322_v0  ;;  %v2192_v36 = vsel %vm303_vm6, %v2179_v6, %v2125_v13 }
 0x51e   : > { %v2251_v34 = vperm.slane %v2196_v17, %v12108_v32  ;;  %v2127_v59 = vadd.f32 %v2108_v48, %v2019_v12  ;;  %v2269_v33 = vadd.f32 %v12480_v41, %v2247_v21  ;;  %v2284_v54 = vmul.f32 2.0, %v1853_v28  ;;  %v2334_v28 = vld [vmem:[#allocation2 + $0x8a8] sm:$0xff] }
 0x51f   : > { %v1820_v17 = vperm.slane %v1772_v9, %v12108_v32  ;;  %v2278_v21 = vmul.f32 2.0, %v1847_v37  ;;  %v2193_v12 = vrot.slane %v2192_v36, 4  ;;  %v2267_v48 = vadd.f32 %v12480_v41, %v2239_v19  ;;  %v2336_v9 = vld [vmem:[#allocation2 + $0x8b8] sm:$0xff] }
 0x520   : > { %v2197_v8 = vsel %vm303_vm6, %v2127_v59, %v2181_v25  ;;  %v2198_v44 = vsel %vm303_vm6, %v2181_v25, %v2127_v59  ;;  %v2293_v58 = vmul.f32 0.3, %v2269_v33  ;;  %v2270_v51 = vadd.f32 %v12480_v41, %v2251_v34  ;;  %3385 = vmatpush.msra.mxu0 %v2336_v9 }
 0x521   : > { %v2199_v42 = vrot.slane %v2198_v44, 4  ;;  %v2255_v23 = vperm.slane %v2197_v8, %v12108_v32  ;;  %v12760_v25 = vadd.f32 %v2290_v35, %v2278_v21  ;;  %v1848_v39 = vadd.f32 %v12464_v18, %v1820_v17 }
 0x522   : > { %v12713_v43 = vadd.f32 %v2293_v58, %v2281_v53  ;;  %v2294_v50 = vmul.f32 0.3, %v2270_v51  ;;  %v1773_v53 = vsel %vm303_vm6, %v1760_v45, %v12668_v27  ;;  %v2316_v45 = vld [vmem:[#allocation2 + $0x7d0] sm:$0xff]  ;;  %v2243_v33 = vperm.slane %v2193_v12, %v12108_v32 }
 0x523   : > { %v2259_v31 = vperm.slane %v2199_v42, %v12108_v32  ;;  %v2271_v47 = vadd.f32 %v12480_v41, %v2255_v23  ;;  %v1774_v24 = vrot.slane %v1773_v53, 4  ;;  %v2291_v6 = vmul.f32 0.3, %v2267_v48  ;;  %2494 = vmatpush.msrb.mxu2 %v2316_v45  ;;  %v2333_v48 = vld [vmem:[#allocation2 + $0x8a0] sm:$0xff] }
 0x524   : > { %11000 = vmatmul.msk.f32.gmra.mxu0 %vm2337_vm12, %v12710_v14  ;;  %11012 = vmatmul.msk.f32.gmra.mxu2 %vm2337_vm12, %v12710_v14  ;;  %v12725_v40 = vadd.f32 %v2294_v50, %v2282_v3  ;;  %v3046_v56 = vmul.f32 %v12708_v4, %v12713_v43  ;;  %v2279_v26 = vmul.f32 2.0, %v1848_v39  ;;  %v2268_v8 = vadd.f32 %v12480_v41, %v2243_v33 }
 0x525   : > { %11036 = vmatmul.msk.f32.gmra.mxu3 %vm2337_vm12, %v12710_v14  ;;  %v2295_v55 = vmul.f32 0.3, %v2271_v47  ;;  %v2272_v2 = vadd.f32 %v12480_v41, %v2259_v31  ;;  %v1824_v46 = vperm.slane %v1774_v24, %v12108_v32  ;;  %v2312_v41 = vld [vmem:[#allocation2 + $0x7b0] sm:$0xff]  ;;  %v3039_v22 = vmul.f32 %v12708_v4, %v12598_v5  ;;  %3226 = vmatpush.msra.mxu1 %v2333_v48 }
 0x526   : > { %v12741_v7 = vadd.f32 %v12728_v52, %v3046_v56  ;;  %v3047_v20 = vmul.f32 %v12708_v4, %v12725_v40  ;;  %v12780_v3 = vadd.f32 %v2291_v6, %v2279_v26  ;;  %v2292_v58 = vmul.f32 0.3, %v2268_v8  ;;  %2495 = vmatpush.msrb.mxu2 %v2312_v41  ;;  %v2335_v47 = vld [vmem:[#allocation2 + $0x8b0] sm:$0xff] }
 0x527   : > { %v12746_v15 = vadd.f32 %v2295_v55, %v2283_v62  ;;  %v2296_v61 = vmul.f32 0.3, %v2272_v2  ;;  %v1849_v44 = vadd.f32 %v12464_v18, %v1824_v46  ;;  %v3038_v18 = vmul.f32 %v12708_v4, %v12538_v30  ;;  %3332 = vmatpush.msra.mxu3 %v2335_v47  ;;  %v2327_v8 = vld [vmem:[#allocation2 + $0x870] sm:$0xff] }
 0x528   : > { %v12750_v57 = vadd.f32 %v12728_v52, %v3047_v20  ;;  %v3052_v50 = vadd.f32 %v12728_v52, %v3039_v22  ;;  %v3040_v31 = vmul.f32 %v12708_v4, %v12634_v1  ;;  %3279 = vmatpush.msra.mxu2 %v2334_v28  ;;  %v3041_v56 = vmul.f32 %v12708_v4, %v12678_v29 }
 0x529   : > { %v12756_v10 = vadd.f32 %v2296_v61, %v2284_v54  ;;  %v3048_v11 = vmul.f32 %v12708_v4, %v12746_v15  ;;  %v2280_v51 = vmul.f32 2.0, %v1849_v44  ;;  %v3051_v42 = vadd.f32 %v12728_v52, %v3038_v18  ;;  %v2331_v61 = vld [vmem:[#allocation2 + $0x890] sm:$0xff]  ;;  %v2326_v44 = vld [vmem:[#allocation2 + $0x868] sm:$0xff] }
 0x52a   : > { %v3064_v49 = vmax.f32 %v3052_v50, 0.0  ;;  %v3053_v37 = vadd.f32 %v12728_v52, %v3040_v31  ;;  %v3042_v62 = vmul.f32 %v12708_v4, %v12710_v14  ;;  %v3043_v19 = vmul.f32 %v12708_v4, %v12760_v25  ;;  %3333 = vmatpush.msra.mxu3 %v2331_v61 }
 0x52b   : > { %v12764_v34 = vadd.f32 %v12728_v52, %v3048_v11  ;;  %v3049_v59 = vmul.f32 %v12708_v4, %v12756_v10  ;;  %v12790_v13 = vadd.f32 %v2292_v58, %v2280_v51  ;;  %v3063_v23 = vmax.f32 %v3051_v42, 0.0  ;;  %v2325_v51 = vld [vmem:[#allocation2 + $0x860] sm:$0xff] }
 0x52c   : > { %11001 = vmatmul.msk.f32.gmra.mxu0 %vm2337_vm12, %v12760_v25  ;;  %11013 = vmatmul.msk.f32.gmra.mxu2 %vm2337_vm12, %v12760_v25  ;;  %v3055_v55 = vadd.f32 %v12728_v52, %v3042_v62  ;;  %v3056_v35 = vadd.f32 %v12728_v52, %v3043_v19  ;;  %v3044_v54 = vmul.f32 %v12708_v4, %v12780_v3  ;;  %v3071_v6 = vmax.f32 %v12741_v7, 0.0 }
 0x52d   : > { %11037 = vmatmul.msk.f32.gmra.mxu3 %vm2337_vm12, %v12760_v25  ;;  %v12776_v27 = vadd.f32 %v12728_v52, %v3049_v59  ;;  %v3045_v12 = vmul.f32 %v12708_v4, %v12790_v13  ;;  %v3073_v58 = vmax.f32 %v12764_v34, 0.0 }
 0x52e   : > { %v3068_v36 = vmax.f32 %v3056_v35, 0.0  ;;  %v3057_v17 = vadd.f32 %v12728_v52, %v3044_v54  ;;  %3334 = vmatpush.msra.mxu3 %v2327_v8 }
 0x52f   : > { %v3058_v59 = vadd.f32 %v12728_v52, %v3045_v12  ;;  %v3074_v41 = vmax.f32 %v12776_v27, 0.0  ;;  %v12931_v27 = vperm.slane %v12697_v38, 3 }
 0x530   : > { %v3069_v11 = vmax.f32 %v3057_v17, 0.0  ;;  %v3863_v17 = vld [vmem:[#allocation2 + $0x900] sm:$0xff] }
 0x531   : > { %v3070_v45 = vmax.f32 %v3058_v59, 0.0 }
 0x534   : > { %11002 = vmatmul.msk.f32.gmra.mxu0 %vm2337_vm12, %v12780_v3  ;;  %11014 = vmatmul.msk.f32.gmra.mxu2 %vm2337_vm12, %v12780_v3 }
 0x535   : > { %11038 = vmatmul.msk.f32.gmra.mxu3 %vm2337_vm12, %v12780_v3 }
 0x53c   : > { %11003 = vmatmul.msk.f32.gmra.mxu0 %vm2337_vm12, %v12790_v13  ;;  %11015 = vmatmul.msk.f32.gmra.mxu2 %vm2337_vm12, %v12790_v13 }
 0x53d   : > { %11039 = vmatmul.msk.f32.gmra.mxu3 %vm2337_vm12, %v12790_v13 }
 0x544   : > { %11004 = vmatmul.msk.f32.gmra.mxu0 %vm2337_vm12, %v12713_v43  ;;  %11016 = vmatmul.msk.f32.gmra.mxu2 %vm2337_vm12, %v12713_v43 }
 0x545   : > { %11040 = vmatmul.msk.f32.gmra.mxu3 %vm2337_vm12, %v12713_v43 }
 0x54c   : > { %11005 = vmatmul.msk.f32.gmra.mxu0 %vm2337_vm12, %v12725_v40  ;;  %11017 = vmatmul.msk.f32.gmra.mxu2 %vm2337_vm12, %v12725_v40 }
 0x54d   : > { %11041 = vmatmul.msk.f32.gmra.mxu3 %vm2337_vm12, %v12725_v40 }
 0x554   : > { %11006 = vmatmul.msk.f32.gmra.mxu0 %vm2337_vm12, %v12746_v15  ;;  %11018 = vmatmul.msk.f32.gmra.mxu2 %vm2337_vm12, %v12746_v15 }
 0x555   : > { %11042 = vmatmul.msk.f32.gmra.mxu3 %vm2337_vm12, %v12746_v15 }
 0x55c   : > { %11007 = vmatmul.msk.f32.gmra.mxu0 %vm2337_vm12, %v12756_v10  ;;  %11019 = vmatmul.msk.f32.gmra.mxu2 %vm2337_vm12, %v12756_v10 }
 0x55d   : > { %11043 = vmatmul.msk.f32.gmra.mxu3 %vm2337_vm12, %v12756_v10 }
 0x564   : > { %11020 = vmatmul.msk.f32.vlgmr.msrb.gmra.mxu2 %vm2337_vm12, %v12538_v30  ;;  %11044 = vmatmul.msk.f32.vlgmr.msrb.gmra.mxu0 %vm2337_vm12, %v3063_v23  ;;  %v3065_v30 = vmax.f32 %v3053_v37, 0.0 }
 0x56c   : > { %11021 = vmatmul.msk.f32.gmra.mxu2 %vm2337_vm12, %v12598_v5  ;;  %11045 = vmatmul.msk.f32.gmra.mxu0 %vm2337_vm12, %v3064_v49  ;;  %v3054_v5 = vadd.f32 %v12728_v52, %v3041_v56  ;;  %v2329_v52 = vld [vmem:[#allocation2 + $0x880] sm:$0xff] }
 0x56d   : > { %3227 = vmatpush.msra.mxu1 %v2329_v52 }
 0x56e   : > { %v3066_v0 = vmax.f32 %v3054_v5, 0.0 }
 0x56f   : > { %3228 = vmatpush.msra.mxu1 %v2325_v51 }
 0x571   : > { %3964 = vmatpush.msrb.mxu1 %v3863_v17 }
 0x574   : > { %11022 = vmatmul.msk.f32.gmra.mxu2 %vm2337_vm12, %v12634_v1  ;;  %11046 = vmatmul.msk.f32.gmra.mxu0 %vm2337_vm12, %v3065_v30  ;;  %v3067_v1 = vmax.f32 %v3055_v55, 0.0 }
 0x57c   : > { %11023 = vmatmul.msk.f32.gmra.mxu2 %vm2337_vm12, %v12678_v29  ;;  %11047 = vmatmul.msk.f32.gmra.mxu0 %vm2337_vm12, %v3066_v0 }
 0x581   : > { %v12849_v2 = vpop.f32.mrf.mxu0 }
 0x584   : > { %11024 = vmatmul.msk.f32.gmra.mxu2 %vm2337_vm12, %v12710_v14  ;;  %11048 = vmatmul.msk.f32.gmra.mxu0 %vm2337_vm12, %v3067_v1  ;;  %v2330_v14 = vld [vmem:[#allocation2 + $0x888] sm:$0xff] }
 0x585   : > { %3280 = vmatpush.msra.mxu2 %v2330_v14 }
 0x587   : > { %v12857_v20 = vpop.f32.mrf.mxu2  ;;  %3281 = vmatpush.msra.mxu2 %v2326_v44 }
 0x588   : > { %v12948_v62 = vpop.f32.mrf.mxu3 }
 0x589   : > { %v12859_v29 = vpop.f32.mrf.mxu0 }
 0x58c   : > { %11025 = vmatmul.msk.f32.gmra.mxu2 %vm2337_vm12, %v12760_v25  ;;  %11049 = vmatmul.msk.f32.gmra.mxu0 %vm2337_vm12, %v3068_v36  ;;  %v2332_v25 = vld [vmem:[#allocation2 + $0x898] sm:$0xff] }
 0x58d   : > { %3386 = vmatpush.msra.mxu0 %v2332_v25 }
 0x58f   : > { %v12867_v21 = vpop.f32.mrf.mxu2 }
 0x590   : > { %v12961_v36 = vpop.f32.mrf.mxu3 }
 0x591   : > { %v12869_v53 = vpop.f32.mrf.mxu0 }
 0x594   : > { %11026 = vmatmul.msk.f32.gmra.mxu2 %vm2337_vm12, %v12780_v3  ;;  %11050 = vmatmul.msk.f32.gmra.mxu0 %vm2337_vm12, %v3069_v11  ;;  %v3072_v3 = vmax.f32 %v12750_v57, 0.0  ;;  %v2328_v57 = vld [vmem:[#allocation2 + $0x878] sm:$0xff] }
 0x595   : > { %3387 = vmatpush.msra.mxu0 %v2328_v57 }
 0x597   : > { %v12877_v24 = vpop.f32.mrf.mxu2 }
 0x598   : > { %v12970_v25 = vpop.f32.mrf.mxu3 }
 0x599   : > { %v12879_v39 = vpop.f32.mrf.mxu0 }
 0x59c   : > { %11027 = vmatmul.msk.f32.gmra.mxu2 %vm2337_vm12, %v12790_v13  ;;  %11051 = vmatmul.msk.f32.gmra.mxu0 %vm2337_vm12, %v3070_v45 }
 0x59f   : > { %v12884_v4 = vpop.f32.mrf.mxu2 }
 0x5a1   : > { %v12886_v33 = vpop.f32.mrf.mxu0 }
 0x5a4   : > { %11028 = vmatmul.msk.f32.gmra.mxu2 %vm2337_vm12, %v12713_v43  ;;  %11052 = vmatmul.msk.f32.gmra.mxu0 %vm2337_vm12, %v3071_v6 }
 0x5a7   : > { %v12892_v46 = vpop.f32.mrf.mxu2 }
 0x5a9   : > { %v12894_v26 = vpop.f32.mrf.mxu0 }
 0x5ac   : > { %11029 = vmatmul.msk.f32.gmra.mxu2 %vm2337_vm12, %v12725_v40  ;;  %11053 = vmatmul.msk.f32.gmra.mxu0 %vm2337_vm12, %v3072_v3  ;;  %v12980_v3 = vpop.f32.mrf.mxu3 }
 0x5af   : > { %v12900_v43 = vpop.f32.mrf.mxu2 }
 0x5b1   : > { %v12902_v7 = vpop.f32.mrf.mxu0 }
 0x5b4   : > { %11030 = vmatmul.msk.f32.gmra.mxu2 %vm2337_vm12, %v12746_v15  ;;  %11054 = vmatmul.msk.f32.gmra.mxu0 %vm2337_vm12, %v3073_v58 }
 0x5b7   : > { %v12910_v40 = vpop.f32.mrf.mxu2 }
 0x5b9   : > { %v12908_v13 = vpop.f32.mrf.mxu0 }
 0x5bc   : > { %11031 = vmatmul.msk.f32.gmra.mxu2 %vm2337_vm12, %v12756_v10  ;;  %11055 = vmatmul.msk.f32.gmra.mxu0 %vm2337_vm12, %v3074_v41  ;;  %v12989_v41 = vpop.f32.mrf.mxu3 }
 0x5bf   : > { %v12918_v15 = vpop.f32.mrf.mxu2 }
 0x5c1   : > { %v12916_v34 = vpop.f32.mrf.mxu0 }
 0x5c7   : > { %v12922_v42 = vpop.f32.mrf.mxu2 }
 0x5c9   : > { %v12920_v18 = vpop.f32.mrf.mxu0 }
 0x5cf   : > { %v12926_v22 = vpop.f32.mrf.mxu2 }
 0x5d0   : > { %18495 = vst [vmem:[#allocation6_spill] sm:$0xff] %v12926_v22 }
 0x5d1   : > { %v12924_v23 = vpop.f32.mrf.mxu0 }
 0x5d7   : > { %v12933_v49 = vpop.f32.mrf.mxu2 }
 0x5d8   : > { %18497 = vst [vmem:[#allocation8_spill] sm:$0xff] %v12933_v49 }
 0x5d9   : > { %v12928_v50 = vpop.f32.mrf.mxu0 }
 0x5da   : > { %18496 = vst [vmem:[#allocation7_spill] sm:$0xff] %v12928_v50  ;;  %v13073_v50 = vperm.slane %v12697_v38, 4 }
 0x5df   : > { %v12941_v30 = vpop.f32.mrf.mxu2 }
 0x5e0   : > { %18498 = vst [vmem:[#allocation9_spill] sm:$0xff] %v12941_v30 }
 0x5e1   : > { %v3129_v10 = vpop.f32.mrf.mxu0 }
 0x5e2   : > { %v3130_v31 = vadd.f32 %v3129_v10, %v12931_v27 }
 0x5e4   : > { %v3165_v47 = vmax.f32 %v3130_v31, 0.0 }
 0x5e6   : > { %11056 = vmatmul.msk.f32.vlgmr.msra.gmra.mxu1 %vm2337_vm12, %v3165_v47  ;;  %11068 = vmatmul.msk.f32.vlgmr.msra.gmra.mxu2 %vm2337_vm12, %v3165_v47 }
 0x5e7   : > { %11080 = vmatmul.msk.f32.vlgmr.msra.gmra.mxu3 %vm2337_vm12, %v3165_v47  ;;  %11092 = vmatmul.msk.f32.vlgmr.msra.gmra.mxu0 %vm2337_vm12, %v3165_v47  ;;  %v12950_v55 = vpop.f32.mrf.mxu2 }
 0x5e9   : > { %v3132_v28 = vpop.f32.mrf.mxu0 }
 0x5ea   : > { %v3133_v37 = vadd.f32 %v3132_v28, %v12931_v27 }
 0x5ec   : > { %v3166_v56 = vmax.f32 %v3133_v37, 0.0  ;;  %v13002_v37 = vpop.f32.mrf.mxu3 }
 0x5ee   : > { %11057 = vmatmul.msk.f32.gmra.mxu1 %vm2337_vm12, %v3166_v56  ;;  %11069 = vmatmul.msk.f32.gmra.mxu2 %vm2337_vm12, %v3166_v56 }
 0x5ef   : > { %11081 = vmatmul.msk.f32.gmra.mxu3 %vm2337_vm12, %v3166_v56  ;;  %11093 = vmatmul.msk.f32.gmra.mxu0 %vm2337_vm12, %v3166_v56  ;;  %v12963_v54 = vpop.f32.mrf.mxu2 }
 0x5f1   : > { %v3135_v9 = vpop.f32.mrf.mxu0 }
 0x5f2   : > { %v3136_v5 = vadd.f32 %v3135_v9, %v12931_v27 }
 0x5f4   : > { %v3167_v0 = vmax.f32 %v3136_v5, 0.0 }
 0x5f6   : > { %11058 = vmatmul.msk.f32.gmra.mxu1 %vm2337_vm12, %v3167_v0  ;;  %11070 = vmatmul.msk.f32.gmra.mxu2 %vm2337_vm12, %v3167_v0 }
 0x5f7   : > { %11082 = vmatmul.msk.f32.gmra.mxu3 %vm2337_vm12, %v3167_v0  ;;  %11094 = vmatmul.msk.f32.gmra.mxu0 %vm2337_vm12, %v3167_v0  ;;  %v12972_v48 = vpop.f32.mrf.mxu2  ;;  %v3859_v0 = vld [vmem:[#allocation2 + $0x8e0] sm:$0xff] }
 0x5f8   : > { %3965 = vmatpush.msrb.mxu1 %v3859_v0  ;;  %v3862_v0 = vld [vmem:[#allocation2 + $0x8f8] sm:$0xff] }
 0x5f9   : > { %v3138_v1 = vpop.f32.mrf.mxu0 }
 0x5fa   : > { %v3139_v19 = vadd.f32 %v3138_v1, %v12931_v27 }
 0x5fc   : > { %v3168_v35 = vmax.f32 %v3139_v19, 0.0 }
 0x5fe   : > { %11059 = vmatmul.msk.f32.gmra.mxu1 %vm2337_vm12, %v3168_v35  ;;  %11071 = vmatmul.msk.f32.gmra.mxu2 %vm2337_vm12, %v3168_v35 }
 0x5ff   : > { %11083 = vmatmul.msk.f32.gmra.mxu3 %vm2337_vm12, %v3168_v35  ;;  %11095 = vmatmul.msk.f32.gmra.mxu0 %vm2337_vm12, %v3168_v35  ;;  %v12982_v8 = vpop.f32.mrf.mxu2  ;;  %v13011_v35 = vpop.f32.mrf.mxu3 }
 0x601   : > { %v3141_v61 = vpop.f32.mrf.mxu0 }
 0x602   : > { %v3142_v14 = vadd.f32 %v3141_v61, %v12931_v27 }
 0x604   : > { %v3169_v11 = vmax.f32 %v3142_v14, 0.0 }
 0x606   : > { %11060 = vmatmul.msk.f32.gmra.mxu1 %vm2337_vm12, %v3169_v11  ;;  %11072 = vmatmul.msk.f32.gmra.mxu2 %vm2337_vm12, %v3169_v11 }
 0x607   : > { %11084 = vmatmul.msk.f32.gmra.mxu3 %vm2337_vm12, %v3169_v11  ;;  %11096 = vmatmul.msk.f32.gmra.mxu0 %vm2337_vm12, %v3169_v11  ;;  %v12991_v10 = vpop.f32.mrf.mxu2 }
 0x609   : > { %v3144_v12 = vpop.f32.mrf.mxu0 }
 0x60a   : > { %v3145_v59 = vadd.f32 %v3144_v12, %v12931_v27 }
 0x60c   : > { %v3170_v45 = vmax.f32 %v3145_v59, 0.0  ;;  %v13021_v59 = vpop.f32.mrf.mxu3 }
 0x60e   : > { %11061 = vmatmul.msk.f32.gmra.mxu1 %vm2337_vm12, %v3170_v45  ;;  %11073 = vmatmul.msk.f32.gmra.mxu2 %vm2337_vm12, %v3170_v45 }
 0x60f   : > { %11085 = vmatmul.msk.f32.gmra.mxu3 %vm2337_vm12, %v3170_v45  ;;  %11097 = vmatmul.msk.f32.gmra.mxu0 %vm2337_vm12, %v3170_v45  ;;  %v13004_v56 = vpop.f32.mrf.mxu2 }
 0x611   : > { %v3147_v6 = vpop.f32.mrf.mxu0 }
 0x612   : > { %v3148_v52 = vadd.f32 %v3147_v6, %v12931_v27 }
 0x614   : > { %v3171_v44 = vmax.f32 %v3148_v52, 0.0  ;;  %v13029_v52 = vpop.f32.mrf.mxu3 }
 0x616   : > { %11062 = vmatmul.msk.f32.gmra.mxu1 %vm2337_vm12, %v3171_v44  ;;  %11074 = vmatmul.msk.f32.gmra.mxu2 %vm2337_vm12, %v3171_v44 }
 0x617   : > { %11086 = vmatmul.msk.f32.gmra.mxu3 %vm2337_vm12, %v3171_v44  ;;  %11098 = vmatmul.msk.f32.gmra.mxu0 %vm2337_vm12, %v3171_v44  ;;  %v13013_v61 = vpop.f32.mrf.mxu2 }
 0x619   : > { %v3150_v58 = vpop.f32.mrf.mxu0 }
 0x61a   : > { %v3151_v57 = vadd.f32 %v3150_v58, %v12931_v27 }
 0x61c   : > { %v3172_v51 = vmax.f32 %v3151_v57, 0.0  ;;  %v13033_v58 = vpop.f32.mrf.mxu3 }
 0x61d   : > { %18499 = vst [vmem:[#allocation10_spill] sm:$0xff] %v13033_v58 }
 0x61e   : > { %11063 = vmatmul.msk.f32.gmra.mxu1 %vm2337_vm12, %v3172_v51  ;;  %11075 = vmatmul.msk.f32.gmra.mxu2 %vm2337_vm12, %v3172_v51 }
 0x61f   : > { %11087 = vmatmul.msk.f32.gmra.mxu3 %vm2337_vm12, %v3172_v51  ;;  %11099 = vmatmul.msk.f32.gmra.mxu0 %vm2337_vm12, %v3172_v51  ;;  %v13023_v45 = vpop.f32.mrf.mxu2 }
 0x621   : > { %v3153_v31 = vpop.f32.mrf.mxu0 }
 0x622   : > { %v3154_v47 = vadd.f32 %v3153_v31, %v12931_v27  ;;  %v3864_v31 = vld [vmem:[#allocation2 + $0x908] sm:$0xff] }
 0x623   : > { %4053 = vmatpush.msrb.mxu2 %v3864_v31 }
 0x624   : > { %v3173_v28 = vmax.f32 %v3154_v47, 0.0  ;;  %v13037_v57 = vpop.f32.mrf.mxu3  ;;  %v3865_v47 = vld [vmem:[#allocation2 + $0x910] sm:$0xff] }
 0x625   : > { %18501 = vst [vmem:[#allocation12_spill] sm:$0xff] %v13037_v57  ;;  %4142 = vmatpush.msrb.mxu3 %v3865_v47 }
 0x626   : > { %11064 = vmatmul.msk.f32.gmra.mxu1 %vm2337_vm12, %v3173_v28  ;;  %11076 = vmatmul.msk.f32.gmra.mxu2 %vm2337_vm12, %v3173_v28 }
 0x627   : > { %11088 = vmatmul.msk.f32.gmra.mxu3 %vm2337_vm12, %v3173_v28  ;;  %11100 = vmatmul.msk.f32.gmra.mxu0 %vm2337_vm12, %v3173_v28  ;;  %v13031_v44 = vpop.f32.mrf.mxu2  ;;  %v3866_v28 = vld [vmem:[#allocation2 + $0x918] sm:$0xff] }
 0x628   : > { %4231 = vmatpush.msrb.mxu0 %v3866_v28 }
 0x629   : > { %v3156_v9 = vpop.f32.mrf.mxu0 }
 0x62a   : > { %v3157_v5 = vadd.f32 %v3156_v9, %v12931_v27  ;;  %v3860_v9 = vld [vmem:[#allocation2 + $0x8e8] sm:$0xff]  ;;  %4232 = vmatpush.msrb.mxu0 %v3862_v0 }
 0x62b   : > { %4054 = vmatpush.msrb.mxu2 %v3860_v9  ;;  %v3868_v9 = vld [vmem:[#allocation2 + $0x940] sm:$0xff] }
 0x62c   : > { %v3174_v1 = vmax.f32 %v3157_v5, 0.0  ;;  %v3861_v5 = vld [vmem:[#allocation2 + $0x8f0] sm:$0xff]  ;;  %v13047_v31 = vpop.f32.mrf.mxu3  ;;  %5368 = vmatpush.msra.mxu1 %v3868_v9 }
 0x62d   : > { %4143 = vmatpush.msrb.mxu3 %v3861_v5  ;;  %18503 = vst [vmem:[#allocation14_spill] sm:$0xff] %v13047_v31 }
 0x62e   : > { %11065 = vmatmul.msk.f32.gmra.mxu1 %vm2337_vm12, %v3174_v1  ;;  %11077 = vmatmul.msk.f32.gmra.mxu2 %vm2337_vm12, %v3174_v1 }
 0x62f   : > { %11089 = vmatmul.msk.f32.gmra.mxu3 %vm2337_vm12, %v3174_v1  ;;  %11101 = vmatmul.msk.f32.gmra.mxu0 %vm2337_vm12, %v3174_v1  ;;  %v2725_v1 = vrot.slane %v12859_v29, 1 }
 0x631   : > { %v3159_v19 = vpop.f32.mrf.mxu0 }
 0x632   : > { %v3160_v14 = vadd.f32 %v3159_v19, %v12931_v27  ;;  %v2598_v19 = vrot.slane %v12948_v62, 7 }
 0x634   : > { %v3175_v17 = vmax.f32 %v3160_v14, 0.0  ;;  %v2640_v14 = vand.u32 31, %v12084_v63 }
 0x636   : > { %11066 = vmatmul.msk.f32.gmra.mxu1 %vm2337_vm12, %v3175_v17  ;;  %11078 = vmatmul.msk.f32.gmra.mxu2 %vm2337_vm12, %v3175_v17  ;;  %vm13052_vm15 = vcmp.eq.s32.totalorder %v2640_v14, 0 }
 0x637   : > { %11090 = vmatmul.msk.f32.gmra.mxu3 %vm2337_vm12, %v3175_v17  ;;  %11102 = vmatmul.msk.f32.gmra.mxu0 %vm2337_vm12, %v3175_v17  ;;  %v2724_v17 = vrot.slane %v12849_v2, 1 }
 0x639   : > { %v3162_v11 = vpop.f32.mrf.mxu0 }
 0x63a   : > { %v3163_v12 = vadd.f32 %v3162_v11, %v12931_v27  ;;  %v13035_v27 = vpop.f32.mrf.mxu2  ;;  %v2726_v11 = vsel %vm641_vm7, %v2724_v17, %v2725_v1 }
 0x63b   : > { %18500 = vst [vmem:[#allocation11_spill] sm:$0xff] %v13035_v27  ;;  %v2808_v47 = vadd.f32 %v2726_v11, %v12950_v55 }
 0x63c   : > { %v3176_v6 = vmax.f32 %v3163_v12, 0.0 }
 0x63d   : > { %v2844_v5 = vrot.slane %v2808_v47, 4 }
 0x63e   : > { %11067 = vmatmul.msk.f32.gmra.mxu1 %vm2337_vm12, %v3176_v6  ;;  %11079 = vmatmul.msk.f32.gmra.mxu2 %vm2337_vm12, %v3176_v6 }
 0x63f   : > { %11091 = vmatmul.msk.f32.gmra.mxu3 %vm2337_vm12, %v3176_v6  ;;  %11103 = vmatmul.msk.f32.gmra.mxu0 %vm2337_vm12, %v3176_v6  ;;  %v2633_v6 = vsel %vm617_vm9, 0.0, %v2598_v19 }
 0x640   : > { %v2688_v2 = vsel %vm13052_vm15, 0.0, %v2633_v6  ;;  %v13064_v6 = vperm.slane %v12697_v38, 0 }
 0x641   : > { %v2700_v17 = vadd.f32 %v2688_v2, %v12857_v20 }
 0x642   : > { %v13039_v51 = vpop.f32.mrf.mxu2 }
 0x643   : > { %18502 = vst [vmem:[#allocation13_spill] sm:$0xff] %v13039_v51  ;;  %v2856_v55 = vsel %vm303_vm6, %v2700_v17, %v2844_v5  ;;  %v18175_v51 = vrot.slane %v12869_v53, 1  ;;  %v2857_v20 = vsel %vm303_vm6, %v2844_v5, %v2700_v17 }
 0x644   : > { %v2919_v47 = vperm.slane %v2856_v55, %v12108_v32  ;;  %v2858_v55 = vrot.slane %v2857_v20, 4 }
 0x645   : > { %v2728_v22 = vsel %vm641_vm7, %v2725_v1, %v18175_v51 }
 0x64a   : > { %v13050_v28 = vpop.f32.mrf.mxu2 }
 0x64b   : > { %18504 = vst [vmem:[#allocation15_spill] sm:$0xff] %v13050_v28 }
 0x663   : > { %v3230_v12 = vpop.f32.mrf.mxu1 }
 0x664   : > { %v3389_v62 = vpop.f32.mrf.mxu0  ;;  %v3509_v31 = vrot.slane %v3230_v12, 1 }
 0x665   : > { %v3437_v0 = vrot.slane %v3389_v62, 7 }
 0x667   : > { %v3472_v49 = vsel %vm617_vm9, 0.0, %v3437_v0 }
 0x668   : > { %v3473_v12 = vsel %vm13052_vm15, 0.0, %v3472_v49 }
 0x669   : > { %v3283_v11 = vpop.f32.mrf.mxu2 }
 0x66a   : > { %v3336_v28 = vpop.f32.mrf.mxu3  ;;  %v3485_v9 = vadd.f32 %v3473_v12, %v3283_v11 }
 0x66b   : > { %v3233_v30 = vpop.f32.mrf.mxu1 }
 0x66c   : > { %v3510_v14 = vrot.slane %v3233_v30, 1  ;;  %v13070_v30 = vpop.f32.mrf.mxu0 }
 0x66e   : > { %v3511_v57 = vsel %vm641_vm7, %v3509_v31, %v3510_v14  ;;  %v2599_v31 = vrot.slane %v12961_v36, 7 }
 0x66f   : > { %v3557_v62 = vadd.f32 %v3511_v57, %v3336_v28  ;;  %v3013_v57 = vadd.f32 %v13064_v6, %v2919_v47 }
 0x671   : > { %v3593_v2 = vrot.slane %v3557_v62, 4  ;;  %v2809_v62 = vadd.f32 %v2728_v22, %v12963_v54  ;;  %v3286_v20 = vpop.f32.mrf.mxu2 }
 0x672   : > { %v3339_v51 = vpop.f32.mrf.mxu3 }
 0x673   : > { %v3605_v28 = vsel %vm303_vm6, %v3485_v9, %v3593_v2  ;;  %v3606_v49 = vsel %vm303_vm6, %v3593_v2, %v3485_v9  ;;  %v3236_v29 = vpop.f32.mrf.mxu1  ;;  %v2600_v9 = vsel %vm617_vm9, %v2598_v19, %v2599_v31  ;;  %v2845_v54 = vrot.slane %v2809_v62, 4 }
 0x674   : > { %v3607_v5 = vrot.slane %v3606_v49, 4  ;;  %v3668_v17 = vperm.slane %v3605_v28, %v12108_v32  ;;  %v3512_v11 = vrot.slane %v3236_v29, 1  ;;  %v2923_v28 = vperm.slane %v2858_v55, %v12108_v32 }
 0x675   : > { %v3786_v49 = vmul.f32 2.0, %v3013_v57  ;;  %v18507_v29 = vrot.slane %v13070_v30, 7  ;;  %v2701_v58 = vadd.f32 %v2600_v9, %v12867_v21 }
 0x676   : > { %v3672_v12 = vperm.slane %v3607_v5, %v12108_v32  ;;  %v3762_v1 = vadd.f32 %v13073_v50, %v3668_v17  ;;  %v3513_v47 = vsel %vm641_vm7, %v3510_v14, %v3512_v11 }
 0x677   : > { %v3558_v2 = vadd.f32 %v3513_v47, %v3339_v51  ;;  %v3439_v22 = vsel %vm617_vm9, %v3437_v0, %v18507_v29  ;;  %v3014_v0 = vadd.f32 %v13064_v6, %v2923_v28  ;;  %v2859_v57 = vsel %vm303_vm6, %v2701_v58, %v2845_v54 }
 0x678   : > { %v3810_v38 = vmul.f32 0.3, %v3762_v1  ;;  %v3486_v5 = vadd.f32 %v3439_v22, %v3286_v20  ;;  %v3763_v14 = vadd.f32 %v13073_v50, %v3672_v12  ;;  %v2729_v12 = vrot.slane %v12879_v39, 1 }
 0x679   : > { %v3594_v17 = vrot.slane %v3558_v2, 4  ;;  %v2927_v1 = vperm.slane %v2859_v57, %v12108_v32  ;;  %v3787_v47 = vmul.f32 2.0, %v3014_v0  ;;  %v2860_v9 = vsel %vm303_vm6, %v2845_v54, %v2701_v58  ;;  %v13116_v2 = vpop.f32.mrf.mxu0 }
 0x67a   : > { %v13095_v27 = vadd.f32 %v3810_v38, %v3786_v49  ;;  %v3811_v38 = vmul.f32 0.3, %v3763_v14  ;;  %v3342_v49 = vpop.f32.mrf.mxu3  ;;  %v2601_v14 = vrot.slane %v12970_v25, 7  ;;  %v3440_v58 = vrot.slane %v13116_v2, 7 }
 0x67b   : > { %v3608_v51 = vsel %vm303_vm6, %v3486_v5, %v3594_v17  ;;  %v3239_v19 = vpop.f32.mrf.mxu1  ;;  %v3609_v62 = vsel %vm303_vm6, %v3594_v17, %v3486_v5  ;;  %v2861_v17 = vrot.slane %v2860_v9, 4  ;;  %v3015_v39 = vadd.f32 %v13064_v6, %v2927_v1 }
 0x67c   : > { %v3514_v55 = vrot.slane %v3239_v19, 1  ;;  %11104 = vmatmul.msk.f32.vlgmr.msrb.gmra.mxu1 %vm3877_vm0, %v13095_v27  ;;  %11128 = vmatmul.msk.f32.vlgmr.msrb.gmra.mxu2 %vm3877_vm0, %v13095_v27  ;;  %v3676_v21 = vperm.slane %v3608_v51, %v12108_v32  ;;  %v3610_v28 = vrot.slane %v3609_v62, 4  ;;  %v13118_v29 = vadd.f32 %v3811_v38, %v3787_v47  ;;  %v3289_v19 = vpop.f32.mrf.mxu2 }
 0x67d   : > { %11152 = vmatmul.msk.f32.vlgmr.msrb.gmra.mxu3 %vm3877_vm0, %v13095_v27  ;;  %11176 = vmatmul.msk.f32.vlgmr.msrb.gmra.mxu0 %vm3877_vm0, %v13095_v27  ;;  %v18508_v51 = vrot.slane %v12869_v53, 1  ;;  %v2602_v38 = vsel %vm617_vm9, %v2599_v31, %v2601_v14  ;;  %v3788_v62 = vmul.f32 2.0, %v3015_v39  ;;  %v18509_v1 = vrot.slane %v13070_v30, 7 }
 0x67e   : > { %v3515_v20 = vsel %vm641_vm7, %v3512_v11, %v3514_v55  ;;  %v3764_v22 = vadd.f32 %v13073_v50, %v3676_v21  ;;  %v3680_v53 = vperm.slane %v3610_v28, %v12108_v32  ;;  %v2702_v36 = vadd.f32 %v2602_v38, %v12877_v24 }
 0x67f   : > { %v3559_v5 = vadd.f32 %v3515_v20, %v3342_v49  ;;  %v2730_v11 = vsel %vm641_vm7, %v18508_v51, %v2729_v12  ;;  %v3441_v20 = vsel %vm617_vm9, %v18509_v1, %v3440_v58  ;;  %v2643_v31 = vand.u32 31, %v12469_v16 }
 0x680   : > { %v2810_v54 = vadd.f32 %v2730_v11, %v12972_v48  ;;  %v3812_v57 = vmul.f32 0.3, %v3764_v22  ;;  %v2931_v48 = vperm.slane %v2861_v17, %v12108_v32  ;;  %v3487_v9 = vadd.f32 %v3441_v20, %v3289_v19 }
 0x681   : > { %v3595_v21 = vrot.slane %v3559_v5, 4  ;;  %v3765_v22 = vadd.f32 %v13073_v50, %v3680_v53  ;;  %v2731_v30 = vrot.slane %v12886_v33, 1  ;;  %vm13172_vm1 = vcmp.eq.s32.totalorder %v2643_v31, 31 }
 0x682   : > { %v2846_v47 = vrot.slane %v2810_v54, 4  ;;  %v13151_v49 = vadd.f32 %v3812_v57, %v3788_v62  ;;  %v3016_v17 = vadd.f32 %v13064_v6, %v2931_v48  ;;  %v13184_v48 = vpop.f32.mrf.mxu0  ;;  %v3345_v1 = vpop.f32.mrf.mxu3 }
 0x683   : > { %v13137_v0 = vpop.f32.mrf.mxu1  ;;  %v3611_v5 = vsel %vm303_vm6, %v3487_v9, %v3595_v21  ;;  %v3813_v51 = vmul.f32 0.3, %v3765_v22  ;;  %v3612_v54 = vsel %vm303_vm6, %v3595_v21, %v3487_v9  ;;  %v2732_v38 = vsel %vm641_vm7, %v2729_v12, %v2731_v30 }
 0x684   : > { %11105 = vmatmul.msk.f32.gmra.mxu1 %vm3877_vm0, %v13118_v29  ;;  %11129 = vmatmul.msk.f32.gmra.mxu2 %vm3877_vm0, %v13118_v29  ;;  %v3516_v28 = vrot.slane %v13137_v0, 1  ;;  %v2862_v39 = vsel %vm303_vm6, %v2702_v36, %v2846_v47  ;;  %v3684_v16 = vperm.slane %v3611_v5, %v12108_v32  ;;  %v3789_v53 = vmul.f32 2.0, %v3016_v17  ;;  %v3292_v17 = vpop.f32.mrf.mxu2 }
 0x685   : > { %11153 = vmatmul.msk.f32.gmra.mxu3 %vm3877_vm0, %v13118_v29  ;;  %11177 = vmatmul.msk.f32.gmra.mxu0 %vm3877_vm0, %v13118_v29  ;;  %v2935_v19 = vperm.slane %v2862_v39, %v12108_v32  ;;  %v2863_v57 = vsel %vm303_vm6, %v2846_v47, %v2702_v36  ;;  %v3613_v62 = vrot.slane %v3612_v54, 4  ;;  %v2603_v9 = vrot.slane %v12980_v3, 7 }
 0x686   : > { %v3517_v24 = vsel %vm641_vm7, %v3514_v55, %v3516_v28  ;;  %v13186_v20 = vadd.f32 %v3813_v51, %v3789_v53  ;;  %v3766_v21 = vadd.f32 %v13073_v50, %v3684_v16  ;;  %v2864_v31 = vrot.slane %v2863_v57, 4 }
 0x687   : > { %v3548_v55 = vsel %vm13172_vm1, 0.0, %v3517_v24  ;;  %v3017_v5 = vadd.f32 %v13064_v6, %v2935_v19  ;;  %v2799_v47 = vsel %vm13172_vm1, 0.0, %v2732_v38  ;;  %v3442_v36 = vrot.slane %v13184_v48, 7 }
 0x688   : > { %v3560_v22 = vadd.f32 %v3548_v55, %v3345_v1  ;;  %v2811_v12 = vadd.f32 %v2799_v47, %v12982_v8  ;;  %v3688_v3 = vperm.slane %v3613_v62, %v12108_v32  ;;  %v3814_v39 = vmul.f32 0.3, %v3766_v21 }
 0x689   : > { %v2604_v16 = vsel %vm617_vm9, %v2601_v14, %v2603_v9  ;;  %v2939_v51 = vperm.slane %v2864_v31, %v12108_v32  ;;  %v3790_v11 = vmul.f32 2.0, %v3017_v5  ;;  %v3443_v8 = vsel %vm617_vm9, %v3440_v58, %v3442_v36 }
 0x68a   : > { %v3596_v24 = vrot.slane %v3560_v22, 4  ;;  %v2847_v54 = vrot.slane %v2811_v12, 4  ;;  %v3488_v53 = vadd.f32 %v3443_v8, %v3292_v17  ;;  %v3767_v57 = vadd.f32 %v13073_v50, %v3688_v3  ;;  %v13230_v58 = vpop.f32.mrf.mxu0 }
 0x68b   : > { %v13211_v19 = vpop.f32.mrf.mxu1  ;;  %v13213_v55 = vadd.f32 %v3814_v39, %v3790_v11  ;;  %v2703_v38 = vadd.f32 %v2604_v16, %v12884_v4  ;;  %v3018_v14 = vadd.f32 %v13064_v6, %v2939_v51  ;;  %v2733_v21 = vrot.slane %v12894_v26, 1 }
 0x68c   : > { %11106 = vmatmul.msk.f32.gmra.mxu1 %vm3877_vm0, %v13151_v49  ;;  %11130 = vmatmul.msk.f32.gmra.mxu2 %vm3877_vm0, %v13151_v49  ;;  %v3614_v25 = vsel %vm303_vm6, %v3488_v53, %v3596_v24  ;;  %v3518_v48 = vrot.slane %v13211_v19, 1  ;;  %v3815_v62 = vmul.f32 0.3, %v3767_v57  ;;  %v3615_v1 = vsel %vm303_vm6, %v3596_v24, %v3488_v53  ;;  %v3348_v24 = vpop.f32.mrf.mxu3 }
 0x68d   : > { %11154 = vmatmul.msk.f32.gmra.mxu3 %vm3877_vm0, %v13151_v49  ;;  %11178 = vmatmul.msk.f32.gmra.mxu0 %vm3877_vm0, %v13151_v49  ;;  %v2865_v2 = vsel %vm303_vm6, %v2703_v38, %v2847_v54  ;;  %v3692_v4 = vperm.slane %v3614_v25, %v12108_v32  ;;  %v3791_v22 = vmul.f32 2.0, %v3018_v14  ;;  %v2605_v47 = vrot.slane %v12989_v41, 7 }
 0x68e   : > { %v2943_v31 = vperm.slane %v2865_v2, %v12108_v32  ;;  %v3519_v5 = vsel %vm641_vm7, %v3516_v28, %v3518_v48  ;;  %v2866_v12 = vsel %vm303_vm6, %v2847_v54, %v2703_v38  ;;  %v3444_v3 = vrot.slane %v13230_v58, 7 }
 0x68f   : > { %v2644_v17 = vand.u32 31, %v12495_v60  ;;  %v3616_v39 = vrot.slane %v3615_v1, 4  ;;  %v13244_v26 = vadd.f32 %v3815_v62, %v3791_v22  ;;  %v3768_v16 = vadd.f32 %v13073_v50, %v3692_v4 }
 0x690   : > { %v3561_v51 = vadd.f32 %v3519_v5, %v3348_v24  ;;  %v2867_v11 = vrot.slane %v2866_v12, 4  ;;  %v3019_v0 = vadd.f32 %v13064_v6, %v2943_v31  ;;  %v2734_v28 = vsel %vm641_vm7, %v2731_v30, %v2733_v21  ;;  %v3295_v30 = vpop.f32.mrf.mxu2 }
 0x691   : > { %v2812_v60 = vadd.f32 %v2734_v28, %v12991_v10  ;;  %v2606_v8 = vsel %vm617_vm9, %v2603_v9, %v2605_v47  ;;  %vm13259_vm2 = vcmp.eq.s32.totalorder %v2644_v17, 0  ;;  %v3445_v33 = vsel %vm617_vm9, %v3442_v36, %v3444_v3 }
 0x692   : > { %v3696_v10 = vperm.slane %v3616_v39, %v12108_v32  ;;  %v3816_v53 = vmul.f32 0.3, %v3768_v16  ;;  %v3597_v57 = vrot.slane %v3561_v51, 4  ;;  %v2947_v9 = vperm.slane %v2867_v11, %v12108_v32 }
 0x693   : > { %v3792_v38 = vmul.f32 2.0, %v3019_v0  ;;  %v2692_v25 = vsel %vm13259_vm2, 0.0, %v2606_v8  ;;  %v3477_v36 = vsel %vm13259_vm2, 0.0, %v3445_v33  ;;  %v2848_v14 = vrot.slane %v2812_v60, 4  ;;  %v13276_v4 = vpop.f32.mrf.mxu1  ;;  %v13302_v60 = vpop.f32.mrf.mxu0 }
 0x694   : > { %11107 = vmatmul.msk.f32.gmra.mxu1 %vm3877_vm0, %v13186_v20  ;;  %11131 = vmatmul.msk.f32.gmra.mxu2 %vm3877_vm0, %v13186_v20  ;;  %v3489_v2 = vadd.f32 %v3477_v36, %v3295_v30  ;;  %v3769_v1 = vadd.f32 %v13073_v50, %v3696_v10  ;;  %v2704_v22 = vadd.f32 %v2692_v25, %v12892_v46  ;;  %v3520_v12 = vrot.slane %v13276_v4, 1  ;;  %v3351_v54 = vpop.f32.mrf.mxu3 }
 0x695   : > { %11155 = vmatmul.msk.f32.gmra.mxu3 %vm3877_vm0, %v13186_v20  ;;  %11179 = vmatmul.msk.f32.gmra.mxu0 %vm3877_vm0, %v13186_v20  ;;  %v13278_v62 = vadd.f32 %v3816_v53, %v3792_v38  ;;  %v3020_v5 = vadd.f32 %v13064_v6, %v2947_v9  ;;  %v2735_v16 = vrot.slane %v12902_v7, 1  ;;  %v2607_v30 = vrot.slane %v13002_v37, 7 }
 0x696   : > { %v3617_v31 = vsel %vm303_vm6, %v3489_v2, %v3597_v57  ;;  %v2868_v17 = vsel %vm303_vm6, %v2704_v22, %v2848_v14  ;;  %v3817_v39 = vmul.f32 0.3, %v3769_v1  ;;  %v3618_v24 = vsel %vm303_vm6, %v3597_v57, %v3489_v2 }
 0x697   : > { %v3700_v46 = vperm.slane %v3617_v31, %v12108_v32  ;;  %v3793_v51 = vmul.f32 2.0, %v3020_v5  ;;  %v2951_v11 = vperm.slane %v2868_v17, %v12108_v32  ;;  %v3521_v0 = vsel %vm641_vm7, %v3518_v48, %v3520_v12 }
 0x698   : > { %v2869_v28 = vsel %vm303_vm6, %v2848_v14, %v2704_v22  ;;  %v3619_v8 = vrot.slane %v3618_v24, 4  ;;  %v3562_v53 = vadd.f32 %v3521_v0, %v3351_v54  ;;  %v2736_v57 = vsel %vm641_vm7, %v2733_v21, %v2735_v16  ;;  %v3298_v25 = vpop.f32.mrf.mxu2 }
 0x699   : > { %v13304_v33 = vadd.f32 %v3817_v39, %v3793_v51  ;;  %v3770_v10 = vadd.f32 %v13073_v50, %v3700_v46  ;;  %v2870_v19 = vrot.slane %v2869_v28, 4  ;;  %v3021_v48 = vadd.f32 %v13064_v6, %v2951_v11 }
 0x69a   : > { %v3446_v9 = vrot.slane %v13302_v60, 7  ;;  %v2813_v38 = vadd.f32 %v2736_v57, %v13004_v56  ;;  %v3704_v21 = vperm.slane %v3619_v8, %v12108_v32  ;;  %v3598_v14 = vrot.slane %v3562_v53, 4 }
 0x69b   : > { %v3818_v36 = vmul.f32 0.3, %v3770_v10  ;;  %v2608_v2 = vsel %vm617_vm9, %v2605_v47, %v2607_v30  ;;  %v2955_v4 = vperm.slane %v2870_v19, %v12108_v32  ;;  %v3794_v56 = vmul.f32 2.0, %v3021_v48  ;;  %v13334_v5 = vpop.f32.mrf.mxu1  ;;  %v13358_v53 = vpop.f32.mrf.mxu0 }
 0x69c   : > { %11108 = vmatmul.msk.f32.gmra.mxu1 %vm3877_vm0, %v13213_v55  ;;  %11132 = vmatmul.msk.f32.gmra.mxu2 %vm3877_vm0, %v13213_v55  ;;  %v3447_v1 = vsel %vm617_vm9, %v3444_v3, %v3446_v9  ;;  %v2849_v22 = vrot.slane %v2813_v38, 4  ;;  %v3771_v46 = vadd.f32 %v13073_v50, %v3704_v21  ;;  %v2705_v41 = vadd.f32 %v2608_v2, %v12900_v43  ;;  %v3867_v43 = vld [vmem:[#allocation2 + $0x920] sm:$0xff]  ;;  %v3354_v19 = vpop.f32.mrf.mxu3 }
 0x69d   : > { %11156 = vmatmul.msk.f32.gmra.mxu3 %vm3877_vm0, %v13213_v55  ;;  %11180 = vmatmul.msk.f32.gmra.mxu0 %vm3877_vm0, %v13213_v55  ;;  %v3490_v31 = vadd.f32 %v3447_v1, %v3298_v25  ;;  %v13336_v17 = vadd.f32 %v3818_v36, %v3794_v56  ;;  %v3522_v39 = vrot.slane %v13334_v5, 1  ;;  %v3022_v58 = vadd.f32 %v13064_v6, %v2955_v4 }
 0x69e   : > { %v2871_v3 = vsel %vm303_vm6, %v2705_v41, %v2849_v22  ;;  %v3819_v51 = vmul.f32 0.3, %v3771_v46  ;;  %5369 = vmatpush.msra.mxu1 %v3867_v43  ;;  %v2737_v0 = vrot.slane %v12908_v13, 1  ;;  %v2872_v10 = vsel %vm303_vm6, %v2849_v22, %v2705_v41 }
 0x69f   : > { %v3620_v47 = vsel %vm303_vm6, %v3490_v31, %v3598_v14  ;;  %v3621_v11 = vsel %vm303_vm6, %v3598_v14, %v3490_v31  ;;  %v2959_v28 = vperm.slane %v2871_v3, %v12108_v32  ;;  %v3523_v8 = vsel %vm641_vm7, %v3520_v12, %v3522_v39 }
 0x6a0   : > { %v3708_v24 = vperm.slane %v3620_v47, %v12108_v32  ;;  %v3795_v54 = vmul.f32 2.0, %v3022_v58  ;;  %v3622_v57 = vrot.slane %v3621_v11, 4  ;;  %v2609_v21 = vrot.slane %v13011_v35, 7  ;;  %v3301_v4 = vpop.f32.mrf.mxu2 }
 0x6a1   : > { %v3563_v25 = vadd.f32 %v3523_v8, %v3354_v19  ;;  %v2873_v36 = vrot.slane %v2872_v10, 4  ;;  %v3023_v13 = vadd.f32 %v13064_v6, %v2959_v28  ;;  %v2738_v12 = vsel %vm641_vm7, %v2735_v16, %v2737_v0 }
 0x6a2   : > { %v13360_v48 = vadd.f32 %v3819_v51, %v3795_v54  ;;  %v3772_v38 = vadd.f32 %v13073_v50, %v3708_v24  ;;  %v3448_v14 = vrot.slane %v13358_v53, 7  ;;  %v2814_v2 = vadd.f32 %v2738_v12, %v13013_v61 }
 0x6a3   : > { %v3712_v7 = vperm.slane %v3622_v57, %v12108_v32  ;;  %v13379_v16 = vpop.f32.mrf.mxu1  ;;  %v13382_v1 = vadd.s32 56, %v12084_v63  ;;  %v3599_v22 = vrot.slane %v3563_v25, 4  ;;  %v2610_v61 = vsel %vm617_vm9, %v2607_v30, %v2609_v21  ;;  %v13429_v25 = vpop.f32.mrf.mxu0 }
 0x6a4   : > { %11109 = vmatmul.msk.f32.gmra.mxu1 %vm3877_vm0, %v13244_v26  ;;  %11133 = vmatmul.msk.f32.gmra.mxu2 %vm3877_vm0, %v13244_v26  ;;  %v3820_v56 = vmul.f32 0.3, %v3772_v38  ;;  %v2963_v31 = vperm.slane %v2873_v36, %v12108_v32  ;;  %v3796_v5 = vmul.f32 2.0, %v3023_v13  ;;  %v3449_v46 = vsel %vm617_vm9, %v3446_v9, %v3448_v14  ;;  %v3357_v13 = vpop.f32.mrf.mxu3 }
 0x6a5   : > { %11157 = vmatmul.msk.f32.gmra.mxu3 %vm3877_vm0, %v13244_v26  ;;  %11181 = vmatmul.msk.f32.gmra.mxu0 %vm3877_vm0, %v13244_v26  ;;  %18514 = vst [vmem:[#allocation16_spill] sm:$0xff] %v13382_v1  ;;  %v2850_v41 = vrot.slane %v2814_v2, 4  ;;  %v3491_v47 = vadd.f32 %v3449_v46, %v3301_v4  ;;  %v3524_v58 = vrot.slane %v13379_v16, 1  ;;  %v3773_v43 = vadd.f32 %v13073_v50, %v3712_v7 }
 0x6a6   : > { %v13396_v3 = vadd.f32 %v3820_v56, %v3796_v5  ;;  %v2706_v37 = vadd.f32 %v2610_v61, %v12910_v40  ;;  %v2647_v30 = vand.u32 31, %v13382_v1  ;;  %v3024_v51 = vadd.f32 %v13064_v6, %v2963_v31 }
 0x6a7   : > { %v3623_v24 = vsel %vm303_vm6, %v3491_v47, %v3599_v22  ;;  %v2739_v60 = vrot.slane %v12916_v34, 1  ;;  %v3525_v40 = vsel %vm641_vm7, %v3522_v39, %v3524_v58  ;;  %v3821_v28 = vmul.f32 0.3, %v3773_v43 }
 0x6a8   : > { %v2874_v9 = vsel %vm303_vm6, %v2706_v37, %v2850_v41  ;;  %v3716_v11 = vperm.slane %v3623_v24, %v12108_v32  ;;  %vm13417_vm3 = vcmp.eq.s32.totalorder %v2647_v30, 31  ;;  %v3624_v54 = vsel %vm303_vm6, %v3599_v22, %v3491_v47  ;;  %v3304_v5 = vpop.f32.mrf.mxu2 }
 0x6a9   : > { %v3797_v10 = vmul.f32 2.0, %v3024_v51  ;;  %v2967_v57 = vperm.slane %v2874_v9, %v12108_v32  ;;  %v3552_v39 = vsel %vm13417_vm3, 0.0, %v3525_v40  ;;  %v2875_v19 = vsel %vm303_vm6, %v2850_v41, %v2706_v37 }
 0x6aa   : > { %v2740_v38 = vsel %vm641_vm7, %v2737_v0, %v2739_v60  ;;  %v3625_v36 = vrot.slane %v3624_v54, 4  ;;  %v3774_v2 = vadd.f32 %v13073_v50, %v3716_v11  ;;  %v2611_v7 = vrot.slane %v13021_v59, 7 }
 0x6ab   : > { %v13431_v12 = vadd.f32 %v3821_v28, %v3797_v10  ;;  %v3564_v4 = vadd.f32 %v3552_v39, %v3357_v13  ;;  %v2876_v56 = vrot.slane %v2875_v19, 4  ;;  %v3025_v22 = vadd.f32 %v13064_v6, %v2967_v57  ;;  %v13456_v51 = vpop.f32.mrf.mxu1  ;;  %v13478_v8 = vpop.f32.mrf.mxu0 }
 0x6ac   : > { %11110 = vmatmul.msk.f32.gmra.mxu1 %vm3877_vm0, %v13278_v62  ;;  %11134 = vmatmul.msk.f32.gmra.mxu2 %vm3877_vm0, %v13278_v62  ;;  %v2803_v61 = vsel %vm13417_vm3, 0.0, %v2740_v38  ;;  %v3450_v31 = vrot.slane %v13429_v25, 7  ;;  %v3720_v59 = vperm.slane %v3625_v36, %v12108_v32  ;;  %v3822_v46 = vmul.f32 0.3, %v3774_v2 }
 0x6ad   : > { %11158 = vmatmul.msk.f32.gmra.mxu3 %vm3877_vm0, %v13278_v62  ;;  %11182 = vmatmul.msk.f32.gmra.mxu0 %vm3877_vm0, %v13278_v62  ;;  %v2815_v0 = vadd.f32 %v2803_v61, %v13023_v45  ;;  %v3600_v41 = vrot.slane %v3564_v4, 4  ;;  %v2612_v47 = vsel %vm617_vm9, %v2609_v21, %v2611_v7  ;;  %v2971_v43 = vperm.slane %v2876_v56, %v12108_v32  ;;  %v3360_v56 = vpop.f32.mrf.mxu3 }
 0x6ae   : > { %v3798_v37 = vmul.f32 2.0, %v3025_v22  ;;  %v3451_v45 = vsel %vm617_vm9, %v3448_v14, %v3450_v31  ;;  %v3775_v40 = vadd.f32 %v13073_v50, %v3720_v59  ;;  %v2707_v11 = vadd.f32 %v2612_v47, %v12918_v15 }
 0x6af   : > { %v2851_v30 = vrot.slane %v2815_v0, 4  ;;  %v3492_v24 = vadd.f32 %v3451_v45, %v3304_v5  ;;  %v3026_v21 = vadd.f32 %v13064_v6, %v2971_v43  ;;  %v3526_v28 = vrot.slane %v13456_v51, 1 }
 0x6b0   : > { %v13458_v9 = vadd.f32 %v3822_v46, %v3798_v37  ;;  %v13471_v14 = vadd.s32 64, %v12084_v63  ;;  %v3823_v54 = vmul.f32 0.3, %v3775_v40  ;;  %v2741_v57 = vrot.slane %v12920_v18, 1 }
 0x6b1   : > { %v3626_v35 = vsel %vm303_vm6, %v3492_v24, %v3600_v41  ;;  %v2877_v53 = vsel %vm303_vm6, %v2707_v11, %v2851_v30  ;;  %v3627_v10 = vsel %vm303_vm6, %v3600_v41, %v3492_v24  ;;  %v3799_v39 = vmul.f32 2.0, %v3026_v21 }
 0x6b2   : > { %v3724_v15 = vperm.slane %v3626_v35, %v12108_v32  ;;  %v2975_v19 = vperm.slane %v2877_v53, %v12108_v32  ;;  %v3527_v38 = vsel %vm641_vm7, %v3524_v58, %v3526_v28  ;;  %v2613_v25 = vrot.slane %v13029_v52, 7 }
 0x6b3   : > { %v2878_v36 = vsel %vm303_vm6, %v2851_v30, %v2707_v11  ;;  %v3452_v13 = vrot.slane %v13478_v8, 7  ;;  %v2648_v2 = vand.u32 31, %v13471_v14  ;;  %v3628_v4 = vrot.slane %v3627_v10, 4 }
 0x6b4   : > { %11111 = vmatmul.msk.f32.gmra.mxu1 %vm3877_vm0, %v13304_v33  ;;  %11135 = vmatmul.msk.f32.gmra.mxu2 %vm3877_vm0, %v13304_v33  ;;  %v13492_v22 = vadd.f32 %v3823_v54, %v3799_v39  ;;  %v3776_v61 = vadd.f32 %v13073_v50, %v3724_v15  ;;  %v3565_v0 = vadd.f32 %v3527_v38, %v3360_v56  ;;  %v2879_v59 = vrot.slane %v2878_v36, 4 }
 0x6b5   : > { %11159 = vmatmul.msk.f32.gmra.mxu3 %vm3877_vm0, %v13304_v33  ;;  %11183 = vmatmul.msk.f32.gmra.mxu0 %vm3877_vm0, %v13304_v33  ;;  %v3027_v16 = vadd.f32 %v13064_v6, %v2975_v19  ;;  %v2742_v58 = vsel %vm641_vm7, %v2739_v60, %v2741_v57  ;;  %v2614_v46 = vsel %vm617_vm9, %v2611_v7, %v2613_v25  ;;  %vm13509_vm4 = vcmp.eq.s32.totalorder %v2648_v2, 0  ;;  %v3307_v60 = vpop.f32.mrf.mxu2  ;;  %v13521_v7 = vpop.f32.mrf.mxu1 }
 0x6b6   : > { %v2816_v5 = vadd.f32 %v2742_v58, %v13031_v44  ;;  %v3453_v34 = vsel %vm617_vm9, %v3450_v31, %v3452_v13  ;;  %v3728_v44 = vperm.slane %v3628_v4, %v12108_v32  ;;  %v3824_v47 = vmul.f32 0.3, %v3776_v61  ;;  %v13552_v61 = vpop.f32.mrf.mxu0 }
 0x6b7   : > { %v3601_v43 = vrot.slane %v3565_v0, 4  ;;  %v2979_v37 = vperm.slane %v2879_v59, %v12108_v32  ;;  %v3800_v45 = vmul.f32 2.0, %v3027_v16  ;;  %v2696_v30 = vsel %vm13509_vm4, 0.0, %v2614_v46  ;;  %v3363_v16 = vpop.f32.mrf.mxu3  ;;  %v18519_v46 = vld [vmem:[#allocation10_spill] sm:$0xff] }
 0x6b8   : > { %v3481_v31 = vsel %vm13509_vm4, 0.0, %v3453_v34  ;;  %v2852_v24 = vrot.slane %v2816_v5, 4  ;;  %v3777_v35 = vadd.f32 %v13073_v50, %v3728_v44  ;;  %v2708_v21 = vadd.f32 %v2696_v30, %v12922_v42 }
 0x6b9   : > { %v3493_v40 = vadd.f32 %v3481_v31, %v3307_v60  ;;  %v13528_v11 = vadd.f32 %v3824_v47, %v3800_v45  ;;  %v3028_v15 = vadd.f32 %v13064_v6, %v2979_v37  ;;  %v3528_v54 = vrot.slane %v13521_v7, 1  ;;  %v18520_v47 = vld [vmem:[#allocation11_spill] sm:$0xff] }
 0x6ba   : > { %v2880_v10 = vsel %vm303_vm6, %v2708_v21, %v2852_v24  ;;  %v3825_v39 = vmul.f32 0.3, %v3777_v35  ;;  %v2743_v38 = vrot.slane %v12924_v23, 1  ;;  %v2881_v56 = vsel %vm303_vm6, %v2852_v24, %v2708_v21 }
 0x6bb   : > { %v3629_v53 = vsel %vm303_vm6, %v3493_v40, %v3601_v43  ;;  %v3630_v19 = vsel %vm303_vm6, %v3601_v43, %v3493_v40  ;;  %v3801_v36 = vmul.f32 2.0, %v3028_v15  ;;  %v2983_v2 = vperm.slane %v2880_v10, %v12108_v32  ;;  %v18521_v10 = vld [vmem:[#allocation6_spill] sm:$0xff] }
 0x6bc   : > { %11112 = vmatmul.msk.f32.gmra.mxu1 %vm3877_vm0, %v13336_v17  ;;  %11136 = vmatmul.msk.f32.gmra.mxu2 %vm3877_vm0, %v13336_v17  ;;  %v3732_v42 = vperm.slane %v3629_v53, %v12108_v32  ;;  %v3529_v4 = vsel %vm641_vm7, %v3526_v28, %v3528_v54  ;;  %v3631_v59 = vrot.slane %v3630_v19, 4  ;;  %v2615_v41 = vrot.slane %v18519_v46, 7 }
 0x6bd   : > { %11160 = vmatmul.msk.f32.gmra.mxu3 %vm3877_vm0, %v13336_v17  ;;  %11184 = vmatmul.msk.f32.gmra.mxu0 %vm3877_vm0, %v13336_v17  ;;  %v13554_v0 = vpop.f32.mrf.mxu1  ;;  %v13556_v58 = vadd.f32 %v3825_v39, %v3801_v36  ;;  %v3566_v34 = vadd.f32 %v3529_v4, %v3363_v16  ;;  %v2744_v51 = vsel %vm641_vm7, %v2741_v57, %v2743_v38  ;;  %v2882_v28 = vrot.slane %v2881_v56, 4  ;;  %v3310_v57 = vpop.f32.mrf.mxu2 }
 0x6be   : > { %v3778_v5 = vadd.f32 %v13073_v50, %v3732_v42  ;;  %v3029_v44 = vadd.f32 %v13064_v6, %v2983_v2  ;;  %v3454_v60 = vrot.slane %v13552_v61, 7  ;;  %v2817_v43 = vadd.f32 %v2744_v51, %v18520_v47  ;;  %v18522_v2 = vld [vmem:[#allocation7_spill] sm:$0xff]  ;;  %v13610_v16 = vpop.f32.mrf.mxu0  ;;  %v18523_v47 = vld [vmem:[#allocation12_spill] sm:$0xff] }
 0x6bf   : > { %v3736_v18 = vperm.slane %v3631_v59, %v12108_v32  ;;  %v3602_v37 = vrot.slane %v3566_v34, 4  ;;  %v2616_v45 = vsel %vm617_vm9, %v2613_v25, %v2615_v41  ;;  %v2987_v30 = vperm.slane %v2882_v28, %v12108_v32  ;;  %v3366_v51 = vpop.f32.mrf.mxu3 }
 0x6c0   : > { %v3826_v7 = vmul.f32 0.3, %v3778_v5  ;;  %v3802_v31 = vmul.f32 2.0, %v3029_v44  ;;  %v3455_v24 = vsel %vm617_vm9, %v3452_v13, %v3454_v60  ;;  %v2853_v40 = vrot.slane %v2817_v43, 4 }
 0x6c1   : > { %v3494_v35 = vadd.f32 %v3455_v24, %v3310_v57  ;;  %v3779_v15 = vadd.f32 %v13073_v50, %v3736_v18  ;;  %v2709_v42 = vadd.f32 %v2616_v45, %v18521_v10  ;;  %v3530_v25 = vrot.slane %v13554_v0, 1  ;;  %v18524_v45 = vld [vmem:[#allocation13_spill] sm:$0xff] }
 0x6c2   : > { %v13588_v53 = vadd.f32 %v3826_v7, %v3802_v31  ;;  %v3030_v8 = vadd.f32 %v13064_v6, %v2987_v30  ;;  %v2745_v4 = vrot.slane %v18522_v2, 1  ;;  %v2617_v43 = vrot.slane %v18523_v47, 7 }
 0x6c3   : > { %v3632_v52 = vsel %vm303_vm6, %v3494_v35, %v3602_v37  ;;  %v2883_v13 = vsel %vm303_vm6, %v2709_v42, %v2853_v40  ;;  %v3827_v19 = vmul.f32 0.3, %v3779_v15  ;;  %v3633_v36 = vsel %vm303_vm6, %v3602_v37, %v3494_v35 }
 0x6c4   : > { %11113 = vmatmul.msk.f32.gmra.mxu1 %vm3877_vm0, %v13360_v48  ;;  %11137 = vmatmul.msk.f32.gmra.mxu2 %vm3877_vm0, %v13360_v48  ;;  %v3740_v39 = vperm.slane %v3632_v52, %v12108_v32  ;;  %v2991_v56 = vperm.slane %v2883_v13, %v12108_v32  ;;  %v3531_v61 = vsel %vm641_vm7, %v3528_v54, %v3530_v25  ;;  %v3803_v0 = vmul.f32 2.0, %v3030_v8 }
 0x6c5   : > { %11161 = vmatmul.msk.f32.gmra.mxu3 %vm3877_vm0, %v13360_v48  ;;  %11185 = vmatmul.msk.f32.gmra.mxu0 %vm3877_vm0, %v13360_v48  ;;  %v2884_v59 = vsel %vm303_vm6, %v2853_v40, %v2709_v42  ;;  %v3634_v34 = vrot.slane %v3633_v36, 4  ;;  %v3567_v18 = vadd.f32 %v3531_v61, %v3366_v51  ;;  %v2746_v54 = vsel %vm641_vm7, %v2743_v38, %v2745_v4  ;;  %v3313_v31 = vpop.f32.mrf.mxu2  ;;  %v18525_v36 = vld [vmem:[#allocation8_spill] sm:$0xff] }
 0x6c6   : > { %v13614_v28 = vadd.f32 %v3827_v19, %v3803_v0  ;;  %v3780_v44 = vadd.f32 %v13073_v50, %v3740_v39  ;;  %v2885_v57 = vrot.slane %v2884_v59, 4  ;;  %v3031_v7 = vadd.f32 %v13064_v6, %v2991_v56 }
 0x6c7   : > { %v3456_v37 = vrot.slane %v13610_v16, 7  ;;  %v2818_v30 = vadd.f32 %v2746_v54, %v18524_v45  ;;  %v3744_v23 = vperm.slane %v3634_v34, %v12108_v32  ;;  %v2639_v24 = vadd.s32 88, %v12084_v63  ;;  %v3422_v45 = vpop.f32.mrf.mxu0 }
 0x6c8   : > { %v3828_v38 = vmul.f32 0.3, %v3780_v44  ;;  %v3603_v40 = vrot.slane %v3567_v18, 4  ;;  %v2618_v35 = vsel %vm617_vm9, %v2615_v41, %v2617_v43  ;;  %v2995_v15 = vperm.slane %v2885_v57, %v12108_v32  ;;  %v18530_v57 = vld [vmem:[#allocation9_spill] sm:$0xff] }
 0x6c9   : > { %v3804_v10 = vmul.f32 2.0, %v3031_v7  ;;  %v3457_v42 = vsel %vm617_vm9, %v3454_v60, %v3456_v37  ;;  %v2854_v52 = vrot.slane %v2818_v30, 4  ;;  %v3781_v19 = vadd.f32 %v13073_v50, %v3744_v23  ;;  %v3369_v7 = vpop.f32.mrf.mxu3 }
 0x6ca   : > { %v3495_v8 = vadd.f32 %v3457_v42, %v3313_v31  ;;  %v2710_v2 = vadd.f32 %v2618_v35, %v18525_v36  ;;  %v3032_v41 = vadd.f32 %v13064_v6, %v2995_v15  ;;  %v2651_v56 = vand.u32 31, %v2639_v24  ;;  %v3873_v24 = vld [vmem:[#allocation2 + $0x980] sm:$0xff]  ;;  %v18528_v35 = vld [vmem:[#allocation14_spill] sm:$0xff] }
 0x6cb   : > { %v13645_v39 = vadd.f32 %v3828_v38, %v3804_v10  ;;  %v3829_v0 = vmul.f32 0.3, %v3781_v19  ;;  %v3544_v34 = vsel %vm641_vm7, %v3530_v25, 0.0  ;;  %v2759_v18 = vsel %vm641_vm7, %v2745_v4, 0.0  ;;  %5553 = vmatpush.msra.mxu2 %v3873_v24 }
 0x6cc   : > { %11114 = vmatmul.msk.f32.gmra.mxu1 %vm3877_vm0, %v13396_v3  ;;  %11138 = vmatmul.msk.f32.gmra.mxu2 %vm3877_vm0, %v13396_v3  ;;  %v3635_v46 = vsel %vm303_vm6, %v3495_v8, %v3603_v40  ;;  %v2886_v60 = vsel %vm303_vm6, %v2710_v2, %v2854_v52  ;;  %v3636_v59 = vsel %vm303_vm6, %v3603_v40, %v3495_v8  ;;  %v3805_v51 = vmul.f32 2.0, %v3032_v41  ;;  %v18529_v8 = vld [vmem:[#allocation15_spill] sm:$0xff] }
 0x6cd   : > { %11162 = vmatmul.msk.f32.gmra.mxu3 %vm3877_vm0, %v13396_v3  ;;  %11186 = vmatmul.msk.f32.gmra.mxu0 %vm3877_vm0, %v13396_v3  ;;  %v3748_v61 = vperm.slane %v3635_v46, %v12108_v32  ;;  %v2999_v44 = vperm.slane %v2886_v60, %v12108_v32  ;;  %vm13665_vm5 = vcmp.eq.s32.totalorder %v2651_v56, 31  ;;  %v2887_v54 = vsel %vm303_vm6, %v2854_v52, %v2710_v2  ;;  %v3316_v2 = vpop.f32.mrf.mxu2 }
 0x6ce   : > { %v3637_v23 = vrot.slane %v3636_v59, 4  ;;  %v3556_v31 = vsel %vm13665_vm5, 0.0, %v3544_v34  ;;  %v13674_v25 = vadd.f32 %v3829_v0, %v3805_v51  ;;  %v2807_v4 = vsel %vm13665_vm5, 0.0, %v2759_v18 }
 0x6cf   : > { %v3782_v38 = vadd.f32 %v13073_v50, %v3748_v61  ;;  %v3568_v40 = vadd.f32 %v3556_v31, %v3369_v7  ;;  %v2619_v15 = vrot.slane %v18528_v35, 7  ;;  %v2888_v10 = vrot.slane %v2887_v54, 4 }
 0x6d0   : > { %v3033_v42 = vadd.f32 %v13064_v6, %v2999_v44  ;;  %v3458_v52 = vrot.slane %v3422_v45, 7  ;;  %v2819_v19 = vadd.f32 %v2807_v4, %v18529_v8  ;;  %v3752_v36 = vperm.slane %v3637_v23, %v12108_v32  ;;  %v3875_v8 = vld [vmem:[#allocation2 + $0x990] sm:$0xff] }
 0x6d1   : > { %v3830_v46 = vmul.f32 0.3, %v3782_v38  ;;  %v3604_v41 = vrot.slane %v3568_v40, 4  ;;  %v2620_v56 = vsel %vm617_vm9, %v2617_v43, %v2619_v15  ;;  %v3003_v60 = vperm.slane %v2888_v10, %v12108_v32  ;;  %v3874_v15 = vld [vmem:[#allocation2 + $0x988] sm:$0xff]  ;;  %v3876_v10 = vld [vmem:[#allocation2 + $0x998] sm:$0xff]  ;;  %5731 = vmatpush.msra.mxu0 %v3875_v8 }
 0x6d2   : > { %v3806_v61 = vmul.f32 2.0, %v3033_v42  ;;  %v3459_v0 = vsel %vm617_vm9, %v3456_v37, %v3458_v52  ;;  %v2855_v59 = vrot.slane %v2819_v19, 4  ;;  %v3783_v18 = vadd.f32 %v13073_v50, %v3752_v36  ;;  %5642 = vmatpush.msra.mxu3 %v3874_v15  ;;  %5820 = vmatpush.msrb.mxu1 %v3876_v10 }
 0x6d3   : > { %v3496_v34 = vadd.f32 %v3459_v0, %v3316_v2  ;;  %v2711_v7 = vadd.f32 %v2620_v56, %v18530_v57  ;;  %v3034_v43 = vadd.f32 %v13064_v6, %v3003_v60 }
 0x6d4   : > { %11115 = vmatmul.msk.f32.gmra.mxu1 %vm3877_vm0, %v13431_v12  ;;  %11139 = vmatmul.msk.f32.gmra.mxu2 %vm3877_vm0, %v13431_v12  ;;  %v13700_v44 = vadd.f32 %v3830_v46, %v3806_v61  ;;  %v3831_v54 = vmul.f32 0.3, %v3783_v18  ;;  %v13740_v61 = vld [vmem:[#allocation2 + $0x9a0] sm:$0xff] }
 0x6d5   : > { %11163 = vmatmul.msk.f32.gmra.mxu3 %vm3877_vm0, %v13431_v12  ;;  %11187 = vmatmul.msk.f32.gmra.mxu0 %vm3877_vm0, %v13431_v12  ;;  %v3638_v47 = vsel %vm303_vm6, %v3496_v34, %v3604_v41  ;;  %v2889_v16 = vsel %vm303_vm6, %v2711_v7, %v2855_v59  ;;  %v3639_v45 = vsel %vm303_vm6, %v3604_v41, %v3496_v34  ;;  %v3807_v23 = vmul.f32 2.0, %v3034_v43 }
 0x6d6   : > { %v3756_v37 = vperm.slane %v3638_v47, %v12108_v32  ;;  %v3007_v31 = vperm.slane %v2889_v16, %v12108_v32  ;;  %v2890_v38 = vsel %vm303_vm6, %v2855_v59, %v2711_v7  ;;  %v3640_v4 = vrot.slane %v3639_v45, 4 }
 0x6d7   : > { %v13722_v35 = vadd.f32 %v3831_v54, %v3807_v23  ;;  %v2891_v42 = vrot.slane %v2890_v38, 4  ;;  %v13761_v7 = vperm.slane %v13740_v61, 2 }
 0x6d8   : > { %v3784_v40 = vadd.f32 %v13073_v50, %v3756_v37  ;;  %v3035_v52 = vadd.f32 %v13064_v6, %v3007_v31  ;;  %v3760_v19 = vperm.slane %v3640_v4, %v12108_v32 }
 0x6d9   : > { %v3011_v2 = vperm.slane %v2891_v42, %v12108_v32 }
 0x6da   : > { %v3832_v36 = vmul.f32 0.3, %v3784_v40  ;;  %v3808_v46 = vmul.f32 2.0, %v3035_v52  ;;  %v3785_v56 = vadd.f32 %v13073_v50, %v3760_v19  ;;  %v13752_v50 = vperm.slane %v13740_v61, 1 }
 0x6db   : > { %v3036_v0 = vadd.f32 %v13064_v6, %v3011_v2 }
 0x6dc   : > { %11116 = vmatmul.msk.f32.gmra.mxu1 %vm3877_vm0, %v13458_v9  ;;  %11140 = vmatmul.msk.f32.gmra.mxu2 %vm3877_vm0, %v13458_v9  ;;  %v13738_v60 = vadd.f32 %v3832_v36, %v3808_v46  ;;  %v3833_v59 = vmul.f32 0.3, %v3785_v56  ;;  %v5208_v57 = vmul.f32 %v13752_v50, %v13095_v27  ;;  %v5209_v16 = vmul.f32 %v13752_v50, %v13118_v29 }
 0x6dd   : > { %11164 = vmatmul.msk.f32.gmra.mxu3 %vm3877_vm0, %v13458_v9  ;;  %11188 = vmatmul.msk.f32.gmra.mxu0 %vm3877_vm0, %v13458_v9  ;;  %v3809_v34 = vmul.f32 2.0, %v3036_v0  ;;  %v5210_v23 = vmul.f32 %v13752_v50, %v13151_v49  ;;  %v5211_v29 = vmul.f32 %v13752_v50, %v13186_v20  ;;  %v5212_v49 = vmul.f32 %v13752_v50, %v13213_v55 }
 0x6de   : > { %v5233_v47 = vadd.f32 %v13761_v7, %v5208_v57  ;;  %v5234_v37 = vadd.f32 %v13761_v7, %v5209_v16  ;;  %v5213_v46 = vmul.f32 %v13752_v50, %v13244_v26 }
 0x6df   : > { %v13756_v6 = vadd.f32 %v3833_v59, %v3809_v34  ;;  %v5235_v31 = vadd.f32 %v13761_v7, %v5210_v23  ;;  %v5236_v15 = vadd.f32 %v13761_v7, %v5211_v29  ;;  %v5237_v20 = vadd.f32 %v13761_v7, %v5212_v49 }
 0x6e0   : > { %v5257_v27 = vmax.f32 %v5233_v47, 0.0  ;;  %v5258_v45 = vmax.f32 %v5234_v37, 0.0  ;;  %v5238_v0 = vadd.f32 %v13761_v7, %v5213_v46  ;;  %v5214_v47 = vmul.f32 %v13752_v50, %v13278_v62 }
 0x6e1   : > { %v5259_v4 = vmax.f32 %v5235_v31, 0.0  ;;  %v5260_v42 = vmax.f32 %v5236_v15, 0.0  ;;  %v5261_v2 = vmax.f32 %v5237_v20, 0.0  ;;  %v5215_v23 = vmul.f32 %v13752_v50, %v13304_v33  ;;  %v3869_v20 = vld [vmem:[#allocation2 + $0x960] sm:$0xff] }
 0x6e2   : > { %v5262_v57 = vmax.f32 %v5238_v0, 0.0  ;;  %v5239_v26 = vadd.f32 %v13761_v7, %v5214_v47  ;;  %v5216_v49 = vmul.f32 %v13752_v50, %v13336_v17  ;;  %5554 = vmatpush.msra.mxu2 %v3869_v20  ;;  %v3872_v20 = vld [vmem:[#allocation2 + $0x978] sm:$0xff] }
 0x6e3   : > { %v5240_v62 = vadd.f32 %v13761_v7, %v5215_v23  ;;  %5821 = vmatpush.msrb.mxu1 %v3872_v20 }
 0x6e4   : > { %11117 = vmatmul.msk.f32.gmra.mxu1 %vm3877_vm0, %v13492_v22  ;;  %11141 = vmatmul.msk.f32.gmra.mxu2 %vm3877_vm0, %v13492_v22 }
 0x6e5   : > { %11165 = vmatmul.msk.f32.gmra.mxu3 %vm3877_vm0, %v13492_v22  ;;  %11189 = vmatmul.msk.f32.gmra.mxu0 %vm3877_vm0, %v13492_v22 }
 0x6ec   : > { %11118 = vmatmul.msk.f32.gmra.mxu1 %vm3877_vm0, %v13528_v11  ;;  %11142 = vmatmul.msk.f32.gmra.mxu2 %vm3877_vm0, %v13528_v11 }
 0x6ed   : > { %11166 = vmatmul.msk.f32.gmra.mxu3 %vm3877_vm0, %v13528_v11  ;;  %11190 = vmatmul.msk.f32.gmra.mxu0 %vm3877_vm0, %v13528_v11 }
 0x6f4   : > { %11119 = vmatmul.msk.f32.gmra.mxu1 %vm3877_vm0, %v13556_v58  ;;  %11143 = vmatmul.msk.f32.gmra.mxu2 %vm3877_vm0, %v13556_v58 }
 0x6f5   : > { %11167 = vmatmul.msk.f32.gmra.mxu3 %vm3877_vm0, %v13556_v58  ;;  %11191 = vmatmul.msk.f32.gmra.mxu0 %vm3877_vm0, %v13556_v58 }
 0x6f9   : > { %v13586_v21 = vpop.f32.mrf.mxu1 }
 0x6fa   : > { %v13789_v40 = vpop.f32.mrf.mxu0 }
 0x6fc   : > { %11120 = vmatmul.msk.f32.gmra.mxu1 %vm3877_vm0, %v13588_v53  ;;  %11144 = vmatmul.msk.f32.gmra.mxu2 %vm3877_vm0, %v13588_v53 }
 0x6fd   : > { %11168 = vmatmul.msk.f32.gmra.mxu3 %vm3877_vm0, %v13588_v53  ;;  %11192 = vmatmul.msk.f32.gmra.mxu0 %vm3877_vm0, %v13588_v53 }
 0x6ff   : > { %v13796_v52 = vpop.f32.mrf.mxu2 }
 0x700   : > { %v13798_v8 = vpop.f32.mrf.mxu3 }
 0x701   : > { %v13612_v5 = vpop.f32.mrf.mxu1 }
 0x702   : > { %v13802_v19 = vpop.f32.mrf.mxu0 }
 0x704   : > { %11121 = vmatmul.msk.f32.gmra.mxu1 %vm3877_vm0, %v13614_v28  ;;  %11145 = vmatmul.msk.f32.gmra.mxu2 %vm3877_vm0, %v13614_v28 }
 0x705   : > { %11169 = vmatmul.msk.f32.gmra.mxu3 %vm3877_vm0, %v13614_v28  ;;  %11193 = vmatmul.msk.f32.gmra.mxu0 %vm3877_vm0, %v13614_v28 }
 0x707   : > { %v13809_v56 = vpop.f32.mrf.mxu2 }
 0x708   : > { %v13811_v55 = vpop.f32.mrf.mxu3 }
 0x709   : > { %v13643_v13 = vpop.f32.mrf.mxu1 }
 0x70a   : > { %v13816_v34 = vpop.f32.mrf.mxu0 }
 0x70c   : > { %11122 = vmatmul.msk.f32.gmra.mxu1 %vm3877_vm0, %v13645_v39  ;;  %11146 = vmatmul.msk.f32.gmra.mxu2 %vm3877_vm0, %v13645_v39 }
 0x70d   : > { %11170 = vmatmul.msk.f32.gmra.mxu3 %vm3877_vm0, %v13645_v39  ;;  %11194 = vmatmul.msk.f32.gmra.mxu0 %vm3877_vm0, %v13645_v39 }
 0x710   : > { %v13824_v16 = vpop.f32.mrf.mxu3 }
 0x711   : > { %v13670_v30 = vpop.f32.mrf.mxu1 }
 0x712   : > { %v13830_v31 = vpop.f32.mrf.mxu0 }
 0x714   : > { %11123 = vmatmul.msk.f32.gmra.mxu1 %vm3877_vm0, %v13674_v25  ;;  %11147 = vmatmul.msk.f32.gmra.mxu2 %vm3877_vm0, %v13674_v25 }
 0x715   : > { %11171 = vmatmul.msk.f32.gmra.mxu3 %vm3877_vm0, %v13674_v25  ;;  %11195 = vmatmul.msk.f32.gmra.mxu0 %vm3877_vm0, %v13674_v25 }
 0x718   : > { %v13838_v15 = vpop.f32.mrf.mxu3 }
 0x719   : > { %v13698_v51 = vpop.f32.mrf.mxu1 }
 0x71a   : > { %v13843_v33 = vpop.f32.mrf.mxu0 }
 0x71c   : > { %11124 = vmatmul.msk.f32.gmra.mxu1 %vm3877_vm0, %v13700_v44  ;;  %11148 = vmatmul.msk.f32.gmra.mxu2 %vm3877_vm0, %v13700_v44 }
 0x71d   : > { %11172 = vmatmul.msk.f32.gmra.mxu3 %vm3877_vm0, %v13700_v44  ;;  %11196 = vmatmul.msk.f32.gmra.mxu0 %vm3877_vm0, %v13700_v44 }
 0x721   : > { %v13719_v24 = vpop.f32.mrf.mxu1 }
 0x724   : > { %11125 = vmatmul.msk.f32.gmra.mxu1 %vm3877_vm0, %v13722_v35  ;;  %11149 = vmatmul.msk.f32.gmra.mxu2 %vm3877_vm0, %v13722_v35 }
 0x725   : > { %11173 = vmatmul.msk.f32.gmra.mxu3 %vm3877_vm0, %v13722_v35  ;;  %11197 = vmatmul.msk.f32.gmra.mxu0 %vm3877_vm0, %v13722_v35 }
 0x729   : > { %v13735_v41 = vpop.f32.mrf.mxu1 }
 0x72c   : > { %11126 = vmatmul.msk.f32.gmra.mxu1 %vm3877_vm0, %v13738_v60  ;;  %11150 = vmatmul.msk.f32.gmra.mxu2 %vm3877_vm0, %v13738_v60 }
 0x72d   : > { %11174 = vmatmul.msk.f32.gmra.mxu3 %vm3877_vm0, %v13738_v60  ;;  %11198 = vmatmul.msk.f32.gmra.mxu0 %vm3877_vm0, %v13738_v60 }
 0x731   : > { %v13754_v18 = vpop.f32.mrf.mxu1 }
 0x732   : > { %18531 = vst [vmem:[#allocation10_spill] sm:$0xff] %v13754_v18 }
 0x734   : > { %11127 = vmatmul.msk.f32.gmra.mxu1 %vm3877_vm0, %v13756_v6  ;;  %11151 = vmatmul.msk.f32.gmra.mxu2 %vm3877_vm0, %v13756_v6 }
 0x735   : > { %11175 = vmatmul.msk.f32.gmra.mxu3 %vm3877_vm0, %v13756_v6  ;;  %11199 = vmatmul.msk.f32.gmra.mxu0 %vm3877_vm0, %v13756_v6 }
 0x739   : > { %v13772_v43 = vpop.f32.mrf.mxu1 }
 0x73a   : > { %18532 = vst [vmem:[#allocation11_spill] sm:$0xff] %v13772_v43  ;;  %v4583_v43 = vrot.slane %v13612_v5, 1  ;;  %v18199_v5 = vrot.slane %v13789_v40, 7 }
 0x73c   : > { %11200 = vmatmul.msk.f32.vlgmr.msra.gmra.mxu1 %vm3877_vm0, %v5257_v27  ;;  %v13822_v27 = vpop.f32.mrf.mxu2 }
 0x741   : > { %v13778_v54 = vpop.f32.mrf.mxu1 }
 0x742   : > { %18533 = vst [vmem:[#allocation6_spill] sm:$0xff] %v13778_v54 }
 0x744   : > { %11201 = vmatmul.msk.f32.gmra.mxu1 %vm3877_vm0, %v5258_v45  ;;  %v5263_v45 = vmax.f32 %v5239_v26, 0.0  ;;  %v13852_v26 = vpop.f32.mrf.mxu3 }
 0x749   : > { %v13784_v38 = vpop.f32.mrf.mxu1 }
 0x74a   : > { %18534 = vst [vmem:[#allocation7_spill] sm:$0xff] %v13784_v38 }
 0x74c   : > { %11202 = vmatmul.msk.f32.gmra.mxu1 %vm3877_vm0, %v5259_v4  ;;  %v13834_v4 = vpop.f32.mrf.mxu2 }
 0x751   : > { %v13792_v10 = vpop.f32.mrf.mxu1 }
 0x752   : > { %18535 = vst [vmem:[#allocation12_spill] sm:$0xff] %v13792_v10 }
 0x754   : > { %11203 = vmatmul.msk.f32.gmra.mxu1 %vm3877_vm0, %v5260_v42  ;;  %v5264_v42 = vmax.f32 %v5240_v62, 0.0  ;;  %v13850_v47 = vpop.f32.mrf.mxu2 }
 0x759   : > { %v13804_v36 = vpop.f32.mrf.mxu1 }
 0x75a   : > { %18536 = vst [vmem:[#allocation13_spill] sm:$0xff] %v13804_v36 }
 0x75c   : > { %11204 = vmatmul.msk.f32.gmra.mxu1 %vm3877_vm0, %v5261_v2  ;;  %v5241_v2 = vadd.f32 %v13761_v7, %v5216_v49  ;;  %v3870_v49 = vld [vmem:[#allocation2 + $0x968] sm:$0xff] }
 0x75d   : > { %5643 = vmatpush.msra.mxu3 %v3870_v49 }
 0x75e   : > { %v5265_v0 = vmax.f32 %v5241_v2, 0.0  ;;  %v3871_v2 = vld [vmem:[#allocation2 + $0x970] sm:$0xff] }
 0x75f   : > { %5732 = vmatpush.msra.mxu0 %v3871_v2 }
 0x761   : > { %v13814_v59 = vpop.f32.mrf.mxu1 }
 0x762   : > { %18537 = vst [vmem:[#allocation8_spill] sm:$0xff] %v13814_v59 }
 0x764   : > { %11205 = vmatmul.msk.f32.gmra.mxu1 %vm3877_vm0, %v5262_v57  ;;  %v5217_v57 = vmul.f32 %v13752_v50, %v13360_v48  ;;  %v13863_v48 = vpop.f32.mrf.mxu2 }
 0x765   : > { %18542 = vst [vmem:[#allocation18_spill] sm:$0xff] %v13863_v48 }
 0x766   : > { %v5242_v17 = vadd.f32 %v13761_v7, %v5217_v57 }
 0x768   : > { %v5266_v62 = vmax.f32 %v5242_v17, 0.0 }
 0x769   : > { %v13826_v37 = vpop.f32.mrf.mxu1 }
 0x76a   : > { %18538 = vst [vmem:[#allocation14_spill] sm:$0xff] %v13826_v37 }
 0x76c   : > { %11206 = vmatmul.msk.f32.gmra.mxu1 %vm3877_vm0, %v5263_v45  ;;  %v13856_v45 = vpop.f32.mrf.mxu0 }
 0x771   : > { %v13836_v29 = vpop.f32.mrf.mxu1 }
 0x772   : > { %18539 = vst [vmem:[#allocation15_spill] sm:$0xff] %v13836_v29 }
 0x774   : > { %11207 = vmatmul.msk.f32.gmra.mxu1 %vm3877_vm0, %v5264_v42  ;;  %v5218_v42 = vmul.f32 %v13752_v50, %v13396_v3  ;;  %v13870_v17 = vpop.f32.mrf.mxu0  ;;  %v5219_v3 = vmul.f32 %v13752_v50, %v13431_v12 }
 0x775   : > { %18545 = vst [vmem:[#allocation21_spill] sm:$0xff] %v13870_v17  ;;  %v4582_v17 = vrot.slane %v13586_v21, 1 }
 0x776   : > { %v5243_v57 = vadd.f32 %v13761_v7, %v5218_v42  ;;  %v5244_v49 = vadd.f32 %v13761_v7, %v5219_v3  ;;  %v5220_v42 = vmul.f32 %v13752_v50, %v13458_v9 }
 0x778   : > { %v5268_v29 = vmax.f32 %v5244_v49, 0.0  ;;  %v5245_v12 = vadd.f32 %v13761_v7, %v5220_v42  ;;  %v5222_v42 = vmul.f32 %v13752_v50, %v13528_v11 }
 0x779   : > { %v13846_v46 = vpop.f32.mrf.mxu1 }
 0x77a   : > { %18540 = vst [vmem:[#allocation9_spill] sm:$0xff] %v13846_v46  ;;  %v5269_v37 = vmax.f32 %v5245_v12, 0.0 }
 0x77c   : > { %11208 = vmatmul.msk.f32.gmra.mxu1 %vm3877_vm0, %v5265_v0  ;;  %v13865_v0 = vpop.f32.mrf.mxu3 }
 0x77d   : > { %18543 = vst [vmem:[#allocation19_spill] sm:$0xff] %v13865_v0 }
 0x781   : > { %v13858_v23 = vpop.f32.mrf.mxu1 }
 0x782   : > { %18541 = vst [vmem:[#allocation17_spill] sm:$0xff] %v13858_v23  ;;  %v5267_v23 = vmax.f32 %v5243_v57, 0.0 }
 0x784   : > { %11209 = vmatmul.msk.f32.gmra.mxu1 %vm3877_vm0, %v5266_v62  ;;  %v13876_v62 = vpop.f32.mrf.mxu2  ;;  %v13878_v20 = vpop.f32.mrf.mxu3 }
 0x785   : > { %18546 = vst [vmem:[#allocation22_spill] sm:$0xff] %v13876_v62 }
 0x786   : > { %18547 = vst [vmem:[#allocation23_spill] sm:$0xff] %v13878_v20 }
 0x789   : > { %v13868_v46 = vpop.f32.mrf.mxu1 }
 0x78a   : > { %18544 = vst [vmem:[#allocation20_spill] sm:$0xff] %v13868_v46  ;;  %v13884_v46 = vpop.f32.mrf.mxu0 }
 0x78b   : > { %18549 = vst [vmem:[#allocation25_spill] sm:$0xff] %v13884_v46 }
 0x78c   : > { %11210 = vmatmul.msk.f32.gmra.mxu1 %vm3877_vm0, %v5267_v23  ;;  %v13888_v57 = vpop.f32.mrf.mxu2  ;;  %v13892_v3 = vpop.f32.mrf.mxu3 }
 0x78d   : > { %18550 = vst [vmem:[#allocation26_spill] sm:$0xff] %v13888_v57 }
 0x78e   : > { %18552 = vst [vmem:[#allocation28_spill] sm:$0xff] %v13892_v3 }
 0x791   : > { %v13880_v2 = vpop.f32.mrf.mxu1 }
 0x792   : > { %18548 = vst [vmem:[#allocation24_spill] sm:$0xff] %v13880_v2  ;;  %v5221_v2 = vmul.f32 %v13752_v50, %v13492_v22  ;;  %v13897_v49 = vpop.f32.mrf.mxu0  ;;  %v5247_v22 = vadd.f32 %v13761_v7, %v5222_v42 }
 0x793   : > { %18553 = vst [vmem:[#allocation29_spill] sm:$0xff] %v13897_v49 }
 0x794   : > { %11211 = vmatmul.msk.f32.gmra.mxu1 %vm3877_vm0, %v5268_v29  ;;  %v5246_v9 = vadd.f32 %v13761_v7, %v5221_v2  ;;  %v13904_v36 = vpop.f32.mrf.mxu2  ;;  %v5271_v10 = vmax.f32 %v5247_v22, 0.0  ;;  %v5223_v2 = vmul.f32 %v13752_v50, %v13556_v58  ;;  %v13930_v58 = vperm.slane %v13740_v61, 3 }
 0x795   : > { %18555 = vst [vmem:[#allocation31_spill] sm:$0xff] %v13904_v36 }
 0x796   : > { %v5270_v29 = vmax.f32 %v5246_v9, 0.0 }
 0x799   : > { %v13890_v23 = vpop.f32.mrf.mxu1 }
 0x79a   : > { %18551 = vst [vmem:[#allocation27_spill] sm:$0xff] %v13890_v23  ;;  %v13906_v23 = vpop.f32.mrf.mxu3  ;;  %v13910_v12 = vpop.f32.mrf.mxu0 }
 0x79b   : > { %18556 = vst [vmem:[#allocation32_spill] sm:$0xff] %v13906_v23 }
 0x79c   : > { %11212 = vmatmul.msk.f32.gmra.mxu1 %vm3877_vm0, %v5269_v37  ;;  %18557 = vst [vmem:[#allocation33_spill] sm:$0xff] %v13910_v12  ;;  %v13917_v9 = vpop.f32.mrf.mxu2 }
 0x79d   : > { %18559 = vst [vmem:[#allocation35_spill] sm:$0xff] %v13917_v9 }
 0x7a1   : > { %v13900_v59 = vpop.f32.mrf.mxu1 }
 0x7a2   : > { %18554 = vst [vmem:[#allocation30_spill] sm:$0xff] %v13900_v59  ;;  %v13919_v11 = vpop.f32.mrf.mxu3  ;;  %v5248_v59 = vadd.f32 %v13761_v7, %v5223_v2 }
 0x7a3   : > { %18560 = vst [vmem:[#allocation36_spill] sm:$0xff] %v13919_v11 }
 0x7a4   : > { %11213 = vmatmul.msk.f32.gmra.mxu1 %vm3877_vm0, %v5270_v29  ;;  %v13924_v29 = vpop.f32.mrf.mxu0  ;;  %v5272_v42 = vmax.f32 %v5248_v59, 0.0  ;;  %v13933_v22 = vpop.f32.mrf.mxu2  ;;  %v5225_v59 = vmul.f32 %v13752_v50, %v13614_v28 }
 0x7a5   : > { %18562 = vst [vmem:[#allocation38_spill] sm:$0xff] %v13924_v29 }
 0x7a6   : > { %18563 = vst [vmem:[#allocation39_spill] sm:$0xff] %v13933_v22 }
 0x7a9   : > { %v13912_v37 = vpop.f32.mrf.mxu1 }
 0x7aa   : > { %18558 = vst [vmem:[#allocation34_spill] sm:$0xff] %v13912_v37  ;;  %v5224_v37 = vmul.f32 %v13752_v50, %v13588_v53  ;;  %v13935_v9 = vpop.f32.mrf.mxu3 }
 0x7ab   : > { %18564 = vst [vmem:[#allocation40_spill] sm:$0xff] %v13935_v9 }
 0x7ac   : > { %11214 = vmatmul.msk.f32.gmra.mxu1 %vm3877_vm0, %v5271_v10  ;;  %v5249_v10 = vadd.f32 %v13761_v7, %v5224_v37  ;;  %v13940_v29 = vpop.f32.mrf.mxu0  ;;  %v5250_v37 = vadd.f32 %v13761_v7, %v5225_v59 }
 0x7ad   : > { %18565 = vst [vmem:[#allocation41_spill] sm:$0xff] %v13940_v29 }
 0x7ae   : > { %v5273_v12 = vmax.f32 %v5249_v10, 0.0 }
 0x7b1   : > { %v13922_v38 = vpop.f32.mrf.mxu1 }
 0x7b2   : > { %18561 = vst [vmem:[#allocation37_spill] sm:$0xff] %v13922_v38  ;;  %v13954_v10 = vpop.f32.mrf.mxu3 }
 0x7b3   : > { %18567 = vst [vmem:[#allocation43_spill] sm:$0xff] %v13954_v10  ;;  %v6760_v10 = vld [vmem:[#allocation2 + $0x9c0] sm:$0xff] }
 0x7b4   : > { %11215 = vmatmul.msk.f32.gmra.mxu1 %vm3877_vm0, %v5272_v42  ;;  %v13952_v42 = vpop.f32.mrf.mxu2  ;;  %v13962_v22 = vpop.f32.mrf.mxu0  ;;  %6925 = vmatpush.msrb.mxu2 %v6760_v10  ;;  %v5228_v10 = vmul.f32 %v13752_v50, %v13700_v44 }
 0x7b5   : > { %18566 = vst [vmem:[#allocation42_spill] sm:$0xff] %v13952_v42 }
 0x7b6   : > { %18568 = vst [vmem:[#allocation44_spill] sm:$0xff] %v13962_v22 }
 0x7b9   : > { %v5371_v2 = vpop.f32.mrf.mxu1 }
 0x7ba   : > { %v5372_v38 = vadd.f32 %v5371_v2, %v13930_v58  ;;  %v5274_v2 = vmax.f32 %v5250_v37, 0.0  ;;  %v13976_v42 = vpop.f32.mrf.mxu3 }
 0x7bb   : > { %18570 = vst [vmem:[#allocation46_spill] sm:$0xff] %v13976_v42 }
 0x7bc   : > { %v13942_v53 = vmax.f32 %v5372_v38, 0.0  ;;  %11216 = vmatmul.msk.f32.gmra.mxu1 %vm3877_vm0, %v5273_v12  ;;  %v5226_v12 = vmul.f32 %v13752_v50, %v13645_v39 }
 0x7be   : > { %11224 = vmatmul.msk.f32.vlgmr.msra.gmra.mxu2 %vm3877_vm0, %v13942_v53  ;;  %11248 = vmatmul.msk.f32.vlgmr.msra.gmra.mxu3 %vm3877_vm0, %v13942_v53  ;;  %v5251_v59 = vadd.f32 %v13761_v7, %v5226_v12 }
 0x7bf   : > { %11272 = vmatmul.msk.f32.vlgmr.msra.gmra.mxu0 %vm3877_vm0, %v13942_v53 }
 0x7c1   : > { %v5374_v28 = vpop.f32.mrf.mxu1 }
 0x7c2   : > { %v5375_v38 = vadd.f32 %v5374_v28, %v13930_v58  ;;  %v5275_v28 = vmax.f32 %v5251_v59, 0.0  ;;  %v13998_v42 = vpop.f32.mrf.mxu3 }
 0x7c3   : > { %18573 = vst [vmem:[#allocation49_spill] sm:$0xff] %v13998_v42  ;;  %v6761_v42 = vld [vmem:[#allocation2 + $0x9c8] sm:$0xff] }
 0x7c4   : > { %v13959_v29 = vmax.f32 %v5375_v38, 0.0  ;;  %11217 = vmatmul.msk.f32.gmra.mxu1 %vm3877_vm0, %v5274_v2  ;;  %v5227_v38 = vmul.f32 %v13752_v50, %v13674_v25  ;;  %v13974_v2 = vpop.f32.mrf.mxu2  ;;  %v13988_v25 = vpop.f32.mrf.mxu0  ;;  %7086 = vmatpush.msrb.mxu3 %v6761_v42 }
 0x7c5   : > { %18569 = vst [vmem:[#allocation45_spill] sm:$0xff] %v13974_v2 }
 0x7c6   : > { %11225 = vmatmul.msk.f32.gmra.mxu2 %vm3877_vm0, %v13959_v29  ;;  %11249 = vmatmul.msk.f32.gmra.mxu3 %vm3877_vm0, %v13959_v29  ;;  %v5252_v12 = vadd.f32 %v13761_v7, %v5227_v38  ;;  %18571 = vst [vmem:[#allocation47_spill] sm:$0xff] %v13988_v25  ;;  %v5253_v38 = vadd.f32 %v13761_v7, %v5228_v10  ;;  %v6763_v25 = vld [vmem:[#allocation2 + $0x9d8] sm:$0xff] }
 0x7c7   : > { %11273 = vmatmul.msk.f32.gmra.mxu0 %vm3877_vm0, %v13959_v29  ;;  %7408 = vmatpush.msra.mxu1 %v6763_v25 }
 0x7c9   : > { %v5377_v37 = vpop.f32.mrf.mxu1 }
 0x7ca   : > { %v5378_v39 = vadd.f32 %v5377_v37, %v13930_v58 }
 0x7cc   : > { %v13978_v22 = vmax.f32 %v5378_v39, 0.0  ;;  %11218 = vmatmul.msk.f32.gmra.mxu1 %vm3877_vm0, %v5275_v28  ;;  %v5276_v39 = vmax.f32 %v5252_v12, 0.0  ;;  %v13996_v2 = vpop.f32.mrf.mxu2  ;;  %v14007_v12 = vpop.f32.mrf.mxu0 }
 0x7cd   : > { %18572 = vst [vmem:[#allocation48_spill] sm:$0xff] %v13996_v2 }
 0x7ce   : > { %11226 = vmatmul.msk.f32.gmra.mxu2 %vm3877_vm0, %v13978_v22  ;;  %11250 = vmatmul.msk.f32.gmra.mxu3 %vm3877_vm0, %v13978_v22  ;;  %18574 = vst [vmem:[#allocation50_spill] sm:$0xff] %v14007_v12 }
 0x7cf   : > { %11274 = vmatmul.msk.f32.gmra.mxu0 %vm3877_vm0, %v13978_v22 }
 0x7d1   : > { %v5380_v59 = vpop.f32.mrf.mxu1 }
 0x7d2   : > { %v5381_v37 = vadd.f32 %v5380_v59, %v13930_v58 }
 0x7d4   : > { %v13993_v28 = vmax.f32 %v5381_v37, 0.0  ;;  %11219 = vmatmul.msk.f32.gmra.mxu1 %vm3877_vm0, %v5276_v39  ;;  %v5277_v37 = vmax.f32 %v5253_v38, 0.0  ;;  %v5229_v39 = vmul.f32 %v13752_v50, %v13722_v35  ;;  %v14020_v38 = vpop.f32.mrf.mxu2  ;;  %v6762_v35 = vld [vmem:[#allocation2 + $0x9d0] sm:$0xff]  ;;  %v14029_v12 = vpop.f32.mrf.mxu0 }
 0x7d5   : > { %18575 = vst [vmem:[#allocation51_spill] sm:$0xff] %v14020_v38  ;;  %7247 = vmatpush.msrb.mxu0 %v6762_v35 }
 0x7d6   : > { %11227 = vmatmul.msk.f32.gmra.mxu2 %vm3877_vm0, %v13993_v28  ;;  %11251 = vmatmul.msk.f32.gmra.mxu3 %vm3877_vm0, %v13993_v28  ;;  %v5254_v10 = vadd.f32 %v13761_v7, %v5229_v39  ;;  %18577 = vst [vmem:[#allocation53_spill] sm:$0xff] %v14029_v12 }
 0x7d7   : > { %11275 = vmatmul.msk.f32.gmra.mxu0 %vm3877_vm0, %v13993_v28 }
 0x7d8   : > { %v5278_v25 = vmax.f32 %v5254_v10, 0.0 }
 0x7d9   : > { %v5383_v44 = vpop.f32.mrf.mxu1 }
 0x7da   : > { %v5384_v59 = vadd.f32 %v5383_v44, %v13930_v58  ;;  %v14024_v44 = vpop.f32.mrf.mxu3 }
 0x7db   : > { %18576 = vst [vmem:[#allocation52_spill] sm:$0xff] %v14024_v44 }
 0x7dc   : > { %v14012_v2 = vmax.f32 %v5384_v59, 0.0  ;;  %11220 = vmatmul.msk.f32.gmra.mxu1 %vm3877_vm0, %v5277_v37  ;;  %v5230_v37 = vmul.f32 %v13752_v50, %v13738_v60  ;;  %v14041_v10 = vpop.f32.mrf.mxu2  ;;  %v14051_v38 = vpop.f32.mrf.mxu0 }
 0x7dd   : > { %18578 = vst [vmem:[#allocation54_spill] sm:$0xff] %v14041_v10 }
 0x7de   : > { %11228 = vmatmul.msk.f32.gmra.mxu2 %vm3877_vm0, %v14012_v2  ;;  %11252 = vmatmul.msk.f32.gmra.mxu3 %vm3877_vm0, %v14012_v2  ;;  %v5255_v39 = vadd.f32 %v13761_v7, %v5230_v37  ;;  %18580 = vst [vmem:[#allocation56_spill] sm:$0xff] %v14051_v38 }
 0x7df   : > { %11276 = vmatmul.msk.f32.gmra.mxu0 %vm3877_vm0, %v14012_v2 }
 0x7e1   : > { %v5386_v59 = vpop.f32.mrf.mxu1 }
 0x7e2   : > { %v5387_v42 = vadd.f32 %v5386_v59, %v13930_v58  ;;  %v14043_v35 = vpop.f32.mrf.mxu3 }
 0x7e3   : > { %18579 = vst [vmem:[#allocation55_spill] sm:$0xff] %v14043_v35 }
 0x7e4   : > { %v14031_v9 = vmax.f32 %v5387_v42, 0.0  ;;  %11221 = vmatmul.msk.f32.gmra.mxu1 %vm3877_vm0, %v5278_v25  ;;  %v5279_v42 = vmax.f32 %v5255_v39, 0.0  ;;  %v5231_v25 = vmul.f32 %v13752_v50, %v13756_v6 }
 0x7e6   : > { %11229 = vmatmul.msk.f32.gmra.mxu2 %vm3877_vm0, %v14031_v9  ;;  %11253 = vmatmul.msk.f32.gmra.mxu3 %vm3877_vm0, %v14031_v9  ;;  %v5256_v37 = vadd.f32 %v13761_v7, %v5231_v25  ;;  %v14074_v7 = vpop.f32.mrf.mxu0 }
 0x7e7   : > { %11277 = vmatmul.msk.f32.gmra.mxu0 %vm3877_vm0, %v14031_v9  ;;  %18583 = vst [vmem:[#allocation59_spill] sm:$0xff] %v14074_v7 }
 0x7e8   : > { %v5280_v6 = vmax.f32 %v5256_v37, 0.0 }
 0x7e9   : > { %v5389_v60 = vpop.f32.mrf.mxu1 }
 0x7ea   : > { %v5390_v59 = vadd.f32 %v5389_v60, %v13930_v58  ;;  %v14061_v60 = vpop.f32.mrf.mxu2 }
 0x7eb   : > { %18581 = vst [vmem:[#allocation57_spill] sm:$0xff] %v14061_v60 }
 0x7ec   : > { %v14048_v12 = vmax.f32 %v5390_v59, 0.0  ;;  %11222 = vmatmul.msk.f32.gmra.mxu1 %vm3877_vm0, %v5279_v42  ;;  %v14063_v59 = vpop.f32.mrf.mxu3 }
 0x7ed   : > { %18582 = vst [vmem:[#allocation58_spill] sm:$0xff] %v14063_v59 }
 0x7ee   : > { %11230 = vmatmul.msk.f32.gmra.mxu2 %vm3877_vm0, %v14048_v12  ;;  %11254 = vmatmul.msk.f32.gmra.mxu3 %vm3877_vm0, %v14048_v12 }
 0x7ef   : > { %11278 = vmatmul.msk.f32.gmra.mxu0 %vm3877_vm0, %v14048_v12 }
 0x7f1   : > { %v5392_v39 = vpop.f32.mrf.mxu1 }
 0x7f2   : > { %v5393_v50 = vadd.f32 %v5392_v39, %v13930_v58 }
 0x7f4   : > { %v14065_v42 = vmax.f32 %v5393_v50, 0.0  ;;  %11223 = vmatmul.msk.f32.gmra.mxu1 %vm3877_vm0, %v5280_v6  ;;  %v14081_v50 = vpop.f32.mrf.mxu2  ;;  %v14083_v6 = vpop.f32.mrf.mxu3 }
 0x7f5   : > { %18584 = vst [vmem:[#allocation60_spill] sm:$0xff] %v14081_v50 }
 0x7f6   : > { %11231 = vmatmul.msk.f32.gmra.mxu2 %vm3877_vm0, %v14065_v42  ;;  %11255 = vmatmul.msk.f32.gmra.mxu3 %vm3877_vm0, %v14065_v42  ;;  %18585 = vst [vmem:[#allocation61_spill] sm:$0xff] %v14083_v6 }
 0x7f7   : > { %11279 = vmatmul.msk.f32.gmra.mxu0 %vm3877_vm0, %v14065_v42 }
 0x7f9   : > { %v5395_v25 = vpop.f32.mrf.mxu1 }
 0x7fa   : > { %v5396_v37 = vadd.f32 %v5395_v25, %v13930_v58  ;;  %v14091_v25 = vpop.f32.mrf.mxu0 }
 0x7fb   : > { %18586 = vst [vmem:[#allocation62_spill] sm:$0xff] %v14091_v25 }
 0x7fc   : > { %v14077_v39 = vmax.f32 %v5396_v37, 0.0  ;;  %11296 = vmatmul.msk.f32.vlgmr.msrb.gmra.mxu1 %vm3877_vm0, %v13942_v53  ;;  %v14102_v53 = vpop.f32.mrf.mxu2  ;;  %v14106_v6 = vpop.f32.mrf.mxu3 }
 0x7fd   : > { %18587 = vst [vmem:[#allocation63_spill] sm:$0xff] %v14102_v53 }
 0x7fe   : > { %11232 = vmatmul.msk.f32.gmra.mxu2 %vm3877_vm0, %v14077_v39  ;;  %11256 = vmatmul.msk.f32.gmra.mxu3 %vm3877_vm0, %v14077_v39  ;;  %18588 = vst [vmem:[#allocation64_spill] sm:$0xff] %v14106_v6 }
 0x7ff   : > { %11280 = vmatmul.msk.f32.gmra.mxu0 %vm3877_vm0, %v14077_v39 }
 0x801   : > { %v5398_v59 = vpop.f32.mrf.mxu1 }
 0x802   : > { %v5399_v37 = vadd.f32 %v5398_v59, %v13930_v58 }
 0x804   : > { %v14094_v7 = vmax.f32 %v5399_v37, 0.0  ;;  %11297 = vmatmul.msk.f32.gmra.mxu1 %vm3877_vm0, %v13959_v29  ;;  %v14109_v37 = vpop.f32.mrf.mxu0  ;;  %v14121_v29 = vpop.f32.mrf.mxu2 }
 0x805   : > { %18589 = vst [vmem:[#allocation65_spill] sm:$0xff] %v14109_v37 }
 0x806   : > { %11233 = vmatmul.msk.f32.gmra.mxu2 %vm3877_vm0, %v14094_v7  ;;  %11257 = vmatmul.msk.f32.gmra.mxu3 %vm3877_vm0, %v14094_v7  ;;  %18590 = vst [vmem:[#allocation66_spill] sm:$0xff] %v14121_v29 }
 0x807   : > { %11281 = vmatmul.msk.f32.gmra.mxu0 %vm3877_vm0, %v14094_v7 }
 0x809   : > { %v5401_v25 = vpop.f32.mrf.mxu1 }
 0x80a   : > { %v5402_v59 = vadd.f32 %v5401_v25, %v13930_v58  ;;  %v14123_v25 = vpop.f32.mrf.mxu3 }
 0x80b   : > { %18591 = vst [vmem:[#allocation67_spill] sm:$0xff] %v14123_v25 }
 0x80c   : > { %v14111_v50 = vmax.f32 %v5402_v59, 0.0  ;;  %11298 = vmatmul.msk.f32.gmra.mxu1 %vm3877_vm0, %v13978_v22  ;;  %v14130_v22 = vpop.f32.mrf.mxu0 }
 0x80d   : > { %18592 = vst [vmem:[#allocation68_spill] sm:$0xff] %v14130_v22 }
 0x80e   : > { %11234 = vmatmul.msk.f32.gmra.mxu2 %vm3877_vm0, %v14111_v50  ;;  %11258 = vmatmul.msk.f32.gmra.mxu3 %vm3877_vm0, %v14111_v50 }
 0x80f   : > { %11282 = vmatmul.msk.f32.gmra.mxu0 %vm3877_vm0, %v14111_v50 }
 0x811   : > { %v5404_v6 = vpop.f32.mrf.mxu1 }
 0x812   : > { %v5405_v59 = vadd.f32 %v5404_v6, %v13930_v58  ;;  %v14139_v6 = vpop.f32.mrf.mxu2 }
 0x813   : > { %18593 = vst [vmem:[#allocation69_spill] sm:$0xff] %v14139_v6 }
 0x814   : > { %v14126_v37 = vmax.f32 %v5405_v59, 0.0  ;;  %11299 = vmatmul.msk.f32.gmra.mxu1 %vm3877_vm0, %v13993_v28  ;;  %v14141_v59 = vpop.f32.mrf.mxu3  ;;  %v14153_v28 = vpop.f32.mrf.mxu0 }
 0x815   : > { %18594 = vst [vmem:[#allocation70_spill] sm:$0xff] %v14141_v59 }
 0x816   : > { %11235 = vmatmul.msk.f32.gmra.mxu2 %vm3877_vm0, %v14126_v37  ;;  %11259 = vmatmul.msk.f32.gmra.mxu3 %vm3877_vm0, %v14126_v37  ;;  %18595 = vst [vmem:[#allocation71_spill] sm:$0xff] %v14153_v28 }
 0x817   : > { %11283 = vmatmul.msk.f32.gmra.mxu0 %vm3877_vm0, %v14126_v37 }
 0x819   : > { %v5407_v29 = vpop.f32.mrf.mxu1 }
 0x81a   : > { %v5408_v25 = vadd.f32 %v5407_v29, %v13930_v58 }
 0x81c   : > { %v14143_v53 = vmax.f32 %v5408_v25, 0.0  ;;  %11300 = vmatmul.msk.f32.gmra.mxu1 %vm3877_vm0, %v14012_v2  ;;  %v14160_v2 = vpop.f32.mrf.mxu2  ;;  %v14162_v25 = vpop.f32.mrf.mxu3 }
 0x81d   : > { %18596 = vst [vmem:[#allocation72_spill] sm:$0xff] %v14160_v2 }
 0x81e   : > { %11236 = vmatmul.msk.f32.gmra.mxu2 %vm3877_vm0, %v14143_v53  ;;  %11260 = vmatmul.msk.f32.gmra.mxu3 %vm3877_vm0, %v14143_v53  ;;  %18597 = vst [vmem:[#allocation73_spill] sm:$0xff] %v14162_v25 }
 0x81f   : > { %11284 = vmatmul.msk.f32.gmra.mxu0 %vm3877_vm0, %v14143_v53 }
 0x821   : > { %v5410_v29 = vpop.f32.mrf.mxu1 }
 0x822   : > { %v5411_v6 = vadd.f32 %v5410_v29, %v13930_v58  ;;  %v14170_v29 = vpop.f32.mrf.mxu0 }
 0x823   : > { %18598 = vst [vmem:[#allocation74_spill] sm:$0xff] %v14170_v29 }
 0x824   : > { %v14156_v59 = vmax.f32 %v5411_v6, 0.0  ;;  %11301 = vmatmul.msk.f32.gmra.mxu1 %vm3877_vm0, %v14031_v9  ;;  %v14181_v9 = vpop.f32.mrf.mxu2  ;;  %v14185_v25 = vpop.f32.mrf.mxu3 }
 0x825   : > { %18599 = vst [vmem:[#allocation75_spill] sm:$0xff] %v14181_v9 }
 0x826   : > { %11237 = vmatmul.msk.f32.gmra.mxu2 %vm3877_vm0, %v14156_v59  ;;  %11261 = vmatmul.msk.f32.gmra.mxu3 %vm3877_vm0, %v14156_v59  ;;  %18600 = vst [vmem:[#allocation76_spill] sm:$0xff] %v14185_v25 }
 0x827   : > { %11285 = vmatmul.msk.f32.gmra.mxu0 %vm3877_vm0, %v14156_v59 }
 0x829   : > { %v5413_v28 = vpop.f32.mrf.mxu1 }
 0x82a   : > { %v5414_v6 = vadd.f32 %v5413_v28, %v13930_v58 }
 0x82c   : > { %v14173_v22 = vmax.f32 %v5414_v6, 0.0  ;;  %11302 = vmatmul.msk.f32.gmra.mxu1 %vm3877_vm0, %v14048_v12  ;;  %v14188_v6 = vpop.f32.mrf.mxu0  ;;  %v14200_v12 = vpop.f32.mrf.mxu2 }
 0x82d   : > { %18601 = vst [vmem:[#allocation77_spill] sm:$0xff] %v14188_v6 }
 0x82e   : > { %11238 = vmatmul.msk.f32.gmra.mxu2 %vm3877_vm0, %v14173_v22  ;;  %11262 = vmatmul.msk.f32.gmra.mxu3 %vm3877_vm0, %v14173_v22  ;;  %18602 = vst [vmem:[#allocation78_spill] sm:$0xff] %v14200_v12 }
 0x82f   : > { %11286 = vmatmul.msk.f32.gmra.mxu0 %vm3877_vm0, %v14173_v22 }
 0x831   : > { %v5416_v29 = vpop.f32.mrf.mxu1 }
 0x832   : > { %v5417_v28 = vadd.f32 %v5416_v29, %v13930_v58  ;;  %v14202_v29 = vpop.f32.mrf.mxu3 }
 0x833   : > { %18603 = vst [vmem:[#allocation79_spill] sm:$0xff] %v14202_v29 }
 0x834   : > { %v14190_v2 = vmax.f32 %v5417_v28, 0.0  ;;  %11303 = vmatmul.msk.f32.gmra.mxu1 %vm3877_vm0, %v14065_v42 }
 0x836   : > { %11239 = vmatmul.msk.f32.gmra.mxu2 %vm3877_vm0, %v14190_v2  ;;  %11263 = vmatmul.msk.f32.gmra.mxu3 %vm3877_vm0, %v14190_v2 }
 0x837   : > { %11287 = vmatmul.msk.f32.gmra.mxu0 %vm3877_vm0, %v14190_v2 }
 0x839   : > { %v5419_v25 = vpop.f32.mrf.mxu1 }
 0x83a   : > { %v5420_v28 = vadd.f32 %v5419_v25, %v13930_v58 }
 0x83c   : > { %v14205_v6 = vmax.f32 %v5420_v28, 0.0  ;;  %v14207_v9 = vpop.f32.mrf.mxu0  ;;  %11304 = vmatmul.msk.f32.gmra.mxu1 %vm3877_vm0, %v14077_v39 }
 0x83e   : > { %11240 = vmatmul.msk.f32.gmra.mxu2 %vm3877_vm0, %v14205_v6  ;;  %11264 = vmatmul.msk.f32.gmra.mxu3 %vm3877_vm0, %v14205_v6 }
 0x83f   : > { %11288 = vmatmul.msk.f32.gmra.mxu0 %vm3877_vm0, %v14205_v6 }
 0x841   : > { %v5422_v42 = vpop.f32.mrf.mxu1  ;;  %v14217_v29 = vpop.f32.mrf.mxu2 }
 0x842   : > { %v5423_v25 = vadd.f32 %v5422_v42, %v13930_v58  ;;  %v14220_v28 = vpop.f32.mrf.mxu3 }
 0x844   : > { %v14222_v12 = vmax.f32 %v5423_v25, 0.0  ;;  %v14224_v60 = vpop.f32.mrf.mxu0  ;;  %11305 = vmatmul.msk.f32.gmra.mxu1 %vm3877_vm0, %v14094_v7 }
 0x846   : > { %11241 = vmatmul.msk.f32.gmra.mxu2 %vm3877_vm0, %v14222_v12  ;;  %11265 = vmatmul.msk.f32.gmra.mxu3 %vm3877_vm0, %v14222_v12 }
 0x847   : > { %11289 = vmatmul.msk.f32.gmra.mxu0 %vm3877_vm0, %v14222_v12 }
 0x849   : > { %v5425_v39 = vpop.f32.mrf.mxu1  ;;  %v14234_v42 = vpop.f32.mrf.mxu2 }
 0x84a   : > { %v5426_v25 = vadd.f32 %v5425_v39, %v13930_v58  ;;  %v14237_v10 = vpop.f32.mrf.mxu3  ;;  %v6064_v48 = vrot.slane %v14234_v42, 1 }
 0x84c   : > { %v14239_v38 = vmax.f32 %v5426_v25, 0.0  ;;  %v14241_v35 = vpop.f32.mrf.mxu0  ;;  %11306 = vmatmul.msk.f32.gmra.mxu1 %vm3877_vm0, %v14111_v50 }
 0x84e   : > { %11242 = vmatmul.msk.f32.gmra.mxu2 %vm3877_vm0, %v14239_v38  ;;  %11266 = vmatmul.msk.f32.gmra.mxu3 %vm3877_vm0, %v14239_v38 }
 0x84f   : > { %11290 = vmatmul.msk.f32.gmra.mxu0 %vm3877_vm0, %v14239_v38 }
 0x851   : > { %v5428_v7 = vpop.f32.mrf.mxu1  ;;  %v14251_v39 = vpop.f32.mrf.mxu2 }
 0x852   : > { %v5429_v25 = vadd.f32 %v5428_v7, %v13930_v58  ;;  %v14254_v44 = vpop.f32.mrf.mxu3 }
 0x854   : > { %v14256_v11 = vmax.f32 %v5429_v25, 0.0  ;;  %v14258_v36 = vpop.f32.mrf.mxu0  ;;  %11307 = vmatmul.msk.f32.gmra.mxu1 %vm3877_vm0, %v14126_v37 }
 0x856   : > { %11243 = vmatmul.msk.f32.gmra.mxu2 %vm3877_vm0, %v14256_v11  ;;  %11267 = vmatmul.msk.f32.gmra.mxu3 %vm3877_vm0, %v14256_v11 }
 0x857   : > { %11291 = vmatmul.msk.f32.gmra.mxu0 %vm3877_vm0, %v14256_v11 }
 0x859   : > { %v5431_v50 = vpop.f32.mrf.mxu1  ;;  %v14268_v7 = vpop.f32.mrf.mxu2 }
 0x85a   : > { %v5432_v25 = vadd.f32 %v5431_v50, %v13930_v58  ;;  %v14271_v23 = vpop.f32.mrf.mxu3 }
 0x85c   : > { %v14273_v49 = vmax.f32 %v5432_v25, 0.0  ;;  %v14275_v54 = vpop.f32.mrf.mxu0  ;;  %11308 = vmatmul.msk.f32.gmra.mxu1 %vm3877_vm0, %v14143_v53 }
 0x85e   : > { %11244 = vmatmul.msk.f32.gmra.mxu2 %vm3877_vm0, %v14273_v49  ;;  %11268 = vmatmul.msk.f32.gmra.mxu3 %vm3877_vm0, %v14273_v49 }
 0x85f   : > { %11292 = vmatmul.msk.f32.gmra.mxu0 %vm3877_vm0, %v14273_v49 }
 0x861   : > { %v5434_v37 = vpop.f32.mrf.mxu1  ;;  %v14285_v50 = vpop.f32.mrf.mxu2 }
 0x862   : > { %v5435_v25 = vadd.f32 %v5434_v37, %v13930_v58  ;;  %v14288_v57 = vpop.f32.mrf.mxu3 }
 0x864   : > { %v14290_v46 = vmax.f32 %v5435_v25, 0.0  ;;  %v14292_v3 = vpop.f32.mrf.mxu0  ;;  %11309 = vmatmul.msk.f32.gmra.mxu1 %vm3877_vm0, %v14156_v59 }
 0x865   : > { %18604 = vst [vmem:[#allocation80_spill] sm:$0xff] %v14292_v3 }
 0x866   : > { %11245 = vmatmul.msk.f32.gmra.mxu2 %vm3877_vm0, %v14290_v46  ;;  %11269 = vmatmul.msk.f32.gmra.mxu3 %vm3877_vm0, %v14290_v46 }
 0x867   : > { %11293 = vmatmul.msk.f32.gmra.mxu0 %vm3877_vm0, %v14290_v46 }
 0x869   : > { %v5437_v53 = vpop.f32.mrf.mxu1  ;;  %v14302_v37 = vpop.f32.mrf.mxu2 }
 0x86a   : > { %v5438_v25 = vadd.f32 %v5437_v53, %v13930_v58  ;;  %v14305_v62 = vpop.f32.mrf.mxu3  ;;  %v4584_v53 = vsel %vm641_vm7, %v4582_v17, %v4583_v43  ;;  %v4401_v17 = vsel %vm617_vm9, 0.0, %v18199_v5 }
 0x86b   : > { %18605 = vst [vmem:[#allocation81_spill] sm:$0xff] %v14305_v62  ;;  %v4750_v21 = vadd.f32 %v4584_v53, %v13798_v8  ;;  %v6063_v8 = vrot.slane %v14217_v29, 1 }
 0x86c   : > { %v14308_v1 = vmax.f32 %v5438_v25, 0.0  ;;  %v14310_v59 = vpop.f32.mrf.mxu0  ;;  %11310 = vmatmul.msk.f32.gmra.mxu1 %vm3877_vm0, %v14173_v22  ;;  %v4414_v25 = vand.u32 63, %v12084_v63 }
 0x86d   : > { %18606 = vst [vmem:[#allocation82_spill] sm:$0xff] %v14310_v59 }
 0x86e   : > { %11246 = vmatmul.msk.f32.gmra.mxu2 %vm3877_vm0, %v14308_v1  ;;  %11270 = vmatmul.msk.f32.gmra.mxu3 %vm3877_vm0, %v14308_v1  ;;  %vm14334_vm8 = vcmp.eq.s32.totalorder %v4414_v25, 0 }
 0x86f   : > { %11294 = vmatmul.msk.f32.gmra.mxu0 %vm3877_vm0, %v14308_v1  ;;  %v4510_v42 = vsel %vm14334_vm8, 0.0, %v4401_v17  ;;  %v18613_v17 = vrot.slane %v13643_v13, 1 }
 0x870   : > { %v4534_v53 = vadd.f32 %v4510_v42, %v13796_v52  ;;  %v14368_v42 = vperm.slane %v13740_v61, 0 }
 0x871   : > { %v5440_v59 = vpop.f32.mrf.mxu1  ;;  %v14324_v20 = vpop.f32.mrf.mxu2 }
 0x872   : > { %v5441_v22 = vadd.f32 %v5440_v59, %v13930_v58  ;;  %v14328_v18 = vpop.f32.mrf.mxu3  ;;  %v4822_v58 = vrot.slane %v4750_v21, 4  ;;  %v6065_v59 = vsel %vm641_vm7, %v6063_v8, %v6064_v48 }
 0x873   : > { %18607 = vst [vmem:[#allocation83_spill] sm:$0xff] %v14328_v18  ;;  %v6159_v21 = vadd.f32 %v6065_v59, %v14207_v9 }
 0x874   : > { %v14338_v63 = vmax.f32 %v5441_v22, 0.0  ;;  %v14340_v3 = vpop.f32.mrf.mxu0  ;;  %11311 = vmatmul.msk.f32.gmra.mxu1 %vm3877_vm0, %v14190_v2  ;;  %v4846_v25 = vsel %vm303_vm6, %v4534_v53, %v4822_v58  ;;  %v4847_v59 = vsel %vm303_vm6, %v4822_v58, %v4534_v53 }
 0x875   : > { %18610 = vst [vmem:[#allocation84_spill] sm:$0xff] %v14340_v3  ;;  %v4969_v52 = vperm.slane %v4846_v25, %v12108_v32 }
 0x876   : > { %11247 = vmatmul.msk.f32.gmra.mxu2 %vm3877_vm0, %v14338_v63  ;;  %11271 = vmatmul.msk.f32.gmra.mxu3 %vm3877_vm0, %v14338_v63 }
 0x877   : > { %11295 = vmatmul.msk.f32.gmra.mxu0 %vm3877_vm0, %v14338_v63  ;;  %v5159_v58 = vadd.f32 %v14368_v42, %v4969_v52 }
 0x879   : > { %v14355_v2 = vpop.f32.mrf.mxu2  ;;  %v5823_v29 = vpop.f32.mrf.mxu1 }
 0x87a   : > { %18611 = vst [vmem:[#allocation85_spill] sm:$0xff] %v14355_v2  ;;  %v14359_v22 = vpop.f32.mrf.mxu3  ;;  %v5919_v5 = vrot.slane %v5823_v29, 7  ;;  %v6231_v29 = vrot.slane %v6159_v21, 4  ;;  %v14378_v2 = vperm.slane %v13740_v61, 4 }
 0x87b   : > { %18612 = vst [vmem:[#allocation86_spill] sm:$0xff] %v14359_v22  ;;  %v4586_v22 = vsel %vm641_vm7, %v4583_v43, %v18613_v17 }
 0x87c   : > { %v5990_v8 = vsel %vm617_vm9, 0.0, %v5919_v5  ;;  %v5758_v18 = vpop.f32.mrf.mxu0  ;;  %11312 = vmatmul.msk.f32.gmra.mxu1 %vm3877_vm0, %v14205_v6  ;;  %v18614_v6 = vrot.slane %v14251_v39, 1  ;;  %v4751_v61 = vadd.f32 %v4586_v22, %v13811_v55 }
 0x87d   : > { %v5991_v9 = vsel %vm14334_vm8, 0.0, %v5990_v8  ;;  %v4848_v8 = vrot.slane %v4847_v59, 4 }
 0x87e   : > { %v6015_v3 = vadd.f32 %v5991_v9, %v14220_v28  ;;  %v6067_v25 = vsel %vm641_vm7, %v6064_v48, %v18614_v6  ;;  %v18200_v6 = vrot.slane %v13802_v19, 7 }
 0x87f   : > { %v6160_v17 = vadd.f32 %v6067_v25, %v14224_v60  ;;  %v4973_v22 = vperm.slane %v4848_v8, %v12108_v32  ;;  %v4823_v25 = vrot.slane %v4751_v61, 4 }
 0x880   : > { %v6255_v0 = vsel %vm303_vm6, %v6015_v3, %v6231_v29  ;;  %v6256_v62 = vsel %vm303_vm6, %v6231_v29, %v6015_v3 }
 0x881   : > { %v6257_v53 = vrot.slane %v6256_v62, 4  ;;  %v6378_v28 = vperm.slane %v6255_v0, %v12108_v32  ;;  %v14387_v21 = vpop.f32.mrf.mxu2  ;;  %v5826_v43 = vpop.f32.mrf.mxu1  ;;  %v6616_v0 = vmul.f32 2.0, %v5159_v58  ;;  %v6232_v62 = vrot.slane %v6160_v17, 4 }
 0x882   : > { %v14391_v9 = vpop.f32.mrf.mxu3  ;;  %v5920_v48 = vrot.slane %v5826_v43, 7  ;;  %v4587_v17 = vrot.slane %v13670_v30, 1 }
 0x883   : > { %v6568_v3 = vadd.f32 %v14378_v2, %v6378_v28  ;;  %v6382_v59 = vperm.slane %v6257_v53, %v12108_v32  ;;  %v18615_v53 = vrot.slane %v13789_v40, 7  ;;  %v5160_v40 = vadd.f32 %v14368_v42, %v4973_v22 }
 0x884   : > { %v5921_v52 = vsel %vm617_vm9, %v5919_v5, %v5920_v48  ;;  %v14397_v29 = vpop.f32.mrf.mxu0  ;;  %11313 = vmatmul.msk.f32.gmra.mxu1 %vm3877_vm0, %v14222_v12 }
 0x885   : > { %v6664_v55 = vmul.f32 0.3, %v6568_v3  ;;  %v6016_v60 = vadd.f32 %v5921_v52, %v14237_v10  ;;  %v4332_v5 = vsel %vm617_vm9, %v18615_v53, %v18200_v6  ;;  %v6569_v43 = vadd.f32 %v14378_v2, %v6382_v59 }
 0x886   : > { %v4535_v12 = vadd.f32 %v4332_v5, %v13809_v56  ;;  %v18201_v56 = vrot.slane %v14387_v21, 1 }
 0x887   : > { %v14408_v28 = vadd.f32 %v6664_v55, %v6616_v0  ;;  %v6258_v58 = vsel %vm303_vm6, %v6016_v60, %v6232_v62  ;;  %v6665_v0 = vmul.f32 0.3, %v6569_v43  ;;  %v6259_v22 = vsel %vm303_vm6, %v6232_v62, %v6016_v60 }
 0x888   : > { %v4849_v61 = vsel %vm303_vm6, %v4535_v12, %v4823_v25  ;;  %v6386_v55 = vperm.slane %v6258_v58, %v12108_v32  ;;  %v6617_v43 = vmul.f32 2.0, %v5160_v40  ;;  %v4850_v60 = vsel %vm303_vm6, %v4823_v25, %v4535_v12 }
 0x889   : > { %v14413_v10 = vpop.f32.mrf.mxu2  ;;  %v14415_v8 = vpop.f32.mrf.mxu1  ;;  %11320 = vmatmul.msk.f32.vlgmr.msrb.gmra.mxu2 %vm6765_vm10, %v14408_v28  ;;  %11368 = vmatmul.msk.f32.vlgmr.msrb.gmra.mxu3 %vm6765_vm10, %v14408_v28  ;;  %v4977_v58 = vperm.slane %v4849_v61, %v12108_v32  ;;  %v18617_v62 = vrot.slane %v13643_v13, 1  ;;  %v4851_v40 = vrot.slane %v4850_v60, 4  ;;  %v18620_v60 = vrot.slane %v13802_v19, 7 }
 0x88a   : > { %v18202_v3 = vrot.slane %v14413_v10, 1  ;;  %v14426_v59 = vpop.f32.mrf.mxu3  ;;  %11416 = vmatmul.msk.f32.vlgmr.msrb.gmra.mxu0 %vm6765_vm10, %v14408_v28  ;;  %v5922_v52 = vrot.slane %v14415_v8, 7  ;;  %v6570_v8 = vadd.f32 %v14378_v2, %v6386_v55 }
 0x88b   : > { %v5161_v13 = vadd.f32 %v14368_v42, %v4977_v58 }
 0x88c   : > { %v6081_v53 = vsel %vm641_vm7, %v18201_v56, %v18202_v3  ;;  %v14438_v5 = vpop.f32.mrf.mxu0  ;;  %11314 = vmatmul.msk.f32.gmra.mxu1 %vm3877_vm0, %v14239_v38  ;;  %v4588_v56 = vsel %vm641_vm7, %v18617_v62, %v4587_v17  ;;  %v18618_v3 = vrot.slane %v14268_v7, 1  ;;  %v6260_v38 = vrot.slane %v6259_v22, 4 }
 0x88d   : > { %18616 = vst [vmem:[#allocation87_spill] sm:$0xff] %v14438_v5  ;;  %v14442_v6 = vadd.f32 %v6081_v53, %v5758_v18  ;;  %v18619_v5 = vrot.slane %v14251_v39, 1  ;;  %v14457_v53 = vadd.f32 %v6665_v0, %v6617_v43  ;;  %v5923_v25 = vsel %vm617_vm9, %v5920_v48, %v5922_v52 }
 0x88e   : > { %v4752_v39 = vadd.f32 %v4588_v56, %v13824_v16  ;;  %v4333_v48 = vrot.slane %v13816_v34, 7  ;;  %v6666_v55 = vmul.f32 0.3, %v6570_v8  ;;  %v6390_v22 = vperm.slane %v6260_v38, %v12108_v32 }
 0x88f   : > { %v6069_v18 = vsel %vm641_vm7, %v18619_v5, %v18618_v3  ;;  %v6017_v5 = vadd.f32 %v5923_v25, %v14254_v44  ;;  %v6618_v16 = vmul.f32 2.0, %v5161_v13  ;;  %v4589_v25 = vrot.slane %v13698_v51, 1 }
 0x890   : > { %v6161_v3 = vadd.f32 %v6069_v18, %v14241_v35  ;;  %v4981_v35 = vperm.slane %v4851_v40, %v12108_v32  ;;  %v4824_v56 = vrot.slane %v4752_v39, 4  ;;  %v4334_v62 = vsel %vm617_vm9, %v18620_v60, %v4333_v48 }
 0x891   : > { %v14461_v12 = vpop.f32.mrf.mxu2  ;;  %v14463_v61 = vpop.f32.mrf.mxu1  ;;  %11321 = vmatmul.msk.f32.gmra.mxu2 %vm6765_vm10, %v14457_v53  ;;  %11369 = vmatmul.msk.f32.gmra.mxu3 %vm6765_vm10, %v14457_v53  ;;  %v14487_v34 = vadd.f32 %v6666_v55, %v6618_v16  ;;  %v6571_v18 = vadd.f32 %v14378_v2, %v6390_v22  ;;  %v4536_v44 = vadd.f32 %v4334_v62, %v13822_v27  ;;  %v6070_v27 = vrot.slane %v14285_v50, 1 }
 0x892   : > { %v14472_v0 = vpop.f32.mrf.mxu3  ;;  %11417 = vmatmul.msk.f32.gmra.mxu0 %vm6765_vm10, %v14457_v53  ;;  %v6233_v58 = vrot.slane %v6161_v3, 4  ;;  %v5162_v19 = vadd.f32 %v14368_v42, %v4981_v35  ;;  %v5924_v22 = vrot.slane %v14463_v61, 7  ;;  %v4590_v50 = vsel %vm641_vm7, %v4587_v17, %v4589_v25 }
 0x893   : > { %v4852_v40 = vsel %vm303_vm6, %v4536_v44, %v4824_v56  ;;  %v6667_v39 = vmul.f32 0.3, %v6571_v18  ;;  %v4853_v60 = vsel %vm303_vm6, %v4824_v56, %v4536_v44 }
 0x894   : > { %v14479_v43 = vpop.f32.mrf.mxu0  ;;  %11315 = vmatmul.msk.f32.gmra.mxu1 %vm3877_vm0, %v14256_v11  ;;  %v6261_v38 = vsel %vm303_vm6, %v6017_v5, %v6233_v58  ;;  %v6262_v55 = vsel %vm303_vm6, %v6233_v58, %v6017_v5  ;;  %v6619_v16 = vmul.f32 2.0, %v5162_v19  ;;  %v4985_v35 = vperm.slane %v4852_v40, %v12108_v32 }
 0x895   : > { %v6394_v3 = vperm.slane %v6261_v38, %v12108_v32  ;;  %v18621_v5 = vrot.slane %v14268_v7, 1  ;;  %v4854_v38 = vrot.slane %v4853_v60, 4  ;;  %v5925_v56 = vsel %vm617_vm9, %v5922_v52, %v5924_v22 }
 0x896   : > { %v14525_v18 = vadd.f32 %v6667_v39, %v6619_v16  ;;  %v5163_v30 = vadd.f32 %v14368_v42, %v4985_v35  ;;  %v4753_v7 = vadd.f32 %v4590_v50, %v13838_v15  ;;  %v4335_v52 = vrot.slane %v13830_v31, 7 }
 0x897   : > { %v6071_v58 = vsel %vm641_vm7, %v18621_v5, %v6070_v27  ;;  %v6572_v61 = vadd.f32 %v14378_v2, %v6394_v3  ;;  %v4989_v15 = vperm.slane %v4854_v38, %v12108_v32  ;;  %v18205_v38 = vrot.slane %v14302_v37, 1 }
 0x898   : > { %v6162_v17 = vadd.f32 %v6071_v58, %v14258_v36  ;;  %v6620_v16 = vmul.f32 2.0, %v5163_v30  ;;  %v4825_v35 = vrot.slane %v4753_v7, 4  ;;  %v4336_v60 = vsel %vm617_vm9, %v4333_v48, %v4335_v52 }
 0x899   : > { %v14492_v8 = vpop.f32.mrf.mxu2  ;;  %v14494_v11 = vpop.f32.mrf.mxu1  ;;  %11322 = vmatmul.msk.f32.gmra.mxu2 %vm6765_vm10, %v14487_v34  ;;  %11370 = vmatmul.msk.f32.gmra.mxu3 %vm6765_vm10, %v14487_v34  ;;  %v6668_v39 = vmul.f32 0.3, %v6572_v61  ;;  %v4537_v31 = vadd.f32 %v4336_v60, %v13834_v4  ;;  %v5164_v48 = vadd.f32 %v14368_v42, %v4989_v15  ;;  %v4591_v4 = vrot.slane %v13719_v24, 1 }
 0x89a   : > { %v14503_v13 = vpop.f32.mrf.mxu3  ;;  %11418 = vmatmul.msk.f32.gmra.mxu0 %vm6765_vm10, %v14487_v34  ;;  %v6234_v36 = vrot.slane %v6162_v17, 4 }
 0x89b   : > { %v14551_v50 = vadd.f32 %v6668_v39, %v6620_v16  ;;  %v4855_v61 = vsel %vm303_vm6, %v4537_v31, %v4825_v35  ;;  %v4856_v39 = vsel %vm303_vm6, %v4825_v35, %v4537_v31  ;;  %v6621_v16 = vmul.f32 2.0, %v5164_v48 }
 0x89c   : > { %11316 = vmatmul.msk.f32.gmra.mxu1 %vm3877_vm0, %v14273_v49  ;;  %v14520_v62 = vpop.f32.mrf.mxu0  ;;  %v6263_v49 = vrot.slane %v6262_v55, 4  ;;  %v6018_v55 = vadd.f32 %v5925_v56, %v14271_v23  ;;  %v4993_v15 = vperm.slane %v4855_v61, %v12108_v32  ;;  %v4592_v60 = vsel %vm641_vm7, %v4589_v25, %v4591_v4 }
 0x89d   : > { %v4857_v35 = vrot.slane %v4856_v39, 4  ;;  %v4754_v31 = vadd.f32 %v4592_v60, %v13852_v26 }
 0x89e   : > { %v6398_v3 = vperm.slane %v6263_v49, %v12108_v32  ;;  %v6264_v58 = vsel %vm303_vm6, %v6018_v55, %v6234_v36  ;;  %v6265_v7 = vsel %vm303_vm6, %v6234_v36, %v6018_v55  ;;  %v6073_v55 = vsel %vm641_vm7, %v6070_v27, %v18205_v38 }
 0x89f   : > { %v6402_v30 = vperm.slane %v6264_v58, %v12108_v32  ;;  %v6266_v36 = vrot.slane %v6265_v7, 4  ;;  %v5165_v25 = vadd.f32 %v14368_v42, %v4993_v15  ;;  %v18203_v27 = vrot.slane %v13843_v33, 7 }
 0x8a0   : > { %v6573_v5 = vadd.f32 %v14378_v2, %v6398_v3  ;;  %v18204_v3 = vrot.slane %v14494_v11, 7  ;;  %v6163_v26 = vadd.f32 %v6073_v55, %v14275_v54  ;;  %v4997_v7 = vperm.slane %v4857_v35, %v12108_v32 }
 0x8a1   : > { %v14529_v44 = vpop.f32.mrf.mxu2  ;;  %v14531_v19 = vpop.f32.mrf.mxu1  ;;  %11323 = vmatmul.msk.f32.gmra.mxu2 %vm6765_vm10, %v14525_v18  ;;  %11371 = vmatmul.msk.f32.gmra.mxu3 %vm6765_vm10, %v14525_v18  ;;  %v4826_v39 = vrot.slane %v4754_v31, 4  ;;  %v4338_v54 = vsel %vm617_vm9, %v4335_v52, %v18203_v27 }
 0x8a2   : > { %v14540_v40 = vpop.f32.mrf.mxu3  ;;  %11419 = vmatmul.msk.f32.gmra.mxu0 %vm6765_vm10, %v14525_v18  ;;  %v6669_v56 = vmul.f32 0.3, %v6573_v5  ;;  %v5927_v58 = vsel %vm617_vm9, %v5924_v22, %v18204_v3  ;;  %v6235_v15 = vrot.slane %v6163_v26, 4  ;;  %v4538_v55 = vadd.f32 %v4338_v54, %v13850_v47 }
 0x8a3   : > { %v5166_v35 = vadd.f32 %v14368_v42, %v4997_v7  ;;  %v4593_v47 = vrot.slane %v13735_v41, 1 }
 0x8a4   : > { %11317 = vmatmul.msk.f32.gmra.mxu1 %vm3877_vm0, %v14290_v46  ;;  %v14556_v49 = vpop.f32.mrf.mxu0  ;;  %v14589_v5 = vadd.f32 %v6669_v56, %v6621_v16  ;;  %v6406_v56 = vperm.slane %v6266_v36, %v12108_v32  ;;  %v6622_v16 = vmul.f32 2.0, %v5165_v25  ;;  %v4422_v36 = vand.u32 63, %v13471_v14 }
 0x8a5   : > { %v4858_v31 = vsel %vm303_vm6, %v4538_v55, %v4826_v39  ;;  %v18207_v25 = vrot.slane %v14461_v12, 1  ;;  %v4859_v3 = vsel %vm303_vm6, %v4826_v39, %v4538_v55  ;;  %v18625_v39 = vrot.slane %v14413_v10, 1 }
 0x8a6   : > { %vm14642_vm11 = vcmp.eq.s32.totalorder %v4422_v36, 0 }
 0x8a9   : > { %v14558_v23 = vpop.f32.mrf.mxu2  ;;  %v14560_v46 = vpop.f32.mrf.mxu1  ;;  %11324 = vmatmul.msk.f32.gmra.mxu2 %vm6765_vm10, %v14551_v50  ;;  %11372 = vmatmul.msk.f32.gmra.mxu3 %vm6765_vm10, %v14551_v50 }
 0x8aa   : > { %11420 = vmatmul.msk.f32.gmra.mxu0 %vm6765_vm10, %v14551_v50  ;;  %v14574_v17 = vpop.f32.mrf.mxu3 }
 0x8ac   : > { %11318 = vmatmul.msk.f32.gmra.mxu1 %vm3877_vm0, %v14308_v1  ;;  %v6574_v1 = vadd.f32 %v14378_v2, %v6402_v30  ;;  %v14609_v22 = vpop.f32.mrf.mxu0  ;;  %v6019_v30 = vadd.f32 %v5927_v58, %v14288_v57  ;;  %v6575_v57 = vadd.f32 %v14378_v2, %v6406_v56 }
 0x8ae   : > { %v6670_v61 = vmul.f32 0.3, %v6574_v1  ;;  %v6671_v56 = vmul.f32 0.3, %v6575_v57  ;;  %v6268_v54 = vsel %vm303_vm6, %v6235_v15, %v6019_v30  ;;  %v18208_v57 = vrot.slane %v14531_v19, 7 }
 0x8b0   : > { %v14622_v1 = vadd.f32 %v6670_v61, %v6622_v16  ;;  %v18211_v61 = vrot.slane %v14324_v20, 1 }
 0x8b1   : > { %v14596_v48 = vpop.f32.mrf.mxu2  ;;  %v14598_v51 = vpop.f32.mrf.mxu1  ;;  %11325 = vmatmul.msk.f32.gmra.mxu2 %vm6765_vm10, %v14589_v5  ;;  %11373 = vmatmul.msk.f32.gmra.mxu3 %vm6765_vm10, %v14589_v5 }
 0x8b2   : > { %11421 = vmatmul.msk.f32.gmra.mxu0 %vm6765_vm10, %v14589_v5  ;;  %v14619_v60 = vpop.f32.mrf.mxu3  ;;  %v18206_v14 = vrot.slane %v14598_v51, 7 }
 0x8b4   : > { %11319 = vmatmul.msk.f32.gmra.mxu1 %vm3877_vm0, %v14338_v63  ;;  %v6267_v63 = vsel %vm303_vm6, %v6019_v30, %v6235_v15  ;;  %v14654_v38 = vpop.f32.mrf.mxu0  ;;  %v4594_v30 = vsel %vm641_vm7, %v4591_v4, %v4593_v47  ;;  %v6083_v15 = vsel %vm641_vm7, %v18625_v39, %v18207_v25  ;;  %v18631_v39 = vld [vmem:[#allocation80_spill] sm:$0xff] }
 0x8b5   : > { %v6410_v7 = vperm.slane %v6267_v63, %v12108_v32  ;;  %18624 = vst [vmem:[#allocation88_spill] sm:$0xff] %v14654_v38  ;;  %v5001_v63 = vperm.slane %v4858_v31, %v12108_v32  ;;  %v6269_v31 = vrot.slane %v6268_v54, 4 }
 0x8b7   : > { %v6576_v4 = vadd.f32 %v14378_v2, %v6410_v7 }
 0x8b9   : > { %v14629_v58 = vpop.f32.mrf.mxu2  ;;  %v5847_v52 = vpop.f32.mrf.mxu1  ;;  %11326 = vmatmul.msk.f32.gmra.mxu2 %vm6765_vm10, %v14622_v1  ;;  %11374 = vmatmul.msk.f32.gmra.mxu3 %vm6765_vm10, %v14622_v1 }
 0x8ba   : > { %v5934_v26 = vrot.slane %v5847_v52, 7  ;;  %11422 = vmatmul.msk.f32.gmra.mxu0 %vm6765_vm10, %v14622_v1  ;;  %v6623_v52 = vmul.f32 2.0, %v5166_v35 }
 0x8bc   : > { %v5935_v27 = vsel %vm617_vm9, %v18206_v14, %v5934_v26  ;;  %11464 = vmatmul.msk.f32.vlgmr.msra.gmra.mxu1 %vm6765_vm10, %v14408_v28  ;;  %v6239_v28 = vrot.slane %v14442_v6, 4  ;;  %v14676_v24 = vadd.f32 %v6671_v56, %v6623_v52  ;;  %v14679_v6 = vpop.f32.mrf.mxu3  ;;  %v18630_v52 = vld [vmem:[#allocation19_spill] sm:$0xff] }
 0x8bd   : > { %v5999_v36 = vsel %vm14642_vm11, 0.0, %v5935_v27  ;;  %v18626_v27 = vrot.slane %v14302_v37, 1  ;;  %18627 = vst [vmem:[#allocation89_spill] sm:$0xff] %v14679_v6  ;;  %v18628_v37 = vrot.slane %v14494_v11, 7 }
 0x8be   : > { %v6023_v55 = vadd.f32 %v5999_v36, %v14391_v9  ;;  %v4860_v9 = vrot.slane %v4859_v3, 4  ;;  %v6168_v36 = vadd.f32 %v6083_v15, %v14397_v29  ;;  %v5167_v3 = vadd.f32 %v14368_v42, %v5001_v63 }
 0x8bf   : > { %v6075_v35 = vsel %vm641_vm7, %v18626_v27, %v18211_v61  ;;  %v5929_v56 = vsel %vm617_vm9, %v18628_v37, %v18208_v57  ;;  %v18210_v29 = vrot.slane %v13856_v45, 7  ;;  %v6414_v27 = vperm.slane %v6269_v31, %v12108_v32  ;;  %v18632_v37 = vld [vmem:[#allocation81_spill] sm:$0xff]  ;;  %v14722_v57 = vpop.f32.mrf.mxu0 }
 0x8c0   : > { %v14682_v14 = vsel %vm303_vm6, %v6023_v55, %v6239_v28  ;;  %v14685_v10 = vsel %vm303_vm6, %v6239_v28, %v6023_v55  ;;  %v4755_v28 = vadd.f32 %v4594_v30, %v18630_v52  ;;  %v6164_v11 = vadd.f32 %v6075_v35, %v18631_v39  ;;  %18634 = vst [vmem:[#allocation19_spill] sm:$0xff] %v14722_v57 }
 0x8c1   : > { %v14693_v54 = vpop.f32.mrf.mxu2  ;;  %v14695_v7 = vpop.f32.mrf.mxu1  ;;  %11327 = vmatmul.msk.f32.gmra.mxu2 %vm6765_vm10, %v14676_v24  ;;  %11375 = vmatmul.msk.f32.gmra.mxu3 %vm6765_vm10, %v14676_v24  ;;  %v6672_v55 = vmul.f32 0.3, %v6576_v4  ;;  %v6020_v25 = vadd.f32 %v5929_v56, %v18632_v37  ;;  %v6240_v30 = vrot.slane %v6168_v36, 4  ;;  %v6624_v52 = vmul.f32 2.0, %v5167_v3  ;;  %v18635_v36 = vld [vmem:[#allocation18_spill] sm:$0xff] }
 0x8c2   : > { %18629 = vst [vmem:[#allocation90_spill] sm:$0xff] %v14693_v54  ;;  %v18209_v15 = vrot.slane %v14695_v7, 7  ;;  %11423 = vmatmul.msk.f32.gmra.mxu0 %vm6765_vm10, %v14676_v24  ;;  %v5005_v39 = vperm.slane %v4860_v9, %v12108_v32  ;;  %v18633_v4 = vrot.slane %v13843_v33, 7  ;;  %v4827_v56 = vrot.slane %v4755_v28, 4 }
 0x8c3   : > { %v6236_v37 = vrot.slane %v6164_v11, 4  ;;  %v6577_v9 = vadd.f32 %v14378_v2, %v6414_v27  ;;  %v18650_v57 = vrot.slane %v13856_v45, 7 }
 0x8c4   : > { %v5937_v63 = vsel %vm617_vm9, %v5934_v26, %v18209_v15  ;;  %11465 = vmatmul.msk.f32.gmra.mxu1 %vm6765_vm10, %v14457_v53  ;;  %v4340_v31 = vsel %vm617_vm9, %v18633_v4, %v18210_v29  ;;  %v5168_v11 = vadd.f32 %v14368_v42, %v5005_v39  ;;  %v18212_v39 = vrot.slane %v14560_v46, 7 }
 0x8c5   : > { %v6024_v35 = vadd.f32 %v5937_v63, %v14426_v59  ;;  %v14730_v59 = vadd.f32 %v6672_v55, %v6624_v52  ;;  %v4539_v3 = vadd.f32 %v4340_v31, %v18635_v36  ;;  %v6270_v33 = vsel %vm303_vm6, %v6020_v25, %v6236_v37  ;;  %v18639_v52 = vld [vmem:[#allocation85_spill] sm:$0xff] }
 0x8c6   : > { %v6076_v4 = vrot.slane %v18639_v52, 1  ;;  %v6673_v31 = vmul.f32 0.3, %v6577_v9  ;;  %v6418_v36 = vperm.slane %v6270_v33, %v12108_v32  ;;  %v6271_v15 = vsel %vm303_vm6, %v6236_v37, %v6020_v25 }
 0x8c7   : > { %v14725_v26 = vsel %vm303_vm6, %v6024_v35, %v6240_v30  ;;  %v14728_v53 = vsel %vm303_vm6, %v6240_v30, %v6024_v35  ;;  %v4861_v55 = vsel %vm303_vm6, %v4539_v3, %v4827_v56  ;;  %v18637_v30 = vld [vmem:[#allocation10_spill] sm:$0xff]  ;;  %v14746_v35 = vpop.f32.mrf.mxu3  ;;  %v6625_v29 = vmul.f32 2.0, %v5168_v11 }
 0x8c8   : > { %v4595_v27 = vrot.slane %v18637_v30, 1  ;;  %18638 = vst [vmem:[#allocation81_spill] sm:$0xff] %v14746_v35  ;;  %v5009_v30 = vperm.slane %v4861_v55, %v12108_v32  ;;  %v4862_v61 = vsel %vm303_vm6, %v4827_v56, %v4539_v3  ;;  %v18640_v9 = vrot.slane %v14324_v20, 1  ;;  %v14772_v3 = vpop.f32.mrf.mxu0 }
 0x8c9   : > { %v14735_v63 = vpop.f32.mrf.mxu2  ;;  %v14737_v28 = vpop.f32.mrf.mxu1  ;;  %11328 = vmatmul.msk.f32.gmra.mxu2 %vm6765_vm10, %v14730_v59  ;;  %11376 = vmatmul.msk.f32.gmra.mxu3 %vm6765_vm10, %v14730_v59  ;;  %v6272_v52 = vrot.slane %v6271_v15, 4  ;;  %v14764_v25 = vadd.f32 %v6673_v31, %v6625_v29  ;;  %v4863_v37 = vrot.slane %v4862_v61, 4  ;;  %v18641_v11 = vrot.slane %v14531_v19, 7  ;;  %18642 = vst [vmem:[#allocation18_spill] sm:$0xff] %v14772_v3  ;;  %v18644_v29 = vld [vmem:[#allocation82_spill] sm:$0xff]  ;;  %v18646_v19 = vld [vmem:[#allocation21_spill] sm:$0xff] }
 0x8ca   : > { %18636 = vst [vmem:[#allocation80_spill] sm:$0xff] %v14735_v63  ;;  %11424 = vmatmul.msk.f32.gmra.mxu0 %vm6765_vm10, %v14730_v59  ;;  %v4596_v35 = vsel %vm641_vm7, %v4593_v47, %v4595_v27  ;;  %v6077_v33 = vsel %vm641_vm7, %v18640_v9, %v6076_v4  ;;  %v5169_v20 = vadd.f32 %v14368_v42, %v5009_v30  ;;  %v18643_v47 = vld [vmem:[#allocation23_spill] sm:$0xff]  ;;  %v4341_v31 = vrot.slane %v18646_v19, 7 }
 0x8cb   : > { %v5931_v56 = vsel %vm617_vm9, %v18641_v11, %v18212_v39  ;;  %v4756_v61 = vadd.f32 %v4596_v35, %v18643_v47  ;;  %v6165_v15 = vadd.f32 %v6077_v33, %v18644_v29  ;;  %v6422_v9 = vperm.slane %v6272_v52, %v12108_v32  ;;  %v18647_v11 = vld [vmem:[#allocation83_spill] sm:$0xff]  ;;  %v18649_v33 = vld [vmem:[#allocation16_spill] sm:$0xff] }
 0x8cc   : > { %11466 = vmatmul.msk.f32.gmra.mxu1 %vm6765_vm10, %v14487_v34  ;;  %v6578_v34 = vadd.f32 %v14378_v2, %v6418_v36  ;;  %v6021_v39 = vadd.f32 %v5931_v56, %v18647_v11  ;;  %v6626_v35 = vmul.f32 2.0, %v5169_v20  ;;  %v5013_v30 = vperm.slane %v4863_v37, %v12108_v32  ;;  %v18651_v19 = vld [vmem:[#allocation11_spill] sm:$0xff]  ;;  %v18652_v11 = vld [vmem:[#allocation22_spill] sm:$0xff] }
 0x8cd   : > { %v4421_v47 = vand.u32 63, %v18649_v33  ;;  %v4828_v29 = vrot.slane %v4756_v61, 4  ;;  %v18215_v52 = vrot.slane %v18651_v19, 1  ;;  %v6579_v56 = vadd.f32 %v14378_v2, %v6422_v9 }
 0x8ce   : > { %v6674_v36 = vmul.f32 0.3, %v6578_v34  ;;  %v4342_v34 = vsel %vm617_vm9, %v18650_v57, %v4341_v31  ;;  %v5170_v45 = vadd.f32 %v14368_v42, %v5013_v30 }
 0x8cf   : > { %v14790_v3 = vpop.f32.mrf.mxu3  ;;  %v4598_v37 = vsel %vm641_vm7, %v4595_v27, %v18215_v52  ;;  %vm14818_vm12 = vcmp.eq.s32.totalorder %v4421_v47, 63 }
 0x8d0   : > { %18648 = vst [vmem:[#allocation85_spill] sm:$0xff] %v14790_v3  ;;  %v14800_v63 = vadd.f32 %v6674_v36, %v6626_v35  ;;  %v4540_v3 = vadd.f32 %v4342_v34, %v18652_v11  ;;  %v6675_v36 = vmul.f32 0.3, %v6579_v56  ;;  %v18656_v35 = vrot.slane %v14387_v21, 1 }
 0x8d1   : > { %v14774_v41 = vpop.f32.mrf.mxu1  ;;  %11329 = vmatmul.msk.f32.gmra.mxu2 %vm6765_vm10, %v14764_v25  ;;  %11377 = vmatmul.msk.f32.gmra.mxu3 %vm6765_vm10, %v14764_v25  ;;  %v14783_v55 = vpop.f32.mrf.mxu2  ;;  %v6627_v27 = vmul.f32 2.0, %v5170_v45  ;;  %v4733_v56 = vsel %vm14818_vm12, 0.0, %v4598_v37  ;;  %v18660_v45 = vrot.slane %v14560_v46, 7  ;;  %v18661_v37 = vld [vmem:[#allocation28_spill] sm:$0xff]  ;;  %v18663_v46 = vld [vmem:[#allocation25_spill] sm:$0xff] }
 0x8d2   : > { %18645 = vst [vmem:[#allocation10_spill] sm:$0xff] %v14783_v55  ;;  %11425 = vmatmul.msk.f32.gmra.mxu0 %vm6765_vm10, %v14764_v25  ;;  %v6237_v55 = vrot.slane %v6165_v15, 4  ;;  %v4864_v57 = vsel %vm303_vm6, %v4540_v3, %v4828_v29  ;;  %v14822_v15 = vpop.f32.mrf.mxu0  ;;  %v6079_v30 = vsel %vm641_vm7, %v6076_v4, %v18656_v35  ;;  %v4865_v11 = vsel %vm303_vm6, %v4828_v29, %v4540_v3 }
 0x8d3   : > { %18655 = vst [vmem:[#allocation23_spill] sm:$0xff] %v14822_v15  ;;  %v5017_v47 = vperm.slane %v4864_v57, %v12108_v32  ;;  %v6142_v21 = vsel %vm14818_vm12, 0.0, %v6079_v30  ;;  %v4866_v35 = vrot.slane %v4865_v11, 4  ;;  %v4757_v61 = vadd.f32 %v4733_v56, %v18661_v37 }
 0x8d4   : > { %11467 = vmatmul.msk.f32.gmra.mxu1 %vm6765_vm10, %v14525_v18  ;;  %v6273_v18 = vsel %vm303_vm6, %v6021_v39, %v6237_v55  ;;  %v6274_v33 = vsel %vm303_vm6, %v6237_v55, %v6021_v39  ;;  %v14841_v39 = vadd.f32 %v6675_v36, %v6627_v27  ;;  %v18662_v36 = vld [vmem:[#allocation84_spill] sm:$0xff]  ;;  %v18664_v27 = vld [vmem:[#allocation86_spill] sm:$0xff] }
 0x8d5   : > { %v6426_v9 = vperm.slane %v6273_v18, %v12108_v32  ;;  %v6275_v4 = vrot.slane %v6274_v33, 4  ;;  %v5171_v57 = vadd.f32 %v14368_v42, %v5017_v47  ;;  %v5021_v56 = vperm.slane %v4866_v35, %v12108_v32 }
 0x8d7   : > { %v14837_v18 = vpop.f32.mrf.mxu3  ;;  %v6580_v55 = vadd.f32 %v14378_v2, %v6426_v9  ;;  %v6166_v9 = vadd.f32 %v6142_v21, %v18662_v36  ;;  %v6430_v33 = vperm.slane %v6275_v4, %v12108_v32  ;;  %v6628_v47 = vmul.f32 2.0, %v5171_v57  ;;  %v18669_v57 = vld [vmem:[#allocation6_spill] sm:$0xff] }
 0x8d8   : > { %18658 = vst [vmem:[#allocation21_spill] sm:$0xff] %v14837_v18 }
 0x8d9   : > { %v14805_v20 = vpop.f32.mrf.mxu1  ;;  %11330 = vmatmul.msk.f32.gmra.mxu2 %vm6765_vm10, %v14800_v63  ;;  %11378 = vmatmul.msk.f32.gmra.mxu3 %vm6765_vm10, %v14800_v63  ;;  %v14829_v34 = vpop.f32.mrf.mxu2  ;;  %v6676_v30 = vmul.f32 0.3, %v6580_v55  ;;  %v6238_v21 = vrot.slane %v6166_v9, 4  ;;  %v6581_v4 = vadd.f32 %v14378_v2, %v6430_v33  ;;  %v18667_v55 = vld [vmem:[#allocation26_spill] sm:$0xff] }
 0x8da   : > { %11426 = vmatmul.msk.f32.gmra.mxu0 %vm6765_vm10, %v14800_v63  ;;  %18657 = vst [vmem:[#allocation82_spill] sm:$0xff] %v14829_v34  ;;  %v18712_v34 = vrot.slane %v14492_v8, 1 }
 0x8db   : > { %v6677_v9 = vmul.f32 0.3, %v6581_v4 }
 0x8dc   : > { %11468 = vmatmul.msk.f32.gmra.mxu1 %vm6765_vm10, %v14551_v50  ;;  %v18659_v50 = vrot.slane %v14598_v51, 7  ;;  %v4343_v51 = vrot.slane %v18663_v46, 7  ;;  %v14871_v46 = vadd.f32 %v6676_v30, %v6628_v47 }
 0x8de   : > { %v5933_v3 = vsel %vm617_vm9, %v18660_v45, %v18659_v50  ;;  %v14865_v50 = vpop.f32.mrf.mxu0  ;;  %v4829_v45 = vrot.slane %v4757_v61, 4  ;;  %v4344_v36 = vsel %vm617_vm9, %v4341_v31, %v4343_v51  ;;  %v5172_v31 = vadd.f32 %v14368_v42, %v5021_v56 }
 0x8df   : > { %v6022_v11 = vadd.f32 %v5933_v3, %v18664_v27  ;;  %18665 = vst [vmem:[#allocation83_spill] sm:$0xff] %v14865_v50  ;;  %v4541_v3 = vadd.f32 %v4344_v36, %v18667_v55  ;;  %v4599_v61 = vrot.slane %v18669_v57, 1  ;;  %v18670_v55 = vrot.slane %v18651_v19, 1 }
 0x8e0   : > { %v6629_v47 = vmul.f32 2.0, %v5172_v31 }
 0x8e1   : > { %v14849_v29 = vpop.f32.mrf.mxu1  ;;  %11331 = vmatmul.msk.f32.gmra.mxu2 %vm6765_vm10, %v14841_v39  ;;  %11379 = vmatmul.msk.f32.gmra.mxu3 %vm6765_vm10, %v14841_v39  ;;  %v14868_v37 = vpop.f32.mrf.mxu2  ;;  %v6276_v27 = vsel %vm303_vm6, %v6022_v11, %v6238_v21  ;;  %v4867_v35 = vsel %vm303_vm6, %v4541_v3, %v4829_v45  ;;  %v6277_v33 = vsel %vm303_vm6, %v6238_v21, %v6022_v11  ;;  %v18672_v11 = vld [vmem:[#allocation29_spill] sm:$0xff] }
 0x8e2   : > { %11427 = vmatmul.msk.f32.gmra.mxu0 %vm6765_vm10, %v14841_v39  ;;  %18666 = vst [vmem:[#allocation16_spill] sm:$0xff] %v14868_v37  ;;  %v6434_v30 = vperm.slane %v6276_v27, %v12108_v32  ;;  %v5025_v36 = vperm.slane %v4867_v35, %v12108_v32  ;;  %v4868_v56 = vsel %vm303_vm6, %v4829_v45, %v4541_v3  ;;  %v6278_v50 = vrot.slane %v6277_v33, 4  ;;  %v18675_v45 = vld [vmem:[#allocation32_spill] sm:$0xff] }
 0x8e3   : > { %v14900_v4 = vadd.f32 %v6677_v9, %v6629_v47  ;;  %v4345_v21 = vrot.slane %v18672_v11, 7 }
 0x8e4   : > { %11469 = vmatmul.msk.f32.gmra.mxu1 %vm6765_vm10, %v14589_v5  ;;  %v14876_v5 = vpop.f32.mrf.mxu3  ;;  %v6582_v27 = vadd.f32 %v14378_v2, %v6434_v30  ;;  %v5173_v19 = vadd.f32 %v14368_v42, %v5025_v36  ;;  %v6438_v30 = vperm.slane %v6278_v50, %v12108_v32 }
 0x8e5   : > { %18668 = vst [vmem:[#allocation11_spill] sm:$0xff] %v14876_v5  ;;  %v4600_v5 = vsel %vm641_vm7, %v18670_v55, %v4599_v61  ;;  %v4346_v33 = vsel %vm617_vm9, %v4343_v51, %v4345_v21 }
 0x8e6   : > { %v14898_v37 = vpop.f32.mrf.mxu0  ;;  %v4758_v3 = vadd.f32 %v4600_v5, %v18675_v45  ;;  %v6678_v9 = vmul.f32 0.3, %v6582_v27  ;;  %v6630_v47 = vmul.f32 2.0, %v5173_v19  ;;  %v4518_v5 = vsel %vm14642_vm11, 0.0, %v4346_v33  ;;  %v18677_v45 = vld [vmem:[#allocation31_spill] sm:$0xff] }
 0x8e7   : > { %18671 = vst [vmem:[#allocation22_spill] sm:$0xff] %v14898_v37  ;;  %v6583_v11 = vadd.f32 %v14378_v2, %v6438_v30  ;;  %v4542_v27 = vadd.f32 %v4518_v5, %v18677_v45  ;;  %v6281_v45 = vrot.slane %v14685_v10, 4  ;;  %v18685_v10 = vld [vmem:[#allocation33_spill] sm:$0xff] }
 0x8e8   : > { %v4830_v55 = vrot.slane %v4758_v3, 4  ;;  %v14925_v36 = vadd.f32 %v6678_v9, %v6630_v47  ;;  %v6442_v9 = vperm.slane %v14682_v14, %v12108_v32 }
 0x8e9   : > { %v14878_v52 = vpop.f32.mrf.mxu1  ;;  %11332 = vmatmul.msk.f32.gmra.mxu2 %vm6765_vm10, %v14871_v46  ;;  %11380 = vmatmul.msk.f32.gmra.mxu3 %vm6765_vm10, %v14871_v46  ;;  %v14904_v57 = vpop.f32.mrf.mxu2  ;;  %v6679_v3 = vmul.f32 0.3, %v6583_v11 }
 0x8ea   : > { %11428 = vmatmul.msk.f32.gmra.mxu0 %vm6765_vm10, %v14871_v46  ;;  %18673 = vst [vmem:[#allocation28_spill] sm:$0xff] %v14904_v57  ;;  %v4870_v16 = vsel %vm303_vm6, %v4542_v27, %v4830_v55  ;;  %v6584_v11 = vadd.f32 %v14378_v2, %v6442_v9  ;;  %v18699_v57 = vrot.slane %v14695_v7, 7 }
 0x8eb   : > { %v5033_v47 = vperm.slane %v4870_v16, %v12108_v32 }
 0x8ec   : > { %11470 = vmatmul.msk.f32.gmra.mxu1 %vm6765_vm10, %v14622_v1  ;;  %v4869_v1 = vrot.slane %v4868_v56, 4  ;;  %v14914_v35 = vpop.f32.mrf.mxu3  ;;  %v6680_v16 = vmul.f32 0.3, %v6584_v11  ;;  %v18689_v11 = vld [vmem:[#allocation35_spill] sm:$0xff] }
 0x8ed   : > { %18676 = vst [vmem:[#allocation25_spill] sm:$0xff] %v14914_v35 }
 0x8ee   : > { %v5029_v56 = vperm.slane %v4869_v1, %v12108_v32  ;;  %v14929_v35 = vpop.f32.mrf.mxu0  ;;  %v18681_v1 = vld [vmem:[#allocation7_spill] sm:$0xff] }
 0x8ef   : > { %18678 = vst [vmem:[#allocation86_spill] sm:$0xff] %v14929_v35  ;;  %v4601_v19 = vrot.slane %v18681_v1, 1 }
 0x8f1   : > { %v14906_v31 = vpop.f32.mrf.mxu1  ;;  %11333 = vmatmul.msk.f32.gmra.mxu2 %vm6765_vm10, %v14900_v4  ;;  %11381 = vmatmul.msk.f32.gmra.mxu3 %vm6765_vm10, %v14900_v4  ;;  %v14939_v51 = vpop.f32.mrf.mxu2  ;;  %v4602_v5 = vsel %vm641_vm7, %v4599_v61, %v4601_v19  ;;  %v4347_v61 = vrot.slane %v18685_v10, 7 }
 0x8f2   : > { %18674 = vst [vmem:[#allocation84_spill] sm:$0xff] %v14906_v31  ;;  %11429 = vmatmul.msk.f32.gmra.mxu0 %vm6765_vm10, %v14900_v4 }
 0x8f3   : > { %18680 = vst [vmem:[#allocation6_spill] sm:$0xff] %v14939_v51  ;;  %v6284_v51 = vrot.slane %v14728_v53, 4 }
 0x8f4   : > { %11471 = vmatmul.msk.f32.gmra.mxu1 %vm6765_vm10, %v14676_v24  ;;  %v5174_v24 = vadd.f32 %v14368_v42, %v5029_v56  ;;  %v14946_v30 = vpop.f32.mrf.mxu3  ;;  %v4871_v56 = vsel %vm303_vm6, %v4830_v55, %v4542_v27  ;;  %v18684_v55 = vld [vmem:[#allocation36_spill] sm:$0xff] }
 0x8f5   : > { %18682 = vst [vmem:[#allocation29_spill] sm:$0xff] %v14946_v30  ;;  %v4872_v1 = vrot.slane %v4871_v56, 4  ;;  %v4759_v27 = vadd.f32 %v4602_v5, %v18684_v55  ;;  %v4348_v55 = vsel %vm617_vm9, %v4345_v21, %v4347_v61 }
 0x8f6   : > { %v6631_v33 = vmul.f32 2.0, %v5174_v24  ;;  %v14968_v24 = vpop.f32.mrf.mxu0 }
 0x8f7   : > { %18686 = vst [vmem:[#allocation31_spill] sm:$0xff] %v14968_v24  ;;  %v4831_v56 = vrot.slane %v4759_v27, 4  ;;  %v4543_v24 = vadd.f32 %v4348_v55, %v18689_v11 }
 0x8f8   : > { %v14954_v35 = vadd.f32 %v6679_v3, %v6631_v33  ;;  %v6446_v3 = vperm.slane %v6281_v45, %v12108_v32 }
 0x8f9   : > { %v14931_v50 = vpop.f32.mrf.mxu1  ;;  %11334 = vmatmul.msk.f32.gmra.mxu2 %vm6765_vm10, %v14925_v36  ;;  %11382 = vmatmul.msk.f32.gmra.mxu3 %vm6765_vm10, %v14925_v36  ;;  %v14971_v9 = vpop.f32.mrf.mxu2 }
 0x8fa   : > { %18679 = vst [vmem:[#allocation26_spill] sm:$0xff] %v14931_v50  ;;  %11430 = vmatmul.msk.f32.gmra.mxu0 %vm6765_vm10, %v14925_v36  ;;  %v6585_v10 = vadd.f32 %v14378_v2, %v6446_v3  ;;  %v6450_v3 = vperm.slane %v14725_v26, %v12108_v32  ;;  %v18694_v26 = vrot.slane %v14461_v12, 1  ;;  %v18724_v50 = vld [vmem:[#allocation45_spill] sm:$0xff] }
 0x8fb   : > { %18687 = vst [vmem:[#allocation7_spill] sm:$0xff] %v14971_v9 }
 0x8fc   : > { %11472 = vmatmul.msk.f32.gmra.mxu1 %vm6765_vm10, %v14730_v59  ;;  %v5175_v59 = vadd.f32 %v14368_v42, %v5033_v47  ;;  %v5037_v47 = vperm.slane %v4872_v1, %v12108_v32  ;;  %v14976_v5 = vpop.f32.mrf.mxu3  ;;  %v4873_v1 = vsel %vm303_vm6, %v4543_v24, %v4831_v56 }
 0x8fd   : > { %18688 = vst [vmem:[#allocation36_spill] sm:$0xff] %v14976_v5  ;;  %v4874_v5 = vsel %vm303_vm6, %v4831_v56, %v4543_v24  ;;  %v18697_v24 = vld [vmem:[#allocation40_spill] sm:$0xff] }
 0x8fe   : > { %v6632_v33 = vmul.f32 2.0, %v5175_v59  ;;  %v18691_v59 = vld [vmem:[#allocation12_spill] sm:$0xff]  ;;  %v15002_v55 = vpop.f32.mrf.mxu0 }
 0x8ff   : > { %v4603_v21 = vrot.slane %v18691_v59, 1  ;;  %18692 = vst [vmem:[#allocation35_spill] sm:$0xff] %v15002_v55  ;;  %v5041_v59 = vperm.slane %v4873_v1, %v12108_v32  ;;  %v18695_v55 = vld [vmem:[#allocation38_spill] sm:$0xff]  ;;  %v4875_v1 = vrot.slane %v4874_v5, 4 }
 0x900   : > { %v14979_v30 = vadd.f32 %v6680_v16, %v6632_v33  ;;  %v6681_v16 = vmul.f32 0.3, %v6585_v10  ;;  %v18693_v10 = vrot.slane %v14492_v8, 1  ;;  %v18718_v8 = vld [vmem:[#allocation47_spill] sm:$0xff] }
 0x901   : > { %v14957_v14 = vpop.f32.mrf.mxu1  ;;  %11335 = vmatmul.msk.f32.gmra.mxu2 %vm6765_vm10, %v14954_v35  ;;  %11383 = vmatmul.msk.f32.gmra.mxu3 %vm6765_vm10, %v14954_v35  ;;  %v4604_v27 = vsel %vm641_vm7, %v4601_v19, %v4603_v21  ;;  %v18698_v19 = vrot.slane %v14737_v28, 7  ;;  %v5177_v53 = vadd.f32 %v14368_v42, %v5041_v59 }
 0x902   : > { %18683 = vst [vmem:[#allocation32_spill] sm:$0xff] %v14957_v14  ;;  %11431 = vmatmul.msk.f32.gmra.mxu0 %vm6765_vm10, %v14954_v35  ;;  %v6085_v9 = vsel %vm641_vm7, %v18694_v26, %v18693_v10  ;;  %v4760_v56 = vadd.f32 %v4604_v27, %v18697_v24  ;;  %v18702_v27 = vld [vmem:[#allocation13_spill] sm:$0xff] }
 0x903   : > { %v5939_v12 = vsel %vm617_vm9, %v18699_v57, %v18698_v19  ;;  %v6454_v57 = vperm.slane %v6284_v51, %v12108_v32  ;;  %v5045_v19 = vperm.slane %v4875_v1, %v12108_v32 }
 0x904   : > { %11473 = vmatmul.msk.f32.gmra.mxu1 %vm6765_vm10, %v14764_v25  ;;  %v5176_v25 = vadd.f32 %v14368_v42, %v5037_v47  ;;  %v6586_v47 = vadd.f32 %v14378_v2, %v6450_v3  ;;  %v15017_v37 = vpop.f32.mrf.mxu3  ;;  %v4605_v3 = vrot.slane %v18702_v27, 1  ;;  %v4832_v59 = vrot.slane %v4760_v56, 4 }
 0x905   : > { %18696 = vst [vmem:[#allocation12_spill] sm:$0xff] %v15017_v37  ;;  %v18704_v37 = vld [vmem:[#allocation8_spill] sm:$0xff] }
 0x906   : > { %v6633_v11 = vmul.f32 2.0, %v5176_v25  ;;  %v4349_v25 = vrot.slane %v18695_v55, 7  ;;  %v6682_v7 = vmul.f32 0.3, %v6586_v47  ;;  %v6025_v55 = vadd.f32 %v5939_v12, %v14472_v0 }
 0x907   : > { %v15043_v24 = vpop.f32.mrf.mxu0  ;;  %v4606_v51 = vsel %vm641_vm7, %v4603_v21, %v4605_v3  ;;  %v4607_v0 = vrot.slane %v18704_v37, 1  ;;  %v5178_v37 = vadd.f32 %v14368_v42, %v5045_v19 }
 0x908   : > { %v4350_v26 = vsel %vm617_vm9, %v4347_v61, %v4349_v25 }
 0x909   : > { %v14983_v45 = vpop.f32.mrf.mxu1  ;;  %11336 = vmatmul.msk.f32.gmra.mxu2 %vm6765_vm10, %v14979_v30  ;;  %11384 = vmatmul.msk.f32.gmra.mxu3 %vm6765_vm10, %v14979_v30 }
 0x90a   : > { %18690 = vst [vmem:[#allocation33_spill] sm:$0xff] %v14983_v45  ;;  %11432 = vmatmul.msk.f32.gmra.mxu0 %vm6765_vm10, %v14979_v30 }
 0x90c   : > { %v14997_v33 = vpop.f32.mrf.mxu2  ;;  %11474 = vmatmul.msk.f32.gmra.mxu1 %vm6765_vm10, %v14800_v63  ;;  %v15013_v63 = vadd.f32 %v6681_v16, %v6633_v11  ;;  %v18701_v16 = vld [vmem:[#allocation87_spill] sm:$0xff]  ;;  %v15053_v61 = vpop.f32.mrf.mxu3 }
 0x90d   : > { %v6169_v5 = vadd.f32 %v6085_v9, %v18701_v16  ;;  %v6634_v9 = vmul.f32 2.0, %v5177_v53  ;;  %v18703_v16 = vld [vmem:[#allocation39_spill] sm:$0xff]  ;;  %v18705_v53 = vld [vmem:[#allocation41_spill] sm:$0xff] }
 0x90e   : > { %v4544_v27 = vadd.f32 %v4350_v26, %v18703_v16  ;;  %v4351_v18 = vrot.slane %v18705_v53, 7  ;;  %v18710_v16 = vld [vmem:[#allocation46_spill] sm:$0xff] }
 0x90f   : > { %v6241_v47 = vrot.slane %v6169_v5, 4  ;;  %v15049_v12 = vadd.f32 %v6682_v7, %v6634_v9  ;;  %v18707_v5 = vld [vmem:[#allocation43_spill] sm:$0xff]  ;;  %v4608_v9 = vsel %vm641_vm7, %v4605_v3, %v4607_v0  ;;  %v6635_v3 = vmul.f32 2.0, %v5178_v37 }
 0x910   : > { %v4876_v56 = vsel %vm303_vm6, %v4544_v27, %v4832_v59  ;;  %v4877_v21 = vsel %vm303_vm6, %v4832_v59, %v4544_v27  ;;  %v4761_v7 = vadd.f32 %v4606_v51, %v18707_v5  ;;  %v4352_v27 = vsel %vm617_vm9, %v4349_v25, %v4351_v18 }
 0x911   : > { %v15025_v10 = vpop.f32.mrf.mxu1  ;;  %11337 = vmatmul.msk.f32.gmra.mxu2 %vm6765_vm10, %v15013_v63  ;;  %11385 = vmatmul.msk.f32.gmra.mxu3 %vm6765_vm10, %v15013_v63  ;;  %v6286_v15 = vsel %vm303_vm6, %v6241_v47, %v6025_v55  ;;  %v5049_v59 = vperm.slane %v4876_v56, %v12108_v32  ;;  %v4878_v19 = vrot.slane %v4877_v21, 4  ;;  %v15088_v21 = vpop.f32.mrf.mxu0 }
 0x912   : > { %18700 = vst [vmem:[#allocation38_spill] sm:$0xff] %v15025_v10  ;;  %11433 = vmatmul.msk.f32.gmra.mxu0 %vm6765_vm10, %v15013_v63  ;;  %v6587_v10 = vadd.f32 %v14378_v2, %v6454_v57  ;;  %v18708_v57 = vld [vmem:[#allocation14_spill] sm:$0xff]  ;;  %v4833_v5 = vrot.slane %v4761_v7, 4  ;;  %v6287_v56 = vrot.slane %v6286_v15, 4 }
 0x913   : > { %v4609_v26 = vrot.slane %v18708_v57, 1  ;;  %v18709_v57 = vld [vmem:[#allocation44_spill] sm:$0xff]  ;;  %v18714_v7 = vld [vmem:[#allocation42_spill] sm:$0xff] }
 0x914   : > { %v15038_v11 = vpop.f32.mrf.mxu2  ;;  %11475 = vmatmul.msk.f32.gmra.mxu1 %vm6765_vm10, %v14841_v39  ;;  %v6285_v39 = vsel %vm303_vm6, %v6025_v55, %v6241_v47  ;;  %v6683_v53 = vmul.f32 0.3, %v6587_v10  ;;  %v4353_v10 = vrot.slane %v18709_v57, 7  ;;  %v18711_v47 = vrot.slane %v14529_v44, 1  ;;  %v18715_v57 = vld [vmem:[#allocation5_spill] sm:$0xff] }
 0x915   : > { %v4610_v55 = vsel %vm641_vm7, %v4607_v0, %v4609_v26  ;;  %v4545_v51 = vadd.f32 %v4352_v27, %v18714_v7  ;;  %v15095_v14 = vadd.s32 120, %v18715_v57  ;;  %v15098_v0 = vadd.s32 128, %v18715_v57 }
 0x916   : > { %v15090_v25 = vadd.f32 %v6683_v53, %v6635_v3  ;;  %v18721_v3 = vrot.slane %v14774_v41, 7 }
 0x917   : > { %18716 = vst [vmem:[#allocation13_spill] sm:$0xff] %v15095_v14  ;;  %v4429_v38 = vand.u32 63, %v15095_v14 }
 0x918   : > { %18713 = vst [vmem:[#allocation87_spill] sm:$0xff] %v15090_v25 }
 0x919   : > { %v15057_v1 = vpop.f32.mrf.mxu1  ;;  %11338 = vmatmul.msk.f32.gmra.mxu2 %vm6765_vm10, %v15049_v12  ;;  %11386 = vmatmul.msk.f32.gmra.mxu3 %vm6765_vm10, %v15049_v12  ;;  %18717 = vst [vmem:[#allocation39_spill] sm:$0xff] %v15098_v0  ;;  %vm15148_vm13 = vcmp.eq.s32.totalorder %v4429_v38, 63 }
 0x91a   : > { %18706 = vst [vmem:[#allocation40_spill] sm:$0xff] %v15057_v1  ;;  %11434 = vmatmul.msk.f32.gmra.mxu0 %vm6765_vm10, %v15049_v12  ;;  %v6458_v1 = vperm.slane %v6285_v39, %v12108_v32  ;;  %v4762_v39 = vadd.f32 %v4608_v9, %v18710_v16  ;;  %v5179_v9 = vadd.f32 %v14368_v42, %v5049_v59 }
 0x91b   : > { %v4879_v59 = vsel %vm303_vm6, %v4545_v51, %v4833_v5 }
 0x91c   : > { %v15073_v45 = vpop.f32.mrf.mxu2  ;;  %11476 = vmatmul.msk.f32.gmra.mxu1 %vm6765_vm10, %v14871_v46  ;;  %v6087_v46 = vsel %vm641_vm7, %v18712_v34, %v18711_v47  ;;  %v6588_v37 = vadd.f32 %v14378_v2, %v6458_v1  ;;  %v18719_v34 = vld [vmem:[#allocation49_spill] sm:$0xff]  ;;  %v18720_v47 = vld [vmem:[#allocation15_spill] sm:$0xff]  ;;  %v18722_v1 = vrot.slane %v14737_v28, 7  ;;  %v5053_v28 = vperm.slane %v4878_v19, %v12108_v32 }
 0x91d   : > { %v15103_v15 = vadd.f32 %v4610_v55, %v18719_v34  ;;  %v4611_v53 = vrot.slane %v18720_v47, 1  ;;  %v4354_v55 = vsel %vm617_vm9, %v4351_v18, %v4353_v10  ;;  %v6170_v34 = vadd.f32 %v6087_v46, %v14479_v43  ;;  %v15120_v47 = vpop.f32.mrf.mxu3 }
 0x91e   : > { %v5941_v27 = vsel %vm617_vm9, %v18722_v1, %v18721_v3  ;;  %v4880_v3 = vsel %vm303_vm6, %v4833_v5, %v4545_v51  ;;  %v4834_v1 = vrot.slane %v4762_v39, 4  ;;  %v6684_v16 = vmul.f32 0.3, %v6588_v37  ;;  %v18726_v37 = vld [vmem:[#allocation48_spill] sm:$0xff] }
 0x91f   : > { %v4546_v6 = vadd.f32 %v4354_v55, %v18724_v50  ;;  %v6026_v18 = vadd.f32 %v5941_v27, %v14503_v13  ;;  %v6636_v46 = vmul.f32 2.0, %v5179_v9  ;;  %v18725_v19 = vrot.slane %v18718_v8, 7 }
 0x920   : > { %v4835_v5 = vrot.slane %v15103_v15, 4  ;;  %v4612_v39 = vsel %vm641_vm7, %v4609_v26, %v4611_v53  ;;  %v5057_v50 = vperm.slane %v4879_v59, %v12108_v32  ;;  %v6242_v13 = vrot.slane %v6170_v34, 4 }
 0x921   : > { %v15111_v7 = vpop.f32.mrf.mxu1  ;;  %11339 = vmatmul.msk.f32.gmra.mxu2 %vm6765_vm10, %v15090_v25  ;;  %11387 = vmatmul.msk.f32.gmra.mxu3 %vm6765_vm10, %v15090_v25  ;;  %v4356_v51 = vsel %vm617_vm9, %v4353_v10, %v18725_v19  ;;  %v5180_v27 = vadd.f32 %v14368_v42, %v5053_v28  ;;  %v4882_v14 = vsel %vm303_vm6, %v4546_v6, %v4834_v1  ;;  %v18729_v19 = vld [vmem:[#allocation52_spill] sm:$0xff]  ;;  %v4430_v59 = vand.u32 63, %v15098_v0 }
 0x922   : > { %18723 = vst [vmem:[#allocation8_spill] sm:$0xff] %v15111_v7  ;;  %11435 = vmatmul.msk.f32.gmra.mxu0 %vm6765_vm10, %v15090_v25  ;;  %v6462_v7 = vperm.slane %v6287_v56, %v12108_v32  ;;  %v4881_v56 = vrot.slane %v4880_v3, 4  ;;  %v4547_v55 = vadd.f32 %v4356_v51, %v18726_v37  ;;  %v15144_v31 = vadd.f32 %v6684_v16, %v6636_v46  ;;  %v18732_v51 = vld [vmem:[#allocation50_spill] sm:$0xff]  ;;  %v15157_v16 = vpop.f32.mrf.mxu0 }
 0x923   : > { %v4764_v15 = vadd.f32 %v4612_v39, %v18729_v19  ;;  %v6288_v34 = vsel %vm303_vm6, %v6026_v18, %v6242_v13  ;;  %v4883_v28 = vsel %vm303_vm6, %v4834_v1, %v4546_v6  ;;  %v5181_v38 = vadd.f32 %v14368_v42, %v5057_v50 }
 0x924   : > { %v15130_v43 = vpop.f32.mrf.mxu2  ;;  %11477 = vmatmul.msk.f32.gmra.mxu1 %vm6765_vm10, %v14900_v4  ;;  %v18727_v4 = vld [vmem:[#allocation9_spill] sm:$0xff]  ;;  %18728 = vst [vmem:[#allocation41_spill] sm:$0xff] %v15144_v31  ;;  %v6589_v10 = vadd.f32 %v14378_v2, %v6462_v7  ;;  %v4886_v3 = vsel %vm303_vm6, %v4835_v5, %v4547_v55  ;;  %v6637_v6 = vmul.f32 2.0, %v5180_v27  ;;  %v5061_v1 = vperm.slane %v4881_v56, %v12108_v32 }
 0x925   : > { %v18234_v9 = vrot.slane %v18727_v4, 1  ;;  %v5065_v39 = vperm.slane %v4882_v14, %v12108_v32  ;;  %v18236_v37 = vrot.slane %v14558_v23, 1  ;;  %v6466_v54 = vperm.slane %v6288_v34, %v12108_v32 }
 0x926   : > { %v4884_v50 = vrot.slane %v4883_v28, 4  ;;  %v4887_v25 = vrot.slane %v4886_v3, 4  ;;  %v4836_v7 = vrot.slane %v4764_v15, 4  ;;  %v6289_v0 = vsel %vm303_vm6, %v6242_v13, %v6026_v18  ;;  %v18736_v28 = vld [vmem:[#allocation51_spill] sm:$0xff] }
 0x927   : > { %v4614_v19 = vsel %vm641_vm7, %v4611_v53, %v18234_v9  ;;  %v4885_v14 = vsel %vm303_vm6, %v4547_v55, %v4835_v5  ;;  %v18734_v53 = vrot.slane %v18732_v51, 7  ;;  %v18735_v56 = vrot.slane %v18718_v8, 7 }
 0x928   : > { %v6638_v15 = vmul.f32 2.0, %v5181_v38  ;;  %v4741_v13 = vsel %vm15148_vm13, 0.0, %v4614_v19  ;;  %vm15193_vm14 = vcmp.eq.s32.totalorder %v4430_v59, 0  ;;  %v18737_v3 = vmov 0 }
 0x929   : > { %v15159_v46 = vpop.f32.mrf.mxu1  ;;  %11340 = vmatmul.msk.f32.gmra.mxu2 %vm6765_vm10, %v15144_v31  ;;  %11388 = vmatmul.msk.f32.gmra.mxu3 %vm6765_vm10, %v15144_v31  ;;  %v18738_v3 = vsel %vm15193_vm14, 4294967295, %v18737_v3  ;;  %v5183_v5 = vadd.f32 %v14368_v42, %v5065_v39  ;;  %v18740_v8 = vrot.slane %v14529_v44, 1  ;;  %v6290_v38 = vrot.slane %v6289_v0, 4  ;;  %v18742_v44 = vld [vmem:[#allocation55_spill] sm:$0xff] }
 0x92a   : > { %18733 = vst [vmem:[#allocation43_spill] sm:$0xff] %v15159_v46  ;;  %11436 = vmatmul.msk.f32.gmra.mxu0 %vm6765_vm10, %v15144_v31  ;;  %v6685_v46 = vmul.f32 0.3, %v6589_v10  ;;  %v15177_v31 = vpop.f32.mrf.mxu3  ;;  %v4358_v10 = vsel %vm617_vm9, %v18735_v56, %v18734_v53  ;;  %v6590_v56 = vadd.f32 %v14378_v2, %v6466_v54  ;;  %v5069_v19 = vperm.slane %v4884_v50, %v12108_v32 }
 0x92b   : > { %v4548_v18 = vadd.f32 %v4358_v10, %v18736_v28  ;;  %18739 = vst [vmem:[#allocation14_spill] sm:$0xff] %v18738_v3  ;;  %v6089_v55 = vsel %vm641_vm7, %v18740_v8, %v18236_v37  ;;  %v5073_v10 = vperm.slane %v4885_v14, %v12108_v32  ;;  %v18741_v28 = vld [vmem:[#allocation53_spill] sm:$0xff]  ;;  %v15214_v34 = vadd.f32 %v4741_v13, %v18742_v44  ;;  %v15236_v13 = vpop.f32.mrf.mxu0 }
 0x92c   : > { %v15179_v27 = vpop.f32.mrf.mxu2  ;;  %11478 = vmatmul.msk.f32.gmra.mxu1 %vm6765_vm10, %v14925_v36  ;;  %v5182_v36 = vadd.f32 %v14368_v42, %v5061_v1  ;;  %v15204_v53 = vadd.f32 %v6685_v46, %v6637_v6  ;;  %v5077_v1 = vperm.slane %v4887_v25, %v12108_v32  ;;  %v4359_v9 = vrot.slane %v18741_v28, 7  ;;  %v18746_v25 = vld [vmem:[#allocation56_spill] sm:$0xff] }
 0x92d   : > { %v4888_v59 = vsel %vm303_vm6, %v4548_v18, %v4836_v7  ;;  %v4889_v39 = vsel %vm303_vm6, %v4836_v7, %v4548_v18  ;;  %v18743_v0 = vrot.slane %v14805_v20, 7  ;;  %v18744_v46 = vrot.slane %v14774_v41, 7 }
 0x92e   : > { %v18235_v7 = vrot.slane %v18746_v25, 7  ;;  %v6171_v50 = vadd.f32 %v6089_v55, %v14520_v62  ;;  %v15231_v14 = vmul.f32 2.0, %v5182_v36  ;;  %v15233_v41 = vmul.f32 2.0, %v5183_v5 }
 0x92f   : > { %v5943_v54 = vsel %vm617_vm9, %v18744_v46, %v18743_v0  ;;  %v8107_v18 = vrot.slane %v15038_v11, 1  ;;  %v6686_v8 = vmul.f32 0.3, %v6590_v56  ;;  %v6470_v28 = vperm.slane %v6290_v38, %v12108_v32 }
 0x930   : > { %v5081_v44 = vperm.slane %v4888_v59, %v12108_v32  ;;  %v4890_v0 = vrot.slane %v4889_v39, 4  ;;  %v6027_v46 = vadd.f32 %v5943_v54, %v14540_v40  ;;  %v5184_v36 = vadd.f32 %v14368_v42, %v5069_v19  ;;  %v18748_v40 = vld [vmem:[#allocation54_spill] sm:$0xff] }
 0x931   : > { %v15221_v6 = vpop.f32.mrf.mxu1  ;;  %11341 = vmatmul.msk.f32.gmra.mxu2 %vm6765_vm10, %v15204_v53  ;;  %11389 = vmatmul.msk.f32.gmra.mxu3 %vm6765_vm10, %v15204_v53  ;;  %v5185_v5 = vadd.f32 %v14368_v42, %v5073_v10  ;;  %v18747_v11 = vrot.slane %v18732_v51, 7  ;;  %v4837_v38 = vrot.slane %v15214_v34, 4  ;;  %v8106_v56 = vrot.slane %v14997_v33, 1 }
 0x932   : > { %18745 = vst [vmem:[#allocation44_spill] sm:$0xff] %v15221_v6  ;;  %11437 = vmatmul.msk.f32.gmra.mxu0 %vm6765_vm10, %v15204_v53  ;;  %v5186_v59 = vadd.f32 %v14368_v42, %v5077_v1  ;;  %v6243_v54 = vrot.slane %v6171_v50, 4  ;;  %v15257_v19 = vpop.f32.mrf.mxu3  ;;  %v7770_v10 = vand.u32 127, %v18715_v57  ;;  %v6591_v34 = vadd.f32 %v14378_v2, %v6470_v28 }
 0x933   : > { %v4360_v55 = vsel %vm617_vm9, %v18747_v11, %v4359_v9  ;;  %v8108_v51 = vsel %vm641_vm7, %v8106_v56, %v8107_v18  ;;  %v15261_v11 = vadd.f32 %v6686_v8, %v6638_v15  ;;  %v5187_v33 = vadd.f32 %v14368_v42, %v5081_v44  ;;  %v18749_v56 = vld [vmem:[#allocation17_spill] sm:$0xff] }
 0x934   : > { %v15241_v62 = vpop.f32.mrf.mxu2  ;;  %11479 = vmatmul.msk.f32.gmra.mxu1 %vm6765_vm10, %v14954_v35  ;;  %v4549_v39 = vadd.f32 %v4360_v55, %v18748_v40  ;;  %v4362_v35 = vsel %vm617_vm9, %v4359_v9, %v18235_v7  ;;  %v6291_v1 = vsel %vm303_vm6, %v6027_v46, %v6243_v54  ;;  %v15266_v55 = vmul.f32 2.0, %v5184_v36 }
 0x935   : > { %v15268_v40 = vmul.f32 2.0, %v5185_v5  ;;  %v5085_v9 = vperm.slane %v4890_v0, %v12108_v32  ;;  %v4526_v7 = vsel %vm15193_vm14, 0.0, %v4362_v35  ;;  %v15279_v28 = vmul.f32 2.0, %v5186_v59  ;;  %v18752_v59 = vld [vmem:[#allocation57_spill] sm:$0xff] }
 0x936   : > { %v4892_v50 = vsel %vm303_vm6, %v4837_v38, %v4549_v39  ;;  %v8442_v44 = vadd.f32 %v8108_v51, %v15043_v24  ;;  %v8109_v0 = vrot.slane %v15073_v45, 1  ;;  %vm15285_vm15 = vcmp.eq.s32.totalorder %v7770_v10, 0 }
 0x937   : > { %v18238_v35 = vrot.slane %v14596_v48, 1  ;;  %v6687_v37 = vmul.f32 0.3, %v6591_v34  ;;  %v6474_v15 = vperm.slane %v6291_v1, %v12108_v32  ;;  %v15291_v6 = vmul.f32 2.0, %v5187_v33  ;;  %v15302_v34 = vpop.f32.mrf.mxu0 }
 0x938   : > { %v15294_v3 = vadd.f32 %v4526_v7, %v18752_v59  ;;  %v6292_v45 = vsel %vm303_vm6, %v6243_v54, %v6027_v46  ;;  %v5188_v10 = vadd.f32 %v14368_v42, %v5085_v9  ;;  %v4893_v51 = vrot.slane %v4892_v50, 4 }
 0x939   : > { %11342 = vmatmul.msk.f32.gmra.mxu2 %vm6765_vm10, %v15261_v11  ;;  %11390 = vmatmul.msk.f32.gmra.mxu3 %vm6765_vm10, %v15261_v11  ;;  %v7410_v8 = vpop.f32.mrf.mxu1  ;;  %v4891_v7 = vsel %vm303_vm6, %v4549_v39, %v4837_v38  ;;  %v18753_v1 = vrot.slane %v18749_v56, 1  ;;  %v18754_v46 = vrot.slane %v18727_v4, 1  ;;  %v8586_v59 = vrot.slane %v8442_v44, 4 }
 0x93a   : > { %11438 = vmatmul.msk.f32.gmra.mxu0 %vm6765_vm10, %v15261_v11  ;;  %v7602_v36 = vrot.slane %v7410_v8, 7  ;;  %v18239_v8 = vrot.slane %v14849_v29, 7  ;;  %v18755_v5 = vrot.slane %v14558_v23, 1  ;;  %v6293_v38 = vrot.slane %v6292_v45, 4 }
 0x93b   : > { %v4616_v54 = vsel %vm641_vm7, %v18754_v46, %v18753_v1  ;;  %v15322_v39 = vadd.f32 %v6687_v37, %v15231_v14  ;;  %v6592_v4 = vadd.f32 %v14378_v2, %v6474_v15  ;;  %v18756_v1 = vld [vmem:[#allocation59_spill] sm:$0xff]  ;;  %v15326_v46 = vpop.f32.mrf.mxu3  ;;  %v5089_v23 = vperm.slane %v4891_v7, %v12108_v32 }
 0x93c   : > { %v7745_v24 = vsel %vm617_vm9, 0.0, %v7602_v36  ;;  %11480 = vmatmul.msk.f32.gmra.mxu1 %vm6765_vm10, %v14979_v30  ;;  %v8110_v30 = vsel %vm641_vm7, %v8107_v18, %v8109_v0  ;;  %v15314_v50 = vpop.f32.mrf.mxu2  ;;  %v15328_v18 = vld [vmem:[#allocation2 + $0x9e0] ss:$0 sm:$0xff]  ;;  %v18757_v45 = vrot.slane %v14805_v20, 7  ;;  %v8111_v20 = vrot.slane %v15130_v43, 1 }
 0x93d   : > { %v7962_v33 = vsel %vm15285_vm15, 0.0, %v7745_v24  ;;  %v6091_v24 = vsel %vm641_vm7, %v18755_v5, %v18238_v35  ;;  %v8443_v14 = vadd.f32 %v8110_v30, %v15088_v21  ;;  %v15353_v44 = vmul.f32 2.0, %v5188_v10 }
 0x93e   : > { %v8010_v9 = vadd.f32 %v7962_v33, %v15053_v61  ;;  %v5945_v37 = vsel %vm617_vm9, %v18757_v45, %v18239_v8  ;;  %v6172_v35 = vadd.f32 %v6091_v24, %v14556_v49  ;;  %v6688_v45 = vmul.f32 0.3, %v6592_v4 }
 0x93f   : > { %v6478_v8 = vperm.slane %v6293_v38, %v12108_v32  ;;  %v5189_v49 = vadd.f32 %v14368_v42, %v5089_v23  ;;  %v5093_v43 = vperm.slane %v4893_v51, %v12108_v32  ;;  %v8587_v24 = vrot.slane %v8443_v14, 4  ;;  %v15371_v51 = vpop.f32.mrf.mxu0 }
 0x940   : > { %v8634_v61 = vsel %vm303_vm6, %v8010_v9, %v8586_v59  ;;  %v8635_v33 = vsel %vm303_vm6, %v8586_v59, %v8010_v9  ;;  %v18758_v9 = vld [vmem:[#allocation58_spill] sm:$0xff]  ;;  %v8112_v23 = vsel %vm641_vm7, %v8109_v0, %v8111_v20 }
 0x941   : > { %11343 = vmatmul.msk.f32.gmra.mxu2 %vm6765_vm10, %v15322_v39  ;;  %11391 = vmatmul.msk.f32.gmra.mxu3 %vm6765_vm10, %v15322_v39  ;;  %v7413_v15 = vpop.f32.mrf.mxu1  ;;  %v8877_v5 = vperm.slane %v8634_v61, %v12108_v32  ;;  %v8636_v59 = vrot.slane %v8635_v33, 4  ;;  %v4766_v7 = vadd.f32 %v4616_v54, %v18758_v9  ;;  %v6028_v61 = vadd.f32 %v5945_v37, %v14574_v17 }
 0x942   : > { %11439 = vmatmul.msk.f32.gmra.mxu0 %vm6765_vm10, %v15322_v39  ;;  %v7603_v21 = vrot.slane %v7413_v15, 7  ;;  %v18760_v17 = vrot.slane %v18756_v1, 7  ;;  %v6593_v15 = vadd.f32 %v14378_v2, %v6478_v8  ;;  %v5190_v0 = vadd.f32 %v14368_v42, %v5093_v43 }
 0x943   : > { %v15350_v30 = vadd.f32 %v8877_v5, %v15328_v18  ;;  %v8881_v10 = vperm.slane %v8636_v59, %v12108_v32  ;;  %v4838_v38 = vrot.slane %v4766_v7, 4  ;;  %v18762_v7 = vld [vmem:[#allocation60_spill] sm:$0xff] }
 0x944   : > { %v7604_v54 = vsel %vm617_vm9, %v7602_v36, %v7603_v21  ;;  %11481 = vmatmul.msk.f32.gmra.mxu1 %vm6765_vm10, %v15013_v63  ;;  %v18761_v36 = vrot.slane %v18746_v25, 7  ;;  %v6244_v63 = vrot.slane %v6172_v35, 4  ;;  %v15380_v25 = vpop.f32.mrf.mxu2 }
 0x945   : > { %18759 = vst [vmem:[#allocation46_spill] sm:$0xff] %v15350_v30  ;;  %v8011_v33 = vadd.f32 %v7604_v54, %v15120_v47  ;;  %v9354_v4 = vsel %vm3877_vm0, %v15350_v30, -inf  ;;  %v15374_v47 = vadd.f32 %v6688_v45, %v15233_v41  ;;  %v8444_v41 = vadd.f32 %v8112_v23, %v15157_v16 }
 0x946   : > { %v4364_v37 = vsel %vm617_vm9, %v18761_v36, %v18760_v17  ;;  %9355 = vmax.xlane.f32.xlu0 %v9354_v4  ;;  %v6294_v59 = vsel %vm303_vm6, %v6028_v61, %v6244_v63  ;;  %v15393_v45 = vadd.f32 %v8881_v10, %v15328_v18  ;;  %v15399_v4 = vpop.f32.mrf.mxu3  ;;  %v4894_v36 = vsel %vm303_vm6, %v15294_v3, %v4838_v38 }
 0x947   : > { %v8637_v14 = vsel %vm303_vm6, %v8011_v33, %v8587_v24  ;;  %v8638_v5 = vsel %vm303_vm6, %v8587_v24, %v8011_v33  ;;  %v15385_v54 = vadd.f32 %v4364_v37, %v18762_v7  ;;  %v15395_v24 = vmul.f32 2.0, %v5189_v49  ;;  %v18765_v7 = vld [vmem:[#allocation20_spill] sm:$0xff] }
 0x948   : > { %v8885_v35 = vperm.slane %v8637_v14, %v12108_v32  ;;  %v8639_v9 = vrot.slane %v8638_v5, 4  ;;  %18763 = vst [vmem:[#allocation42_spill] sm:$0xff] %v15393_v45  ;;  %v18242_v33 = vrot.slane %v14629_v58, 1  ;;  %v6295_v10 = vsel %vm303_vm6, %v6244_v63, %v6028_v61 }
 0x949   : > { %11344 = vmatmul.msk.f32.gmra.mxu2 %vm6765_vm10, %v15374_v47  ;;  %11392 = vmatmul.msk.f32.gmra.mxu3 %vm6765_vm10, %v15374_v47  ;;  %v7416_v8 = vpop.f32.mrf.mxu1  ;;  %v6689_v49 = vmul.f32 0.3, %v6593_v15  ;;  %v6482_v37 = vperm.slane %v6294_v59, %v12108_v32  ;;  %v18241_v23 = vrot.slane %v14878_v52, 7  ;;  %v8588_v43 = vrot.slane %v8444_v41, 4 }
 0x94a   : > { %11440 = vmatmul.msk.f32.gmra.mxu0 %vm6765_vm10, %v15374_v47  ;;  %v7605_v16 = vrot.slane %v7416_v8, 7  ;;  %v15404_v17 = vadd.f32 %v8885_v35, %v15328_v18  ;;  %v8889_v35 = vperm.slane %v8639_v9, %v12108_v32  ;;  %v18240_v8 = vrot.slane %v18765_v7, 1 }
 0x94b   : > { %v9357_v63 = vsel %vm3877_vm0, %v15393_v45, -inf  ;;  %v6296_v59 = vrot.slane %v6295_v10, 4  ;;  %v18767_v9 = vrot.slane %v15179_v27, 1 }
 0x94c   : > { %18764 = vst [vmem:[#allocation47_spill] sm:$0xff] %v15404_v17  ;;  %v7606_v14 = vsel %vm617_vm9, %v7603_v21, %v7605_v16  ;;  %11482 = vmatmul.msk.f32.gmra.mxu1 %vm6765_vm10, %v15049_v12  ;;  %v9360_v5 = vsel %vm3877_vm0, %v15404_v17, -inf  ;;  %v4895_v21 = vsel %vm303_vm6, %v4838_v38, %v15294_v3  ;;  %v18766_v12 = vrot.slane %v14596_v48, 1 }
 0x94d   : > { %v8012_v61 = vadd.f32 %v7606_v14, %v15177_v31  ;;  %9361 = vmax.xlane.f32.xlu1 %v9360_v5  ;;  %v8114_v41 = vsel %vm641_vm7, %v8111_v20, %v18767_v9  ;;  %v15432_v31 = vadd.f32 %v6689_v49, %v15266_v55  ;;  %v6594_v5 = vadd.f32 %v14378_v2, %v6482_v37  ;;  %v15452_v37 = vpop.f32.mrf.mxu0  ;;  %v15463_v9 = vpop.f32.mrf.mxu2 }
 0x94e   : > { %v6093_v15 = vsel %vm641_vm7, %v18766_v12, %v18242_v33  ;;  %9358 = vmax.xlane.f32.xlu0 %v9357_v63  ;;  %v18768_v48 = vrot.slane %v14849_v29, 7  ;;  %v15443_v10 = vadd.f32 %v8889_v35, %v15328_v18  ;;  %v18770_v55 = vrot.slane %v18749_v56, 1 }
 0x94f   : > { %v8640_v14 = vsel %vm303_vm6, %v8012_v61, %v8588_v43  ;;  %v8641_v3 = vsel %vm303_vm6, %v8588_v43, %v8012_v61  ;;  %v8445_v43 = vadd.f32 %v8114_v41, %v15236_v13  ;;  %v15458_v35 = vmul.f32 2.0, %v5190_v0 }
 0x950   : > { %v5947_v38 = vsel %vm617_vm9, %v18768_v48, %v18241_v23  ;;  %18769 = vst [vmem:[#allocation49_spill] sm:$0xff] %v15443_v10  ;;  %v8893_v20 = vperm.slane %v8640_v14, %v12108_v32  ;;  %v8642_v63 = vrot.slane %v8641_v3, 4  ;;  %v4618_v49 = vsel %vm641_vm7, %v18770_v55, %v18240_v8 }
 0x951   : > { %11345 = vmatmul.msk.f32.gmra.mxu2 %vm6765_vm10, %v15432_v31  ;;  %11393 = vmatmul.msk.f32.gmra.mxu3 %vm6765_vm10, %v15432_v31  ;;  %v7419_v29 = vpop.f32.mrf.mxu1  ;;  %v5097_v61 = vperm.slane %v4894_v36, %v12108_v32  ;;  %v6173_v12 = vadd.f32 %v6093_v15, %v14609_v22  ;;  %v8115_v56 = vrot.slane %v15241_v62, 1  ;;  %v4896_v14 = vrot.slane %v4895_v21, 4  ;;  %v15472_v36 = vpop.f32.mrf.mxu3  ;;  %v18772_v15 = vld [vmem:[#allocation87_spill] sm:$0xff] }
 0x952   : > { %11441 = vmatmul.msk.f32.gmra.mxu0 %vm6765_vm10, %v15432_v31  ;;  %v7607_v13 = vrot.slane %v7419_v29, 7  ;;  %v15468_v41 = vadd.f32 %v8893_v20, %v15328_v18  ;;  %v6029_v3 = vadd.f32 %v5947_v38, %v14619_v60  ;;  %v6690_v0 = vmul.f32 0.3, %v6594_v5  ;;  %v18773_v29 = vld [vmem:[#allocation61_spill] sm:$0xff]  ;;  %v18774_v5 = vld [vmem:[#allocation62_spill] sm:$0xff] }
 0x953   : > { %v6486_v48 = vperm.slane %v6296_v59, %v12108_v32  ;;  %v9363_v55 = vsel %vm3877_vm0, %v15443_v10, -inf  ;;  %v8897_v21 = vperm.slane %v8642_v63, %v12108_v32  ;;  %v15483_v60 = vadd.f32 %v4618_v49, %v18773_v29 }
 0x954   : > { %18771 = vst [vmem:[#allocation15_spill] sm:$0xff] %v15468_v41  ;;  %v7608_v22 = vsel %vm617_vm9, %v7605_v16, %v7607_v13  ;;  %11483 = vmatmul.msk.f32.gmra.mxu1 %vm6765_vm10, %v18772_v15  ;;  %v9366_v20 = vsel %vm3877_vm0, %v15468_v41, -inf  ;;  %v18245_v59 = vrot.slane %v18774_v5, 7  ;;  %v8589_v38 = vrot.slane %v8445_v43, 4  ;;  %v18775_v15 = vld [vmem:[#allocation90_spill] sm:$0xff] }
 0x955   : > { %v8013_v8 = vadd.f32 %v7608_v22, %v15257_v19  ;;  %9364 = vmax.xlane.f32.xlu1 %v9363_v55  ;;  %9367 = vmax.xlane.f32.xlu2 %v9366_v20  ;;  %v6245_v16 = vrot.slane %v6173_v12, 4  ;;  %v18246_v23 = vrot.slane %v18775_v15, 1  ;;  %v18776_v33 = vrot.slane %v15179_v27, 1 }
 0x956   : > { %v5191_v63 = vadd.f32 %v14368_v42, %v5097_v61  ;;  %v15495_v49 = vadd.f32 %v6690_v0, %v15268_v40  ;;  %v6595_v22 = vadd.f32 %v14378_v2, %v6486_v48  ;;  %v15502_v55 = vadd.f32 %v8897_v21, %v15328_v18 }
 0x957   : > { %v8116_v41 = vsel %vm641_vm7, %v18776_v33, %v8115_v56  ;;  %v8643_v43 = vsel %vm303_vm6, %v8013_v8, %v8589_v38  ;;  %v8644_v19 = vsel %vm303_vm6, %v8589_v38, %v8013_v8  ;;  %v6297_v12 = vsel %vm303_vm6, %v6029_v3, %v6245_v16 }
 0x958   : > { %18777 = vst [vmem:[#allocation45_spill] sm:$0xff] %v15502_v55  ;;  %v8901_v27 = vperm.slane %v8643_v43, %v12108_v32  ;;  %v8645_v20 = vrot.slane %v8644_v19, 4  ;;  %v4839_v33 = vrot.slane %v15483_v60, 4  ;;  %v18778_v40 = vrot.slane %v18756_v1, 7 }
 0x959   : > { %v8446_v8 = vadd.f32 %v8116_v41, %v15302_v34  ;;  %11346 = vmatmul.msk.f32.gmra.mxu2 %vm6765_vm10, %v15495_v49  ;;  %11394 = vmatmul.msk.f32.gmra.mxu3 %vm6765_vm10, %v15495_v49  ;;  %v7422_v0 = vpop.f32.mrf.mxu1  ;;  %v5101_v48 = vperm.slane %v4896_v14, %v12108_v32  ;;  %v8117_v21 = vrot.slane %v15314_v50, 1  ;;  %v18780_v41 = vrot.slane %v14629_v58, 1  ;;  %v15530_v14 = vpop.f32.mrf.mxu0  ;;  %v18791_v50 = vld [vmem:[#allocation65_spill] sm:$0xff] }
 0x95a   : > { %v4366_v61 = vsel %vm617_vm9, %v18778_v40, %v18245_v59  ;;  %11442 = vmatmul.msk.f32.gmra.mxu0 %vm6765_vm10, %v15495_v49  ;;  %v7609_v29 = vrot.slane %v7422_v0, 7  ;;  %v15521_v1 = vadd.f32 %v8901_v27, %v15328_v18  ;;  %v8905_v34 = vperm.slane %v8645_v20, %v12108_v32  ;;  %v15533_v40 = vpop.f32.mrf.mxu2  ;;  %v18781_v0 = vld [vmem:[#allocation41_spill] sm:$0xff] }
 0x95b   : > { %v6095_v60 = vsel %vm641_vm7, %v18780_v41, %v18246_v23  ;;  %v6298_v38 = vsel %vm303_vm6, %v6245_v16, %v6029_v3  ;;  %v6691_v43 = vmul.f32 0.3, %v6595_v22  ;;  %v6490_v19 = vperm.slane %v6297_v12, %v12108_v32  ;;  %v18783_v16 = vld [vmem:[#allocation84_spill] sm:$0xff]  ;;  %v15555_v23 = vpop.f32.mrf.mxu3 }
 0x95c   : > { %18779 = vst [vmem:[#allocation48_spill] sm:$0xff] %v15521_v1  ;;  %v7610_v27 = vsel %vm617_vm9, %v7607_v13, %v7609_v29  ;;  %11484 = vmatmul.msk.f32.gmra.mxu1 %vm6765_vm10, %v18781_v0  ;;  %v9369_v20 = vsel %vm3877_vm0, %v15502_v55, -inf  ;;  %v9372_v58 = vsel %vm3877_vm0, %v15521_v1, -inf  ;;  %v15543_v3 = vadd.f32 %v8905_v34, %v15328_v18 }
 0x95d   : > { %v18248_v22 = vrot.slane %v18783_v16, 7  ;;  %v8590_v41 = vrot.slane %v8446_v8, 4  ;;  %v8014_v12 = vadd.f32 %v7610_v27, %v15326_v46  ;;  %9370 = vmax.xlane.f32.xlu2 %v9369_v20  ;;  %9373 = vmax.xlane.f32.xlu0 %v9372_v58  ;;  %v5192_v13 = vadd.f32 %v14368_v42, %v5101_v48  ;;  %v18785_v58 = vld [vmem:[#allocation88_spill] sm:$0xff] }
 0x95e   : > { %18782 = vst [vmem:[#allocation9_spill] sm:$0xff] %v15543_v3  ;;  %v6150_v0 = vsel %vm15148_vm13, 0.0, %v6095_v60  ;;  %v6299_v59 = vrot.slane %v6298_v38, 4  ;;  %v8118_v34 = vsel %vm641_vm7, %v8115_v56, %v8117_v21  ;;  %v9375_v8 = vsel %vm3877_vm0, %v15543_v3, -inf  ;;  %v18784_v56 = vld [vmem:[#allocation63_spill] sm:$0xff] }
 0x95f   : > { %9376 = vmax.xlane.f32.xlu1 %v9375_v8  ;;  %v15560_v46 = vadd.f32 %v6691_v43, %v15279_v28  ;;  %v8646_v48 = vsel %vm303_vm6, %v8014_v12, %v8590_v41  ;;  %v8647_v26 = vsel %vm303_vm6, %v8590_v41, %v8014_v12  ;;  %v6596_v60 = vadd.f32 %v14378_v2, %v6490_v19 }
 0x960   : > { %v15567_v62 = vsel %vm303_vm6, %v4839_v33, %v15385_v54  ;;  %v15570_v38 = vadd.f32 %v4366_v61, %v18784_v56  ;;  %v8909_v27 = vperm.slane %v8646_v48, %v12108_v32  ;;  %v8648_v20 = vrot.slane %v8647_v26, 4 }
 0x961   : > { %v6174_v8 = vadd.f32 %v6150_v0, %v18785_v58  ;;  %v18786_v28 = vrot.slane %v14878_v52, 7  ;;  %v8447_v19 = vadd.f32 %v8118_v34, %v15371_v51  ;;  %11347 = vmatmul.msk.f32.gmra.mxu2 %vm6765_vm10, %v15560_v46  ;;  %11395 = vmatmul.msk.f32.gmra.mxu3 %vm6765_vm10, %v15560_v46  ;;  %v7425_v61 = vpop.f32.mrf.mxu1  ;;  %v15584_v41 = vmul.f32 2.0, %v5191_v63  ;;  %v18788_v63 = vld [vmem:[#allocation89_spill] sm:$0xff] }
 0x962   : > { %v18247_v12 = vrot.slane %v15380_v25, 1  ;;  %11443 = vmatmul.msk.f32.gmra.mxu0 %vm6765_vm10, %v15560_v46  ;;  %v7611_v0 = vrot.slane %v7425_v61, 7  ;;  %v15590_v52 = vadd.f32 %v8909_v27, %v15328_v18  ;;  %v8913_v51 = vperm.slane %v8648_v20, %v12108_v32  ;;  %v15617_v61 = vpop.f32.mrf.mxu2 }
 0x963   : > { %v5949_v43 = vsel %vm617_vm9, %v18786_v28, %v18248_v22  ;;  %v4897_v34 = vsel %vm303_vm6, %v15385_v54, %v4839_v33  ;;  %v6692_v48 = vmul.f32 0.3, %v6596_v60  ;;  %v6494_v26 = vperm.slane %v6299_v59, %v12108_v32  ;;  %v18790_v33 = vld [vmem:[#allocation24_spill] sm:$0xff] }
 0x964   : > { %18787 = vst [vmem:[#allocation52_spill] sm:$0xff] %v15590_v52  ;;  %v15596_v56 = vmul.f32 2.0, %v5192_v13  ;;  %v6030_v58 = vadd.f32 %v5949_v43, %v18788_v63  ;;  %v7612_v28 = vsel %vm617_vm9, %v7609_v29, %v7611_v0  ;;  %11485 = vmatmul.msk.f32.gmra.mxu1 %vm6765_vm10, %v15204_v53  ;;  %v9378_v27 = vsel %vm3877_vm0, %v15590_v52, -inf  ;;  %v15609_v13 = vpop.f32.mrf.mxu0 }
 0x965   : > { %v15605_v20 = vadd.f32 %v8913_v51, %v15328_v18  ;;  %v4899_v54 = vrot.slane %v15567_v62, 4  ;;  %v18249_v60 = vrot.slane %v18790_v33, 1  ;;  %v8591_v59 = vrot.slane %v8447_v19, 4  ;;  %9379 = vmax.xlane.f32.xlu2 %v9378_v27  ;;  %v15630_v27 = vpop.f32.mrf.mxu3 }
 0x966   : > { %v8015_v43 = vadd.f32 %v7612_v28, %v15399_v4  ;;  %v6246_v29 = vrot.slane %v6174_v8, 4  ;;  %v8120_v53 = vsel %vm641_vm7, %v8117_v21, %v18247_v12  ;;  %v5105_v51 = vperm.slane %v4897_v34, %v12108_v32 }
 0x967   : > { %18789 = vst [vmem:[#allocation50_spill] sm:$0xff] %v15605_v20  ;;  %v9381_v62 = vsel %vm3877_vm0, %v15605_v20, -inf  ;;  %v15623_v19 = vadd.f32 %v6692_v48, %v15291_v6  ;;  %v6597_v63 = vadd.f32 %v14378_v2, %v6494_v26  ;;  %v18792_v6 = vrot.slane %v18765_v7, 1  ;;  %v18793_v48 = vld [vmem:[#allocation80_spill] sm:$0xff] }
 0x968   : > { %9382 = vmax.xlane.f32.xlu0 %v9381_v62  ;;  %v8649_v4 = vsel %vm303_vm6, %v8015_v43, %v8591_v59  ;;  %v8650_v8 = vsel %vm303_vm6, %v8591_v59, %v8015_v43  ;;  %v6300_v21 = vsel %vm303_vm6, %v6030_v58, %v6246_v29  ;;  %v18794_v59 = vld [vmem:[#allocation26_spill] sm:$0xff]  ;;  %v8448_v26 = vadd.f32 %v8120_v53, %v15452_v37 }
 0x969   : > { %v8917_v12 = vperm.slane %v8649_v4, %v12108_v32  ;;  %v8651_v22 = vrot.slane %v8650_v8, 4  ;;  %v4620_v34 = vsel %vm641_vm7, %v18792_v6, %v18249_v60  ;;  %11348 = vmatmul.msk.f32.gmra.mxu2 %vm6765_vm10, %v15623_v19  ;;  %11396 = vmatmul.msk.f32.gmra.mxu3 %vm6765_vm10, %v15623_v19  ;;  %v7428_v4 = vpop.f32.mrf.mxu1  ;;  %v15653_v37 = vadd.s32 184, %v18715_v57  ;;  %v18797_v8 = vld [vmem:[#allocation64_spill] sm:$0xff] }
 0x96a   : > { %11444 = vmatmul.msk.f32.gmra.mxu0 %vm6765_vm10, %v15623_v19  ;;  %v7613_v7 = vrot.slane %v7428_v4, 7  ;;  %v6301_v53 = vsel %vm303_vm6, %v6246_v29, %v6030_v58  ;;  %v6693_v28 = vmul.f32 0.3, %v6597_v63  ;;  %v6498_v43 = vperm.slane %v6300_v21, %v12108_v32 }
 0x96b   : > { %v15649_v6 = vadd.f32 %v8917_v12, %v15328_v18  ;;  %v8921_v60 = vperm.slane %v8651_v22, %v12108_v32  ;;  %v5193_v22 = vadd.f32 %v14368_v42, %v5105_v51  ;;  %v4768_v57 = vadd.f32 %v4620_v34, %v18797_v8 }
 0x96c   : > { %v7614_v62 = vsel %vm617_vm9, %v7611_v0, %v7613_v7  ;;  %11486 = vmatmul.msk.f32.gmra.mxu1 %vm6765_vm10, %v15261_v11  ;;  %v18798_v58 = vrot.slane %v18793_v48, 1  ;;  %v18799_v29 = vrot.slane %v18775_v15, 1  ;;  %v8592_v0 = vrot.slane %v8448_v26, 4  ;;  %v15685_v26 = vpop.f32.mrf.mxu0 }
 0x96d   : > { %18795 = vst [vmem:[#allocation51_spill] sm:$0xff] %v15649_v6  ;;  %v9384_v4 = vsel %vm3877_vm0, %v15649_v6, -inf  ;;  %v15663_v12 = vadd.f32 %v8921_v60, %v15328_v18  ;;  %v8016_v21 = vadd.f32 %v7614_v62, %v15472_v36  ;;  %v6302_v11 = vrot.slane %v6301_v53, 4 }
 0x96e   : > { %v6097_v63 = vsel %vm641_vm7, %v18799_v29, %v18798_v58  ;;  %9385 = vmax.xlane.f32.xlu1 %v9384_v4  ;;  %v18800_v6 = vrot.slane %v18794_v59, 7  ;;  %v18801_v60 = vrot.slane %v18783_v16, 7  ;;  %v18802_v51 = vrot.slane %v15463_v9, 1  ;;  %v15698_v58 = vpop.f32.mrf.mxu2 }
 0x96f   : > { %18796 = vst [vmem:[#allocation53_spill] sm:$0xff] %v15663_v12  ;;  %v18803_v34 = vrot.slane %v15380_v25, 1  ;;  %v9387_v15 = vsel %vm3877_vm0, %v15663_v12, -inf  ;;  %v15688_v36 = vadd.f32 %v6693_v28, %v15353_v44  ;;  %v8652_v62 = vsel %vm303_vm6, %v8016_v21, %v8592_v0 }
 0x970   : > { %v5951_v20 = vsel %vm617_vm9, %v18801_v60, %v18800_v6  ;;  %9388 = vmax.xlane.f32.xlu2 %v9387_v15  ;;  %v8653_v16 = vsel %vm303_vm6, %v8592_v0, %v8016_v21  ;;  %v6598_v6 = vadd.f32 %v14378_v2, %v6498_v43  ;;  %v18804_v53 = vrot.slane %v18791_v50, 7 }
 0x971   : > { %v8122_v8 = vsel %vm641_vm7, %v18803_v34, %v18802_v51  ;;  %v18805_v25 = vrot.slane %v18774_v5, 7  ;;  %v8925_v29 = vperm.slane %v8652_v62, %v12108_v32  ;;  %v8654_v60 = vrot.slane %v8653_v16, 4  ;;  %v18806_v51 = vld [vmem:[#allocation19_spill] sm:$0xff]  ;;  %11349 = vmatmul.msk.f32.gmra.mxu2 %vm6765_vm10, %v15688_v36  ;;  %11397 = vmatmul.msk.f32.gmra.mxu3 %vm6765_vm10, %v15688_v36  ;;  %v7431_v5 = vpop.f32.mrf.mxu1  ;;  %v15712_v62 = vpop.f32.mrf.mxu3 }
 0x972   : > { %v5109_v44 = vperm.slane %v4899_v54, %v12108_v32  ;;  %v6175_v34 = vadd.f32 %v6097_v63, %v18806_v51  ;;  %v6007_v43 = vsel %vm15193_vm14, 0.0, %v5951_v20  ;;  %v8449_v21 = vadd.f32 %v8122_v8, %v15530_v14  ;;  %11445 = vmatmul.msk.f32.gmra.mxu0 %vm6765_vm10, %v15688_v36 }
 0x973   : > { %v4368_v4 = vsel %vm617_vm9, %v18805_v25, %v18804_v53  ;;  %v18256_v15 = vrot.slane %v15533_v40, 1  ;;  %v7615_v54 = vrot.slane %v7431_v5, 7  ;;  %v15717_v63 = vadd.f32 %v8925_v29, %v15328_v18  ;;  %v18809_v25 = vld [vmem:[#allocation81_spill] sm:$0xff] }
 0x974   : > { %v8929_v14 = vperm.slane %v8654_v60, %v12108_v32  ;;  %v4840_v20 = vrot.slane %v4768_v57, 4  ;;  %v6694_v8 = vmul.f32 0.3, %v6598_v6  ;;  %v6502_v16 = vperm.slane %v6302_v11, %v12108_v32  ;;  %11487 = vmatmul.msk.f32.gmra.mxu1 %vm6765_vm10, %v15322_v39  ;;  %v18811_v60 = vld [vmem:[#allocation27_spill] sm:$0xff] }
 0x975   : > { %18808 = vst [vmem:[#allocation55_spill] sm:$0xff] %v15717_v63  ;;  %v15721_v53 = vmul.f32 2.0, %v5193_v22  ;;  %v6031_v51 = vadd.f32 %v6007_v43, %v18809_v25  ;;  %v7616_v0 = vsel %vm617_vm9, %v7613_v7, %v7615_v54  ;;  %v9390_v5 = vsel %vm3877_vm0, %v15717_v63, -inf  ;;  %v18812_v43 = vld [vmem:[#allocation66_spill] sm:$0xff] }
 0x976   : > { %v15730_v29 = vadd.f32 %v8929_v14, %v15328_v18  ;;  %v18255_v57 = vrot.slane %v18811_v60, 1  ;;  %v8593_v6 = vrot.slane %v8449_v21, 4  ;;  %v8017_v11 = vadd.f32 %v7616_v0, %v15555_v23  ;;  %9391 = vmax.xlane.f32.xlu0 %v9390_v5 }
 0x977   : > { %v15735_v22 = vadd.f32 %v14368_v42, %v5109_v44  ;;  %v15738_v7 = vadd.f32 %v4368_v4, %v18812_v43  ;;  %v6247_v25 = vrot.slane %v6175_v34, 4  ;;  %v18813_v39 = vrot.slane %v15463_v9, 1  ;;  %v15766_v43 = vpop.f32.mrf.mxu0 }
 0x978   : > { %18810 = vst [vmem:[#allocation56_spill] sm:$0xff] %v15730_v29  ;;  %v9393_v28 = vsel %vm3877_vm0, %v15730_v29, -inf  ;;  %v15748_v23 = vadd.f32 %v6694_v8, %v15395_v24  ;;  %v8655_v44 = vsel %vm303_vm6, %v8017_v11, %v8593_v6  ;;  %v8656_v21 = vsel %vm303_vm6, %v8593_v6, %v8017_v11  ;;  %v18815_v6 = vld [vmem:[#allocation10_spill] sm:$0xff] }
 0x979   : > { %v8124_v14 = vsel %vm641_vm7, %v18813_v39, %v18256_v15  ;;  %9394 = vmax.xlane.f32.xlu1 %v9393_v28  ;;  %v6599_v4 = vadd.f32 %v14378_v2, %v6502_v16  ;;  %v4901_v34 = vsel %vm303_vm6, %v4840_v20, %v15570_v38  ;;  %v6303_v9 = vsel %vm303_vm6, %v6031_v51, %v6247_v25  ;;  %v7434_v39 = vpop.f32.mrf.mxu1  ;;  %v15783_v15 = vpop.f32.mrf.mxu3 }
 0x97a   : > { %v8933_v0 = vperm.slane %v8655_v44, %v12108_v32  ;;  %v8657_v5 = vrot.slane %v8656_v21, 4  ;;  %v4900_v28 = vsel %vm303_vm6, %v15570_v38, %v4840_v20  ;;  %v18814_v24 = vrot.slane %v18790_v33, 1  ;;  %11350 = vmatmul.msk.f32.gmra.mxu2 %vm6765_vm10, %v15748_v23  ;;  %11398 = vmatmul.msk.f32.gmra.mxu3 %vm6765_vm10, %v15748_v23  ;;  %v15773_v20 = vpop.f32.mrf.mxu2 }
 0x97b   : > { %v8450_v16 = vadd.f32 %v8124_v14, %v15609_v13  ;;  %11446 = vmatmul.msk.f32.gmra.mxu0 %vm6765_vm10, %v15748_v23  ;;  %v7617_v33 = vrot.slane %v7434_v39, 7  ;;  %v4902_v14 = vrot.slane %v4901_v34, 4  ;;  %v6304_v21 = vsel %vm303_vm6, %v6247_v25, %v6031_v51  ;;  %v18819_v25 = vld [vmem:[#allocation32_spill] sm:$0xff] }
 0x97c   : > { %v4622_v8 = vsel %vm641_vm7, %v18814_v24, %v18255_v57  ;;  %v15778_v44 = vadd.f32 %v8933_v0, %v15328_v18  ;;  %v8937_v13 = vperm.slane %v8657_v5, %v12108_v32  ;;  %v6695_v24 = vmul.f32 0.3, %v6599_v4  ;;  %11488 = vmatmul.msk.f32.gmra.mxu1 %vm6765_vm10, %v15374_v47  ;;  %v18818_v5 = vld [vmem:[#allocation67_spill] sm:$0xff] }
 0x97d   : > { %v6506_v57 = vperm.slane %v6303_v9, %v12108_v32  ;;  %v7618_v38 = vsel %vm617_vm9, %v7615_v54, %v7617_v33  ;;  %v5113_v34 = vperm.slane %v4900_v28, %v12108_v32  ;;  %v15795_v51 = vadd.f32 %v4622_v8, %v18818_v5 }
 0x97e   : > { %18816 = vst [vmem:[#allocation54_spill] sm:$0xff] %v15778_v44  ;;  %v9396_v39 = vsel %vm3877_vm0, %v15778_v44, -inf  ;;  %v15791_v0 = vadd.f32 %v8937_v13, %v15328_v18  ;;  %v18261_v4 = vrot.slane %v18819_v25, 7  ;;  %v8594_v9 = vrot.slane %v8450_v16, 4 }
 0x97f   : > { %v8018_v11 = vadd.f32 %v7618_v38, %v15630_v27  ;;  %9397 = vmax.xlane.f32.xlu2 %v9396_v39  ;;  %v18820_v54 = vrot.slane %v18815_v6, 1  ;;  %v18821_v47 = vrot.slane %v18793_v48, 1  ;;  %v6305_v29 = vrot.slane %v6304_v21, 4 }
 0x980   : > { %18817 = vst [vmem:[#allocation17_spill] sm:$0xff] %v15791_v0  ;;  %v18822_v13 = vrot.slane %v15617_v61, 1  ;;  %v18823_v28 = vrot.slane %v15533_v40, 1  ;;  %v9399_v5 = vsel %vm3877_vm0, %v15791_v0, -inf  ;;  %v15812_v27 = vadd.f32 %v6695_v24, %v15458_v35 }
 0x981   : > { %v6099_v44 = vsel %vm641_vm7, %v18821_v47, %v18820_v54  ;;  %9400 = vmax.xlane.f32.xlu0 %v9399_v5  ;;  %v8658_v16 = vsel %vm303_vm6, %v8018_v11, %v8594_v9  ;;  %v8659_v48 = vsel %vm303_vm6, %v8594_v9, %v8018_v11  ;;  %v6600_v38 = vadd.f32 %v14378_v2, %v6506_v57  ;;  %v18824_v47 = vld [vmem:[#allocation68_spill] sm:$0xff]  ;;  %v7437_v57 = vpop.f32.mrf.mxu1  ;;  %v15840_v9 = vpop.f32.mrf.mxu0 }
 0x982   : > { %v8126_v8 = vsel %vm641_vm7, %v18823_v28, %v18822_v13  ;;  %v8941_v21 = vperm.slane %v8658_v16, %v12108_v32  ;;  %v8660_v39 = vrot.slane %v8659_v48, 4  ;;  %v5195_v40 = vadd.f32 %v14368_v42, %v5113_v34  ;;  %v18825_v28 = vld [vmem:[#allocation18_spill] sm:$0xff]  ;;  %11351 = vmatmul.msk.f32.gmra.mxu2 %vm6765_vm10, %v15812_v27  ;;  %11399 = vmatmul.msk.f32.gmra.mxu3 %vm6765_vm10, %v15812_v27 }
 0x983   : > { %v5117_v54 = vperm.slane %v4902_v14, %v12108_v32  ;;  %v18262_v13 = vrot.slane %v18824_v47, 7  ;;  %v6176_v5 = vadd.f32 %v6099_v44, %v18825_v28  ;;  %v18826_v35 = vrot.slane %v18794_v59, 7  ;;  %11447 = vmatmul.msk.f32.gmra.mxu0 %vm6765_vm10, %v15812_v27  ;;  %v18828_v28 = vld [vmem:[#allocation85_spill] sm:$0xff] }
 0x984   : > { %v8451_v11 = vadd.f32 %v8126_v8, %v15685_v26  ;;  %v18263_v14 = vrot.slane %v15698_v58, 1  ;;  %v7619_v44 = vrot.slane %v7437_v57, 7  ;;  %v15836_v34 = vadd.f32 %v8941_v21, %v15328_v18  ;;  %11489 = vmatmul.msk.f32.gmra.mxu1 %vm6765_vm10, %v15432_v31 }
 0x985   : > { %v5953_v24 = vsel %vm617_vm9, %v18826_v35, %v18261_v4  ;;  %v8945_v59 = vperm.slane %v8660_v39, %v12108_v32  ;;  %v4841_v26 = vrot.slane %v15795_v51, 4  ;;  %v6696_v8 = vmul.f32 0.3, %v6600_v38  ;;  %v15847_v4 = vpop.f32.mrf.mxu2 }
 0x986   : > { %18827 = vst [vmem:[#allocation57_spill] sm:$0xff] %v15836_v34  ;;  %v6510_v16 = vperm.slane %v6305_v29, %v12108_v32  ;;  %v15844_v48 = vmul.f32 2.0, %v15735_v22  ;;  %v6032_v35 = vadd.f32 %v5953_v24, %v18828_v28  ;;  %v7620_v57 = vsel %vm617_vm9, %v7617_v33, %v7619_v44  ;;  %v15870_v28 = vpop.f32.mrf.mxu3 }
 0x987   : > { %v9402_v51 = vsel %vm3877_vm0, %v15836_v34, -inf  ;;  %v15855_v21 = vadd.f32 %v8945_v59, %v15328_v18  ;;  %v18830_v29 = vrot.slane %v18791_v50, 7  ;;  %v8595_v38 = vrot.slane %v8451_v11, 4 }
 0x988   : > { %v8019_v39 = vadd.f32 %v7620_v57, %v15712_v62  ;;  %9403 = vmax.xlane.f32.xlu1 %v9402_v51  ;;  %v15863_v33 = vmul.f32 2.0, %v5195_v40  ;;  %v6248_v24 = vrot.slane %v6176_v5, 4  ;;  %v18831_v31 = vrot.slane %v15617_v61, 1 }
 0x989   : > { %18829 = vst [vmem:[#allocation59_spill] sm:$0xff] %v15855_v21  ;;  %v4370_v22 = vsel %vm617_vm9, %v18830_v29, %v18262_v13  ;;  %v9405_v50 = vsel %vm3877_vm0, %v15855_v21, -inf  ;;  %v15875_v29 = vadd.f32 %v14368_v42, %v5117_v54  ;;  %v15878_v62 = vadd.f32 %v6696_v8, %v15584_v41  ;;  %v18832_v54 = vld [vmem:[#allocation30_spill] sm:$0xff]  ;;  %v18834_v41 = vld [vmem:[#allocation33_spill] sm:$0xff] }
 0x98a   : > { %v8128_v59 = vsel %vm641_vm7, %v18831_v31, %v18263_v14  ;;  %9406 = vmax.xlane.f32.xlu2 %v9405_v50  ;;  %v8661_v40 = vsel %vm303_vm6, %v8019_v39, %v8595_v38  ;;  %v8662_v5 = vsel %vm303_vm6, %v8595_v38, %v8019_v39  ;;  %v6601_v61 = vadd.f32 %v14378_v2, %v6510_v16  ;;  %v18833_v50 = vld [vmem:[#allocation82_spill] sm:$0xff]  ;;  %v7440_v16 = vpop.f32.mrf.mxu1 }
 0x98b   : > { %v4903_v11 = vsel %vm303_vm6, %v15738_v7, %v4841_v26  ;;  %v6306_v57 = vsel %vm303_vm6, %v6032_v35, %v6248_v24  ;;  %v8949_v51 = vperm.slane %v8661_v40, %v12108_v32  ;;  %v8663_v31 = vrot.slane %v8662_v5, 4  ;;  %11352 = vmatmul.msk.f32.gmra.mxu2 %vm6765_vm10, %v15878_v62  ;;  %11400 = vmatmul.msk.f32.gmra.mxu3 %vm6765_vm10, %v15878_v62 }
 0x98c   : > { %v8452_v21 = vadd.f32 %v8128_v59, %v15766_v43  ;;  %11448 = vmatmul.msk.f32.gmra.mxu0 %vm6765_vm10, %v15878_v62  ;;  %v7621_v39 = vrot.slane %v7440_v16, 7  ;;  %v4904_v43 = vsel %vm303_vm6, %v4841_v26, %v15738_v7  ;;  %v6307_v59 = vsel %vm303_vm6, %v6248_v24, %v6032_v35  ;;  %11490 = vmatmul.msk.f32.gmra.mxu1 %vm6765_vm10, %v15495_v49 }
 0x98d   : > { %v15899_v40 = vadd.f32 %v8949_v51, %v15328_v18  ;;  %v8953_v5 = vperm.slane %v8663_v31, %v12108_v32  ;;  %v6697_v8 = vmul.f32 0.3, %v6601_v61  ;;  %v6514_v14 = vperm.slane %v6306_v57, %v12108_v32  ;;  %v7285_v57 = vpop.f32.mrf.mxu0  ;;  %v15936_v34 = vpop.f32.mrf.mxu2 }
 0x98e   : > { %v7622_v13 = vsel %vm617_vm9, %v7619_v44, %v7621_v39  ;;  %v5121_v31 = vperm.slane %v4903_v11, %v12108_v32  ;;  %v18837_v7 = vrot.slane %v18832_v54, 1  ;;  %v18838_v26 = vrot.slane %v18811_v60, 1 }
 0x98f   : > { %18835 = vst [vmem:[#allocation58_spill] sm:$0xff] %v15899_v40  ;;  %v9408_v16 = vsel %vm3877_vm0, %v15899_v40, -inf  ;;  %v15912_v51 = vadd.f32 %v8953_v5, %v15328_v18  ;;  %v18839_v24 = vrot.slane %v18833_v50, 1  ;;  %v18840_v44 = vrot.slane %v18815_v6, 1 }
 0x990   : > { %v4624_v35 = vsel %vm641_vm7, %v18838_v26, %v18837_v7  ;;  %v8596_v61 = vrot.slane %v8452_v21, 4  ;;  %v8020_v38 = vadd.f32 %v7622_v13, %v15783_v15  ;;  %9409 = vmax.xlane.f32.xlu0 %v9408_v16  ;;  %v6308_v5 = vrot.slane %v6307_v59, 4  ;;  %v18845_v59 = vld [vmem:[#allocation69_spill] sm:$0xff] }
 0x991   : > { %18836 = vst [vmem:[#allocation60_spill] sm:$0xff] %v15912_v51  ;;  %v6101_v49 = vsel %vm641_vm7, %v18840_v44, %v18839_v24  ;;  %v18841_v11 = vrot.slane %v18834_v41, 7  ;;  %v18842_v40 = vrot.slane %v18819_v25, 7  ;;  %v18843_v7 = vrot.slane %v15773_v20, 1  ;;  %v15950_v44 = vpop.f32.mrf.mxu3 }
 0x992   : > { %v18844_v26 = vrot.slane %v15698_v58, 1  ;;  %v9411_v21 = vsel %vm3877_vm0, %v15912_v51, -inf  ;;  %v15941_v15 = vadd.f32 %v6697_v8, %v15596_v56  ;;  %v8664_v13 = vsel %vm303_vm6, %v8020_v38, %v8596_v61  ;;  %v18846_v58 = vld [vmem:[#allocation23_spill] sm:$0xff]  ;;  %v18848_v8 = vld [vmem:[#allocation21_spill] sm:$0xff] }
 0x993   : > { %v5955_v60 = vsel %vm617_vm9, %v18842_v40, %v18841_v11  ;;  %9412 = vmax.xlane.f32.xlu1 %v9411_v21  ;;  %v8665_v25 = vsel %vm303_vm6, %v8596_v61, %v8020_v38  ;;  %v6602_v40 = vadd.f32 %v14378_v2, %v6514_v14  ;;  %v15947_v16 = vadd.f32 %v4370_v22, %v18845_v59  ;;  %v18847_v21 = vld [vmem:[#allocation70_spill] sm:$0xff]  ;;  %v7443_v14 = vpop.f32.mrf.mxu1  ;;  %v18850_v61 = vld [vmem:[#allocation71_spill] sm:$0xff] }
 0x994   : > { %v8130_v6 = vsel %vm641_vm7, %v18844_v26, %v18843_v7  ;;  %v6177_v24 = vadd.f32 %v6101_v49, %v18846_v58  ;;  %v8957_v11 = vperm.slane %v8664_v13, %v12108_v32  ;;  %v8666_v7 = vrot.slane %v8665_v25, 4  ;;  %11353 = vmatmul.msk.f32.gmra.mxu2 %vm6765_vm10, %v15941_v15  ;;  %11401 = vmatmul.msk.f32.gmra.mxu3 %vm6765_vm10, %v15941_v15 }
 0x995   : > { %v4905_v26 = vrot.slane %v4904_v43, 4  ;;  %v15954_v56 = vadd.f32 %v4624_v35, %v18847_v21  ;;  %v6033_v51 = vadd.f32 %v5955_v60, %v18848_v8  ;;  %v8453_v38 = vadd.f32 %v8130_v6, %v15840_v9  ;;  %11449 = vmatmul.msk.f32.gmra.mxu0 %vm6765_vm10, %v15941_v15  ;;  %11491 = vmatmul.msk.f32.gmra.mxu1 %vm6765_vm10, %v15560_v46 }
 0x996   : > { %v18272_v22 = vrot.slane %v15847_v4, 1  ;;  %v7623_v43 = vrot.slane %v7443_v14, 7  ;;  %v15966_v35 = vadd.f32 %v8957_v11, %v15328_v18  ;;  %v8961_v49 = vperm.slane %v8666_v7, %v12108_v32 }
 0x997   : > { %v18273_v9 = vrot.slane %v18850_v61, 7  ;;  %v6698_v60 = vmul.f32 0.3, %v6602_v40  ;;  %v6518_v6 = vperm.slane %v6308_v5, %v12108_v32  ;;  %v5197_v13 = vadd.f32 %v14368_v42, %v5121_v31  ;;  %v18852_v5 = vld [vmem:[#allocation16_spill] sm:$0xff] }
 0x998   : > { %18849 = vst [vmem:[#allocation20_spill] sm:$0xff] %v15966_v35  ;;  %v6249_v25 = vrot.slane %v6177_v24, 4  ;;  %v7624_v59 = vsel %vm617_vm9, %v7621_v39, %v7623_v43  ;;  %v9414_v58 = vsel %vm3877_vm0, %v15966_v35, -inf  ;;  %v15978_v11 = vadd.f32 %v8961_v49, %v15328_v18 }
 0x999   : > { %v4842_v7 = vrot.slane %v15954_v56, 4  ;;  %v8597_v21 = vrot.slane %v8453_v38, 4  ;;  %v8021_v40 = vadd.f32 %v7624_v59, %v15870_v28  ;;  %9415 = vmax.xlane.f32.xlu2 %v9414_v58  ;;  %v5125_v31 = vperm.slane %v4905_v26, %v12108_v32  ;;  %v7288_v56 = vpop.f32.mrf.mxu0  ;;  %v16003_v58 = vpop.f32.mrf.mxu2 }
 0x99a   : > { %18851 = vst [vmem:[#allocation87_spill] sm:$0xff] %v15978_v11  ;;  %v18274_v24 = vrot.slane %v18852_v5, 1  ;;  %v6309_v39 = vsel %vm303_vm6, %v6033_v51, %v6249_v25  ;;  %v18853_v46 = vrot.slane %v15773_v20, 1  ;;  %v9417_v14 = vsel %vm3877_vm0, %v15978_v11, -inf }
 0x99b   : > { %9418 = vmax.xlane.f32.xlu0 %v9417_v14  ;;  %v15993_v28 = vadd.f32 %v6698_v60, %v15721_v53  ;;  %v8667_v26 = vsel %vm303_vm6, %v8021_v40, %v8597_v21  ;;  %v8668_v38 = vsel %vm303_vm6, %v8597_v21, %v8021_v40  ;;  %v6603_v49 = vadd.f32 %v14378_v2, %v6518_v6  ;;  %v7127_v40 = vpop.f32.mrf.mxu3 }
 0x99c   : > { %v8132_v8 = vsel %vm641_vm7, %v18853_v46, %v18272_v22  ;;  %v18854_v20 = vrot.slane %v18824_v47, 7  ;;  %v8965_v46 = vperm.slane %v8667_v26, %v12108_v32  ;;  %v8669_v14 = vrot.slane %v8668_v38, 4  ;;  %v7446_v47 = vpop.f32.mrf.mxu1 }
 0x99d   : > { %v16007_v53 = vmul.f32 2.0, %v15875_v29  ;;  %v6310_v60 = vsel %vm303_vm6, %v6249_v25, %v6033_v51  ;;  %v8454_v22 = vadd.f32 %v8132_v8, %v7285_v57  ;;  %11354 = vmatmul.msk.f32.gmra.mxu2 %vm6765_vm10, %v15993_v28  ;;  %11402 = vmatmul.msk.f32.gmra.mxu3 %vm6765_vm10, %v15993_v28  ;;  %v6522_v6 = vperm.slane %v6309_v39, %v12108_v32 }
 0x99e   : > { %v4372_v59 = vsel %vm617_vm9, %v18854_v20, %v18273_v9  ;;  %v16015_v21 = vmul.f32 2.0, %v5197_v13  ;;  %11450 = vmatmul.msk.f32.gmra.mxu0 %vm6765_vm10, %v15993_v28  ;;  %v7625_v29 = vrot.slane %v7446_v47, 7  ;;  %v16021_v51 = vadd.f32 %v8965_v46, %v15328_v18  ;;  %11492 = vmatmul.msk.f32.gmra.mxu1 %vm6765_vm10, %v15623_v19  ;;  %v18858_v9 = vld [vmem:[#allocation38_spill] sm:$0xff] }
 0x99f   : > { %v8969_v57 = vperm.slane %v8669_v14, %v12108_v32  ;;  %v4906_v25 = vsel %vm303_vm6, %v15947_v16, %v4842_v7  ;;  %v18856_v13 = vrot.slane %v18833_v50, 1  ;;  %v6699_v8 = vmul.f32 0.3, %v6603_v49  ;;  %v18859_v49 = vld [vmem:[#allocation72_spill] sm:$0xff] }
 0x9a0   : > { %18855 = vst [vmem:[#allocation61_spill] sm:$0xff] %v16021_v51  ;;  %v5198_v38 = vadd.f32 %v14368_v42, %v5125_v31  ;;  %v6311_v20 = vrot.slane %v6310_v60, 4  ;;  %v7626_v47 = vsel %vm617_vm9, %v7623_v43, %v7625_v29  ;;  %v9420_v46 = vsel %vm3877_vm0, %v16021_v51, -inf }
 0x9a1   : > { %v6103_v39 = vsel %vm641_vm7, %v18856_v13, %v18274_v24  ;;  %v16038_v14 = vadd.f32 %v8969_v57, %v15328_v18  ;;  %v18275_v26 = vrot.slane %v18858_v9, 7  ;;  %v8598_v50 = vrot.slane %v8454_v22, 4  ;;  %9421 = vmax.xlane.f32.xlu1 %v9420_v46 }
 0x9a2   : > { %v8022_v13 = vadd.f32 %v7626_v47, %v15950_v44  ;;  %v6604_v31 = vadd.f32 %v14378_v2, %v6522_v6  ;;  %v16045_v43 = vsel %vm303_vm6, %v4842_v7, %v15947_v16  ;;  %v16048_v19 = vadd.f32 %v4372_v59, %v18859_v49  ;;  %v18862_v44 = vld [vmem:[#allocation34_spill] sm:$0xff]  ;;  %v18863_v59 = vld [vmem:[#allocation83_spill] sm:$0xff]  ;;  %v7291_v47 = vpop.f32.mrf.mxu0 }
 0x9a3   : > { %18857 = vst [vmem:[#allocation62_spill] sm:$0xff] %v16038_v14  ;;  %v18860_v60 = vrot.slane %v15936_v34, 1  ;;  %v18861_v57 = vrot.slane %v15847_v4, 1  ;;  %v9423_v22 = vsel %vm3877_vm0, %v16038_v14, -inf  ;;  %v16059_v6 = vadd.f32 %v6699_v8, %v15844_v48 }
 0x9a4   : > { %9424 = vmax.xlane.f32.xlu2 %v9423_v22  ;;  %v8670_v16 = vsel %vm303_vm6, %v8022_v13, %v8598_v50  ;;  %v8671_v7 = vsel %vm303_vm6, %v8598_v50, %v8022_v13  ;;  %v6178_v46 = vadd.f32 %v6103_v39, %v18863_v59  ;;  %v7449_v39 = vpop.f32.mrf.mxu1  ;;  %v6700_v8 = vmul.f32 0.3, %v6604_v31  ;;  %v16077_v13 = vpop.f32.mrf.mxu2 }
 0x9a5   : > { %v8134_v24 = vsel %vm641_vm7, %v18861_v57, %v18860_v60  ;;  %v8973_v49 = vperm.slane %v8670_v16, %v12108_v32  ;;  %v8672_v4 = vrot.slane %v8671_v7, 4  ;;  %v5129_v60 = vperm.slane %v4906_v25, %v12108_v32  ;;  %11355 = vmatmul.msk.f32.gmra.mxu2 %vm6765_vm10, %v16059_v6  ;;  %11403 = vmatmul.msk.f32.gmra.mxu3 %vm6765_vm10, %v16059_v6 }
 0x9a6   : > { %v18864_v57 = vrot.slane %v18834_v41, 7  ;;  %v8455_v48 = vadd.f32 %v8134_v24, %v7288_v56  ;;  %v6526_v50 = vperm.slane %v6311_v20, %v12108_v32  ;;  %v8135_v25 = vrot.slane %v16003_v58, 1  ;;  %11451 = vmatmul.msk.f32.gmra.mxu0 %vm6765_vm10, %v16059_v6  ;;  %v18868_v58 = vld [vmem:[#allocation74_spill] sm:$0xff]  ;;  %11493 = vmatmul.msk.f32.gmra.mxu1 %vm6765_vm10, %v15688_v36 }
 0x9a7   : > { %v7627_v41 = vrot.slane %v7449_v39, 7  ;;  %v16082_v24 = vadd.f32 %v8973_v49, %v15328_v18  ;;  %v8977_v56 = vperm.slane %v8672_v4, %v12108_v32  ;;  %v4908_v16 = vrot.slane %v16045_v43, 4  ;;  %v7130_v39 = vpop.f32.mrf.mxu3  ;;  %v16100_v49 = vld [vmem:[#allocation2 + $0x9e0] ss:$0 sm:$0xff] }
 0x9a8   : > { %v5957_v22 = vsel %vm617_vm9, %v18864_v57, %v18275_v26  ;;  %v18866_v7 = vrot.slane %v18862_v44, 1  ;;  %v18867_v31 = vrot.slane %v18832_v54, 1  ;;  %v16092_v57 = vmul.f32 2.0, %v5198_v38  ;;  %v18869_v26 = vld [vmem:[#allocation11_spill] sm:$0xff] }
 0x9a9   : > { %18865 = vst [vmem:[#allocation90_spill] sm:$0xff] %v16082_v24  ;;  %v6034_v14 = vadd.f32 %v5957_v22, %v18869_v26  ;;  %v7628_v18 = vsel %vm617_vm9, %v7625_v29, %v7627_v41  ;;  %v9426_v43 = vsel %vm3877_vm0, %v16082_v24, -inf  ;;  %v16103_v54 = vadd.f32 %v16100_v49, %v8977_v56  ;;  %v18872_v56 = vld [vmem:[#allocation13_spill] sm:$0xff] }
 0x9aa   : > { %v4626_v20 = vsel %vm641_vm7, %v18867_v31, %v18866_v7  ;;  %v6250_v4 = vrot.slane %v6178_v46, 4  ;;  %v8599_v7 = vrot.slane %v8455_v48, 4  ;;  %v8023_v38 = vadd.f32 %v7628_v18, %v7127_v40  ;;  %9427 = vmax.xlane.f32.xlu0 %v9426_v43 }
 0x9ab   : > { %18870 = vst [vmem:[#allocation41_spill] sm:$0xff] %v16103_v54  ;;  %v5199_v26 = vadd.f32 %v14368_v42, %v5129_v60  ;;  %v18871_v22 = vrot.slane %v15936_v34, 1  ;;  %v9429_v36 = vsel %vm3877_vm0, %v16103_v54, -inf  ;;  %v16112_v31 = vadd.f32 %v6700_v8, %v15863_v33  ;;  %v18873_v34 = vld [vmem:[#allocation73_spill] sm:$0xff] }
 0x9ac   : > { %v6605_v59 = vadd.f32 %v14378_v2, %v6526_v50  ;;  %v7785_v24 = vand.u32 127, %v18872_v56  ;;  %9430 = vmax.xlane.f32.xlu1 %v9429_v36  ;;  %v8673_v40 = vsel %vm303_vm6, %v8023_v38, %v8599_v7  ;;  %v8674_v60 = vsel %vm303_vm6, %v8599_v7, %v8023_v38  ;;  %v18876_v56 = vld [vmem:[#allocation28_spill] sm:$0xff]  ;;  %v16148_v46 = vpop.f32.mrf.mxu2 }
 0x9ad   : > { %v8136_v29 = vsel %vm641_vm7, %v18871_v22, %v8135_v25  ;;  %v4771_v48 = vadd.f32 %v4626_v20, %v18873_v34  ;;  %v6312_v18 = vsel %vm303_vm6, %v6034_v14, %v6250_v4  ;;  %v8981_v43 = vperm.slane %v8673_v40, %v12108_v32  ;;  %11356 = vmatmul.msk.f32.gmra.mxu2 %vm6765_vm10, %v16112_v31  ;;  %v7452_v20 = vpop.f32.mrf.mxu1 }
 0x9ae   : > { %v8675_v22 = vrot.slane %v8674_v60, 4  ;;  %v18874_v33 = vrot.slane %v18868_v58, 7  ;;  %v18875_v8 = vrot.slane %v18850_v61, 7  ;;  %v8456_v36 = vadd.f32 %v8136_v29, %v7291_v47  ;;  %11404 = vmatmul.msk.f32.gmra.mxu3 %vm6765_vm10, %v16112_v31  ;;  %11452 = vmatmul.msk.f32.gmra.mxu0 %vm6765_vm10, %v16112_v31  ;;  %v7294_v29 = vpop.f32.mrf.mxu0 }
 0x9af   : > { %v5133_v7 = vperm.slane %v4908_v16, %v12108_v32  ;;  %v7629_v38 = vrot.slane %v7452_v20, 7  ;;  %v16136_v61 = vadd.f32 %v16100_v49, %v8981_v43  ;;  %v6701_v60 = vmul.f32 0.3, %v6605_v59  ;;  %11494 = vmatmul.msk.f32.gmra.mxu1 %vm6765_vm10, %v15748_v23  ;;  %v7133_v54 = vpop.f32.mrf.mxu3 }
 0x9b0   : > { %v4374_v50 = vsel %vm617_vm9, %v18875_v8, %v18874_v33  ;;  %v8985_v40 = vperm.slane %v8675_v22, %v12108_v32  ;;  %v6313_v47 = vsel %vm303_vm6, %v6250_v4, %v6034_v14  ;;  %v18878_v34 = vrot.slane %v16077_v13, 1 }
 0x9b1   : > { %18877 = vst [vmem:[#allocation84_spill] sm:$0xff] %v16136_v61  ;;  %vm16143_vm1 = vcmp.eq.s32.totalorder %v7785_v24, 127  ;;  %v6530_v16 = vperm.slane %v6312_v18, %v12108_v32  ;;  %v4843_v20 = vrot.slane %v4771_v48, 4  ;;  %v7630_v43 = vsel %vm617_vm9, %v7627_v41, %v7629_v38 }
 0x9b2   : > { %v8138_v33 = vsel %vm641_vm7, %v8135_v25, %v18878_v34  ;;  %v9432_v14 = vsel %vm3877_vm0, %v16136_v61, -inf  ;;  %v16156_v59 = vadd.f32 %v16100_v49, %v8985_v40  ;;  %v18882_v25 = vld [vmem:[#allocation40_spill] sm:$0xff]  ;;  %v8600_v4 = vrot.slane %v8456_v36, 4 }
 0x9b3   : > { %v18284_v24 = vrot.slane %v18882_v25, 7  ;;  %v8024_v22 = vadd.f32 %v7630_v43, %v7130_v39  ;;  %9433 = vmax.xlane.f32.xlu2 %v9432_v14  ;;  %v5200_v48 = vadd.f32 %v14368_v42, %v5133_v7  ;;  %v18883_v18 = vrot.slane %v18876_v56, 1  ;;  %v18885_v43 = vld [vmem:[#allocation75_spill] sm:$0xff] }
 0x9b4   : > { %18881 = vst [vmem:[#allocation63_spill] sm:$0xff] %v16156_v59  ;;  %v18884_v41 = vrot.slane %v18852_v5, 1  ;;  %v6314_v23 = vrot.slane %v6313_v47, 4  ;;  %v8409_v61 = vsel %vm16143_vm1, 0.0, %v8138_v33  ;;  %v9435_v40 = vsel %vm3877_vm0, %v16156_v59, -inf }
 0x9b5   : > { %9436 = vmax.xlane.f32.xlu0 %v9435_v40  ;;  %v16170_v39 = vadd.f32 %v6701_v60, %v16007_v53  ;;  %v8676_v36 = vsel %vm303_vm6, %v8024_v22, %v8600_v4  ;;  %v8677_v7 = vsel %vm303_vm6, %v8600_v4, %v8024_v22  ;;  %v6606_v5 = vadd.f32 %v14378_v2, %v6530_v16 }
 0x9b6   : > { %v6105_v34 = vsel %vm641_vm7, %v18884_v41, %v18883_v18  ;;  %v16177_v47 = vsel %vm303_vm6, %v4843_v20, %v16048_v19  ;;  %v16180_v8 = vadd.f32 %v4374_v50, %v18885_v43  ;;  %v8989_v33 = vperm.slane %v8676_v36, %v12108_v32  ;;  %v18886_v18 = vld [vmem:[#allocation22_spill] sm:$0xff]  ;;  %v7455_v50 = vpop.f32.mrf.mxu1 }
 0x9b7   : > { %v8678_v14 = vrot.slane %v8677_v7, 4  ;;  %v6179_v41 = vadd.f32 %v6105_v34, %v18886_v18  ;;  %v18887_v53 = vrot.slane %v18858_v9, 7  ;;  %v8457_v4 = vadd.f32 %v8409_v61, %v7294_v29  ;;  %11357 = vmatmul.msk.f32.gmra.mxu2 %vm6765_vm10, %v16170_v39  ;;  %11405 = vmatmul.msk.f32.gmra.mxu3 %vm6765_vm10, %v16170_v39  ;;  %v18889_v7 = vld [vmem:[#allocation25_spill] sm:$0xff] }
 0x9b8   : > { %v16193_v16 = vmul.f32 2.0, %v5199_v26  ;;  %v8139_v22 = vrot.slane %v16148_v46, 1  ;;  %11453 = vmatmul.msk.f32.gmra.mxu0 %vm6765_vm10, %v16170_v39  ;;  %v7631_v34 = vrot.slane %v7455_v50, 7  ;;  %v16199_v9 = vadd.f32 %v16100_v49, %v8989_v33  ;;  %11495 = vmatmul.msk.f32.gmra.mxu1 %vm6765_vm10, %v15812_v27  ;;  %v16223_v27 = vpop.f32.mrf.mxu2 }
 0x9b9   : > { %v5959_v60 = vsel %vm617_vm9, %v18887_v53, %v18284_v24  ;;  %v8993_v61 = vperm.slane %v8678_v14, %v12108_v32  ;;  %v16204_v29 = vsel %vm303_vm6, %v16048_v19, %v4843_v20  ;;  %v6702_v40 = vmul.f32 0.3, %v6606_v5  ;;  %v18891_v20 = vld [vmem:[#allocation37_spill] sm:$0xff] }
 0x9ba   : > { %18888 = vst [vmem:[#allocation88_spill] sm:$0xff] %v16199_v9  ;;  %v6534_v36 = vperm.slane %v6314_v23, %v12108_v32  ;;  %v16207_v26 = vmul.f32 2.0, %v5200_v48  ;;  %v6035_v46 = vadd.f32 %v5959_v60, %v18889_v7  ;;  %v7632_v43 = vsel %vm617_vm9, %v7629_v38, %v7631_v34  ;;  %v7297_v23 = vpop.f32.mrf.mxu0 }
 0x9bb   : > { %v9438_v33 = vsel %vm3877_vm0, %v16199_v9, -inf  ;;  %v16216_v14 = vadd.f32 %v16100_v49, %v8993_v61  ;;  %v18285_v5 = vrot.slane %v18891_v20, 1  ;;  %v8601_v48 = vrot.slane %v8457_v4, 4  ;;  %v18893_v4 = vld [vmem:[#allocation77_spill] sm:$0xff] }
 0x9bc   : > { %v8025_v18 = vadd.f32 %v7632_v43, %v7133_v54  ;;  %9439 = vmax.xlane.f32.xlu1 %v9438_v33  ;;  %v6251_v53 = vrot.slane %v6179_v41, 4  ;;  %v18892_v38 = vrot.slane %v16077_v13, 1  ;;  %v5137_v61 = vperm.slane %v16204_v29, %v12108_v32  ;;  %v16249_v43 = vpop.xlane.xlu0 %9355 }
 0x9bd   : > { %18890 = vst [vmem:[#allocation89_spill] sm:$0xff] %v16216_v14  ;;  %v9441_v50 = vsel %vm3877_vm0, %v16216_v14, -inf  ;;  %v16230_v7 = vadd.f32 %v6702_v40, %v16015_v21  ;;  %v6607_v13 = vadd.f32 %v14378_v2, %v6534_v36  ;;  %v18894_v29 = vrot.slane %v18862_v44, 1  ;;  %v18895_v40 = vld [vmem:[#allocation6_spill] sm:$0xff] }
 0x9be   : > { %v8140_v60 = vsel %vm641_vm7, %v18892_v38, %v8139_v22  ;;  %9442 = vmax.xlane.f32.xlu2 %v9441_v50  ;;  %v8679_v54 = vsel %vm303_vm6, %v8025_v18, %v8601_v48  ;;  %v8680_v41 = vsel %vm303_vm6, %v8601_v48, %v8025_v18  ;;  %v6315_v33 = vsel %vm303_vm6, %v6035_v46, %v6251_v53  ;;  %v7136_v38 = vpop.f32.mrf.mxu3  ;;  %v7458_v18 = vpop.f32.mrf.mxu1 }
 0x9bf   : > { %v8997_v19 = vperm.slane %v8679_v54, %v12108_v32  ;;  %v8681_v24 = vrot.slane %v8680_v41, 4  ;;  %v16243_v21 = vsel %vm641_vm7, %v18894_v29, %v18285_v5  ;;  %v8458_v48 = vadd.f32 %v8140_v60, %v7297_v23  ;;  %11406 = vmatmul.msk.f32.gmra.mxu3 %vm6765_vm10, %v16230_v7  ;;  %18896 = vst [vmem:[#allocation24_spill] sm:$0xff] %v16249_v43  ;;  %v18897_v54 = vld [vmem:[#allocation39_spill] sm:$0xff] }
 0x9c0   : > { %11358 = vmatmul.msk.f32.gmra.mxu2 %vm6765_vm10, %v16230_v7  ;;  %11454 = vmatmul.msk.f32.gmra.mxu0 %vm6765_vm10, %v16230_v7  ;;  %v7633_v44 = vrot.slane %v7458_v18, 7  ;;  %v18898_v41 = vand.u32 127, %v18897_v54  ;;  %v9642_v23 = vsub.f32 %v15350_v30, %v16249_v43  ;;  %v6316_v5 = vsel %vm303_vm6, %v6251_v53, %v6035_v46  ;;  %v18902_v18 = vld [vmem:[#allocation8_spill] sm:$0xff] }
 0x9c1   : > { %v16264_v60 = vadd.f32 %v16100_v49, %v8997_v19  ;;  %v9001_v36 = vperm.slane %v8681_v24, %v12108_v32  ;;  %v6703_v50 = vmul.f32 0.3, %v6607_v13  ;;  %v6538_v14 = vperm.slane %v6315_v33, %v12108_v32  ;;  %11496 = vmatmul.msk.f32.gmra.mxu1 %vm6765_vm10, %v15878_v62 }
 0x9c2   : > { %vm16257_vm2 = vcmp.eq.s32.totalorder %v18898_v41, 0  ;;  %v7634_v54 = vsel %vm617_vm9, %v7631_v34, %v7633_v44  ;;  %v9738_v41 = vmul.f32 1.442695, %v9642_v23  ;;  %v18903_v19 = vrot.slane %v18895_v40, 1  ;;  %v7300_v43 = vpop.f32.mrf.mxu0 }
 0x9c3   : > { %18901 = vst [vmem:[#allocation65_spill] sm:$0xff] %v16264_v60  ;;  %v9444_v30 = vsel %vm3877_vm0, %v16264_v60, -inf  ;;  %v18904_v46 = vrot.slane %v18876_v56, 1  ;;  %v18905_v53 = vrot.slane %v16223_v27, 1  ;;  %v7978_v34 = vsel %vm16257_vm2, 0.0, %v7634_v54  ;;  %v16306_v54 = vpop.xlane.xlu1 %9361 }
 0x9c4   : > { %9445 = vmax.xlane.f32.xlu0 %v9444_v30  ;;  %v16286_v33 = vadd.f32 %v16100_v49, %v9001_v36  ;;  %v6317_v62 = vrot.slane %v6316_v5, 4  ;;  %v8602_v23 = vrot.slane %v8458_v48, 4  ;;  %v8026_v9 = vadd.f32 %v7978_v34, %v7136_v38  ;;  %v16304_v48 = vpop.f32.mrf.mxu2  ;;  %18909 = vst [vmem:[#allocation26_spill] sm:$0xff] %v16306_v54 }
 0x9c5   : > { %v6107_v24 = vsel %vm641_vm7, %v18904_v46, %v18903_v19  ;;  %v8142_v13 = vsel %vm641_vm7, %v8139_v22, %v18905_v53  ;;  %11550 = vpow2.f32 %v9738_v41  ;;  %v16291_v19 = vadd.f32 %v6703_v50, %v16092_v57  ;;  %v18910_v50 = vld [vmem:[#allocation86_spill] sm:$0xff] }
 0x9c6   : > { %18906 = vst [vmem:[#allocation80_spill] sm:$0xff] %v16286_v33  ;;  %v9447_v56 = vsel %vm3877_vm0, %v16286_v33, -inf  ;;  %v6608_v22 = vadd.f32 %v14378_v2, %v6538_v14  ;;  %v16295_v29 = vadd.f32 %v14368_v42, %v5137_v61  ;;  %v18907_v30 = vrot.slane %v18902_v18, 7  ;;  %v7139_v34 = vpop.f32.mrf.mxu3 }
 0x9c7   : > { %v18908_v36 = vrot.slane %v18882_v25, 7  ;;  %v16302_v38 = vadd.f32 %v8142_v13, %v7300_v43  ;;  %9448 = vmax.xlane.f32.xlu1 %v9447_v56  ;;  %v8682_v57 = vsel %vm303_vm6, %v8026_v9, %v8602_v23  ;;  %v8683_v14 = vsel %vm303_vm6, %v8602_v23, %v8026_v9  ;;  %11407 = vmatmul.msk.f32.gmra.mxu3 %vm6765_vm10, %v16291_v19  ;;  %v16315_v25 = vpop.f32.mrf.mxu1  ;;  %v16317_v43 = vpop.xlane.xlu0 %9358  ;;  %v18912_v13 = vld [vmem:[#allocation7_spill] sm:$0xff] }
 0x9c8   : > { %v6180_v61 = vadd.f32 %v6107_v24, %v18910_v50  ;;  %v9644_v41 = vsub.f32 %v15404_v17, %v16306_v54  ;;  %18911 = vst [vmem:[#allocation64_spill] sm:$0xff] %v16317_v43  ;;  %11359 = vmatmul.msk.f32.gmra.mxu2 %vm6765_vm10, %v16291_v19  ;;  %v9005_v46 = vperm.slane %v8682_v57, %v12108_v32  ;;  %v8684_v53 = vrot.slane %v8683_v14, 4  ;;  %v18916_v57 = vld [vmem:[#allocation29_spill] sm:$0xff] }
 0x9c9   : > { %v5961_v5 = vsel %vm617_vm9, %v18908_v36, %v18907_v30  ;;  %11455 = vmatmul.msk.f32.gmra.mxu0 %vm6765_vm10, %v16291_v19  ;;  %v7635_v24 = vrot.slane %v16315_v25, 7  ;;  %v9643_v23 = vsub.f32 %v15393_v45, %v16317_v43  ;;  %v6542_v56 = vperm.slane %v6317_v62, %v12108_v32  ;;  %11497 = vmatmul.msk.f32.gmra.mxu1 %vm6765_vm10, %v15941_v15 }
 0x9ca   : > { %v18913_v30 = vand.u32 63, %v15653_v37  ;;  %v6036_v14 = vadd.f32 %v5961_v5, %v18916_v57  ;;  %v9742_v50 = vmul.f32 1.442695, %v9644_v41  ;;  %v16337_v9 = vadd.f32 %v16100_v49, %v9005_v46 }
 0x9cb   : > { %v6704_v17 = vmul.f32 0.3, %v6608_v22  ;;  %v11551_v54 = vpop.eup %11550  ;;  %v8603_v25 = vrot.slane %v16302_v38, 4  ;;  %v18296_v45 = vrot.slane %v16304_v48, 1  ;;  %v7636_v62 = vsel %vm617_vm9, %v7633_v44, %v7635_v24 }
 0x9cc   : > { %vm16331_vm3 = vcmp.eq.s32.totalorder %v18913_v30, 63  ;;  %18917 = vst [vmem:[#allocation19_spill] sm:$0xff] %v16337_v9  ;;  %v9740_v43 = vmul.f32 1.442695, %v9643_v23  ;;  %11552 = vpow2.f32 %v9742_v50  ;;  %v8027_v37 = vadd.f32 %v7636_v62, %v7139_v34  ;;  %v18918_v30 = vld [vmem:[#allocation76_spill] sm:$0xff]  ;;  %v16374_v50 = vpop.xlane.xlu1 %9364 }
 0x9cd   : > { %v9930_v5 = vsel %vm3877_vm0, %v11551_v54, 0.0  ;;  %v9009_v41 = vperm.slane %v8684_v53, %v12108_v32  ;;  %v6252_v46 = vrot.slane %v6180_v61, 4  ;;  %v9450_v22 = vsel %vm3877_vm0, %v16337_v9, -inf  ;;  %18924 = vst [vmem:[#allocation14_spill] sm:$0xff] %v16374_v50  ;;  %v18930_v9 = vld [vmem:[#allocation15_spill] sm:$0xff] }
 0x9ce   : > { %11554 = vpow2.f32 %v9740_v43  ;;  %9931 = vadd.xlane.f32.xlu0 %v9930_v5  ;;  %v6609_v38 = vadd.f32 %v14378_v2, %v6542_v56  ;;  %v16351_v44 = vadd.f32 %v16243_v21, %v18918_v30  ;;  %9451 = vmax.xlane.f32.xlu2 %v9450_v22  ;;  %v16354_v15 = vadd.f32 %v6704_v17, %v16193_v16  ;;  %v16399_v22 = vpop.f32.mrf.mxu2 }
 0x9cf   : > { %v8686_v54 = vsel %vm303_vm6, %v8603_v25, %v8027_v37  ;;  %v18919_v61 = vrot.slane %v16177_v47, 4  ;;  %v18920_v53 = vrot.slane %v18893_v4, 7  ;;  %v18921_v34 = vrot.slane %v18868_v58, 7  ;;  %v16376_v47 = vpop.xlane.xlu2 %9367 }
 0x9d0   : > { %v18922_v21 = vrot.slane %v18912_v13, 1  ;;  %v18923_v56 = vrot.slane %v18895_v40, 1  ;;  %v6318_v16 = vsel %vm303_vm6, %v6036_v14, %v6252_v46  ;;  %v6319_v57 = vsel %vm303_vm6, %v6252_v46, %v6036_v14  ;;  %18925 = vst [vmem:[#allocation81_spill] sm:$0xff] %v16376_v47  ;;  %11360 = vmatmul.msk.f32.gmra.mxu2 %vm6765_vm10, %v16354_v15  ;;  %11408 = vmatmul.msk.f32.gmra.mxu3 %vm6765_vm10, %v16354_v15  ;;  %v16394_v14 = vpop.f32.mrf.mxu1  ;;  %v7303_v46 = vpop.f32.mrf.mxu0 }
 0x9d1   : > { %v5141_v43 = vperm.slane %v18919_v61, %v12108_v32  ;;  %v16365_v23 = vsel %vm617_vm9, %v18921_v34, %v18920_v53  ;;  %v18926_v4 = vrot.slane %v18891_v20, 1  ;;  %v18927_v62 = vrot.slane %v16223_v27, 1  ;;  %11456 = vmatmul.msk.f32.gmra.mxu0 %vm6765_vm10, %v16354_v15  ;;  %11498 = vmatmul.msk.f32.gmra.mxu1 %vm6765_vm10, %v15993_v28 }
 0x9d2   : > { %v6109_v17 = vsel %vm641_vm7, %v18923_v56, %v18922_v21  ;;  %v9645_v5 = vsub.f32 %v15443_v10, %v16374_v50  ;;  %v16397_v20 = vadd.f32 %v16100_v49, %v9009_v41  ;;  %v7637_v27 = vrot.slane %v16394_v14, 7  ;;  %v11553_v34 = vpop.eup %11552  ;;  %v18929_v56 = vld [vmem:[#allocation43_spill] sm:$0xff]  ;;  %v7142_v10 = vpop.f32.mrf.mxu3 }
 0x9d3   : > { %v16381_v58 = vsel %vm641_vm7, %v18926_v4, 0.0  ;;  %v8144_v40 = vsel %vm641_vm7, %v18927_v62, %v18296_v45  ;;  %v6705_v30 = vmul.f32 0.3, %v6609_v38  ;;  %v8687_v61 = vrot.slane %v8686_v54, 4 }
 0x9d4   : > { %18928 = vst [vmem:[#allocation27_spill] sm:$0xff] %v16397_v20  ;;  %v8685_v53 = vsel %vm303_vm6, %v8027_v37, %v8603_v25  ;;  %v6320_v21 = vrot.slane %v6319_v57, 4  ;;  %v18305_v4 = vrot.slane %v18929_v56, 7  ;;  %v9744_v62 = vmul.f32 1.442695, %v9645_v5  ;;  %v11555_v45 = vpop.eup %11554 }
 0x9d5   : > { %v6546_v41 = vperm.slane %v6318_v16, %v12108_v32  ;;  %v8460_v50 = vadd.f32 %v8144_v40, %v7303_v46  ;;  %v9646_v33 = vsub.f32 %v18930_v9, %v16376_v47  ;;  %v7638_v60 = vsel %vm617_vm9, %v7635_v24, %v7637_v27  ;;  %v18931_v46 = vld [vmem:[#allocation31_spill] sm:$0xff] }
 0x9d6   : > { %v9936_v25 = vsel %vm3877_vm0, %v11553_v34, 0.0  ;;  %11556 = vpow2.f32 %v9744_v62  ;;  %v9933_v37 = vsel %vm3877_vm0, %v11555_v45, 0.0  ;;  %v9453_v38 = vsel %vm3877_vm0, %v16397_v20, -inf }
 0x9d7   : > { %v9013_v54 = vperm.slane %v8685_v53, %v12108_v32  ;;  %v4749_v16 = vsel %vm16331_vm3, 0.0, %v16381_v58  ;;  %v8145_v57 = vrot.slane %v16399_v22, 1  ;;  %v8028_v24 = vadd.f32 %v7638_v60, %v7142_v10  ;;  %9934 = vadd.xlane.f32.xlu1 %v9933_v37  ;;  %9454 = vmax.xlane.f32.xlu0 %v9453_v38  ;;  %v16434_v34 = vpop.xlane.xlu2 %9370  ;;  %v18938_v37 = vld [vmem:[#allocation78_spill] sm:$0xff]  ;;  %v18939_v38 = vld [vmem:[#allocation36_spill] sm:$0xff] }
 0x9d8   : > { %v9017_v28 = vperm.slane %v8687_v61, %v12108_v32  ;;  %9937 = vadd.xlane.f32.xlu2 %v9936_v25  ;;  %v16423_v40 = vadd.f32 %v6705_v30, %v16207_v26  ;;  %v6610_v45 = vadd.f32 %v14378_v2, %v6546_v41  ;;  %v6658_v5 = vmul.f32 2.0, %v16295_v29  ;;  %18933 = vst [vmem:[#allocation66_spill] sm:$0xff] %v16434_v34  ;;  %v16439_v29 = vpop.xlane.xlu0 %9373 }
 0x9d9   : > { %v5202_v14 = vadd.f32 %v14368_v42, %v5141_v43  ;;  %v6181_v53 = vadd.f32 %v6109_v17, %v18931_v46  ;;  %v18932_v10 = vrot.slane %v18902_v18, 7  ;;  %v8604_v58 = vrot.slane %v8460_v50, 4  ;;  %18934 = vst [vmem:[#allocation10_spill] sm:$0xff] %v16439_v29  ;;  %v16445_v18 = vpop.f32.mrf.mxu1  ;;  %11499 = vmatmul.msk.f32.gmra.mxu1 %vm6765_vm10, %v16059_v6 }
 0x9da   : > { %v9746_v61 = vmul.f32 1.442695, %v9646_v33  ;;  %v4844_v26 = vrot.slane %v16351_v44, 4  ;;  %v9647_v30 = vsub.f32 %v15502_v55, %v16434_v34  ;;  %11361 = vmatmul.msk.f32.gmra.mxu2 %vm6765_vm10, %v16423_v40  ;;  %11409 = vmatmul.msk.f32.gmra.mxu3 %vm6765_vm10, %v16423_v40  ;;  %v16448_v43 = vadd.f32 %v16100_v49, %v9013_v54 }
 0x9db   : > { %v5963_v60 = vsel %vm617_vm9, %v18932_v10, %v18305_v4  ;;  %v6550_v33 = vperm.slane %v6320_v21, %v12108_v32  ;;  %v18936_v44 = vrot.slane %v16304_v48, 1  ;;  %11457 = vmatmul.msk.f32.gmra.mxu0 %vm6765_vm10, %v16423_v40  ;;  %v18306_v50 = vrot.slane %v16445_v18, 7  ;;  %v7306_v10 = vpop.f32.mrf.mxu0 }
 0x9dc   : > { %18935 = vst [vmem:[#allocation67_spill] sm:$0xff] %v16448_v43  ;;  %v16460_v62 = vadd.f32 %v16100_v49, %v9017_v28  ;;  %v8688_v41 = vsel %vm303_vm6, %v8028_v24, %v8604_v58  ;;  %v11557_v25 = vpop.eup %11556  ;;  %v16465_v21 = vadd.f32 %v16365_v23, %v18938_v37  ;;  %v6037_v54 = vadd.f32 %v5963_v60, %v18939_v38 }
 0x9dd   : > { %v8146_v17 = vsel %vm641_vm7, %v18936_v44, %v8145_v57  ;;  %v9748_v48 = vmul.f32 1.442695, %v9647_v30  ;;  %v6706_v46 = vmul.f32 0.3, %v6610_v45  ;;  %v16468_v44 = vpop.f32.mrf.mxu2  ;;  %11558 = vpow2.f32 %v9746_v61  ;;  %v7145_v30 = vpop.f32.mrf.mxu3 }
 0x9de   : > { %18937 = vst [vmem:[#allocation32_spill] sm:$0xff] %v16460_v62  ;;  %v9648_v4 = vsub.f32 %v15521_v1, %v16439_v29  ;;  %v7640_v28 = vsel %vm617_vm9, %v7637_v27, %v18306_v50  ;;  %v9939_v23 = vsel %vm3877_vm0, %v11557_v25, 0.0  ;;  %v8461_v37 = vadd.f32 %v8146_v17, %v7306_v10 }
 0x9df   : > { %11560 = vpow2.f32 %v9748_v48  ;;  %v9456_v45 = vsel %vm3877_vm0, %v16448_v43, -inf  ;;  %v9021_v60 = vperm.slane %v8688_v41, %v12108_v32  ;;  %v6253_v61 = vrot.slane %v6181_v53, 4  ;;  %9940 = vadd.xlane.f32.xlu0 %v9939_v23 }
 0x9e0   : > { %v9459_v38 = vsel %vm3877_vm0, %v16460_v62, -inf  ;;  %9457 = vmax.xlane.f32.xlu1 %v9456_v45  ;;  %v6611_v27 = vadd.f32 %v14378_v2, %v6550_v33  ;;  %v8689_v6 = vsel %vm303_vm6, %v8604_v58, %v8028_v24  ;;  %v4912_v17 = vsel %vm303_vm6, %v16180_v8, %v4844_v26  ;;  %v18940_v33 = vld [vmem:[#allocation79_spill] sm:$0xff]  ;;  %v16498_v58 = vpop.xlane.xlu1 %9376 }
 0x9e1   : > { %v18307_v25 = vrot.slane %v16468_v44, 1  ;;  %v8029_v48 = vadd.f32 %v7640_v28, %v7145_v30  ;;  %9460 = vmax.xlane.f32.xlu2 %v9459_v38  ;;  %v16488_v10 = vadd.f32 %v6706_v46, %v6658_v5  ;;  %v16492_v53 = vsel %vm303_vm6, %v4844_v26, %v16180_v8  ;;  %18941 = vst [vmem:[#allocation68_spill] sm:$0xff] %v16498_v58  ;;  %v16504_v5 = vpop.f32.mrf.mxu1  ;;  %v16513_v28 = vpop.xlane.xlu2 %9379 }
 0x9e2   : > { %v6321_v41 = vsel %vm303_vm6, %v6037_v54, %v6253_v61  ;;  %v9750_v23 = vmul.f32 1.442695, %v9648_v4  ;;  %v6659_v45 = vmul.f32 2.0, %v5202_v14  ;;  %v16496_v50 = vadd.f32 %v4749_v16, %v18940_v33  ;;  %18944 = vst [vmem:[#allocation85_spill] sm:$0xff] %v16513_v28  ;;  %v18945_v33 = vld [vmem:[#allocation44_spill] sm:$0xff]  ;;  %11500 = vmatmul.msk.f32.gmra.mxu1 %vm6765_vm10, %v16112_v31 }
 0x9e3   : > { %v8605_v24 = vrot.slane %v8461_v37, 4  ;;  %11362 = vmatmul.msk.f32.gmra.mxu2 %vm6765_vm10, %v16488_v10  ;;  %11410 = vmatmul.msk.f32.gmra.mxu3 %vm6765_vm10, %v16488_v10  ;;  %v16507_v8 = vadd.f32 %v16100_v49, %v9021_v60  ;;  %v8690_v26 = vrot.slane %v8689_v6, 4  ;;  %v11559_v4 = vpop.eup %11558  ;;  %v18943_v14 = vrot.slane %v18912_v13, 1 }
 0x9e4   : > { %v6322_v46 = vsel %vm303_vm6, %v6253_v61, %v6037_v54  ;;  %11458 = vmatmul.msk.f32.gmra.mxu0 %vm6765_vm10, %v16488_v10  ;;  %v6707_v37 = vmul.f32 0.3, %v6611_v27  ;;  %v5145_v30 = vperm.slane %v4912_v17, %v12108_v32  ;;  %v5964_v60 = vrot.slane %v18945_v33, 7  ;;  %v7309_v33 = vpop.f32.mrf.mxu0 }
 0x9e5   : > { %18942 = vst [vmem:[#allocation18_spill] sm:$0xff] %v16507_v8  ;;  %v6134_v16 = vsel %vm641_vm7, %v18943_v14, 0.0  ;;  %v11561_v38 = vpop.eup %11560  ;;  %v8148_v13 = vsel %vm641_vm7, %v8145_v57, %v18307_v25  ;;  %v8691_v6 = vsel %vm303_vm6, %v8029_v48, %v8605_v24  ;;  %v6554_v54 = vperm.slane %v6321_v41, %v12108_v32 }
 0x9e6   : > { %11562 = vpow2.f32 %v9750_v23  ;;  %v9649_v61 = vsub.f32 %v15543_v3, %v16498_v58  ;;  %v9945_v17 = vsel %vm3877_vm0, %v11561_v38, 0.0  ;;  %v9650_v22 = vsub.f32 %v15590_v52, %v16513_v28  ;;  %v16544_v52 = vpop.f32.mrf.mxu2 }
 0x9e7   : > { %v9942_v57 = vsel %vm3877_vm0, %v11559_v4, 0.0  ;;  %v9462_v14 = vsel %vm3877_vm0, %v16507_v8, -inf  ;;  %v9025_v41 = vperm.slane %v8690_v26, %v12108_v32  ;;  %v4914_v23 = vrot.slane %v16492_v53, 4 }
 0x9e8   : > { %9943 = vadd.xlane.f32.xlu1 %v9942_v57  ;;  %9463 = vmax.xlane.f32.xlu0 %v9462_v14  ;;  %v9029_v25 = vperm.slane %v8691_v6, %v12108_v32  ;;  %v5203_v31 = vadd.f32 %v14368_v42, %v5145_v30  ;;  %v8692_v38 = vsel %vm303_vm6, %v8605_v24, %v8029_v48  ;;  %v6158_v27 = vsel %vm16331_vm3, 0.0, %v6134_v16 }
 0x9e9   : > { %v6323_v4 = vrot.slane %v6322_v46, 4  ;;  %9946 = vadd.xlane.f32.xlu2 %v9945_v17  ;;  %v16546_v28 = vadd.f32 %v6707_v37, %v6659_v45  ;;  %v6612_v53 = vadd.f32 %v14378_v2, %v6554_v54  ;;  %v18946_v26 = vrot.slane %v18929_v56, 7  ;;  %v16558_v46 = vpop.xlane.xlu0 %9382  ;;  %v18953_v17 = vld [vmem:[#allocation12_spill] sm:$0xff] }
 0x9ea   : > { %v8462_v6 = vadd.f32 %v8148_v13, %v7309_v33  ;;  %v9752_v14 = vmul.f32 1.442695, %v9649_v61  ;;  %v18947_v30 = vrot.slane %v16504_v5, 7  ;;  %v18948_v48 = vrot.slane %v16445_v18, 7  ;;  %18949 = vst [vmem:[#allocation30_spill] sm:$0xff] %v16558_v46  ;;  %v7148_v13 = vpop.f32.mrf.mxu3  ;;  %11501 = vmatmul.msk.f32.gmra.mxu1 %vm6765_vm10, %v16170_v39 }
 0x9eb   : > { %v5965_v57 = vsel %vm617_vm9, %v18946_v26, %v5964_v60  ;;  %v4845_v24 = vrot.slane %v16496_v50, 4  ;;  %v9754_v16 = vmul.f32 1.442695, %v9650_v22  ;;  %11363 = vmatmul.msk.f32.gmra.mxu2 %vm6765_vm10, %v16546_v28  ;;  %11411 = vmatmul.msk.f32.gmra.mxu3 %vm6765_vm10, %v16546_v28  ;;  %v16565_v56 = vadd.f32 %v16100_v49, %v9025_v41  ;;  %v18951_v60 = vld [vmem:[#allocation35_spill] sm:$0xff]  ;;  %v16575_v26 = vpop.f32.mrf.mxu1 }
 0x9ec   : > { %v7642_v36 = vsel %vm617_vm9, %v18948_v48, %v18947_v30  ;;  %v8693_v45 = vrot.slane %v8692_v38, 4  ;;  %v11563_v37 = vpop.eup %11562  ;;  %v6182_v18 = vadd.f32 %v6158_v27, %v18951_v60  ;;  %11459 = vmatmul.msk.f32.gmra.mxu0 %vm6765_vm10, %v16546_v28  ;;  %v16571_v50 = vadd.f32 %v16100_v49, %v9029_v25  ;;  %v18954_v48 = vld [vmem:[#allocation50_spill] sm:$0xff] }
 0x9ed   : > { %18950 = vst [vmem:[#allocation82_spill] sm:$0xff] %v16565_v56  ;;  %v6660_v54 = vmul.f32 2.0, %v5203_v31  ;;  %v5149_v61 = vperm.slane %v4914_v23, %v12108_v32  ;;  %v6038_v22 = vadd.f32 %v5965_v57, %v18953_v17  ;;  %v8030_v33 = vadd.f32 %v7642_v36, %v7148_v13 }
 0x9ee   : > { %18952 = vst [vmem:[#allocation33_spill] sm:$0xff] %v16571_v50  ;;  %v6708_v41 = vmul.f32 0.3, %v6612_v53  ;;  %v6558_v38 = vperm.slane %v6323_v4, %v12108_v32  ;;  %v8606_v30 = vrot.slane %v8462_v6, 4  ;;  %v18310_v27 = vrot.slane %v16544_v52, 1 }
 0x9ef   : > { %11564 = vpow2.f32 %v9752_v14  ;;  %v9651_v60 = vsub.f32 %v18954_v48, %v16558_v46  ;;  %v9465_v25 = vsel %vm3877_vm0, %v16565_v56, -inf  ;;  %v9948_v23 = vsel %vm3877_vm0, %v11563_v37, 0.0  ;;  %v7312_v37 = vpop.f32.mrf.mxu0 }
 0x9f0   : > { %11566 = vpow2.f32 %v9754_v16  ;;  %v9033_v31 = vperm.slane %v8693_v45, %v12108_v32  ;;  %v4915_v4 = vsel %vm303_vm6, %v16465_v21, %v4845_v24  ;;  %v6254_v53 = vrot.slane %v6182_v18, 4  ;;  %9466 = vmax.xlane.f32.xlu1 %v9465_v25  ;;  %9949 = vadd.xlane.f32.xlu0 %v9948_v23  ;;  %v16605_v25 = vpop.f32.mrf.mxu2 }
 0x9f1   : > { %v9468_v57 = vsel %vm3877_vm0, %v16571_v50, -inf  ;;  %v5204_v6 = vadd.f32 %v14368_v42, %v5149_v61  ;;  %v18314_v39 = vrot.slane %v16575_v26, 7  ;;  %v16593_v14 = vadd.f32 %v6708_v41, %v6660_v54  ;;  %v16607_v54 = vpop.xlane.xlu1 %9385 }
 0x9f2   : > { %9469 = vmax.xlane.f32.xlu2 %v9468_v57  ;;  %v6613_v36 = vadd.f32 %v14378_v2, %v6558_v38  ;;  %v8695_v16 = vsel %vm303_vm6, %v8606_v30, %v8030_v33  ;;  %v6324_v45 = vsel %vm303_vm6, %v6038_v22, %v6254_v53  ;;  %v9756_v18 = vmul.f32 1.442695, %v9651_v60  ;;  %18956 = vst [vmem:[#allocation69_spill] sm:$0xff] %v16607_v54  ;;  %v16617_v38 = vpop.xlane.xlu2 %9388  ;;  %v7151_v46 = vpop.f32.mrf.mxu3 }
 0x9f3   : > { %v4916_v13 = vsel %vm303_vm6, %v4845_v24, %v16465_v21  ;;  %v18955_v61 = vrot.slane %v16468_v44, 1  ;;  %11364 = vmatmul.msk.f32.gmra.mxu2 %vm6765_vm10, %v16593_v14  ;;  %11412 = vmatmul.msk.f32.gmra.mxu3 %vm6765_vm10, %v16593_v14  ;;  %v16614_v41 = vadd.f32 %v16100_v49, %v9033_v31  ;;  %v5153_v24 = vperm.slane %v4915_v4, %v12108_v32 }
 0x9f4   : > { %18958 = vst [vmem:[#allocation70_spill] sm:$0xff] %v16617_v38  ;;  %11460 = vmatmul.msk.f32.gmra.mxu0 %vm6765_vm10, %v16593_v14  ;;  %v6661_v44 = vmul.f32 2.0, %v5204_v6  ;;  %v8696_v60 = vrot.slane %v8695_v16, 4  ;;  %v8694_v23 = vsel %vm303_vm6, %v8030_v33, %v8606_v30  ;;  %v18959_v31 = vrot.slane %v16504_v5, 7  ;;  %v18960_v6 = vld [vmem:[#allocation51_spill] sm:$0xff]  ;;  %11502 = vmatmul.msk.f32.gmra.mxu1 %vm6765_vm10, %v16230_v7  ;;  %v16636_v5 = vpop.f32.mrf.mxu1 }
 0x9f5   : > { %v8150_v17 = vsel %vm641_vm7, %v18955_v61, %v18310_v27  ;;  %18957 = vst [vmem:[#allocation23_spill] sm:$0xff] %v16614_v41  ;;  %v11565_v21 = vpop.eup %11564  ;;  %v6325_v61 = vsel %vm303_vm6, %v6254_v53, %v6038_v22  ;;  %v6709_v48 = vmul.f32 0.3, %v6613_v36  ;;  %v6562_v4 = vperm.slane %v6324_v45, %v12108_v32 }
 0x9f6   : > { %v11567_v57 = vpop.eup %11566  ;;  %v7644_v27 = vsel %vm617_vm9, %v18959_v31, %v18314_v39  ;;  %v8463_v3 = vadd.f32 %v8150_v17, %v7312_v37  ;;  %11568 = vpow2.f32 %v9756_v18  ;;  %v9652_v33 = vsub.f32 %v18960_v6, %v16607_v54 }
 0x9f7   : > { %v9653_v22 = vsub.f32 %v15663_v12, %v16617_v38  ;;  %v9951_v30 = vsel %vm3877_vm0, %v11565_v21, 0.0  ;;  %v9471_v53 = vsel %vm3877_vm0, %v16614_v41, -inf  ;;  %v9037_v36 = vperm.slane %v8694_v23, %v12108_v32 }
 0x9f8   : > { %v4917_v16 = vrot.slane %v4916_v13, 4  ;;  %v8031_v45 = vadd.f32 %v7644_v27, %v7151_v46  ;;  %9952 = vadd.xlane.f32.xlu1 %v9951_v30  ;;  %9472 = vmax.xlane.f32.xlu0 %v9471_v53  ;;  %v9954_v37 = vsel %vm3877_vm0, %v11567_v57, 0.0  ;;  %v9041_v7 = vperm.slane %v8696_v60, %v12108_v32  ;;  %v16654_v60 = vpop.xlane.xlu0 %9391 }
 0x9f9   : > { %v5205_v18 = vadd.f32 %v14368_v42, %v5153_v24  ;;  %v6326_v17 = vrot.slane %v6325_v61, 4  ;;  %v16645_v31 = vadd.f32 %v6709_v48, %v6661_v44  ;;  %v6614_v21 = vadd.f32 %v14378_v2, %v6562_v4  ;;  %18963 = vst [vmem:[#allocation21_spill] sm:$0xff] %v16654_v60  ;;  %v7315_v61 = vpop.f32.mrf.mxu0 }
 0x9fa   : > { %9955 = vadd.xlane.f32.xlu2 %v9954_v37  ;;  %v8607_v39 = vrot.slane %v8463_v3, 4  ;;  %v9758_v58 = vmul.f32 1.442695, %v9652_v33  ;;  %v7645_v23 = vrot.slane %v16636_v5, 7  ;;  %v18961_v46 = vrot.slane %v16605_v25, 1 }
 0x9fb   : > { %v18962_v27 = vrot.slane %v16544_v52, 1  ;;  %v9760_v57 = vmul.f32 1.442695, %v9653_v22  ;;  %11365 = vmatmul.msk.f32.gmra.mxu2 %vm6765_vm10, %v16645_v31  ;;  %11413 = vmatmul.msk.f32.gmra.mxu3 %vm6765_vm10, %v16645_v31  ;;  %v16661_v3 = vadd.f32 %v16100_v49, %v9037_v36  ;;  %v16666_v52 = vadd.f32 %v16100_v49, %v9041_v7 }
 0x9fc   : > { %v11569_v48 = vpop.eup %11568  ;;  %11461 = vmatmul.msk.f32.gmra.mxu0 %vm6765_vm10, %v16645_v31  ;;  %v8697_v24 = vsel %vm303_vm6, %v8031_v45, %v8607_v39  ;;  %v5157_v44 = vperm.slane %v4917_v16, %v12108_v32  ;;  %v6662_v4 = vmul.f32 2.0, %v5205_v18  ;;  %v6710_v33 = vmul.f32 0.3, %v6614_v21  ;;  %11503 = vmatmul.msk.f32.gmra.mxu1 %vm6765_vm10, %v16291_v19  ;;  %v16680_v16 = vpop.f32.mrf.mxu2 }
 0x9fd   : > { %v8152_v13 = vsel %vm641_vm7, %v18962_v27, %v18961_v46  ;;  %18964 = vst [vmem:[#allocation71_spill] sm:$0xff] %v16661_v3  ;;  %v6566_v22 = vperm.slane %v6326_v17, %v12108_v32  ;;  %11570 = vpow2.f32 %v9758_v58  ;;  %v9654_v53 = vsub.f32 %v15717_v63, %v16654_v60  ;;  %v7154_v17 = vpop.f32.mrf.mxu3 }
 0x9fe   : > { %18965 = vst [vmem:[#allocation16_spill] sm:$0xff] %v16666_v52  ;;  %v8464_v30 = vadd.f32 %v8152_v13, %v7315_v61  ;;  %v18966_v36 = vrot.slane %v16575_v26, 7  ;;  %11572 = vpow2.f32 %v9760_v57  ;;  %v9957_v7 = vsel %vm3877_vm0, %v11569_v48, 0.0  ;;  %v16694_v61 = vpop.xlane.xlu1 %9394 }
 0x9ff   : > { %v9474_v58 = vsel %vm3877_vm0, %v16661_v3, -inf  ;;  %v9045_v18 = vperm.slane %v8697_v24, %v12108_v32  ;;  %v9477_v26 = vsel %vm3877_vm0, %v16666_v52, -inf  ;;  %v8698_v21 = vsel %vm303_vm6, %v8607_v39, %v8031_v45  ;;  %18967 = vst [vmem:[#allocation38_spill] sm:$0xff] %v16694_v61 }
 0xa00   : > { %v7646_v37 = vsel %vm617_vm9, %v18966_v36, %v7645_v23  ;;  %9958 = vadd.xlane.f32.xlu0 %v9957_v7  ;;  %9475 = vmax.xlane.f32.xlu1 %v9474_v58  ;;  %v16689_v19 = vadd.f32 %v6710_v33, %v6662_v4  ;;  %v5206_v27 = vadd.f32 %v14368_v42, %v5157_v44  ;;  %v18315_v57 = vrot.slane %v16680_v16, 1  ;;  %v16696_v36 = vpop.f32.mrf.mxu1 }
 0xa01   : > { %v8032_v46 = vadd.f32 %v7646_v37, %v7154_v17  ;;  %v6615_v13 = vadd.f32 %v14378_v2, %v6566_v22  ;;  %v9762_v48 = vmul.f32 1.442695, %v9654_v53  ;;  %v8608_v24 = vrot.slane %v8464_v30, 4  ;;  %v16705_v2 = vpop.xlane.xlu2 %9397  ;;  %v18971_v37 = vld [vmem:[#allocation56_spill] sm:$0xff] }
 0xa02   : > { %9478 = vmax.xlane.f32.xlu2 %v9477_v26  ;;  %v16703_v39 = vadd.f32 %v16100_v49, %v9045_v18  ;;  %v8699_v42 = vrot.slane %v8698_v21, 4  ;;  %18969 = vst [vmem:[#allocation34_spill] sm:$0xff] %v16705_v2  ;;  %v6663_v4 = vmul.f32 2.0, %v5206_v27  ;;  %v18970_v30 = vrot.slane %v16605_v25, 1  ;;  %v18972_v18 = vld [vmem:[#allocation54_spill] sm:$0xff]  ;;  %v7318_v27 = vpop.f32.mrf.mxu0 }
 0xa03   : > { %11366 = vmatmul.msk.f32.gmra.mxu2 %vm6765_vm10, %v16689_v19  ;;  %11414 = vmatmul.msk.f32.gmra.mxu3 %vm6765_vm10, %v16689_v19  ;;  %v11571_v45 = vpop.eup %11570  ;;  %v6711_v33 = vmul.f32 0.3, %v6615_v13  ;;  %v8700_v22 = vsel %vm303_vm6, %v8032_v46, %v8608_v24  ;;  %11574 = vpow2.f32 %v9762_v48  ;;  %v9655_v7 = vsub.f32 %v18971_v37, %v16694_v61 }
 0xa04   : > { %18968 = vst [vmem:[#allocation72_spill] sm:$0xff] %v16703_v39  ;;  %11462 = vmatmul.msk.f32.gmra.mxu0 %vm6765_vm10, %v16689_v19  ;;  %v11573_v44 = vpop.eup %11572  ;;  %v8154_v53 = vsel %vm641_vm7, %v18970_v30, %v18315_v57  ;;  %v7647_v58 = vrot.slane %v16696_v36, 7  ;;  %11504 = vmatmul.msk.f32.gmra.mxu1 %vm6765_vm10, %v16354_v15  ;;  %v9656_v17 = vsub.f32 %v18972_v18, %v16705_v2  ;;  %v9960_v26 = vsel %vm3877_vm0, %v11571_v45, 0.0  ;;  %v16729_v15 = vpop.f32.mrf.mxu2 }
 0xa05   : > { %v9480_v21 = vsel %vm3877_vm0, %v16703_v39, -inf  ;;  %v9049_v25 = vperm.slane %v8699_v42, %v12108_v32  ;;  %v9963_v13 = vsel %vm3877_vm0, %v11573_v44, 0.0  ;;  %v9053_v48 = vperm.slane %v8700_v22, %v12108_v32  ;;  %v7157_v18 = vpop.f32.mrf.mxu3  ;;  %v16736_v44 = vpop.xlane.xlu0 %9400 }
 0xa06   : > { %v8701_v36 = vsel %vm303_vm6, %v8608_v24, %v8032_v46  ;;  %v16731_v30 = vadd.f32 %v6711_v33, %v6663_v4  ;;  %v8465_v45 = vadd.f32 %v8154_v53, %v7318_v27  ;;  %v9764_v57 = vmul.f32 1.442695, %v9655_v7  ;;  %18973 = vst [vmem:[#allocation83_spill] sm:$0xff] %v16736_v44 }
 0xa07   : > { %v7648_v42 = vsel %vm617_vm9, %v7645_v23, %v7647_v58  ;;  %v9766_v2 = vmul.f32 1.442695, %v9656_v17  ;;  %v16743_v46 = vadd.f32 %v16100_v49, %v9049_v25  ;;  %v8702_v24 = vrot.slane %v8701_v36, 4  ;;  %v16772_v36 = vld [vmem:[#allocation2 + $0x9e0] ss:$0 sm:$0xff] }
 0xa08   : > { %9961 = vadd.xlane.f32.xlu1 %v9960_v26  ;;  %9481 = vmax.xlane.f32.xlu0 %v9480_v21  ;;  %v16748_v5 = vadd.f32 %v16100_v49, %v9053_v48  ;;  %v8033_v23 = vadd.f32 %v7648_v42, %v7157_v18  ;;  %v16750_v33 = vpop.f32.mrf.mxu1  ;;  %v8609_v22 = vrot.slane %v8465_v45, 4  ;;  %v8155_v53 = vrot.slane %v16729_v15, 1  ;;  %v16770_v48 = vpop.xlane.xlu1 %9403 }
 0xa09   : > { %18974 = vst [vmem:[#allocation74_spill] sm:$0xff] %v16743_v46  ;;  %v11575_v4 = vpop.eup %11574  ;;  %11576 = vpow2.f32 %v9764_v57  ;;  %v9657_v7 = vsub.f32 %v15791_v0, %v16736_v44  ;;  %v9483_v17 = vsel %vm3877_vm0, %v16743_v46, -inf  ;;  %v9057_v18 = vperm.slane %v8702_v24, %v12108_v32  ;;  %v16777_v42 = vpop.xlane.xlu2 %9406 }
 0xa0a   : > { %9964 = vadd.xlane.f32.xlu2 %v9963_v13  ;;  %18975 = vst [vmem:[#allocation11_spill] sm:$0xff] %v16748_v5  ;;  %11578 = vpow2.f32 %v9766_v2  ;;  %v9966_v49 = vsel %vm3877_vm0, %v11575_v4, 0.0  ;;  %v9486_v26 = vsel %vm3877_vm0, %v16748_v5, -inf  ;;  %v7649_v57 = vrot.slane %v16750_v33, 7  ;;  %v7321_v25 = vpop.f32.mrf.mxu0 }
 0xa0b   : > { %11367 = vmatmul.msk.f32.gmra.mxu2 %vm6765_vm10, %v16731_v30  ;;  %11415 = vmatmul.msk.f32.gmra.mxu3 %vm6765_vm10, %v16731_v30  ;;  %v8704_v21 = vsel %vm303_vm6, %v8609_v22, %v8033_v23  ;;  %v18976_v2 = vrot.slane %v16680_v16, 1  ;;  %18977 = vst [vmem:[#allocation13_spill] sm:$0xff] %v16770_v48  ;;  %v16775_v15 = vadd.f32 %v16772_v36, %v9057_v18  ;;  %v18981_v18 = vld [vmem:[#allocation59_spill] sm:$0xff] }
 0xa0c   : > { %11463 = vmatmul.msk.f32.gmra.mxu0 %vm6765_vm10, %v16731_v30  ;;  %11505 = vmatmul.msk.f32.gmra.mxu1 %vm6765_vm10, %v16423_v40  ;;  %v9768_v40 = vmul.f32 1.442695, %v9657_v7  ;;  %v16768_v13 = vpop.f32.mrf.mxu2  ;;  %18979 = vst [vmem:[#allocation28_spill] sm:$0xff] %v16777_v42  ;;  %v8705_v24 = vrot.slane %v8704_v21, 4  ;;  %v8703_v4 = vsel %vm303_vm6, %v8033_v23, %v8609_v22  ;;  %v7650_v16 = vsel %vm617_vm9, %v7647_v58, %v7649_v57 }
 0xa0d   : > { %v8156_v27 = vsel %vm641_vm7, %v18976_v2, %v8155_v53  ;;  %18978 = vst [vmem:[#allocation73_spill] sm:$0xff] %v16775_v15  ;;  %v7160_v7 = vpop.f32.mrf.mxu3  ;;  %v9659_v0 = vsub.f32 %v18981_v18, %v16777_v42  ;;  %v9489_v58 = vsel %vm3877_vm0, %v16775_v15, -inf  ;;  %v9061_v22 = vperm.slane %v8703_v4, %v12108_v32  ;;  %v16796_v44 = vpop.xlane.xlu0 %9409 }
 0xa0e   : > { %11580 = vpow2.f32 %v9768_v40  ;;  %18982 = vst [vmem:[#allocation40_spill] sm:$0xff] %v16796_v44 }
 0xa0f   : > { %v11577_v45 = vpop.eup %11576  ;;  %v9772_v61 = vmul.f32 1.442695, %v9659_v0  ;;  %v16801_v63 = vadd.f32 %v16772_v36, %v9061_v22 }
 0xa10   : > { %9484 = vmax.xlane.f32.xlu1 %v9483_v17  ;;  %9967 = vadd.xlane.f32.xlu0 %v9966_v49  ;;  %v11579_v33 = vpop.eup %11578  ;;  %v8466_v17 = vadd.f32 %v8156_v27, %v7321_v25  ;;  %v8157_v49 = vrot.slane %v16768_v13, 1  ;;  %v16788_v21 = vpop.f32.mrf.mxu1  ;;  %v9969_v23 = vsel %vm3877_vm0, %v11577_v45, 0.0  ;;  %v8034_v25 = vadd.f32 %v7650_v16, %v7160_v7 }
 0xa11   : > { %v9972_v40 = vsel %vm3877_vm0, %v11579_v33, 0.0  ;;  %v9065_v27 = vperm.slane %v8705_v24, %v12108_v32  ;;  %v7651_v37 = vrot.slane %v16788_v21, 7  ;;  %18983 = vst [vmem:[#allocation75_spill] sm:$0xff] %v16801_v63 }
 0xa12   : > { %9487 = vmax.xlane.f32.xlu2 %v9486_v26  ;;  %v18980_v26 = vld [vmem:[#allocation57_spill] sm:$0xff]  ;;  %v8158_v45 = vsel %vm641_vm7, %v8155_v53, %v8157_v49  ;;  %v7324_v24 = vpop.f32.mrf.mxu0 }
 0xa13   : > { %v9658_v2 = vsub.f32 %v18980_v26, %v16770_v48  ;;  %v16804_v16 = vadd.f32 %v16772_v36, %v9065_v27  ;;  %v8467_v7 = vadd.f32 %v8158_v45, %v7324_v24  ;;  %v7652_v53 = vsel %vm617_vm9, %v7649_v57, %v7651_v37 }
 0xa14   : > { %11506 = vmatmul.msk.f32.gmra.mxu1 %vm6765_vm10, %v16488_v10  ;;  %v8610_v10 = vrot.slane %v8466_v17, 4  ;;  %v11581_v4 = vpop.eup %11580  ;;  %v16807_v17 = vpop.f32.mrf.mxu2 }
 0xa15   : > { %v9770_v13 = vmul.f32 1.442695, %v9658_v2  ;;  %18984 = vst [vmem:[#allocation22_spill] sm:$0xff] %v16804_v16  ;;  %v18985_v2 = vld [vmem:[#allocation58_spill] sm:$0xff]  ;;  %v9975_v0 = vsel %vm3877_vm0, %v11581_v4, 0.0  ;;  %v7163_v22 = vpop.f32.mrf.mxu3  ;;  %v8611_v45 = vrot.slane %v8467_v7, 4  ;;  %v16824_v4 = vpop.xlane.xlu1 %9412 }
 0xa16   : > { %v8706_v33 = vsel %vm303_vm6, %v8034_v25, %v8610_v10  ;;  %v9660_v21 = vsub.f32 %v18985_v2, %v16796_v44  ;;  %v8707_v27 = vsel %vm303_vm6, %v8610_v10, %v8034_v25  ;;  %v8035_v57 = vadd.f32 %v7652_v53, %v7163_v22  ;;  %18987 = vst [vmem:[#allocation37_spill] sm:$0xff] %v16824_v4  ;;  %v18990_v7 = vld [vmem:[#allocation60_spill] sm:$0xff] }
 0xa17   : > { %11582 = vpow2.f32 %v9770_v13  ;;  %v16822_v13 = vpop.xlane.xlu0 %9418  ;;  %v9661_v53 = vsub.f32 %v18990_v7, %v16824_v4 }
 0xa18   : > { %9970 = vadd.xlane.f32.xlu1 %v9969_v23  ;;  %9490 = vmax.xlane.f32.xlu0 %v9489_v58  ;;  %11584 = vpow2.f32 %v9772_v61  ;;  %v9492_v23 = vsel %vm3877_vm0, %v16801_v63, -inf  ;;  %v9069_v58 = vperm.slane %v8706_v33, %v12108_v32  ;;  %v9774_v61 = vmul.f32 1.442695, %v9660_v21  ;;  %18986 = vst [vmem:[#allocation25_spill] sm:$0xff] %v16822_v13  ;;  %v16826_v24 = vpop.f32.mrf.mxu1 }
 0xa19   : > { %v8709_v10 = vsel %vm303_vm6, %v8035_v57, %v8611_v45  ;;  %v7653_v22 = vrot.slane %v16826_v24, 7 }
 0xa1a   : > { %9973 = vadd.xlane.f32.xlu2 %v9972_v40  ;;  %v9495_v40 = vsel %vm3877_vm0, %v16804_v16, -inf  ;;  %v16829_v33 = vadd.f32 %v16772_v36, %v9069_v58  ;;  %11586 = vpow2.f32 %v9774_v61  ;;  %v9077_v24 = vperm.slane %v8709_v10, %v12108_v32 }
 0xa1c   : > { %11507 = vmatmul.msk.f32.gmra.mxu1 %vm6765_vm10, %v16546_v28  ;;  %v18323_v28 = vrot.slane %v16807_v17, 1  ;;  %18988 = vst [vmem:[#allocation77_spill] sm:$0xff] %v16829_v33 }
 0xa1d   : > { %v11583_v60 = vpop.eup %11582 }
 0xa1e   : > { %v11585_v25 = vpop.eup %11584  ;;  %v8160_v21 = vsel %vm641_vm7, %v8157_v49, %v18323_v28  ;;  %v16848_v49 = vpop.f32.mrf.mxu2 }
 0xa1f   : > { %v9981_v61 = vsel %vm3877_vm0, %v11585_v25, 0.0  ;;  %v7327_v28 = vpop.f32.mrf.mxu0  ;;  %v16854_v38 = vpop.xlane.xlu0 %9427 }
 0xa20   : > { %9976 = vadd.xlane.f32.xlu0 %v9975_v0  ;;  %9493 = vmax.xlane.f32.xlu1 %v9492_v23  ;;  %v8708_v0 = vrot.slane %v8707_v27, 4  ;;  %v16831_v23 = vpop.xlane.xlu2 %9415  ;;  %v9498_v27 = vsel %vm3877_vm0, %v16829_v33, -inf  ;;  %18991 = vst [vmem:[#allocation39_spill] sm:$0xff] %v16854_v38 }
 0xa21   : > { %18989 = vst [vmem:[#allocation6_spill] sm:$0xff] %v16831_v23  ;;  %v9662_v58 = vsub.f32 %v15966_v35, %v16831_v23  ;;  %v8468_v35 = vadd.f32 %v8160_v21, %v7327_v28  ;;  %v9776_v23 = vmul.f32 1.442695, %v9661_v53  ;;  %v8161_v21 = vrot.slane %v16848_v49, 1 }
 0xa22   : > { %9496 = vmax.xlane.f32.xlu2 %v9495_v40  ;;  %v9978_v40 = vsel %vm3877_vm0, %v11583_v60, 0.0  ;;  %v9073_v12 = vperm.slane %v8708_v0, %v12108_v32  ;;  %v7654_v60 = vsel %vm617_vm9, %v7651_v37, %v7653_v22  ;;  %v16856_v0 = vpop.xlane.xlu1 %9421  ;;  %v9663_v53 = vsub.f32 %v15978_v11, %v16822_v13 }
 0xa23   : > { %v9778_v7 = vmul.f32 1.442695, %v9662_v58  ;;  %18992 = vst [vmem:[#allocation8_spill] sm:$0xff] %v16856_v0  ;;  %v8612_v37 = vrot.slane %v8468_v35, 4  ;;  %11588 = vpow2.f32 %v9776_v23 }
 0xa24   : > { %11508 = vmatmul.msk.f32.gmra.mxu1 %vm6765_vm10, %v16593_v14  ;;  %v8710_v14 = vsel %vm303_vm6, %v8611_v45, %v8035_v57  ;;  %v16859_v6 = vadd.f32 %v16772_v36, %v9073_v12  ;;  %v16864_v57 = vadd.f32 %v16772_v36, %v9077_v24  ;;  %v16866_v45 = vpop.f32.mrf.mxu1 }
 0xa25   : > { %v8711_v25 = vrot.slane %v8710_v14, 4  ;;  %11590 = vpow2.f32 %v9778_v7  ;;  %v7655_v23 = vrot.slane %v16866_v45, 7 }
 0xa26   : > { %18993 = vst [vmem:[#allocation86_spill] sm:$0xff] %v16859_v6  ;;  %v9501_v12 = vsel %vm3877_vm0, %v16859_v6, -inf  ;;  %v9504_v35 = vsel %vm3877_vm0, %v16864_v57, -inf  ;;  %v16881_v24 = vpop.f32.mrf.mxu2 }
 0xa27   : > { %18995 = vst [vmem:[#allocation29_spill] sm:$0xff] %v16864_v57  ;;  %v7330_v14 = vpop.f32.mrf.mxu0 }
 0xa28   : > { %9979 = vadd.xlane.f32.xlu1 %v9978_v40  ;;  %9499 = vmax.xlane.f32.xlu0 %v9498_v27  ;;  %v11587_v40 = vpop.eup %11586  ;;  %v7166_v27 = vpop.f32.mrf.mxu3 }
 0xa29   : > { %v16861_v10 = vpop.xlane.xlu2 %9424  ;;  %v8036_v28 = vadd.f32 %v7654_v60, %v7166_v27  ;;  %v9984_v58 = vsel %vm3877_vm0, %v11587_v40, 0.0  ;;  %v16883_v7 = vpop.xlane.xlu0 %9436  ;;  %v18997_v60 = vrot.slane %v16807_v17, 1  ;;  %v8163_v17 = vrot.slane %v16881_v24, 1 }
 0xa2a   : > { %9982 = vadd.xlane.f32.xlu2 %v9981_v61  ;;  %18994 = vst [vmem:[#allocation7_spill] sm:$0xff] %v16861_v10  ;;  %v9081_v61 = vperm.slane %v8711_v25, %v12108_v32  ;;  %v16888_v40 = vpop.xlane.xlu1 %9430 }
 0xa2b   : > { %v8713_v49 = vsel %vm303_vm6, %v8612_v37, %v8036_v28  ;;  %18996 = vst [vmem:[#allocation76_spill] sm:$0xff] %v16883_v7  ;;  %v8162_v25 = vsel %vm641_vm7, %v18997_v60, %v8161_v21  ;;  %v9664_v60 = vsub.f32 %v16021_v51, %v16856_v0 }
 0xa2c   : > { %11509 = vmatmul.msk.f32.gmra.mxu1 %vm6765_vm10, %v16645_v31  ;;  %v9780_v31 = vmul.f32 1.442695, %v9663_v53  ;;  %18998 = vst [vmem:[#allocation43_spill] sm:$0xff] %v16888_v40  ;;  %v16891_v27 = vadd.f32 %v16772_v36, %v9081_v61  ;;  %v7656_v53 = vsel %vm617_vm9, %v7653_v22, %v7655_v23  ;;  %v8469_v4 = vadd.f32 %v8162_v25, %v7330_v14  ;;  %v19001_v61 = vld [vmem:[#allocation62_spill] sm:$0xff] }
 0xa2d   : > { %v9665_v54 = vsub.f32 %v19001_v61, %v16861_v10  ;;  %v9782_v25 = vmul.f32 1.442695, %v9664_v60 }
 0xa2e   : > { %18999 = vst [vmem:[#allocation31_spill] sm:$0xff] %v16891_v27  ;;  %11592 = vpow2.f32 %v9780_v31  ;;  %v9507_v22 = vsel %vm3877_vm0, %v16891_v27, -inf }
 0xa2f   : > { %v9784_v51 = vmul.f32 1.442695, %v9665_v54  ;;  %v7333_v60 = vpop.f32.mrf.mxu0  ;;  %11594 = vpow2.f32 %v9782_v25  ;;  %v19007_v54 = vld [vmem:[#allocation90_spill] sm:$0xff] }
 0xa30   : > { %9502 = vmax.xlane.f32.xlu1 %v9501_v12  ;;  %9985 = vadd.xlane.f32.xlu0 %v9984_v58  ;;  %v11589_v12 = vpop.eup %11588  ;;  %v8714_v58 = vrot.slane %v8713_v49, 4  ;;  %v7169_v13 = vpop.f32.mrf.mxu3 }
 0xa31   : > { %v16893_v45 = vpop.xlane.xlu2 %9433  ;;  %v11591_v11 = vpop.eup %11590  ;;  %v8037_v24 = vadd.f32 %v7656_v53, %v7169_v13  ;;  %11596 = vpow2.f32 %v9784_v51 }
 0xa32   : > { %9505 = vmax.xlane.f32.xlu2 %v9504_v35  ;;  %19000 = vst [vmem:[#allocation78_spill] sm:$0xff] %v16893_v45  ;;  %v8712_v35 = vsel %vm303_vm6, %v8036_v28, %v8612_v37  ;;  %v16904_v49 = vpop.f32.mrf.mxu1  ;;  %v9987_v28 = vsel %vm3877_vm0, %v11589_v12, 0.0  ;;  %v9990_v31 = vsel %vm3877_vm0, %v11591_v11, 0.0  ;;  %v9089_v14 = vperm.slane %v8714_v58, %v12108_v32  ;;  %v16916_v0 = vpop.xlane.xlu1 %9439 }
 0xa33   : > { %v9085_v37 = vperm.slane %v8712_v35, %v12108_v32  ;;  %v7657_v61 = vrot.slane %v16904_v49, 7  ;;  %v8164_v12 = vsel %vm641_vm7, %v8161_v21, %v8163_v17  ;;  %19003 = vst [vmem:[#allocation79_spill] sm:$0xff] %v16916_v0  ;;  %v16921_v53 = vpop.f32.mrf.mxu2  ;;  %v9666_v21 = vsub.f32 %v19007_v54, %v16854_v38 }
 0xa34   : > { %11510 = vmatmul.msk.f32.gmra.mxu1 %vm6765_vm10, %v16689_v19  ;;  %v8613_v19 = vrot.slane %v8469_v4, 4  ;;  %v11593_v35 = vpop.eup %11592  ;;  %v16926_v4 = vadd.f32 %v16772_v36, %v9089_v14  ;;  %v8470_v49 = vadd.f32 %v8164_v12, %v7333_v60  ;;  %v8165_v51 = vrot.slane %v16921_v53, 1  ;;  %v19011_v53 = vld [vmem:[#allocation41_spill] sm:$0xff] }
 0xa35   : > { %v16919_v13 = vadd.f32 %v16772_v36, %v9085_v37  ;;  %v11595_v2 = vpop.eup %11594 }
 0xa36   : > { %19006 = vst [vmem:[#allocation12_spill] sm:$0xff] %v16926_v4  ;;  %v8715_v58 = vsel %vm303_vm6, %v8037_v24, %v8613_v19  ;;  %v9513_v25 = vsel %vm3877_vm0, %v16926_v4, -inf  ;;  %v8716_v12 = vsel %vm303_vm6, %v8613_v19, %v8037_v24  ;;  %v9996_v44 = vsel %vm3877_vm0, %v11595_v2, 0.0 }
 0xa37   : > { %v16913_v10 = vpop.xlane.xlu0 %9445  ;;  %19004 = vst [vmem:[#allocation44_spill] sm:$0xff] %v16919_v13  ;;  %v9510_v37 = vsel %vm3877_vm0, %v16919_v13, -inf  ;;  %v11597_v24 = vpop.eup %11596 }
 0xa38   : > { %9988 = vadd.xlane.f32.xlu1 %v9987_v28  ;;  %9508 = vmax.xlane.f32.xlu0 %v9507_v22  ;;  %19002 = vst [vmem:[#allocation36_spill] sm:$0xff] %v16913_v10  ;;  %v7658_v28 = vsel %vm617_vm9, %v7655_v23, %v7657_v61  ;;  %v9993_v22 = vsel %vm3877_vm0, %v11593_v35, 0.0  ;;  %v7172_v14 = vpop.f32.mrf.mxu3  ;;  %v8614_v35 = vrot.slane %v8470_v49, 4  ;;  %v9667_v49 = vsub.f32 %v19011_v53, %v16888_v40 }
 0xa39   : > { %v16923_v11 = vpop.xlane.xlu2 %9442  ;;  %v8038_v23 = vadd.f32 %v7658_v28, %v7172_v14  ;;  %v8166_v28 = vsel %vm641_vm7, %v8163_v17, %v8165_v51  ;;  %v9999_v17 = vsel %vm3877_vm0, %v11597_v24, 0.0 }
 0xa3a   : > { %9991 = vadd.xlane.f32.xlu2 %v9990_v31  ;;  %19005 = vst [vmem:[#allocation35_spill] sm:$0xff] %v16923_v11  ;;  %v9093_v31 = vperm.slane %v8715_v58, %v12108_v32  ;;  %v16941_v60 = vpop.f32.mrf.mxu1  ;;  %v16944_v54 = vpop.xlane.xlu1 %9448  ;;  %v9788_v26 = vmul.f32 1.442695, %v9667_v49 }
 0xa3b   : > { %19008 = vst [vmem:[#allocation91_spill] sm:$0xff] %v16944_v54  ;;  %v8718_v19 = vsel %vm303_vm6, %v8038_v23, %v8614_v35  ;;  %v16955_v14 = vpop.f32.mrf.mxu2  ;;  %v8719_v53 = vsel %vm303_vm6, %v8614_v35, %v8038_v23  ;;  %v19018_v35 = vld [vmem:[#allocation5_spill] sm:$0xff] }
 0xa3c   : > { %11511 = vmatmul.msk.f32.gmra.mxu1 %vm6765_vm10, %v16731_v30  ;;  %v9786_v30 = vmul.f32 1.442695, %v9666_v21  ;;  %v16949_v58 = vadd.f32 %v16772_v36, %v9093_v31  ;;  %v7659_v21 = vrot.slane %v16941_v60, 7  ;;  %v19012_v31 = vld [vmem:[#allocation84_spill] sm:$0xff] }
 0xa3e   : > { %19009 = vst [vmem:[#allocation92_spill] sm:$0xff] %v16949_v58  ;;  %11598 = vpow2.f32 %v9786_v30  ;;  %v9516_v18 = vsel %vm3877_vm0, %v16949_v58, -inf  ;;  %v9101_v30 = vperm.slane %v8718_v19, %v12108_v32 }
 0xa3f   : > { %11600 = vpow2.f32 %v9788_v26 }
 0xa40   : > { %9994 = vadd.xlane.f32.xlu0 %v9993_v22  ;;  %9511 = vmax.xlane.f32.xlu1 %v9510_v37  ;;  %v8717_v22 = vrot.slane %v8716_v12, 4  ;;  %v9668_v12 = vsub.f32 %v19012_v31, %v16893_v45  ;;  %v7175_v60 = vpop.f32.mrf.mxu3  ;;  %v7660_v31 = vsel %vm617_vm9, %v7657_v61, %v7659_v21  ;;  %v16982_v23 = vadd.f32 %v16772_v36, %v9101_v30 }
 0xa41   : > { %v16946_v38 = vpop.xlane.xlu0 %9931  ;;  %v16951_v37 = vpop.xlane.xlu2 %9451  ;;  %v8039_v61 = vadd.f32 %v7660_v31, %v7175_v60 }
 0xa42   : > { %9514 = vmax.xlane.f32.xlu2 %v9513_v25  ;;  %19010 = vst [vmem:[#allocation93_spill] sm:$0xff] %v16951_v37  ;;  %v7336_v25 = vpop.f32.mrf.mxu0  ;;  %v9097_v42 = vperm.slane %v8717_v22, %v12108_v32  ;;  %v9790_v2 = vmul.f32 1.442695, %v9668_v12  ;;  %v16970_v45 = vpop.f32.mrf.mxu1 }
 0xa43   : > { %v8471_v40 = vadd.f32 %v8166_v28, %v7336_v25  ;;  %19017 = vst [vmem:[#allocation98_spill] sm:$0xff] %v16982_v23  ;;  %v7753_v28 = vadd.s32 248, %v19018_v35  ;;  %v8167_v25 = vrot.slane %v16955_v14, 1  ;;  %v16992_v30 = vpop.f32.mrf.mxu2  ;;  %v7661_v26 = vrot.slane %v16970_v45, 7 }
 0xa44   : > { %v16975_v22 = vadd.f32 %v16772_v36, %v9097_v42  ;;  %v9669_v42 = vsub.f32 %v16156_v59, %v16883_v7  ;;  %11602 = vpow2.f32 %v9790_v2  ;;  %v19026_v34 = vrot.slane %v16992_v30, 1 }
 0xa45   : > { %v8615_v49 = vrot.slane %v8471_v40, 4  ;;  %v9522_v40 = vsel %vm3877_vm0, %v16982_v23, -inf  ;;  %v8168_v60 = vsel %vm641_vm7, %v8165_v51, %v8167_v25  ;;  %v7801_v2 = vand.u32 127, %v7753_v28 }
 0xa46   : > { %19014 = vst [vmem:[#allocation95_spill] sm:$0xff] %v16975_v22  ;;  %v9792_v59 = vmul.f32 1.442695, %v9669_v42  ;;  %v7662_v51 = vsel %vm617_vm9, %v7659_v21, %v7661_v26  ;;  %v7754_v42 = vadd.s32 256, %v19018_v35 }
 0xa47   : > { %v8722_v31 = vsel %vm303_vm6, %v8615_v49, %v8039_v61  ;;  %vm17011_vm4 = vcmp.eq.s32.totalorder %v7801_v2, 127 }
 0xa48   : > { %9997 = vadd.xlane.f32.xlu1 %v9996_v44  ;;  %9517 = vmax.xlane.f32.xlu0 %v9516_v18  ;;  %v8720_v44 = vrot.slane %v8719_v53, 4  ;;  %v11599_v18 = vpop.eup %11598  ;;  %v9519_v53 = vsel %vm3877_vm0, %v16975_v22, -inf  ;;  %v7178_v28 = vpop.f32.mrf.mxu3  ;;  %11604 = vpow2.f32 %v9792_v59 }
 0xa49   : > { %v10002_v12 = vsel %vm3877_vm0, %v11599_v18, 0.0  ;;  %v11601_v7 = vpop.eup %11600  ;;  %v8040_v59 = vadd.f32 %v7662_v51, %v7178_v28 }
 0xa4a   : > { %10000 = vadd.xlane.f32.xlu2 %v9999_v17  ;;  %v16972_v48 = vpop.xlane.xlu1 %9934  ;;  %v16977_v24 = vpop.xlane.xlu0 %9454  ;;  %v9105_v17 = vperm.slane %v8720_v44, %v12108_v32 }
 0xa4b   : > { %19013 = vst [vmem:[#allocation94_spill] sm:$0xff] %v16972_v48  ;;  %v16979_v19 = vpop.xlane.xlu2 %9937  ;;  %v7339_v14 = vpop.f32.mrf.mxu0 }
 0xa4c   : > { %19015 = vst [vmem:[#allocation96_spill] sm:$0xff] %v16977_v24  ;;  %v11603_v29 = vpop.eup %11602  ;;  %v8472_v55 = vadd.f32 %v8168_v60, %v7339_v14  ;;  %v19027_v14 = vld [vmem:[#allocation89_spill] sm:$0xff]  ;;  %v10005_v60 = vsel %vm3877_vm0, %v11601_v7, 0.0 }
 0xa4d   : > { %19016 = vst [vmem:[#allocation97_spill] sm:$0xff] %v16979_v19  ;;  %v9671_v21 = vsub.f32 %v19027_v14, %v16923_v11 }
 0xa4e   : > { %v11605_v28 = vpop.eup %11604 }
 0xa4f   : > { %v9796_v9 = vmul.f32 1.442695, %v9671_v21 }
 0xa50   : > { %9520 = vmax.xlane.f32.xlu1 %v9519_v53  ;;  %10003 = vadd.xlane.f32.xlu0 %v10002_v12  ;;  %v17003_v53 = vadd.f32 %v16772_v36, %v9105_v17  ;;  %v8721_v12 = vsel %vm303_vm6, %v8039_v61, %v8615_v49  ;;  %v19025_v17 = vld [vmem:[#allocation88_spill] sm:$0xff]  ;;  %v17017_v61 = vpop.f32.mrf.mxu1 }
 0xa51   : > { %v9670_v18 = vsub.f32 %v19025_v17, %v16916_v0  ;;  %v9109_v49 = vperm.slane %v8721_v12, %v12108_v32  ;;  %v10008_v17 = vsel %vm3877_vm0, %v11603_v29, 0.0  ;;  %v8616_v12 = vrot.slane %v8472_v55, 4 }
 0xa52   : > { %9523 = vmax.xlane.f32.xlu2 %v9522_v40  ;;  %19020 = vst [vmem:[#allocation99_spill] sm:$0xff] %v17003_v53  ;;  %v17006_v1 = vpop.xlane.xlu0 %9940  ;;  %v8723_v40 = vrot.slane %v8722_v31, 4  ;;  %v8170_v31 = vsel %vm641_vm7, %v8167_v25, %v19026_v34  ;;  %v9525_v2 = vsel %vm3877_vm0, %v17003_v53, -inf  ;;  %v7663_v14 = vrot.slane %v17017_v61, 7  ;;  %v19033_v61 = vld [vmem:[#allocation65_spill] sm:$0xff] }
 0xa53   : > { %v17000_v44 = vpop.xlane.xlu1 %9457  ;;  %19021 = vst [vmem:[#allocation100_spill] sm:$0xff] %v17006_v1  ;;  %v8425_v34 = vsel %vm17011_vm4, 0.0, %v8170_v31  ;;  %v9794_v25 = vmul.f32 1.442695, %v9670_v18  ;;  %v17034_v7 = vadd.f32 %v16772_v36, %v9109_v49  ;;  %v7342_v11 = vpop.f32.mrf.mxu0  ;;  %v9672_v49 = vsub.f32 %v19033_v61, %v16913_v10 }
 0xa54   : > { %19019 = vst [vmem:[#allocation5_spill] sm:$0xff] %v17000_v44  ;;  %v17008_v45 = vpop.xlane.xlu2 %9460  ;;  %v9113_v0 = vperm.slane %v8723_v40, %v12108_v32  ;;  %v8724_v40 = vsel %vm303_vm6, %v8040_v59, %v8616_v12  ;;  %v8473_v18 = vadd.f32 %v8425_v34, %v7342_v11  ;;  %v7664_v31 = vsel %vm617_vm9, %v7661_v26, %v7663_v14  ;;  %v7181_v34 = vpop.f32.mrf.mxu3 }
 0xa55   : > { %19022 = vst [vmem:[#allocation101_spill] sm:$0xff] %v17008_v45  ;;  %11606 = vpow2.f32 %v9794_v25  ;;  %v9528_v21 = vsel %vm3877_vm0, %v17034_v7, -inf  ;;  %v8725_v11 = vsel %vm303_vm6, %v8616_v12, %v8040_v59  ;;  %v8041_v61 = vadd.f32 %v7664_v31, %v7181_v34  ;;  %v19039_v31 = vld [vmem:[#allocation80_spill] sm:$0xff] }
 0xa56   : > { %19028 = vst [vmem:[#allocation102_spill] sm:$0xff] %v17034_v7  ;;  %v17043_v55 = vadd.f32 %v16772_v36, %v9113_v0  ;;  %11608 = vpow2.f32 %v9796_v9  ;;  %v10011_v0 = vsel %vm3877_vm0, %v11605_v28, 0.0  ;;  %v9798_v10 = vmul.f32 1.442695, %v9672_v49 }
 0xa57   : > { %v7802_v9 = vand.u32 127, %v7754_v42  ;;  %v8617_v28 = vrot.slane %v8473_v18, 4  ;;  %v19038_v49 = vrot.slane %v16992_v30, 1  ;;  %v19042_v30 = vld [vmem:[#allocation19_spill] sm:$0xff] }
 0xa58   : > { %10006 = vadd.xlane.f32.xlu1 %v10005_v60  ;;  %9526 = vmax.xlane.f32.xlu0 %v9525_v2  ;;  %19032 = vst [vmem:[#allocation106_spill] sm:$0xff] %v17043_v55  ;;  %v9117_v2 = vperm.slane %v8724_v40, %v12108_v32  ;;  %v17057_v47 = vpop.f32.mrf.mxu1  ;;  %v9531_v25 = vsel %vm3877_vm0, %v17043_v55, -inf  ;;  %11610 = vpow2.f32 %v9798_v10 }
 0xa59   : > { %v18352_v40 = vrot.slane %v17057_v47, 7  ;;  %v8727_v18 = vsel %vm303_vm6, %v8041_v61, %v8617_v28  ;;  %vm17080_vm5 = vcmp.eq.s32.totalorder %v7802_v9, 0 }
 0xa5a   : > { %10009 = vadd.xlane.f32.xlu2 %v10008_v17  ;;  %v17047_v17 = vpop.f32.mrf.mxu2  ;;  %v17066_v59 = vadd.f32 %v16772_v36, %v9117_v2 }
 0xa5b   : > { %v17036_v51 = vpop.xlane.xlu1 %9943  ;;  %v17040_v29 = vpop.xlane.xlu0 %9463  ;;  %v18350_v26 = vrot.slane %v17047_v17, 1 }
 0xa5c   : > { %19029 = vst [vmem:[#allocation103_spill] sm:$0xff] %v17036_v51  ;;  %v17038_v60 = vpop.xlane.xlu2 %9946  ;;  %v11607_v12 = vpop.eup %11606  ;;  %v9534_v10 = vsel %vm3877_vm0, %v17066_v59, -inf }
 0xa5d   : > { %19030 = vst [vmem:[#allocation104_spill] sm:$0xff] %v17038_v60  ;;  %v8726_v60 = vrot.slane %v8725_v11, 4  ;;  %v8172_v42 = vsel %vm641_vm7, %v19038_v49, %v18350_v26  ;;  %v9673_v11 = vsub.f32 %v19039_v31, %v16944_v54  ;;  %v10014_v49 = vsel %vm3877_vm0, %v11607_v12, 0.0  ;;  %v7345_v26 = vpop.f32.mrf.mxu0 }
 0xa5e   : > { %19031 = vst [vmem:[#allocation105_spill] sm:$0xff] %v17040_v29  ;;  %v9125_v31 = vperm.slane %v8727_v18, %v12108_v32 }
 0xa5f   : > { %19035 = vst [vmem:[#allocation108_spill] sm:$0xff] %v17066_v59  ;;  %v9121_v34 = vperm.slane %v8726_v60, %v12108_v32  ;;  %v8728_v60 = vsel %vm303_vm6, %v8617_v28, %v8041_v61 }
 0xa60   : > { %10012 = vadd.xlane.f32.xlu0 %v10011_v0  ;;  %9529 = vmax.xlane.f32.xlu1 %v9528_v21  ;;  %v11609_v21 = vpop.eup %11608  ;;  %v17110_v28 = vadd.f32 %v16772_v36, %v9125_v31 }
 0xa61   : > { %v10017_v9 = vsel %vm3877_vm0, %v11609_v21, 0.0  ;;  %v17103_v21 = vadd.f32 %v16772_v36, %v9121_v34 }
 0xa62   : > { %9532 = vmax.xlane.f32.xlu2 %v9531_v25  ;;  %v7666_v25 = vsel %vm617_vm9, %v7663_v14, %v18352_v40  ;;  %v17096_v54 = vpop.f32.mrf.mxu2  ;;  %v8474_v14 = vadd.f32 %v8172_v42, %v7345_v26  ;;  %v9800_v40 = vmul.f32 1.442695, %v9673_v11  ;;  %19047 = vst [vmem:[#allocation115_spill] sm:$0xff] %v17110_v28  ;;  %v7509_v42 = vpop.f32.mrf.mxu1  ;;  %v9540_v31 = vsel %vm3877_vm0, %v17110_v28, -inf }
 0xa63   : > { %v17063_v51 = vpop.xlane.xlu1 %9466  ;;  %v17068_v0 = vpop.xlane.xlu0 %9949  ;;  %v7994_v12 = vsel %vm17080_vm5, 0.0, %v7666_v25  ;;  %19044 = vst [vmem:[#allocation112_spill] sm:$0xff] %v17103_v21  ;;  %v8173_v2 = vrot.slane %v17096_v54, 1  ;;  %v9537_v34 = vsel %vm3877_vm0, %v17103_v21, -inf }
 0xa64   : > { %19034 = vst [vmem:[#allocation107_spill] sm:$0xff] %v17063_v51  ;;  %v8618_v11 = vrot.slane %v8474_v14, 4  ;;  %11612 = vpow2.f32 %v9800_v40 }
 0xa65   : > { %19036 = vst [vmem:[#allocation109_spill] sm:$0xff] %v17068_v0  ;;  %v17070_v1 = vpop.xlane.xlu2 %9469  ;;  %v9674_v0 = vsub.f32 %v19042_v30, %v16951_v37  ;;  %v7184_v30 = vpop.f32.mrf.mxu3 }
 0xa66   : > { %19037 = vst [vmem:[#allocation110_spill] sm:$0xff] %v17070_v1  ;;  %v8042_v26 = vadd.f32 %v7994_v12, %v7184_v30  ;;  %v7667_v30 = vrot.slane %v7509_v42, 7  ;;  %v7348_v40 = vpop.f32.mrf.mxu0 }
 0xa67   : > { %v9802_v37 = vmul.f32 1.442695, %v9674_v0  ;;  %v9675_v0 = vsub.f32 %v16397_v20, %v16977_v24 }
 0xa68   : > { %10015 = vadd.xlane.f32.xlu1 %v10014_v49  ;;  %9535 = vmax.xlane.f32.xlu0 %v9534_v10  ;;  %v8729_v49 = vrot.slane %v8728_v60, 4  ;;  %v11611_v10 = vpop.eup %11610  ;;  %v8731_v54 = vsel %vm303_vm6, %v8618_v11, %v8042_v26 }
 0xa69   : > { %11614 = vpow2.f32 %v9802_v37  ;;  %v10020_v25 = vsel %vm3877_vm0, %v11611_v10, 0.0  ;;  %v9804_v60 = vmul.f32 1.442695, %v9675_v0  ;;  %v19048_v37 = vrot.slane %v17047_v17, 1 }
 0xa6a   : > { %10018 = vadd.xlane.f32.xlu2 %v10017_v9  ;;  %v9129_v9 = vperm.slane %v8729_v49, %v12108_v32  ;;  %v17125_v12 = vpop.f32.mrf.mxu2  ;;  %v8732_v42 = vrot.slane %v8731_v54, 4  ;;  %v19052_v0 = vrot.slane %v17057_v47, 7  ;;  %v17143_v48 = vpop.f32.mrf.mxu1 }
 0xa6b   : > { %v17100_v19 = vpop.xlane.xlu1 %9952  ;;  %v17105_v18 = vpop.xlane.xlu0 %9472  ;;  %v8174_v14 = vsel %vm641_vm7, %v19048_v37, %v8173_v2  ;;  %11616 = vpow2.f32 %v9804_v60 }
 0xa6c   : > { %19043 = vst [vmem:[#allocation111_spill] sm:$0xff] %v17100_v19  ;;  %v17130_v49 = vadd.f32 %v16772_v36, %v9129_v9  ;;  %v7668_v17 = vsel %vm617_vm9, %v19052_v0, %v7667_v30  ;;  %v8175_v19 = vrot.slane %v17125_v12, 1  ;;  %v9676_v9 = vsub.f32 %v16448_v43, %v17000_v44 }
 0xa6d   : > { %19045 = vst [vmem:[#allocation113_spill] sm:$0xff] %v17105_v18  ;;  %v17107_v61 = vpop.xlane.xlu2 %9955  ;;  %v7187_v37 = vpop.f32.mrf.mxu3  ;;  %v9137_v60 = vperm.slane %v8732_v42, %v12108_v32  ;;  %v7669_v12 = vrot.slane %v17143_v48, 7 }
 0xa6e   : > { %19046 = vst [vmem:[#allocation114_spill] sm:$0xff] %v17107_v61  ;;  %v8475_v61 = vadd.f32 %v8174_v14, %v7348_v40  ;;  %v9543_v47 = vsel %vm3877_vm0, %v17130_v49, -inf  ;;  %v8043_v0 = vadd.f32 %v7668_v17, %v7187_v37  ;;  %v9806_v43 = vmul.f32 1.442695, %v9676_v9 }
 0xa6f   : > { %19050 = vst [vmem:[#allocation117_spill] sm:$0xff] %v17130_v49  ;;  %v9678_v9 = vsub.f32 %v16507_v8, %v17040_v29 }
 0xa70   : > { %9538 = vmax.xlane.f32.xlu1 %v9537_v34  ;;  %10021 = vadd.xlane.f32.xlu0 %v10020_v25  ;;  %v11613_v34 = vpop.eup %11612  ;;  %v8619_v14 = vrot.slane %v8475_v61, 4  ;;  %v7351_v61 = vpop.f32.mrf.mxu0  ;;  %11618 = vpow2.f32 %v9806_v43 }
 0xa71   : > { %v11615_v20 = vpop.eup %11614 }
 0xa72   : > { %9541 = vmax.xlane.f32.xlu2 %v9540_v31  ;;  %v8730_v31 = vsel %vm303_vm6, %v8042_v26, %v8618_v11  ;;  %v9677_v26 = vsub.f32 %v16460_v62, %v17008_v45  ;;  %v10023_v11 = vsel %vm3877_vm0, %v11613_v34, 0.0  ;;  %v10026_v40 = vsel %vm3877_vm0, %v11615_v20, 0.0  ;;  %v17166_v48 = vpop.f32.mrf.mxu2 }
 0xa73   : > { %v17127_v10 = vpop.xlane.xlu1 %9475  ;;  %v17138_v24 = vpop.xlane.xlu0 %9958  ;;  %v9133_v54 = vperm.slane %v8730_v31, %v12108_v32  ;;  %v8176_v62 = vsel %vm641_vm7, %v8173_v2, %v8175_v19  ;;  %v17163_v20 = vadd.f32 %v16772_v36, %v9137_v60  ;;  %v8733_v42 = vsel %vm303_vm6, %v8043_v0, %v8619_v14 }
 0xa74   : > { %19049 = vst [vmem:[#allocation116_spill] sm:$0xff] %v17127_v10  ;;  %v9808_v34 = vmul.f32 1.442695, %v9677_v26  ;;  %v11617_v31 = vpop.eup %11616  ;;  %v8476_v37 = vadd.f32 %v8176_v62, %v7351_v61  ;;  %v7670_v2 = vsel %vm617_vm9, %v7667_v30, %v7669_v12  ;;  %v8734_v43 = vsel %vm303_vm6, %v8619_v14, %v8043_v0 }
 0xa75   : > { %v17132_v25 = vpop.xlane.xlu2 %9478  ;;  %v17158_v44 = vadd.f32 %v16772_v36, %v9133_v54  ;;  %v9141_v54 = vperm.slane %v8733_v42, %v12108_v32  ;;  %v9549_v62 = vsel %vm3877_vm0, %v17163_v20, -inf  ;;  %v8177_v60 = vrot.slane %v17166_v48, 1 }
 0xa76   : > { %19051 = vst [vmem:[#allocation118_spill] sm:$0xff] %v17132_v25  ;;  %11620 = vpow2.f32 %v9808_v34  ;;  %v9810_v34 = vmul.f32 1.442695, %v9678_v9  ;;  %v8620_v61 = vrot.slane %v8476_v37, 4  ;;  %v11619_v29 = vpop.eup %11618  ;;  %v9679_v37 = vsub.f32 %v16565_v56, %v17063_v51 }
 0xa77   : > { %v17186_v42 = vadd.f32 %v16772_v36, %v9141_v54  ;;  %v8178_v14 = vsel %vm641_vm7, %v8175_v19, %v8177_v60  ;;  %v10032_v9 = vsel %vm3877_vm0, %v11619_v29, 0.0 }
 0xa78   : > { %10024 = vadd.xlane.f32.xlu1 %v10023_v11  ;;  %9544 = vmax.xlane.f32.xlu0 %v9543_v47  ;;  %v10029_v11 = vsel %vm3877_vm0, %v11617_v31, 0.0  ;;  %v9546_v47 = vsel %vm3877_vm0, %v17158_v44, -inf  ;;  %v17181_v31 = vpop.f32.mrf.mxu1  ;;  %11622 = vpow2.f32 %v9810_v34 }
 0xa79   : > { %19057 = vst [vmem:[#allocation123_spill] sm:$0xff] %v17186_v42  ;;  %v7671_v48 = vrot.slane %v17181_v31, 7  ;;  %v9552_v54 = vsel %vm3877_vm0, %v17186_v42, -inf  ;;  %v9812_v42 = vmul.f32 1.442695, %v9679_v37  ;;  %v9681_v37 = vsub.f32 %v16614_v41, %v17105_v18 }
 0xa7a   : > { %10027 = vadd.xlane.f32.xlu2 %v10026_v40  ;;  %v7190_v40 = vpop.f32.mrf.mxu3 }
 0xa7b   : > { %v17155_v45 = vpop.xlane.xlu1 %9961  ;;  %v17171_v26 = vpop.xlane.xlu0 %9481  ;;  %v8044_v30 = vadd.f32 %v7670_v2, %v7190_v40  ;;  %v9680_v2 = vsub.f32 %v16571_v50, %v17070_v1  ;;  %v7672_v50 = vsel %vm617_vm9, %v7669_v12, %v7671_v48  ;;  %11624 = vpow2.f32 %v9812_v42 }
 0xa7c   : > { %19053 = vst [vmem:[#allocation119_spill] sm:$0xff] %v17155_v45 }
 0xa7d   : > { %v17160_v17 = vpop.xlane.xlu2 %9964  ;;  %19055 = vst [vmem:[#allocation121_spill] sm:$0xff] %v17171_v26  ;;  %v8736_v0 = vsel %vm303_vm6, %v8044_v30, %v8620_v61  ;;  %v8737_v31 = vsel %vm303_vm6, %v8620_v61, %v8044_v30  ;;  %v9814_v1 = vmul.f32 1.442695, %v9680_v2 }
 0xa7e   : > { %19054 = vst [vmem:[#allocation120_spill] sm:$0xff] %v17160_v17  ;;  %v9149_v34 = vperm.slane %v8736_v0, %v12108_v32 }
 0xa7f   : > { %11626 = vpow2.f32 %v9814_v1  ;;  %v9816_v1 = vmul.f32 1.442695, %v9681_v37 }
 0xa80   : > { %10030 = vadd.xlane.f32.xlu0 %v10029_v11  ;;  %9547 = vmax.xlane.f32.xlu1 %v9546_v47  ;;  %v8735_v11 = vrot.slane %v8734_v43, 4  ;;  %v11621_v47 = vpop.eup %11620  ;;  %v17201_v43 = vpop.f32.mrf.mxu2  ;;  %v17217_v30 = vadd.f32 %v16772_v36, %v9149_v34 }
 0xa81   : > { %v10035_v19 = vsel %vm3877_vm0, %v11621_v47, 0.0  ;;  %v8738_v47 = vrot.slane %v8737_v31, 4  ;;  %v7518_v0 = vpop.f32.mrf.mxu1  ;;  %v8179_v12 = vrot.slane %v17201_v43, 1  ;;  %11628 = vpow2.f32 %v9816_v1 }
 0xa82   : > { %9550 = vmax.xlane.f32.xlu2 %v9549_v62  ;;  %v9145_v40 = vperm.slane %v8735_v11, %v12108_v32  ;;  %v7354_v62 = vpop.f32.mrf.mxu0 }
 0xa83   : > { %v17183_v8 = vpop.xlane.xlu1 %9484  ;;  %v17206_v56 = vpop.xlane.xlu0 %9967  ;;  %v8477_v29 = vadd.f32 %v8178_v14, %v7354_v62  ;;  %v9153_v62 = vperm.slane %v8738_v47, %v12108_v32  ;;  %v8180_v31 = vsel %vm641_vm7, %v8177_v60, %v8179_v12 }
 0xa84   : > { %19056 = vst [vmem:[#allocation122_spill] sm:$0xff] %v17183_v8  ;;  %v17212_v51 = vadd.f32 %v16772_v36, %v9145_v40 }
 0xa85   : > { %v17188_v17 = vpop.xlane.xlu2 %9487  ;;  %19059 = vst [vmem:[#allocation125_spill] sm:$0xff] %v17206_v56  ;;  %v8621_v14 = vrot.slane %v8477_v29, 4  ;;  %v17237_v47 = vadd.f32 %v16772_v36, %v9153_v62  ;;  %v9683_v62 = vsub.f32 %v16666_v52, %v17132_v25 }
 0xa86   : > { %19058 = vst [vmem:[#allocation124_spill] sm:$0xff] %v17188_v17  ;;  %v9555_v2 = vsel %vm3877_vm0, %v17212_v51, -inf }
 0xa87   : > { %19064 = vst [vmem:[#allocation130_spill] sm:$0xff] %v17237_v47 }
 0xa88   : > { %10033 = vadd.xlane.f32.xlu1 %v10032_v9  ;;  %9553 = vmax.xlane.f32.xlu0 %v9552_v54  ;;  %v11623_v9 = vpop.eup %11622  ;;  %v7193_v54 = vpop.f32.mrf.mxu3 }
 0xa89   : > { %v8045_v61 = vadd.f32 %v7672_v50, %v7193_v54  ;;  %v10038_v40 = vsel %vm3877_vm0, %v11623_v9, 0.0  ;;  %v9558_v50 = vsel %vm3877_vm0, %v17217_v30, -inf  ;;  %v17229_v34 = vpop.f32.mrf.mxu2  ;;  %v11625_v54 = vpop.eup %11624 }
 0xa8a   : > { %10036 = vadd.xlane.f32.xlu2 %v10035_v19  ;;  %v7673_v19 = vrot.slane %v7518_v0, 7  ;;  %v7357_v43 = vpop.f32.mrf.mxu0  ;;  %v8181_v60 = vrot.slane %v17229_v34, 1 }
 0xa8b   : > { %v17209_v11 = vpop.xlane.xlu1 %9970  ;;  %v8740_v42 = vsel %vm303_vm6, %v8621_v14, %v8045_v61  ;;  %v17232_v29 = vpop.xlane.xlu0 %9490  ;;  %v8478_v37 = vadd.f32 %v8180_v31, %v7357_v43 }
 0xa8c   : > { %19060 = vst [vmem:[#allocation126_spill] sm:$0xff] %v17209_v11  ;;  %v8741_v0 = vrot.slane %v8740_v42, 4  ;;  %v7674_v41 = vsel %vm617_vm9, %v7671_v48, %v7673_v19  ;;  %v17246_v11 = vpop.f32.mrf.mxu1  ;;  %v10041_v42 = vsel %vm3877_vm0, %v11625_v54, 0.0  ;;  %v8182_v52 = vsel %vm641_vm7, %v8179_v12, %v8181_v60 }
 0xa8d   : > { %v17214_v45 = vpop.xlane.xlu2 %9973  ;;  %19062 = vst [vmem:[#allocation128_spill] sm:$0xff] %v17232_v29  ;;  %v8622_v1 = vrot.slane %v8478_v37, 4  ;;  %v7675_v31 = vrot.slane %v17246_v11, 7  ;;  %v9820_v54 = vmul.f32 1.442695, %v9683_v62  ;;  %v9684_v12 = vsub.f32 %v16703_v39, %v17171_v26 }
 0xa8e   : > { %19061 = vst [vmem:[#allocation127_spill] sm:$0xff] %v17214_v45  ;;  %v9682_v45 = vsub.f32 %v16661_v3, %v17127_v10  ;;  %v9161_v34 = vperm.slane %v8741_v0, %v12108_v32  ;;  %v17288_v39 = vld [vmem:[#allocation2 + $0x9e0] ss:$0 sm:$0xff] }
 0xa8f   : > { %v7676_v11 = vsel %vm617_vm9, %v7673_v19, %v7675_v31 }
 0xa90   : > { %9556 = vmax.xlane.f32.xlu1 %v9555_v2  ;;  %10039 = vadd.xlane.f32.xlu0 %v10038_v40  ;;  %v8739_v40 = vsel %vm303_vm6, %v8045_v61, %v8621_v14  ;;  %v7196_v18 = vpop.f32.mrf.mxu3  ;;  %v9561_v61 = vsel %vm3877_vm0, %v17237_v47, -inf  ;;  %v9818_v3 = vmul.f32 1.442695, %v9682_v45 }
 0xa91   : > { %v9157_v48 = vperm.slane %v8739_v40, %v12108_v32  ;;  %v8046_v14 = vadd.f32 %v7674_v41, %v7196_v18  ;;  %v17266_v40 = vadd.f32 %v16772_v36, %v9161_v34  ;;  %v17274_v62 = vpop.f32.mrf.mxu2  ;;  %v9822_v34 = vmul.f32 1.442695, %v9684_v12 }
 0xa92   : > { %9559 = vmax.xlane.f32.xlu2 %v9558_v50  ;;  %v11627_v50 = vpop.eup %11626  ;;  %11630 = vpow2.f32 %v9818_v3  ;;  %v9685_v12 = vsub.f32 %v16743_v46, %v17183_v8 }
 0xa93   : > { %v17234_v9 = vpop.xlane.xlu1 %9493  ;;  %v10044_v43 = vsel %vm3877_vm0, %v11627_v50, 0.0  ;;  %v17261_v47 = vadd.f32 %v16772_v36, %v9157_v48  ;;  %v11629_v41 = vpop.eup %11628  ;;  %19066 = vst [vmem:[#allocation132_spill] sm:$0xff] %v17266_v40  ;;  %v8742_v0 = vsel %vm303_vm6, %v8046_v14, %v8622_v1  ;;  %11632 = vpow2.f32 %v9820_v54 }
 0xa94   : > { %19063 = vst [vmem:[#allocation129_spill] sm:$0xff] %v17234_v9  ;;  %v7360_v50 = vpop.f32.mrf.mxu0  ;;  %v17269_v37 = vpop.xlane.xlu0 %9976  ;;  %v8743_v3 = vsel %vm303_vm6, %v8622_v1, %v8046_v14  ;;  %11634 = vpow2.f32 %v9822_v34  ;;  %v9688_v56 = vsub.f32 %v16801_v63, %v17234_v9 }
 0xa95   : > { %v17239_v2 = vpop.xlane.xlu2 %9496  ;;  %19067 = vst [vmem:[#allocation133_spill] sm:$0xff] %v17269_v37  ;;  %v8479_v45 = vadd.f32 %v8182_v52, %v7360_v50  ;;  %v9564_v36 = vsel %vm3877_vm0, %v17261_v47, -inf  ;;  %v9567_v52 = vsel %vm3877_vm0, %v17266_v40, -inf }
 0xa96   : > { %19065 = vst [vmem:[#allocation131_spill] sm:$0xff] %v17239_v2  ;;  %v9830_v63 = vmul.f32 1.442695, %v9688_v56 }
 0xa97   : > { %v8623_v54 = vrot.slane %v8479_v45, 4 }
 0xa98   : > { %10042 = vadd.xlane.f32.xlu1 %v10041_v42  ;;  %9562 = vmax.xlane.f32.xlu0 %v9561_v61  ;;  %v10047_v42 = vsel %vm3877_vm0, %v11629_v41, 0.0  ;;  %v9165_v61 = vperm.slane %v8742_v0, %v12108_v32  ;;  %v7199_v48 = vpop.f32.mrf.mxu3  ;;  %v17284_v41 = vpop.f32.mrf.mxu1 }
 0xa99   : > { %v8047_v19 = vadd.f32 %v7676_v11, %v7199_v48  ;;  %v11631_v26 = vpop.eup %11630  ;;  %v7677_v45 = vrot.slane %v17284_v41, 7  ;;  %v17311_v46 = vpop.f32.mrf.mxu2 }
 0xa9a   : > { %10045 = vadd.xlane.f32.xlu2 %v10044_v43  ;;  %v8183_v43 = vrot.slane %v17274_v62, 1  ;;  %v17291_v0 = vadd.f32 %v17288_v39, %v9165_v61  ;;  %v11633_v14 = vpop.eup %11632  ;;  %v9686_v62 = vsub.f32 %v16748_v5, %v17188_v17  ;;  %v10050_v48 = vsel %vm3877_vm0, %v11631_v26, 0.0 }
 0xa9b   : > { %v17258_v25 = vpop.xlane.xlu1 %9979  ;;  %v8745_v1 = vsel %vm303_vm6, %v8047_v19, %v8623_v54  ;;  %v8746_v41 = vsel %vm303_vm6, %v8623_v54, %v8047_v19  ;;  %v7678_v26 = vsel %vm617_vm9, %v7675_v31, %v7677_v45  ;;  %v9824_v17 = vmul.f32 1.442695, %v9685_v12 }
 0xa9c   : > { %19069 = vst [vmem:[#allocation135_spill] sm:$0xff] %v17291_v0  ;;  %v8184_v11 = vsel %vm641_vm7, %v8181_v60, %v8183_v43  ;;  %v17302_v61 = vpop.xlane.xlu0 %9499  ;;  %v7363_v10 = vpop.f32.mrf.mxu0  ;;  %v10053_v60 = vsel %vm3877_vm0, %v11633_v14, 0.0  ;;  %v9173_v34 = vperm.slane %v8745_v1, %v12108_v32  ;;  %v9826_v8 = vmul.f32 1.442695, %v9686_v62 }
 0xa9d   : > { %v17263_v18 = vpop.xlane.xlu2 %9982  ;;  %19071 = vst [vmem:[#allocation137_spill] sm:$0xff] %v17302_v61  ;;  %v8480_v5 = vadd.f32 %v8184_v11, %v7363_v10  ;;  %v8747_v14 = vrot.slane %v8746_v41, 4  ;;  %v8185_v31 = vrot.slane %v17311_v46, 1  ;;  %11636 = vpow2.f32 %v9824_v17 }
 0xa9e   : > { %v17322_v19 = vadd.f32 %v17288_v39, %v9173_v34  ;;  %v9687_v11 = vsub.f32 %v16775_v15, %v17232_v29  ;;  %11638 = vpow2.f32 %v9826_v8 }
 0xa9f   : > { %v8624_v10 = vrot.slane %v8480_v5, 4  ;;  %v8186_v41 = vsel %vm641_vm7, %v8183_v43, %v8185_v31 }
 0xaa0   : > { %10048 = vadd.xlane.f32.xlu0 %v10047_v42  ;;  %9565 = vmax.xlane.f32.xlu1 %v9564_v36  ;;  %v8744_v42 = vrot.slane %v8743_v3, 4  ;;  %19074 = vst [vmem:[#allocation140_spill] sm:$0xff] %v17322_v19  ;;  %v7527_v1 = vpop.f32.mrf.mxu1  ;;  %v9828_v8 = vmul.f32 1.442695, %v9687_v11 }
 0xaa1   : > { %v7679_v5 = vrot.slane %v7527_v1, 7 }
 0xaa2   : > { %9568 = vmax.xlane.f32.xlu2 %v9567_v52  ;;  %v9570_v52 = vsel %vm3877_vm0, %v17291_v0, -inf  ;;  %v9169_v3 = vperm.slane %v8744_v42, %v12108_v32  ;;  %11640 = vpow2.f32 %v9828_v8 }
 0xaa3   : > { %v17286_v50 = vpop.xlane.xlu1 %9502  ;;  %v7680_v15 = vsel %vm617_vm9, %v7677_v45, %v7679_v5  ;;  %11642 = vpow2.f32 %v9830_v63 }
 0xaa4   : > { %19068 = vst [vmem:[#allocation134_spill] sm:$0xff] %v17286_v50  ;;  %v17317_v42 = vadd.f32 %v17288_v39, %v9169_v3  ;;  %v9177_v3 = vperm.slane %v8747_v14, %v12108_v32  ;;  %v17333_v34 = vpop.xlane.xlu0 %9985  ;;  %v7366_v17 = vpop.f32.mrf.mxu0 }
 0xaa5   : > { %v17293_v36 = vpop.xlane.xlu2 %9505  ;;  %v8481_v11 = vadd.f32 %v8186_v41, %v7366_v17 }
 0xaa6   : > { %19070 = vst [vmem:[#allocation136_spill] sm:$0xff] %v17293_v36  ;;  %v9573_v12 = vsel %vm3877_vm0, %v17317_v42, -inf  ;;  %v17342_v14 = vadd.f32 %v17288_v39, %v9177_v3  ;;  %v9689_v3 = vsub.f32 %v16804_v16, %v17239_v2 }
 0xaa7   : > { %19072 = vst [vmem:[#allocation138_spill] sm:$0xff] %v17317_v42  ;;  %v8625_v41 = vrot.slane %v8481_v11, 4  ;;  %v9690_v11 = vsub.f32 %v16829_v33, %v17302_v61 }
 0xaa8   : > { %10051 = vadd.xlane.f32.xlu1 %v10050_v48  ;;  %9571 = vmax.xlane.f32.xlu0 %v9570_v52  ;;  %v11635_v48 = vpop.eup %11634  ;;  %v7202_v52 = vpop.f32.mrf.mxu3  ;;  %19076 = vst [vmem:[#allocation142_spill] sm:$0xff] %v17342_v14 }
 0xaa9   : > { %v8048_v54 = vadd.f32 %v7678_v26, %v7202_v52  ;;  %v10056_v62 = vsel %vm3877_vm0, %v11635_v48, 0.0  ;;  %v17337_v26 = vpop.f32.mrf.mxu2  ;;  %v11637_v52 = vpop.eup %11636 }
 0xaaa   : > { %10054 = vadd.xlane.f32.xlu2 %v10053_v60  ;;  %v9576_v60 = vsel %vm3877_vm0, %v17322_v19, -inf  ;;  %v8187_v43 = vrot.slane %v17337_v26, 1 }
 0xaab   : > { %v17314_v0 = vpop.xlane.xlu1 %9988  ;;  %v8749_v46 = vsel %vm303_vm6, %v8624_v10, %v8048_v54 }
 0xaac   : > { %v8750_v1 = vrot.slane %v8749_v46, 4  ;;  %v10059_v46 = vsel %vm3877_vm0, %v11637_v52, 0.0  ;;  %v8188_v16 = vsel %vm641_vm7, %v8185_v31, %v8187_v43  ;;  %v9832_v52 = vmul.f32 1.442695, %v9689_v3  ;;  %v17363_v2 = vpop.xlane.xlu0 %9508 }
 0xaad   : > { %v17319_v37 = vpop.xlane.xlu2 %9991  ;;  %19078 = vst [vmem:[#allocation144_spill] sm:$0xff] %v17363_v2 }
 0xaae   : > { %19073 = vst [vmem:[#allocation139_spill] sm:$0xff] %v17319_v37  ;;  %v17351_v37 = vpop.f32.mrf.mxu1  ;;  %v9185_v8 = vperm.slane %v8750_v1, %v12108_v32  ;;  %11644 = vpow2.f32 %v9832_v52  ;;  %v9834_v52 = vmul.f32 1.442695, %v9690_v11  ;;  %v9692_v11 = vsub.f32 %v16864_v57, %v17293_v36 }
 0xaaf   : > { %v7681_v26 = vrot.slane %v17351_v37, 7  ;;  %v7369_v37 = vpop.f32.mrf.mxu0 }
 0xab0   : > { %9574 = vmax.xlane.f32.xlu1 %v9573_v12  ;;  %10057 = vadd.xlane.f32.xlu0 %v10056_v62  ;;  %v8748_v62 = vsel %vm303_vm6, %v8048_v54, %v8624_v10  ;;  %v7205_v29 = vpop.f32.mrf.mxu3  ;;  %v9579_v54 = vsel %vm3877_vm0, %v17342_v14, -inf  ;;  %v17373_v1 = vadd.f32 %v17288_v39, %v9185_v8  ;;  %v8482_v56 = vadd.f32 %v8188_v16, %v7369_v37 }
 0xab1   : > { %v9181_v45 = vperm.slane %v8748_v62, %v12108_v32  ;;  %v8049_v10 = vadd.f32 %v7680_v15, %v7205_v29  ;;  %v7682_v31 = vsel %vm617_vm9, %v7679_v5, %v7681_v26  ;;  %v17379_v3 = vpop.f32.mrf.mxu2  ;;  %11646 = vpow2.f32 %v9834_v52 }
 0xab2   : > { %9577 = vmax.xlane.f32.xlu2 %v9576_v60  ;;  %v11639_v60 = vpop.eup %11638  ;;  %19081 = vst [vmem:[#allocation147_spill] sm:$0xff] %v17373_v1  ;;  %v9585_v16 = vsel %vm3877_vm0, %v17373_v1, -inf  ;;  %v8189_v8 = vrot.slane %v17379_v3, 1  ;;  %v8626_v37 = vrot.slane %v8482_v56, 4 }
 0xab3   : > { %v17339_v48 = vpop.xlane.xlu1 %9511  ;;  %v10062_v17 = vsel %vm3877_vm0, %v11639_v60, 0.0  ;;  %v17368_v15 = vadd.f32 %v17288_v39, %v9181_v45  ;;  %v11641_v29 = vpop.eup %11640  ;;  %v8751_v60 = vsel %vm303_vm6, %v8049_v10, %v8625_v41  ;;  %v8752_v63 = vsel %vm303_vm6, %v8625_v41, %v8049_v10 }
 0xab4   : > { %19075 = vst [vmem:[#allocation141_spill] sm:$0xff] %v17339_v48  ;;  %v9189_v45 = vperm.slane %v8751_v60, %v12108_v32  ;;  %v11643_v61 = vpop.eup %11642  ;;  %v8190_v41 = vsel %vm641_vm7, %v8187_v43, %v8189_v8 }
 0xab5   : > { %v17344_v12 = vpop.xlane.xlu2 %9514  ;;  %19079 = vst [vmem:[#allocation145_spill] sm:$0xff] %v17368_v15  ;;  %v10068_v3 = vsel %vm3877_vm0, %v11643_v61, 0.0 }
 0xab6   : > { %19077 = vst [vmem:[#allocation143_spill] sm:$0xff] %v17344_v12  ;;  %v17394_v60 = vadd.f32 %v17288_v39, %v9189_v45 }
 0xab8   : > { %10060 = vadd.xlane.f32.xlu1 %v10059_v46  ;;  %9580 = vmax.xlane.f32.xlu0 %v9579_v54  ;;  %v10065_v46 = vsel %vm3877_vm0, %v11641_v29, 0.0  ;;  %v9582_v54 = vsel %vm3877_vm0, %v17368_v15, -inf  ;;  %v17389_v29 = vpop.f32.mrf.mxu1  ;;  %19083 = vst [vmem:[#allocation149_spill] sm:$0xff] %v17394_v60  ;;  %v9588_v45 = vsel %vm3877_vm0, %v17394_v60, -inf }
 0xab9   : > { %v7683_v56 = vrot.slane %v17389_v29, 7  ;;  %v17414_v29 = vpop.f32.mrf.mxu2 }
 0xaba   : > { %10063 = vadd.xlane.f32.xlu2 %v10062_v17  ;;  %v7208_v17 = vpop.f32.mrf.mxu3 }
 0xabb   : > { %v17365_v14 = vpop.xlane.xlu1 %9997  ;;  %v8050_v5 = vadd.f32 %v7682_v31, %v7208_v17  ;;  %v9691_v31 = vsub.f32 %v16859_v6, %v17286_v50  ;;  %v7684_v61 = vsel %vm617_vm9, %v7681_v26, %v7683_v56  ;;  %v9838_v6 = vmul.f32 1.442695, %v9692_v11 }
 0xabc   : > { %v8191_v26 = vrot.slane %v17414_v29, 1 }
 0xabd   : > { %v17370_v62 = vpop.xlane.xlu2 %10000  ;;  %v8754_v10 = vsel %vm303_vm6, %v8050_v5, %v8626_v37  ;;  %v8755_v52 = vsel %vm303_vm6, %v8626_v37, %v8050_v5  ;;  %v9836_v36 = vmul.f32 1.442695, %v9691_v31  ;;  %v9693_v31 = vsub.f32 %v16891_v27, %v17363_v2 }
 0xabe   : > { %19080 = vst [vmem:[#allocation146_spill] sm:$0xff] %v17370_v62  ;;  %v17398_v62 = vpop.xlane.xlu0 %9994  ;;  %v9197_v43 = vperm.slane %v8754_v10, %v12108_v32  ;;  %v8192_v29 = vsel %vm641_vm7, %v8189_v8, %v8191_v26 }
 0xabf   : > { %11648 = vpow2.f32 %v9836_v36 }
 0xac0   : > { %10066 = vadd.xlane.f32.xlu0 %v10065_v46  ;;  %9583 = vmax.xlane.f32.xlu1 %v9582_v54  ;;  %v8753_v46 = vrot.slane %v8752_v63, 4  ;;  %v11645_v54 = vpop.eup %11644  ;;  %v17425_v5 = vadd.f32 %v17288_v39, %v9197_v43  ;;  %v7536_v10 = vpop.f32.mrf.mxu1  ;;  %11650 = vpow2.f32 %v9838_v6  ;;  %v9840_v6 = vmul.f32 1.442695, %v9693_v31 }
 0xac1   : > { %v10071_v63 = vsel %vm3877_vm0, %v11645_v54, 0.0  ;;  %v8756_v54 = vrot.slane %v8755_v52, 4  ;;  %v7685_v43 = vrot.slane %v7536_v10, 7 }
 0xac2   : > { %9586 = vmax.xlane.f32.xlu2 %v9585_v16  ;;  %v9193_v17 = vperm.slane %v8753_v46, %v12108_v32  ;;  %v7372_v16 = vpop.f32.mrf.mxu0  ;;  %11652 = vpow2.f32 %v9840_v6 }
 0xac3   : > { %v17391_v33 = vpop.xlane.xlu1 %9520  ;;  %v8483_v57 = vadd.f32 %v8190_v41, %v7372_v16  ;;  %v7686_v27 = vsel %vm617_vm9, %v7683_v56, %v7685_v43 }
 0xac4   : > { %19082 = vst [vmem:[#allocation148_spill] sm:$0xff] %v17391_v33  ;;  %v17420_v46 = vadd.f32 %v17288_v39, %v9193_v17 }
 0xac5   : > { %v17396_v9 = vpop.xlane.xlu2 %9523  ;;  %v8627_v41 = vrot.slane %v8483_v57, 4  ;;  %v9594_v57 = vsel %vm3877_vm0, %v17425_v5, -inf }
 0xac6   : > { %19084 = vst [vmem:[#allocation150_spill] sm:$0xff] %v17396_v9  ;;  %v17430_v11 = vpop.xlane.xlu0 %9517  ;;  %v9591_v17 = vsel %vm3877_vm0, %v17420_v46, -inf }
 0xac7   : > { %19085 = vst [vmem:[#allocation151_spill] sm:$0xff] %v17420_v46  ;;  %v9694_v46 = vsub.f32 %v16919_v13, %v17339_v48 }
 0xac8   : > { %10069 = vadd.xlane.f32.xlu1 %v10068_v3  ;;  %9589 = vmax.xlane.f32.xlu0 %v9588_v45  ;;  %v11647_v3 = vpop.eup %11646  ;;  %v7211_v45 = vpop.f32.mrf.mxu3  ;;  %19087 = vst [vmem:[#allocation153_spill] sm:$0xff] %v17430_v11 }
 0xac9   : > { %v8051_v37 = vadd.f32 %v7684_v61, %v7211_v45  ;;  %v10074_v16 = vsel %vm3877_vm0, %v11647_v3, 0.0  ;;  %v17440_v61 = vpop.f32.mrf.mxu2 }
 0xaca   : > { %10072 = vadd.xlane.f32.xlu2 %v10071_v63  ;;  %v9201_v63 = vperm.slane %v8756_v54, %v12108_v32  ;;  %v7375_v52 = vpop.f32.mrf.mxu0  ;;  %v11649_v54 = vpop.eup %11648  ;;  %v8193_v8 = vrot.slane %v17440_v61, 1 }
 0xacb   : > { %v17417_v50 = vpop.xlane.xlu1 %10006  ;;  %v8758_v36 = vsel %vm303_vm6, %v8627_v41, %v8051_v37  ;;  %v8757_v10 = vsel %vm303_vm6, %v8051_v37, %v8627_v41  ;;  %v8484_v31 = vadd.f32 %v8192_v29, %v7375_v52 }
 0xacc   : > { %v17445_v3 = vadd.f32 %v17288_v39, %v9201_v63  ;;  %v9695_v63 = vsub.f32 %v16926_v4, %v17344_v12  ;;  %v9205_v56 = vperm.slane %v8757_v10, %v12108_v32  ;;  %v9842_v12 = vmul.f32 1.442695, %v9694_v46 }
 0xacd   : > { %v17422_v60 = vpop.xlane.xlu2 %10009  ;;  %v8628_v61 = vrot.slane %v8484_v31, 4  ;;  %v9696_v46 = vsub.f32 %v16949_v58, %v17430_v11 }
 0xace   : > { %19086 = vst [vmem:[#allocation152_spill] sm:$0xff] %v17422_v60  ;;  %v17454_v60 = vpop.f32.mrf.mxu1  ;;  %v9597_v37 = vsel %vm3877_vm0, %v17445_v3, -inf  ;;  %v17464_v29 = vpop.xlane.xlu0 %10003  ;;  %v9844_v13 = vmul.f32 1.442695, %v9695_v63  ;;  %11654 = vpow2.f32 %v9842_v12 }
 0xacf   : > { %19089 = vst [vmem:[#allocation155_spill] sm:$0xff] %v17445_v3  ;;  %v7687_v4 = vrot.slane %v17454_v60, 7 }
 0xad0   : > { %9592 = vmax.xlane.f32.xlu1 %v9591_v17  ;;  %10075 = vadd.xlane.f32.xlu0 %v10074_v16  ;;  %v8759_v16 = vrot.slane %v8758_v36, 4  ;;  %v7214_v2 = vpop.f32.mrf.mxu3  ;;  %v10077_v36 = vsel %vm3877_vm0, %v11649_v54, 0.0  ;;  %v8194_v54 = vsel %vm641_vm7, %v8191_v26, %v8193_v8  ;;  %11656 = vpow2.f32 %v9844_v13 }
 0xad1   : > { %v8052_v41 = vadd.f32 %v7686_v27, %v7214_v2  ;;  %v17471_v27 = vadd.f32 %v17288_v39, %v9205_v56  ;;  %v7688_v60 = vsel %vm617_vm9, %v7685_v43, %v7687_v4  ;;  %v17482_v26 = vpop.f32.mrf.mxu2 }
 0xad2   : > { %9595 = vmax.xlane.f32.xlu2 %v9594_v57  ;;  %v11651_v57 = vpop.eup %11650  ;;  %v9209_v6 = vperm.slane %v8759_v16, %v12108_v32  ;;  %v7378_v31 = vpop.f32.mrf.mxu0 }
 0xad3   : > { %v17442_v45 = vpop.xlane.xlu1 %9529  ;;  %v10080_v52 = vsel %vm3877_vm0, %v11651_v57, 0.0  ;;  %19091 = vst [vmem:[#allocation157_spill] sm:$0xff] %v17471_v27  ;;  %v11653_v2 = vpop.eup %11652  ;;  %v8760_v57 = vsel %vm303_vm6, %v8052_v41, %v8628_v61  ;;  %v8761_v12 = vsel %vm303_vm6, %v8628_v61, %v8052_v41 }
 0xad4   : > { %19088 = vst [vmem:[#allocation154_spill] sm:$0xff] %v17442_v45  ;;  %v17476_v16 = vadd.f32 %v17288_v39, %v9209_v6  ;;  %v10083_v63 = vsel %vm3877_vm0, %v11653_v2, 0.0  ;;  %v9213_v56 = vperm.slane %v8760_v57, %v12108_v32  ;;  %v9846_v2 = vmul.f32 1.442695, %v9696_v46 }
 0xad5   : > { %v17447_v17 = vpop.xlane.xlu2 %9532  ;;  %v9698_v46 = vsub.f32 %v16982_v23, %v17396_v9 }
 0xad6   : > { %19090 = vst [vmem:[#allocation156_spill] sm:$0xff] %v17447_v17  ;;  %v9603_v6 = vsel %vm3877_vm0, %v17476_v16, -inf  ;;  %v17492_v13 = vpop.f32.mrf.mxu1  ;;  %v17494_v58 = vpop.xlane.xlu0 %9526  ;;  %v17499_v57 = vadd.f32 %v17288_v39, %v9213_v56  ;;  %11658 = vpow2.f32 %v9846_v2 }
 0xad7   : > { %19093 = vst [vmem:[#allocation159_spill] sm:$0xff] %v17476_v16 }
 0xad8   : > { %10078 = vadd.xlane.f32.xlu1 %v10077_v36  ;;  %9598 = vmax.xlane.f32.xlu0 %v9597_v37  ;;  %v8485_v36 = vadd.f32 %v8194_v54, %v7378_v31  ;;  %v9600_v37 = vsel %vm3877_vm0, %v17471_v27, -inf  ;;  %v8195_v54 = vrot.slane %v17482_v26, 1  ;;  %19094 = vst [vmem:[#allocation160_spill] sm:$0xff] %v17494_v58  ;;  %v11655_v27 = vpop.eup %11654  ;;  %v7689_v26 = vrot.slane %v17492_v13, 7 }
 0xad9   : > { %19096 = vst [vmem:[#allocation162_spill] sm:$0xff] %v17499_v57  ;;  %v11657_v41 = vpop.eup %11656  ;;  %v10086_v56 = vsel %vm3877_vm0, %v11655_v27, 0.0  ;;  %v17517_v2 = vpop.f32.mrf.mxu2 }
 0xada   : > { %10081 = vadd.xlane.f32.xlu2 %v10080_v52  ;;  %v7217_v52 = vpop.f32.mrf.mxu3  ;;  %v8629_v31 = vrot.slane %v8485_v36, 4  ;;  %v9697_v36 = vsub.f32 %v16975_v22, %v17391_v33  ;;  %v10089_v3 = vsel %vm3877_vm0, %v11657_v41, 0.0  ;;  %v7690_v27 = vsel %vm617_vm9, %v7687_v4, %v7689_v26 }
 0xadb   : > { %v17468_v48 = vpop.xlane.xlu1 %10015  ;;  %v8053_v43 = vadd.f32 %v7688_v60, %v7217_v52  ;;  %v8196_v60 = vsel %vm641_vm7, %v8193_v8, %v8195_v54  ;;  %v9606_v52 = vsel %vm3877_vm0, %v17499_v57, -inf  ;;  %v9850_v22 = vmul.f32 1.442695, %v9698_v46 }
 0xadc   : > { %v9848_v9 = vmul.f32 1.442695, %v9697_v36  ;;  %v9699_v36 = vsub.f32 %v17003_v53, %v17494_v58 }
 0xadd   : > { %v17473_v10 = vpop.xlane.xlu2 %10018  ;;  %v8763_v61 = vsel %vm303_vm6, %v8053_v43, %v8629_v31  ;;  %v8764_v13 = vsel %vm303_vm6, %v8629_v31, %v8053_v43 }
 0xade   : > { %19092 = vst [vmem:[#allocation158_spill] sm:$0xff] %v17473_v10  ;;  %v9221_v8 = vperm.slane %v8763_v61, %v12108_v32  ;;  %v8765_v41 = vrot.slane %v8764_v13, 4  ;;  %v17530_v61 = vpop.xlane.xlu0 %10012  ;;  %11660 = vpow2.f32 %v9848_v9 }
 0xadf   : > { %11662 = vpow2.f32 %v9850_v22 }
 0xae0   : > { %10084 = vadd.xlane.f32.xlu0 %v10083_v63  ;;  %9601 = vmax.xlane.f32.xlu1 %v9600_v37  ;;  %v8762_v63 = vrot.slane %v8761_v12, 4  ;;  %v7381_v12 = vpop.f32.mrf.mxu0  ;;  %v17528_v43 = vadd.f32 %v17288_v39, %v9221_v8 }
 0xae1   : > { %v8486_v23 = vadd.f32 %v8196_v60, %v7381_v12  ;;  %v8197_v60 = vrot.slane %v17517_v2, 1  ;;  %v9225_v12 = vperm.slane %v8765_v41, %v12108_v32  ;;  %v9852_v2 = vmul.f32 1.442695, %v9699_v36 }
 0xae2   : > { %9604 = vmax.xlane.f32.xlu2 %v9603_v6  ;;  %v9217_v6 = vperm.slane %v8762_v63, %v12108_v32  ;;  %19100 = vst [vmem:[#allocation166_spill] sm:$0xff] %v17528_v43  ;;  %v9612_v8 = vsel %vm3877_vm0, %v17528_v43, -inf }
 0xae3   : > { %v17496_v11 = vpop.xlane.xlu1 %9538  ;;  %v8630_v4 = vrot.slane %v8486_v23, 4  ;;  %v8198_v22 = vsel %vm641_vm7, %v8195_v54, %v8197_v60  ;;  %11664 = vpow2.f32 %v9852_v2  ;;  %v9700_v54 = vsub.f32 %v17034_v7, %v17442_v45 }
 0xae4   : > { %19095 = vst [vmem:[#allocation161_spill] sm:$0xff] %v17496_v11  ;;  %v17523_v63 = vadd.f32 %v17288_v39, %v9217_v6 }
 0xae5   : > { %v17501_v37 = vpop.xlane.xlu2 %9541 }
 0xae6   : > { %19097 = vst [vmem:[#allocation163_spill] sm:$0xff] %v17501_v37  ;;  %v9609_v46 = vsel %vm3877_vm0, %v17523_v63, -inf  ;;  %v17558_v10 = vpop.xlane.xlu0 %9535 }
 0xae7   : > { %19099 = vst [vmem:[#allocation165_spill] sm:$0xff] %v17523_v63 }
 0xae8   : > { %10087 = vadd.xlane.f32.xlu1 %v10086_v56  ;;  %9607 = vmax.xlane.f32.xlu0 %v9606_v52  ;;  %v11659_v56 = vpop.eup %11658  ;;  %v7220_v52 = vpop.f32.mrf.mxu3  ;;  %19101 = vst [vmem:[#allocation167_spill] sm:$0xff] %v17558_v10 }
 0xae9   : > { %v8054_v31 = vadd.f32 %v7690_v27, %v7220_v52  ;;  %v10092_v6 = vsel %vm3877_vm0, %v11659_v56, 0.0  ;;  %v7384_v13 = vpop.f32.mrf.mxu0  ;;  %v7068_v27 = vpop.f32.mrf.mxu2  ;;  %v17546_v56 = vadd.f32 %v17288_v39, %v9225_v12  ;;  %v9701_v12 = vsub.f32 %v17043_v55, %v17447_v17 }
 0xaea   : > { %10090 = vadd.xlane.f32.xlu2 %v10089_v3  ;;  %v7545_v3 = vpop.f32.mrf.mxu1  ;;  %v11661_v41 = vpop.eup %11660  ;;  %v8487_v63 = vadd.f32 %v8198_v22, %v7384_v13  ;;  %v8199_v36 = vrot.slane %v7068_v27, 1  ;;  %v7769_v22 = vadd.s32 376, %v19018_v35  ;;  %v9854_v17 = vmul.f32 1.442695, %v9700_v54 }
 0xaeb   : > { %v17520_v33 = vpop.xlane.xlu1 %10024  ;;  %v7691_v23 = vrot.slane %v7545_v3, 7  ;;  %v8767_v9 = vsel %vm303_vm6, %v8630_v4, %v8054_v31  ;;  %v8766_v53 = vsel %vm303_vm6, %v8054_v31, %v8630_v4  ;;  %v11663_v3 = vpop.eup %11662  ;;  %v9615_v31 = vsel %vm3877_vm0, %v17546_v56, -inf }
 0xaec   : > { %19098 = vst [vmem:[#allocation164_spill] sm:$0xff] %v17520_v33  ;;  %v10098_v13 = vsel %vm3877_vm0, %v11663_v3, 0.0  ;;  %v8631_v27 = vrot.slane %v8487_v63, 4  ;;  %v9856_v7 = vmul.f32 1.442695, %v9701_v12  ;;  %v7817_v3 = vand.u32 127, %v7769_v22 }
 0xaed   : > { %v17525_v57 = vpop.xlane.xlu2 %10027  ;;  %11666 = vpow2.f32 %v9854_v17 }
 0xaee   : > { %11668 = vpow2.f32 %v9856_v7  ;;  %vm17592_vm8 = vcmp.eq.s32.totalorder %v7817_v3, 127 }
 0xaf0   : > { %9610 = vmax.xlane.f32.xlu1 %v9609_v46  ;;  %10093 = vadd.xlane.f32.xlu0 %v10092_v6  ;;  %v8768_v6 = vrot.slane %v8767_v9, 4  ;;  %v7223_v58 = vpop.f32.mrf.mxu3  ;;  %v10095_v9 = vsel %vm3877_vm0, %v11661_v41, 0.0  ;;  %v8200_v41 = vsel %vm641_vm7, %v8197_v60, %v8199_v36  ;;  %v9702_v60 = vsub.f32 %v17066_v59, %v17558_v10 }
 0xaf1   : > { %v7387_v63 = vpop.f32.mrf.mxu0 }
 0xaf2   : > { %9613 = vmax.xlane.f32.xlu2 %v9612_v8  ;;  %v7692_v8 = vsel %vm617_vm9, %v7689_v26, %v7691_v23  ;;  %v17554_v33 = vpop.f32.mrf.mxu1  ;;  %v9229_v26 = vperm.slane %v8766_v53, %v12108_v32  ;;  %v9233_v2 = vperm.slane %v8768_v6, %v12108_v32  ;;  %v11665_v53 = vpop.eup %11664  ;;  %v9858_v22 = vmul.f32 1.442695, %v9702_v60 }
 0xaf3   : > { %v17543_v52 = vpop.xlane.xlu1 %9547  ;;  %v8055_v4 = vadd.f32 %v7692_v8, %v7223_v58  ;;  %v7693_v55 = vrot.slane %v17554_v33, 7  ;;  %v8488_v33 = vadd.f32 %v8200_v41, %v7387_v63  ;;  %v10101_v12 = vsel %vm3877_vm0, %v11665_v53, 0.0 }
 0xaf4   : > { %v17572_v58 = vadd.f32 %v17288_v39, %v9229_v26  ;;  %v17577_v6 = vadd.f32 %v17288_v39, %v9233_v2  ;;  %v17590_v2 = vpop.xlane.xlu0 %10021  ;;  %v8249_v41 = vsel %vm641_vm7, %v8199_v36, 0.0  ;;  %11670 = vpow2.f32 %v9858_v22 }
 0xaf5   : > { %v17548_v46 = vpop.xlane.xlu2 %9550  ;;  %v8769_v35 = vsel %vm303_vm6, %v8055_v4, %v8631_v27  ;;  %v7694_v54 = vsel %vm617_vm9, %v7691_v23, %v7693_v55  ;;  %v8770_v23 = vsel %vm303_vm6, %v8631_v27, %v8055_v4  ;;  %v8632_v53 = vrot.slane %v8488_v33, 4  ;;  %v11667_v4 = vpop.eup %11666 }
 0xaf6   : > { %19102 = vst [vmem:[#allocation168_spill] sm:$0xff] %v17577_v6  ;;  %v9703_v36 = vsub.f32 %v17103_v21, %v17496_v11  ;;  %v9704_v33 = vsub.f32 %v17110_v28, %v17501_v37 }
 0xaf8   : > { %10096 = vadd.xlane.f32.xlu1 %v10095_v9  ;;  %9616 = vmax.xlane.f32.xlu0 %v9615_v31  ;;  %v9618_v9 = vsel %vm3877_vm0, %v17572_v58, -inf  ;;  %v9237_v31 = vperm.slane %v8769_v35, %v12108_v32  ;;  %v7226_v26 = vpop.f32.mrf.mxu3  ;;  %v9860_v37 = vmul.f32 1.442695, %v9703_v36 }
 0xaf9   : > { %v8056_v17 = vadd.f32 %v7694_v54, %v7226_v26  ;;  %v11669_v54 = vpop.eup %11668  ;;  %v8441_v26 = vsel %vm17592_vm8, 0.0, %v8249_v41  ;;  %v7390_v41 = vpop.f32.mrf.mxu0 }
 0xafa   : > { %10099 = vadd.xlane.f32.xlu2 %v10098_v13  ;;  %v9621_v13 = vsel %vm3877_vm0, %v17577_v6, -inf  ;;  %v7551_v35 = vpop.f32.mrf.mxu1  ;;  %v10107_v59 = vsel %vm3877_vm0, %v11669_v54, 0.0  ;;  %11672 = vpow2.f32 %v9860_v37 }
 0xafb   : > { %v17569_v45 = vpop.xlane.xlu1 %10033  ;;  %v8772_v3 = vsel %vm303_vm6, %v8056_v17, %v8632_v53  ;;  %v7695_v60 = vrot.slane %v7551_v35, 7  ;;  %v8773_v22 = vsel %vm303_vm6, %v8632_v53, %v8056_v17  ;;  %v8489_v35 = vadd.f32 %v8441_v26, %v7390_v41 }
 0xafc   : > { %v9245_v7 = vperm.slane %v8772_v3, %v12108_v32  ;;  %v17619_v21 = vpop.xlane.xlu0 %9544  ;;  %v8774_v54 = vrot.slane %v8773_v22, 4 }
 0xafd   : > { %v17574_v8 = vpop.xlane.xlu2 %10036  ;;  %v7696_v28 = vsel %vm617_vm9, %v7693_v55, %v7695_v60  ;;  %19106 = vst [vmem:[#allocation170_spill] sm:$0xff] %v17619_v21  ;;  %v8633_v53 = vrot.slane %v8489_v35, 4  ;;  %v9705_v55 = vsub.f32 %v17130_v49, %v17619_v21 }
 0xafe   : > { %v17629_v17 = vadd.f32 %v17288_v39, %v9245_v7  ;;  %v9249_v36 = vperm.slane %v8774_v54, %v12108_v32 }
 0xaff   : > { %v9864_v37 = vmul.f32 1.442695, %v9705_v55 }
 0xb00   : > { %10102 = vadd.xlane.f32.xlu0 %v10101_v12  ;;  %9619 = vmax.xlane.f32.xlu1 %v9618_v9  ;;  %v17600_v12 = vadd.f32 %v17288_v39, %v9237_v31  ;;  %v8771_v9 = vrot.slane %v8770_v23, 4  ;;  %v10104_v31 = vsel %vm3877_vm0, %v11667_v4, 0.0  ;;  %v9862_v4 = vmul.f32 1.442695, %v9704_v33  ;;  %19108 = vst [vmem:[#allocation172_spill] sm:$0xff] %v17629_v17 }
 0xb01   : > { %v9630_v33 = vsel %vm3877_vm0, %v17629_v17, -inf  ;;  %v17643_v7 = vadd.f32 %v17288_v39, %v9249_v36 }
 0xb02   : > { %9622 = vmax.xlane.f32.xlu2 %v9621_v13  ;;  %19105 = vst [vmem:[#allocation169_spill] sm:$0xff] %v17600_v12  ;;  %v9624_v13 = vsel %vm3877_vm0, %v17600_v12, -inf  ;;  %v9241_v23 = vperm.slane %v8771_v9, %v12108_v32  ;;  %11674 = vpow2.f32 %v9862_v4 }
 0xb03   : > { %v17597_v63 = vpop.xlane.xlu1 %9556  ;;  %19109 = vst [vmem:[#allocation173_spill] sm:$0xff] %v17643_v7  ;;  %11676 = vpow2.f32 %v9864_v37 }
 0xb04   : > { %v17624_v9 = vadd.f32 %v17288_v39, %v9241_v23 }
 0xb05   : > { %v17602_v27 = vpop.xlane.xlu2 %9559 }
 0xb06   : > { %19107 = vst [vmem:[#allocation171_spill] sm:$0xff] %v17624_v9  ;;  %v9627_v26 = vsel %vm3877_vm0, %v17624_v9, -inf }
 0xb08   : > { %10105 = vadd.xlane.f32.xlu1 %v10104_v31  ;;  %9625 = vmax.xlane.f32.xlu0 %v9624_v13  ;;  %v11671_v31 = vpop.eup %11670  ;;  %v7229_v13 = vpop.f32.mrf.mxu3 }
 0xb09   : > { %v10110_v60 = vsel %vm3877_vm0, %v11671_v31, 0.0  ;;  %v11673_v22 = vpop.eup %11672  ;;  %v9706_v31 = vsub.f32 %v17158_v44, %v17543_v52 }
 0xb0a   : > { %10108 = vadd.xlane.f32.xlu2 %v10107_v59  ;;  %v8057_v59 = vadd.f32 %v7696_v28, %v7229_v13  ;;  %v11675_v54 = vpop.eup %11674  ;;  %v9707_v13 = vsub.f32 %v17163_v20, %v17548_v46  ;;  %v10113_v55 = vsel %vm3877_vm0, %v11673_v22, 0.0 }
 0xb0b   : > { %v17621_v11 = vpop.xlane.xlu1 %10042  ;;  %v10116_v36 = vsel %vm3877_vm0, %v11675_v54, 0.0  ;;  %v11677_v22 = vpop.eup %11676 }
 0xb0c   : > { %v8776_v28 = vsel %vm303_vm6, %v8633_v53, %v8057_v59  ;;  %v8775_v4 = vsel %vm303_vm6, %v8057_v59, %v8633_v53  ;;  %v9866_v53 = vmul.f32 1.442695, %v9706_v31  ;;  %v10119_v54 = vsel %vm3877_vm0, %v11677_v22, 0.0 }
 0xb0d   : > { %v17626_v3 = vpop.xlane.xlu2 %10045  ;;  %v8777_v41 = vrot.slane %v8776_v28, 4 }
 0xb0e   : > { %11678 = vpow2.f32 %v9866_v53 }
 0xb0f   : > { %v9257_v59 = vperm.slane %v8777_v41, %v12108_v32 }
 0xb10   : > { %9628 = vmax.xlane.f32.xlu1 %v9627_v26  ;;  %10111 = vadd.xlane.f32.xlu0 %v10110_v60  ;;  %v9633_v26 = vsel %vm3877_vm0, %v17643_v7, -inf  ;;  %v9253_v60 = vperm.slane %v8775_v4, %v12108_v32  ;;  %v9709_v4 = vsub.f32 %v17212_v51, %v17597_v63  ;;  %v9710_v32 = vsub.f32 %v17217_v30, %v17602_v27 }
 0xb11   : > { %v17666_v21 = vadd.f32 %v17288_v39, %v9257_v59 }
 0xb12   : > { %9631 = vmax.xlane.f32.xlu2 %v9630_v33  ;;  %v9868_v33 = vmul.f32 1.442695, %v9707_v13  ;;  %v17661_v37 = vadd.f32 %v17288_v39, %v9253_v60  ;;  %v9872_v39 = vmul.f32 1.442695, %v9709_v4  ;;  %v9874_v13 = vmul.f32 1.442695, %v9710_v32 }
 0xb13   : > { %v17640_v23 = vpop.xlane.xlu1 %9565  ;;  %19112 = vst [vmem:[#allocation176_spill] sm:$0xff] %v17666_v21  ;;  %v9639_v31 = vsel %vm3877_vm0, %v17666_v21, -inf }
 0xb14   : > { %19111 = vst [vmem:[#allocation175_spill] sm:$0xff] %v17661_v37  ;;  %11680 = vpow2.f32 %v9868_v33  ;;  %v9636_v41 = vsel %vm3877_vm0, %v17661_v37, -inf  ;;  %v9712_v59 = vsub.f32 %v17261_v47, %v17640_v23 }
 0xb15   : > { %v17645_v35 = vpop.xlane.xlu2 %9568  ;;  %11682 = vpow2.f32 %v9872_v39 }
 0xb16   : > { %19110 = vst [vmem:[#allocation174_spill] sm:$0xff] %v17645_v35  ;;  %11684 = vpow2.f32 %v9874_v13  ;;  %v9713_v53 = vsub.f32 %v17266_v40, %v17645_v35  ;;  %v9878_v4 = vmul.f32 1.442695, %v9712_v59 }
 0xb18   : > { %10114 = vadd.xlane.f32.xlu1 %v10113_v55  ;;  %9634 = vmax.xlane.f32.xlu0 %v9633_v26  ;;  %v11679_v26 = vpop.eup %11678  ;;  %v9880_v32 = vmul.f32 1.442695, %v9713_v53  ;;  %11686 = vpow2.f32 %v9878_v4 }
 0xb19   : > { %v10122_v33 = vsel %vm3877_vm0, %v11679_v26, 0.0 }
 0xb1a   : > { %10117 = vadd.xlane.f32.xlu2 %v10116_v36  ;;  %v11681_v36 = vpop.eup %11680  ;;  %11688 = vpow2.f32 %v9880_v32 }
 0xb1b   : > { %v17658_v28 = vpop.xlane.xlu1 %10051  ;;  %v10125_v22 = vsel %vm3877_vm0, %v11681_v36, 0.0  ;;  %11690 = vlog2.f32 %v16946_v38 }
 0xb1d   : > { %v17663_v49 = vpop.xlane.xlu2 %10054 }
 0xb20   : > { %9637 = vmax.xlane.f32.xlu1 %v9636_v41  ;;  %10120 = vadd.xlane.f32.xlu0 %v10119_v54  ;;  %v11683_v54 = vpop.eup %11682 }
 0xb21   : > { %v11685_v39 = vpop.eup %11684 }
 0xb22   : > { %9640 = vmax.xlane.f32.xlu2 %v9639_v31  ;;  %v10134_v36 = vsel %vm3877_vm0, %v11685_v39, 0.0  ;;  %v11687_v10 = vpop.eup %11686 }
 0xb23   : > { %v17677_v55 = vpop.xlane.xlu1 %9574  ;;  %v11689_v4 = vpop.eup %11688  ;;  %v10140_v39 = vsel %vm3877_vm0, %v11687_v10, 0.0 }
 0xb24   : > { %19113 = vst [vmem:[#allocation177_spill] sm:$0xff] %v17677_v55  ;;  %v9715_v13 = vsub.f32 %v17317_v42, %v17677_v55  ;;  %v19122_v42 = vld [vmem:[#allocation100_spill] sm:$0xff] }
 0xb25   : > { %v17679_v60 = vpop.xlane.xlu2 %9577 }
 0xb26   : > { %19114 = vst [vmem:[#allocation178_spill] sm:$0xff] %v17679_v60  ;;  %v9716_v26 = vsub.f32 %v17322_v19, %v17679_v60  ;;  %v9884_v59 = vmul.f32 1.442695, %v9715_v13  ;;  %v10143_v13 = vsel %vm3877_vm0, %v11689_v4, 0.0 }
 0xb28   : > { %10123 = vadd.xlane.f32.xlu1 %v10122_v33  ;;  %v10131_v33 = vsel %vm3877_vm0, %v11683_v54, 0.0  ;;  %v9886_v53 = vmul.f32 1.442695, %v9716_v26  ;;  %11692 = vpow2.f32 %v9884_v59  ;;  %v19117_v59 = vld [vmem:[#allocation94_spill] sm:$0xff] }
 0xb2a   : > { %10126 = vadd.xlane.f32.xlu2 %v10125_v22  ;;  %11694 = vpow2.f32 %v9886_v53 }
 0xb2b   : > { %v17687_v41 = vpop.xlane.xlu1 %10060  ;;  %11696 = vlog2.f32 %v19117_v59  ;;  %v19119_v59 = vld [vmem:[#allocation97_spill] sm:$0xff] }
 0xb2d   : > { %v17689_v31 = vpop.xlane.xlu2 %10063 }
 0xb30   : > { %10132 = vadd.xlane.f32.xlu1 %v10131_v33  ;;  %v11691_v33 = vpop.eup %11690 }
 0xb31   : > { %v11693_v19 = vpop.eup %11692  ;;  %v10219_v53 = vmul.f32 0.6931472, %v11691_v33 }
 0xb32   : > { %10135 = vadd.xlane.f32.xlu2 %v10134_v36  ;;  %v11695_v38 = vpop.eup %11694 }
 0xb33   : > { %v17697_v22 = vpop.xlane.xlu1 %9583  ;;  %v10152_v10 = vsel %vm3877_vm0, %v11695_v38, 0.0  ;;  %v11697_v4 = vpop.eup %11696 }
 0xb34   : > { %19115 = vst [vmem:[#allocation179_spill] sm:$0xff] %v17697_v22  ;;  %v9718_v32 = vsub.f32 %v17368_v15, %v17697_v22 }
 0xb35   : > { %v17699_v40 = vpop.xlane.xlu2 %9586 }
 0xb36   : > { %19116 = vst [vmem:[#allocation180_spill] sm:$0xff] %v17699_v40  ;;  %v9719_v54 = vsub.f32 %v17373_v1, %v17699_v40  ;;  %v9890_v26 = vmul.f32 1.442695, %v9718_v32  ;;  %v10149_v1 = vsel %vm3877_vm0, %v11693_v19, 0.0 }
 0xb38   : > { %10141 = vadd.xlane.f32.xlu1 %v10140_v39  ;;  %v9892_v36 = vmul.f32 1.442695, %v9719_v54  ;;  %11698 = vpow2.f32 %v9890_v26  ;;  %v19118_v39 = vld [vmem:[#allocation24_spill] sm:$0xff]  ;;  %v10221_v26 = vmul.f32 0.6931472, %v11697_v4 }
 0xb39   : > { %v10410_v32 = vadd.f32 %v10219_v53, %v19118_v39  ;;  %v19121_v53 = vld [vmem:[#allocation64_spill] sm:$0xff] }
 0xb3a   : > { %10144 = vadd.xlane.f32.xlu2 %v10143_v13  ;;  %11700 = vpow2.f32 %v9892_v36 }
 0xb3b   : > { %11702 = vlog2.f32 %v19119_v59 }
 0xb3d   : > { %v17708_v60 = vpop.xlane.xlu2 %10072 }
 0xb3e   : > { %v11699_v13 = vpop.eup %11698 }
 0xb3f   : > { %v10158_v19 = vsel %vm3877_vm0, %v11699_v13, 0.0 }
 0xb40   : > { %10150 = vadd.xlane.f32.xlu1 %v10149_v1  ;;  %v11701_v40 = vpop.eup %11700  ;;  %v19120_v1 = vld [vmem:[#allocation46_spill] sm:$0xff] }
 0xb41   : > { %v10506_v36 = vsub.f32 %v19120_v1, %v10410_v32  ;;  %v10161_v38 = vsel %vm3877_vm0, %v11701_v40, 0.0  ;;  %v11703_v39 = vpop.eup %11702  ;;  %v19124_v32 = vld [vmem:[#allocation26_spill] sm:$0xff]  ;;  %v19126_v1 = vld [vmem:[#allocation103_spill] sm:$0xff] }
 0xb42   : > { %10153 = vadd.xlane.f32.xlu2 %v10152_v10  ;;  %v10411_v10 = vadd.f32 %v10221_v26, %v19121_v53  ;;  %v10223_v4 = vmul.f32 0.6931472, %v11703_v39 }
 0xb44   : > { %v10412_v40 = vadd.f32 %v10223_v4, %v19124_v32  ;;  %v19129_v4 = vld [vmem:[#allocation104_spill] sm:$0xff]  ;;  %v19130_v32 = vld [vmem:[#allocation49_spill] sm:$0xff] }
 0xb45   : > { %v17714_v54 = vpop.xlane.xlu2 %9595 }
 0xb46   : > { %v9722_v15 = vsub.f32 %v17425_v5, %v17714_v54 }
 0xb48   : > { %v9898_v33 = vmul.f32 1.442695, %v9722_v15  ;;  %10159 = vadd.xlane.f32.xlu1 %v10158_v19  ;;  %v19123_v15 = vld [vmem:[#allocation42_spill] sm:$0xff] }
 0xb49   : > { %10602 = vxpose.xlu0.b32.start [1/16] (narrow) %v10506_v36, 16  ;;  %v10507_v55 = vsub.f32 %v19123_v15, %v10411_v10  ;;  %v19128_v10 = vld [vmem:[#allocation14_spill] sm:$0xff] }
 0xb4a   : > { %11704 = vpow2.f32 %v9898_v33  ;;  %10162 = vadd.xlane.f32.xlu2 %v10161_v38  ;;  %v19127_v38 = vld [vmem:[#allocation47_spill] sm:$0xff] }
 0xb4b   : > { %11706 = vlog2.f32 %v19122_v42  ;;  %v10508_v53 = vsub.f32 %v19127_v38, %v10412_v40 }
 0xb4c   : > { %11708 = vlog2.f32 %v19126_v1 }
 0xb4d   : > { %v17723_v22 = vpop.xlane.xlu2 %10081 }
 0xb50   : > { %v11705_v59 = vpop.eup %11704 }
 0xb51   : > { %v10170_v13 = vsel %vm3877_vm0, %v11705_v59, 0.0  ;;  %10603 = vxpose.xlu0.b32.cont [2/16] (narrow) %v10507_v55, 16  ;;  %v11707_v33 = vpop.eup %11706 }
 0xb52   : > { %10171 = vadd.xlane.f32.xlu2 %v10170_v13  ;;  %v10225_v36 = vmul.f32 0.6931472, %v11707_v33  ;;  %v11709_v59 = vpop.eup %11708  ;;  %v19131_v33 = vld [vmem:[#allocation81_spill] sm:$0xff] }
 0xb53   : > { %v10227_v13 = vmul.f32 0.6931472, %v11709_v59 }
 0xb54   : > { %v10413_v39 = vadd.f32 %v10225_v36, %v19128_v10  ;;  %v19134_v10 = vld [vmem:[#allocation15_spill] sm:$0xff] }
 0xb55   : > { %v17729_v19 = vpop.xlane.xlu2 %9604 }
 0xb56   : > { %19125 = vst [vmem:[#allocation94_spill] sm:$0xff] %v17729_v19  ;;  %v9725_v26 = vsub.f32 %v17476_v16, %v17729_v19  ;;  %v10509_v35 = vsub.f32 %v19130_v32, %v10413_v39  ;;  %v19135_v39 = vld [vmem:[#allocation66_spill] sm:$0xff] }
 0xb58   : > { %v9904_v42 = vmul.f32 1.442695, %v9725_v26  ;;  %v10414_v26 = vadd.f32 %v10227_v13, %v19131_v33  ;;  %v19137_v33 = vld [vmem:[#allocation45_spill] sm:$0xff] }
 0xb59   : > { %10604 = vxpose.xlu0.b32.cont [3/16] (narrow) %v10508_v53, 16 }
 0xb5a   : > { %11710 = vpow2.f32 %v9904_v42  ;;  %v19133_v42 = vld [vmem:[#allocation109_spill] sm:$0xff]  ;;  %v10510_v59 = vsub.f32 %v19134_v10, %v10414_v26  ;;  %v19138_v26 = vld [vmem:[#allocation10_spill] sm:$0xff] }
 0xb5b   : > { %11712 = vlog2.f32 %v19129_v4 }
 0xb5c   : > { %11714 = vlog2.f32 %v19133_v42 }
 0xb5d   : > { %v17736_v55 = vpop.xlane.xlu2 %10090 }
 0xb60   : > { %v11711_v15 = vpop.eup %11710 }
 0xb61   : > { %v10179_v16 = vsel %vm3877_vm0, %v11711_v15, 0.0  ;;  %10605 = vxpose.xlu0.b32.cont [4/16] (narrow) %v10509_v35, 16  ;;  %v11713_v40 = vpop.eup %11712  ;;  %v19136_v15 = vld [vmem:[#allocation111_spill] sm:$0xff] }
 0xb62   : > { %10180 = vadd.xlane.f32.xlu2 %v10179_v16  ;;  %v10229_v38 = vmul.f32 0.6931472, %v11713_v40  ;;  %v11715_v16 = vpop.eup %11714 }
 0xb63   : > { %v10231_v32 = vmul.f32 0.6931472, %v11715_v16 }
 0xb64   : > { %v10415_v4 = vadd.f32 %v10229_v38, %v19135_v39 }
 0xb65   : > { %v17742_v1 = vpop.xlane.xlu2 %9613 }
 0xb66   : > { %19132 = vst [vmem:[#allocation24_spill] sm:$0xff] %v17742_v1  ;;  %v9728_v36 = vsub.f32 %v17528_v43, %v17742_v1  ;;  %v10511_v43 = vsub.f32 %v19137_v33, %v10415_v4  ;;  %v19141_v4 = vld [vmem:[#allocation48_spill] sm:$0xff]  ;;  %v19143_v33 = vld [vmem:[#allocation13_spill] sm:$0xff] }
 0xb68   : > { %v9910_v53 = vmul.f32 1.442695, %v9728_v36  ;;  %v10416_v36 = vadd.f32 %v10231_v32, %v19138_v26 }
 0xb69   : > { %10606 = vxpose.xlu0.b32.cont [5/16] (narrow) %v10510_v59, 16  ;;  %v19140_v59 = vld [vmem:[#allocation114_spill] sm:$0xff] }
 0xb6a   : > { %11716 = vpow2.f32 %v9910_v53  ;;  %v10512_v16 = vsub.f32 %v19141_v4, %v10416_v36 }
 0xb6b   : > { %11718 = vlog2.f32 %v19136_v15 }
 0xb6c   : > { %11720 = vlog2.f32 %v17258_v25 }
 0xb6d   : > { %v17749_v35 = vpop.xlane.xlu2 %10099  ;;  %11722 = vlog2.f32 %v19140_v59 }
 0xb6e   : > { %11724 = vlog2.f32 %v17263_v18  ;;  %v19145_v18 = vld [vmem:[#allocation9_spill] sm:$0xff] }
 0xb70   : > { %v11717_v13 = vpop.eup %11716 }
 0xb71   : > { %v10188_v40 = vsel %vm3877_vm0, %v11717_v13, 0.0  ;;  %10607 = vxpose.xlu0.b32.cont [6/16] (narrow) %v10511_v43, 16  ;;  %v11719_v42 = vpop.eup %11718  ;;  %v19142_v43 = vld [vmem:[#allocation68_spill] sm:$0xff] }
 0xb72   : > { %10189 = vadd.xlane.f32.xlu2 %v10188_v40  ;;  %v11721_v38 = vpop.eup %11720  ;;  %v10233_v39 = vmul.f32 0.6931472, %v11719_v42 }
 0xb73   : > { %v10251_v15 = vmul.f32 0.6931472, %v11721_v38  ;;  %v11723_v32 = vpop.eup %11722 }
 0xb74   : > { %v10417_v13 = vadd.f32 %v10233_v39, %v19142_v43  ;;  %v11725_v1 = vpop.eup %11724  ;;  %v10235_v42 = vmul.f32 0.6931472, %v11723_v32  ;;  %v19147_v39 = vld [vmem:[#allocation85_spill] sm:$0xff]  ;;  %v19148_v43 = vld [vmem:[#allocation28_spill] sm:$0xff] }
 0xb75   : > { %v17756_v53 = vpop.xlane.xlu2 %9622  ;;  %v10426_v40 = vadd.f32 %v10251_v15, %v19143_v33  ;;  %v10253_v36 = vmul.f32 0.6931472, %v11725_v1 }
 0xb76   : > { %19139 = vst [vmem:[#allocation97_spill] sm:$0xff] %v17756_v53  ;;  %v9731_v10 = vsub.f32 %v17577_v6, %v17756_v53 }
 0xb77   : > { %v10427_v33 = vadd.f32 %v10253_v36, %v19148_v43  ;;  %v19153_v36 = vld [vmem:[#allocation30_spill] sm:$0xff] }
 0xb78   : > { %v9916_v25 = vmul.f32 1.442695, %v9731_v10  ;;  %v10513_v10 = vsub.f32 %v19145_v18, %v10417_v13  ;;  %v19150_v13 = vld [vmem:[#allocation119_spill] sm:$0xff] }
 0xb79   : > { %10608 = vxpose.xlu0.b32.cont [7/16] (narrow) %v10512_v16, 16  ;;  %v10418_v16 = vadd.f32 %v10235_v42, %v19147_v39  ;;  %v19154_v39 = vld [vmem:[#allocation40_spill] sm:$0xff] }
 0xb7a   : > { %11726 = vpow2.f32 %v9916_v25  ;;  %v19146_v25 = vld [vmem:[#allocation57_spill] sm:$0xff] }
 0xb7b   : > { %11728 = vlog2.f32 %v17138_v24  ;;  %v10522_v4 = vsub.f32 %v19146_v25, %v10426_v40 }
 0xb7c   : > { %11730 = vlog2.f32 %v17333_v34 }
 0xb7d   : > { %v17765_v26 = vpop.xlane.xlu2 %10108  ;;  %11732 = vlog2.f32 %v19150_v13 }
 0xb7e   : > { %19144 = vst [vmem:[#allocation46_spill] sm:$0xff] %v17765_v26  ;;  %11734 = vlog2.f32 %v17314_v0  ;;  %v19243_v26 = vld [vmem:[#allocation75_spill] sm:$0xff] }
 0xb80   : > { %v11727_v59 = vpop.eup %11726 }
 0xb81   : > { %v10197_v38 = vsel %vm3877_vm0, %v11727_v59, 0.0  ;;  %10609 = vxpose.xlu0.b32.cont [8/16] (narrow) %v10513_v10, 16  ;;  %v11729_v15 = vpop.eup %11728  ;;  %v19151_v59 = vld [vmem:[#allocation52_spill] sm:$0xff] }
 0xb82   : > { %10198 = vadd.xlane.f32.xlu2 %v10197_v38  ;;  %10634 = vxpose.xlu1.b32.start [1/16] (narrow) %v10522_v4, 16  ;;  %v11731_v32 = vpop.eup %11730  ;;  %v10237_v1 = vmul.f32 0.6931472, %v11729_v15  ;;  %v10514_v18 = vsub.f32 %v19151_v59, %v10418_v16  ;;  %v19152_v38 = vld [vmem:[#allocation59_spill] sm:$0xff]  ;;  %v19156_v15 = vld [vmem:[#allocation120_spill] sm:$0xff]  ;;  %v19158_v16 = vld [vmem:[#allocation50_spill] sm:$0xff] }
 0xb83   : > { %v10255_v10 = vmul.f32 0.6931472, %v11731_v32  ;;  %v10523_v42 = vsub.f32 %v19152_v38, %v10427_v33  ;;  %v11733_v4 = vpop.eup %11732  ;;  %v19159_v59 = vld [vmem:[#allocation58_spill] sm:$0xff] }
 0xb84   : > { %v10419_v25 = vadd.f32 %v10237_v1, %v19153_v36  ;;  %v11735_v13 = vpop.eup %11734  ;;  %v17791_v1 = vpop.xlane.xlu0 %10030  ;;  %v19161_v36 = vld [vmem:[#allocation37_spill] sm:$0xff] }
 0xb85   : > { %v17774_v24 = vpop.xlane.xlu2 %9631  ;;  %v10428_v43 = vadd.f32 %v10255_v10, %v19154_v39  ;;  %v10257_v33 = vmul.f32 0.6931472, %v11735_v13  ;;  %v19160_v10 = vld [vmem:[#allocation69_spill] sm:$0xff] }
 0xb86   : > { %19149 = vst [vmem:[#allocation64_spill] sm:$0xff] %v17774_v24  ;;  %v9734_v34 = vsub.f32 %v17629_v17, %v17774_v24  ;;  %v19157_v24 = vld [vmem:[#allocation139_spill] sm:$0xff]  ;;  %v10515_v32 = vsub.f32 %v19158_v16, %v10419_v25  ;;  %v19163_v13 = vld [vmem:[#allocation125_spill] sm:$0xff] }
 0xb87   : > { %v10429_v39 = vadd.f32 %v10257_v33, %v19161_v36  ;;  %v19166_v33 = vld [vmem:[#allocation70_spill] sm:$0xff] }
 0xb88   : > { %v9922_v40 = vmul.f32 1.442695, %v9734_v34  ;;  %v10239_v34 = vmul.f32 0.6931472, %v11733_v4 }
 0xb89   : > { %10610 = vxpose.xlu0.b32.cont [9/16] (narrow) %v10514_v18, 16  ;;  %v10524_v18 = vsub.f32 %v19159_v59, %v10428_v43 }
 0xb8a   : > { %11736 = vpow2.f32 %v9922_v40  ;;  %10635 = vxpose.xlu1.b32.cont [2/16] (narrow) %v10523_v42, 16  ;;  %v10420_v38 = vadd.f32 %v10239_v34, %v19160_v10  ;;  %v19167_v10 = vld [vmem:[#allocation6_spill] sm:$0xff] }
 0xb8b   : > { %11738 = vlog2.f32 %v19156_v15 }
 0xb8c   : > { %11740 = vlog2.f32 %v19157_v24 }
 0xb8d   : > { %v17784_v17 = vpop.xlane.xlu2 %10117  ;;  %11742 = vlog2.f32 %v19163_v13 }
 0xb8e   : > { %19155 = vst [vmem:[#allocation100_spill] sm:$0xff] %v17784_v17  ;;  %11744 = vlog2.f32 %v17398_v62 }
 0xb90   : > { %v11737_v0 = vpop.eup %11736 }
 0xb91   : > { %v10206_v40 = vsel %vm3877_vm0, %v11737_v0, 0.0  ;;  %10611 = vxpose.xlu0.b32.cont [10/16] (narrow) %v10515_v32, 16  ;;  %v11739_v42 = vpop.eup %11738  ;;  %v19164_v0 = vld [vmem:[#allocation51_spill] sm:$0xff] }
 0xb92   : > { %10207 = vadd.xlane.f32.xlu2 %v10206_v40  ;;  %10636 = vxpose.xlu1.b32.cont [3/16] (narrow) %v10524_v18, 16  ;;  %v11741_v24 = vpop.eup %11740  ;;  %v10241_v15 = vmul.f32 0.6931472, %v11739_v42  ;;  %v10516_v16 = vsub.f32 %v19164_v0, %v10420_v38  ;;  %v19165_v40 = vld [vmem:[#allocation60_spill] sm:$0xff]  ;;  %v19168_v42 = vld [vmem:[#allocation126_spill] sm:$0xff]  ;;  %v19169_v38 = vld [vmem:[#allocation53_spill] sm:$0xff] }
 0xb93   : > { %v10259_v32 = vmul.f32 0.6931472, %v11741_v24  ;;  %v10525_v34 = vsub.f32 %v19165_v40, %v10429_v39  ;;  %v11743_v18 = vpop.eup %11742  ;;  %v19170_v0 = vld [vmem:[#allocation20_spill] sm:$0xff] }
 0xb94   : > { %v10421_v59 = vadd.f32 %v10241_v15, %v19166_v33  ;;  %v11745_v13 = vpop.eup %11744  ;;  %v19171_v15 = vld [vmem:[#allocation21_spill] sm:$0xff] }
 0xb95   : > { %v17795_v4 = vpop.xlane.xlu2 %9640  ;;  %v10430_v36 = vadd.f32 %v10259_v32, %v19167_v10  ;;  %v10261_v39 = vmul.f32 0.6931472, %v11745_v13  ;;  %v19175_v13 = vld [vmem:[#allocation55_spill] sm:$0xff] }
 0xb96   : > { %19162 = vst [vmem:[#allocation42_spill] sm:$0xff] %v17795_v4  ;;  %v9737_v25 = vsub.f32 %v17666_v21, %v17795_v4  ;;  %v17805_v21 = vpop.xlane.xlu0 %9553  ;;  %v10517_v24 = vsub.f32 %v19169_v38, %v10421_v59  ;;  %v19174_v59 = vld [vmem:[#allocation146_spill] sm:$0xff] }
 0xb98   : > { %v9928_v43 = vmul.f32 1.442695, %v9737_v25  ;;  %v10243_v25 = vmul.f32 0.6931472, %v11743_v18 }
 0xb99   : > { %10612 = vxpose.xlu0.b32.cont [11/16] (narrow) %v10516_v16, 16  ;;  %v10526_v16 = vsub.f32 %v19170_v0, %v10430_v36  ;;  %v19176_v36 = vld [vmem:[#allocation87_spill] sm:$0xff] }
 0xb9a   : > { %11746 = vpow2.f32 %v9928_v43  ;;  %10637 = vxpose.xlu1.b32.cont [4/16] (narrow) %v10525_v34, 16  ;;  %v10422_v32 = vadd.f32 %v10243_v25, %v19171_v15  ;;  %v19172_v34 = vld [vmem:[#allocation25_spill] sm:$0xff] }
 0xb9b   : > { %11748 = vlog2.f32 %v19168_v42  ;;  %v10431_v33 = vadd.f32 %v10261_v39, %v19172_v34  ;;  %v19173_v42 = vld [vmem:[#allocation127_spill] sm:$0xff]  ;;  %v19179_v34 = vld [vmem:[#allocation133_spill] sm:$0xff] }
 0xb9c   : > { %11750 = vlog2.f32 %v17365_v14 }
 0xb9d   : > { %11752 = vlog2.f32 %v19173_v42 }
 0xb9e   : > { %v17815_v18 = vpop.xlane.xlu0 %10039  ;;  %11754 = vlog2.f32 %v19174_v59 }
 0xb9f   : > { %11756 = vlog2.f32 %v19179_v34  ;;  %v19186_v34 = vld [vmem:[#allocation83_spill] sm:$0xff] }
 0xba0   : > { %v11747_v62 = vpop.eup %11746  ;;  %11758 = vlog2.f32 %v17464_v29  ;;  %v19184_v29 = vld [vmem:[#allocation54_spill] sm:$0xff] }
 0xba1   : > { %v10215_v43 = vsel %vm3877_vm0, %v11747_v62, 0.0  ;;  %10613 = vxpose.xlu0.b32.cont [12/16] (narrow) %v10517_v24, 16  ;;  %v11749_v40 = vpop.eup %11748  ;;  %v10518_v62 = vsub.f32 %v19175_v13, %v10422_v32  ;;  %v19177_v24 = vld [vmem:[#allocation38_spill] sm:$0xff]  ;;  %11760 = vlog2.f32 %v17417_v50 }
 0xba2   : > { %10216 = vadd.xlane.f32.xlu2 %v10215_v43  ;;  %10638 = vxpose.xlu1.b32.cont [5/16] (narrow) %v10526_v16, 16  ;;  %v11751_v10 = vpop.eup %11750  ;;  %v10245_v14 = vmul.f32 0.6931472, %v11749_v40  ;;  %v10527_v43 = vsub.f32 %v19176_v36, %v10431_v33  ;;  %v19178_v16 = vld [vmem:[#allocation8_spill] sm:$0xff]  ;;  %v19182_v13 = vld [vmem:[#allocation34_spill] sm:$0xff]  ;;  %v19183_v36 = vld [vmem:[#allocation7_spill] sm:$0xff]  ;;  %11762 = vlog2.f32 %v17525_v57 }
 0xba3   : > { %v10263_v38 = vmul.f32 0.6931472, %v11751_v10  ;;  %v11753_v0 = vpop.eup %11752  ;;  %v19180_v40 = vld [vmem:[#allocation56_spill] sm:$0xff]  ;;  %v19181_v10 = vld [vmem:[#allocation61_spill] sm:$0xff] }
 0xba4   : > { %v10423_v25 = vadd.f32 %v10245_v14, %v19177_v24  ;;  %v11755_v15 = vpop.eup %11754  ;;  %v10247_v42 = vmul.f32 0.6931472, %v11753_v0  ;;  %v19189_v57 = vld [vmem:[#allocation17_spill] sm:$0xff] }
 0xba5   : > { %v10432_v39 = vadd.f32 %v10263_v38, %v19178_v16  ;;  %v10265_v4 = vmul.f32 0.6931472, %v11755_v15  ;;  %v19185_v16 = vld [vmem:[#allocation62_spill] sm:$0xff] }
 0xba6   : > { %v10519_v59 = vsub.f32 %v19180_v40, %v10423_v25  ;;  %v17825_v32 = vpop.xlane.xlu0 %9562  ;;  %v10424_v14 = vadd.f32 %v10247_v42, %v19182_v13 }
 0xba7   : > { %v10528_v33 = vsub.f32 %v19181_v10, %v10432_v39  ;;  %v10433_v38 = vadd.f32 %v10265_v4, %v19183_v36  ;;  %v17838_v10 = vpop.xlane.xlu1 %10069  ;;  %v19190_v36 = vld [vmem:[#allocation90_spill] sm:$0xff] }
 0xba8   : > { %v10520_v25 = vsub.f32 %v19184_v29, %v10424_v14 }
 0xba9   : > { %10614 = vxpose.xlu0.b32.cont [13/16] (narrow) %v10518_v62, 16  ;;  %v11757_v62 = vpop.eup %11756  ;;  %v10529_v15 = vsub.f32 %v19185_v16, %v10433_v38 }
 0xbaa   : > { %10639 = vxpose.xlu1.b32.cont [6/16] (narrow) %v10527_v43, 16  ;;  %v11759_v43 = vpop.eup %11758  ;;  %v10249_v24 = vmul.f32 0.6931472, %v11757_v62 }
 0xbab   : > { %v10267_v0 = vmul.f32 0.6931472, %v11759_v43  ;;  %v11761_v40 = vpop.eup %11760 }
 0xbac   : > { %v10425_v42 = vadd.f32 %v10249_v24, %v19186_v34  ;;  %v11763_v50 = vpop.eup %11762  ;;  %v10269_v14 = vmul.f32 0.6931472, %v11761_v40  ;;  %v19191_v24 = vld [vmem:[#allocation43_spill] sm:$0xff] }
 0xbad   : > { %v10283_v62 = vmul.f32 0.6931472, %v11763_v50  ;;  %v19193_v40 = vld [vmem:[#allocation19_spill] sm:$0xff] }
 0xbae   : > { %v17834_v39 = vpop.xlane.xlu0 %10048  ;;  %v10521_v13 = vsub.f32 %v19189_v57, %v10425_v42  ;;  %v10435_v29 = vadd.f32 %v10269_v14, %v19191_v24  ;;  %v19195_v57 = vld [vmem:[#allocation78_spill] sm:$0xff]  ;;  %v19196_v14 = vld [vmem:[#allocation96_spill] sm:$0xff]  ;;  %v19197_v24 = vld [vmem:[#allocation27_spill] sm:$0xff] }
 0xbaf   : > { %v17849_v34 = vpop.xlane.xlu1 %9592 }
 0xbb1   : > { %10615 = vxpose.xlu0.b32.cont [14/16] (narrow) %v10519_v59, 16  ;;  %v19187_v59 = vld [vmem:[#allocation39_spill] sm:$0xff] }
 0xbb2   : > { %10640 = vxpose.xlu1.b32.cont [7/16] (narrow) %v10528_v33, 16  ;;  %v10434_v4 = vadd.f32 %v10267_v0, %v19187_v59  ;;  %v19188_v33 = vld [vmem:[#allocation152_spill] sm:$0xff] }
 0xbb3   : > { %11764 = vlog2.f32 %v19188_v33 }
 0xbb4   : > { %11766 = vlog2.f32 %v17791_v1  ;;  %v10530_v38 = vsub.f32 %v19190_v36, %v10434_v4  ;;  %v19194_v4 = vld [vmem:[#allocation41_spill] sm:$0xff] }
 0xbb5   : > { %11768 = vlog2.f32 %v17530_v61  ;;  %v10531_v50 = vsub.f32 %v19194_v4, %v10435_v29  ;;  %v19201_v4 = vld [vmem:[#allocation158_spill] sm:$0xff] }
 0xbb6   : > { %v17846_v16 = vpop.xlane.xlu0 %9571  ;;  %11770 = vlog2.f32 %v17569_v45 }
 0xbb7   : > { %11772 = vlog2.f32 %v17468_v48 }
 0xbb8   : > { %11774 = vlog2.f32 %v17574_v8 }
 0xbb9   : > { %10616 = vxpose.xlu0.b32.cont [15/16] (narrow) %v10520_v25, 16  ;;  %v11765_v43 = vpop.eup %11764  ;;  %v19192_v25 = vld [vmem:[#allocation93_spill] sm:$0xff]  ;;  %11776 = vlog2.f32 %v19201_v4 }
 0xbba   : > { %10641 = vxpose.xlu1.b32.cont [8/16] (narrow) %v10529_v15, 16  ;;  %v10442_v0 = vadd.f32 %v10283_v62, %v19192_v25  ;;  %v11767_v15 = vpop.eup %11766  ;;  %v10271_v1 = vmul.f32 0.6931472, %v11765_v43  ;;  %v17860_v43 = vpop.xlane.xlu1 %10078  ;;  %v19198_v25 = vld [vmem:[#allocation84_spill] sm:$0xff]  ;;  %11778 = vlog2.f32 %v17815_v18 }
 0xbbb   : > { %v10285_v42 = vmul.f32 0.6931472, %v11767_v15  ;;  %v11769_v33 = vpop.eup %11768  ;;  %11780 = vlog2.f32 %v17590_v2 }
 0xbbc   : > { %v10538_v59 = vsub.f32 %v19193_v40, %v10442_v0  ;;  %v11771_v36 = vpop.eup %11770  ;;  %v10273_v45 = vmul.f32 0.6931472, %v11769_v33  ;;  %v19200_v40 = vld [vmem:[#allocation5_spill] sm:$0xff]  ;;  %11782 = vlog2.f32 %v17621_v11 }
 0xbbd   : > { %v10443_v62 = vadd.f32 %v10285_v42, %v19196_v14  ;;  %v11773_v15 = vpop.eup %11772 }
 0xbbe   : > { %v17857_v61 = vpop.xlane.xlu0 %10057  ;;  %v11775_v48 = vpop.eup %11774  ;;  %v10275_v8 = vmul.f32 0.6931472, %v11773_v15 }
 0xbbf   : > { %v10539_v29 = vsub.f32 %v19197_v24, %v10443_v62  ;;  %v19203_v62 = vld [vmem:[#allocation63_spill] sm:$0xff] }
 0xbc0   : > { %v19204_v24 = vld [vmem:[#allocation79_spill] sm:$0xff] }
 0xbc1   : > { %10617 = vxpose.xlu0.b32.end [16/16] (narrow) %v10521_v13, 16  ;;  %v10436_v13 = vadd.f32 %v10271_v1, %v19195_v57  ;;  %v19199_v1 = vld [vmem:[#allocation76_spill] sm:$0xff]  ;;  %v19202_v57 = vld [vmem:[#allocation67_spill] sm:$0xff] }
 0xbc2   : > { %10642 = vxpose.xlu1.b32.cont [9/16] (narrow) %v10530_v38, 16  ;;  %v10287_v38 = vmul.f32 0.6931472, %v11771_v36  ;;  %v10437_v42 = vadd.f32 %v10273_v45, %v19199_v1  ;;  %v17872_v36 = vpop.xlane.xlu1 %9601  ;;  %v11777_v45 = vpop.eup %11776  ;;  %v19206_v1 = vld [vmem:[#allocation32_spill] sm:$0xff] }
 0xbc3   : > { %v10532_v0 = vsub.f32 %v19198_v25, %v10436_v13  ;;  %v10277_v18 = vmul.f32 0.6931472, %v11777_v45 }
 0xbc4   : > { %v10533_v13 = vsub.f32 %v19203_v62, %v10437_v42 }
 0xbc6   : > { %v17868_v33 = vpop.xlane.xlu0 %9580 }
 0xbca   : > { %10643 = vxpose.xlu1.b32.cont [10/16] (narrow) %v10531_v50, 16  ;;  %v10289_v50 = vmul.f32 0.6931472, %v11775_v48  ;;  %v17884_v62 = vpop.xlane.xlu1 %10087 }
 0xbcb   : > { %10670 = vxpose.xlu2.b32.start [1/16] (narrow) %v10538_v59, 16  ;;  %v10444_v59 = vadd.f32 %v10287_v38, %v19200_v40  ;;  %v10438_v38 = vadd.f32 %v10275_v8, %v19204_v24  ;;  %v19211_v24 = vld [vmem:[#allocation18_spill] sm:$0xff] }
 0xbcd   : > { %v10540_v14 = vsub.f32 %v19202_v57, %v10444_v59  ;;  %v19207_v59 = vld [vmem:[#allocation88_spill] sm:$0xff]  ;;  %v19208_v57 = vld [vmem:[#allocation35_spill] sm:$0xff] }
 0xbce   : > { %v10534_v42 = vsub.f32 %v19207_v59, %v10438_v38  ;;  %v17880_v48 = vpop.xlane.xlu0 %10066  ;;  %v10439_v8 = vadd.f32 %v10277_v18, %v19208_v57 }
 0xbd2   : > { %10644 = vxpose.xlu1.b32.cont [11/16] (narrow) %v10532_v0, 16  ;;  %v11779_v0 = vpop.eup %11778  ;;  %v17894_v57 = vpop.xlane.xlu1 %9610 }
 0xbd3   : > { %10671 = vxpose.xlu2.b32.cont [2/16] (narrow) %v10539_v29, 16  ;;  %v19205_v29 = vld [vmem:[#allocation101_spill] sm:$0xff]  ;;  %v10291_v15 = vmul.f32 0.6931472, %v11779_v0  ;;  %v11781_v4 = vpop.eup %11780 }
 0xbd4   : > { %v10445_v25 = vadd.f32 %v10289_v50, %v19205_v29  ;;  %v11783_v2 = vpop.eup %11782  ;;  %v10279_v11 = vmul.f32 0.6931472, %v11781_v4  ;;  %v19212_v29 = vld [vmem:[#allocation89_spill] sm:$0xff] }
 0xbd5   : > { %v10293_v45 = vmul.f32 0.6931472, %v11783_v2  ;;  %v19216_v2 = vld [vmem:[#allocation65_spill] sm:$0xff] }
 0xbd6   : > { %v10541_v40 = vsub.f32 %v19206_v1, %v10445_v25  ;;  %v10535_v25 = vsub.f32 %v19212_v29, %v10439_v8  ;;  %v19213_v1 = vld [vmem:[#allocation36_spill] sm:$0xff]  ;;  %v17892_v59 = vpop.xlane.xlu0 %9589 }
 0xbd7   : > { %v10440_v18 = vadd.f32 %v10279_v11, %v19213_v1  ;;  %v19218_v11 = vld [vmem:[#allocation110_spill] sm:$0xff] }
 0xbd9   : > { %v10536_v8 = vsub.f32 %v19216_v2, %v10440_v18  ;;  %v19221_v18 = vld [vmem:[#allocation113_spill] sm:$0xff] }
 0xbda   : > { %10645 = vxpose.xlu1.b32.cont [12/16] (narrow) %v10533_v13, 16  ;;  %v19210_v13 = vld [vmem:[#allocation164_spill] sm:$0xff]  ;;  %v17904_v1 = vpop.xlane.xlu1 %10096 }
 0xbdb   : > { %10672 = vxpose.xlu2.b32.cont [3/16] (narrow) %v10540_v14, 16  ;;  %v19209_v14 = vld [vmem:[#allocation105_spill] sm:$0xff]  ;;  %11784 = vlog2.f32 %v19210_v13  ;;  %v19217_v13 = vld [vmem:[#allocation91_spill] sm:$0xff] }
 0xbdc   : > { %v10446_v50 = vadd.f32 %v10291_v15, %v19209_v14  ;;  %11786 = vlog2.f32 %v17626_v3  ;;  %v19215_v14 = vld [vmem:[#allocation82_spill] sm:$0xff] }
 0xbdd   : > { %11788 = vlog2.f32 %v17834_v39  ;;  %v19219_v39 = vld [vmem:[#allocation33_spill] sm:$0xff] }
 0xbde   : > { %v10542_v38 = vsub.f32 %v19211_v24, %v10446_v50  ;;  %v17901_v29 = vpop.xlane.xlu0 %10075  ;;  %11790 = vlog2.f32 %v17658_v28 }
 0xbdf   : > { %11792 = vlog2.f32 %v17663_v49  ;;  %v19225_v49 = vld [vmem:[#allocation118_spill] sm:$0xff] }
 0xbe0   : > { %11794 = vlog2.f32 %v17857_v61 }
 0xbe1   : > { %v11785_v0 = vpop.eup %11784  ;;  %11796 = vlog2.f32 %v17687_v41 }
 0xbe2   : > { %10646 = vxpose.xlu1.b32.cont [13/16] (narrow) %v10534_v42, 16  ;;  %v11787_v42 = vpop.eup %11786  ;;  %v10281_v3 = vmul.f32 0.6931472, %v11785_v0  ;;  %v17913_v28 = vpop.xlane.xlu1 %9619  ;;  %11798 = vlog2.f32 %v17689_v31 }
 0xbe3   : > { %10673 = vxpose.xlu2.b32.cont [4/16] (narrow) %v10541_v40, 16  ;;  %v19214_v40 = vld [vmem:[#allocation107_spill] sm:$0xff]  ;;  %v10295_v4 = vmul.f32 0.6931472, %v11787_v42  ;;  %11800 = vlog2.f32 %v17880_v48 }
 0xbe4   : > { %v10447_v15 = vadd.f32 %v10293_v45, %v19214_v40  ;;  %v10441_v24 = vadd.f32 %v10281_v3, %v19217_v13  ;;  %v11789_v45 = vpop.eup %11788  ;;  %v19220_v40 = vld [vmem:[#allocation80_spill] sm:$0xff]  ;;  %11802 = vlog2.f32 %v17838_v10  ;;  %v19239_v10 = vld [vmem:[#allocation135_spill] sm:$0xff] }
 0xbe6   : > { %v10543_v50 = vsub.f32 %v19215_v14, %v10447_v15  ;;  %v10537_v15 = vsub.f32 %v19220_v40, %v10441_v24  ;;  %v11791_v14 = vpop.eup %11790 }
 0xbe7   : > { %v10299_v3 = vmul.f32 0.6931472, %v11791_v14  ;;  %v19227_v14 = vld [vmem:[#allocation121_spill] sm:$0xff] }
 0xbea   : > { %10647 = vxpose.xlu1.b32.cont [14/16] (narrow) %v10535_v25, 16  ;;  %v10297_v25 = vmul.f32 0.6931472, %v11789_v45 }
 0xbeb   : > { %10674 = vxpose.xlu2.b32.cont [5/16] (narrow) %v10542_v38, 16  ;;  %v10448_v38 = vadd.f32 %v10295_v4, %v19218_v11  ;;  %v17910_v4 = vpop.xlane.xlu0 %9598  ;;  %v11793_v11 = vpop.eup %11792 }
 0xbec   : > { %v10449_v42 = vadd.f32 %v10297_v25, %v19221_v18  ;;  %v10301_v24 = vmul.f32 0.6931472, %v11793_v11  ;;  %v11795_v40 = vpop.eup %11794  ;;  %v19226_v18 = vld [vmem:[#allocation16_spill] sm:$0xff] }
 0xbed   : > { %v10544_v0 = vsub.f32 %v19219_v39, %v10448_v38  ;;  %v19224_v38 = vld [vmem:[#allocation71_spill] sm:$0xff] }
 0xbee   : > { %v10451_v39 = vadd.f32 %v10301_v24, %v19225_v49  ;;  %v19230_v24 = vld [vmem:[#allocation122_spill] sm:$0xff]  ;;  %v19231_v49 = vld [vmem:[#allocation123_spill] sm:$0xff] }
 0xbf2   : > { %10648 = vxpose.xlu1.b32.cont [15/16] (narrow) %v10536_v8, 16  ;;  %v19223_v8 = vld [vmem:[#allocation116_spill] sm:$0xff] }
 0xbf3   : > { %10675 = vxpose.xlu2.b32.cont [6/16] (narrow) %v10543_v50, 16  ;;  %v19222_v50 = vld [vmem:[#allocation23_spill] sm:$0xff]  ;;  %v10450_v13 = vadd.f32 %v10299_v3, %v19223_v8  ;;  %v17918_v25 = vpop.xlane.xlu0 %10084 }
 0xbf4   : > { %v10545_v2 = vsub.f32 %v19222_v50, %v10449_v42  ;;  %v10547_v42 = vsub.f32 %v19226_v18, %v10451_v39  ;;  %v11797_v50 = vpop.eup %11796  ;;  %v9708_v39 = vsub.f32 %v19231_v49, %v17805_v21  ;;  %v19233_v18 = vld [vmem:[#allocation74_spill] sm:$0xff] }
 0xbf5   : > { %v10546_v45 = vsub.f32 %v19224_v38, %v10450_v13  ;;  %v10305_v8 = vmul.f32 0.6931472, %v11797_v50  ;;  %v19229_v13 = vld [vmem:[#allocation72_spill] sm:$0xff]  ;;  %v11799_v41 = vpop.eup %11798 }
 0xbf6   : > { %v9870_v31 = vmul.f32 1.442695, %v9708_v39  ;;  %v11801_v50 = vpop.eup %11800 }
 0xbf7   : > { %v10453_v38 = vadd.f32 %v10305_v8, %v19230_v24  ;;  %v19235_v8 = vld [vmem:[#allocation130_spill] sm:$0xff]  ;;  %v10309_v48 = vmul.f32 0.6931472, %v11801_v50  ;;  %v19236_v24 = vld [vmem:[#allocation11_spill] sm:$0xff]  ;;  %v19240_v50 = vld [vmem:[#allocation73_spill] sm:$0xff] }
 0xbf8   : > { %11804 = vpow2.f32 %v9870_v31  ;;  %v9714_v31 = vsub.f32 %v19239_v10, %v17846_v16 }
 0xbf9   : > { %11806 = vlog2.f32 %v17708_v60  ;;  %v19242_v60 = vld [vmem:[#allocation142_spill] sm:$0xff] }
 0xbfa   : > { %10649 = vxpose.xlu1.b32.end [16/16] (narrow) %v10537_v15, 16  ;;  %v10303_v15 = vmul.f32 0.6931472, %v11795_v40  ;;  %v10307_v40 = vmul.f32 0.6931472, %v11799_v41 }
 0xbfb   : > { %10676 = vxpose.xlu2.b32.cont [7/16] (narrow) %v10544_v0, 16  ;;  %v17921_v0 = vpop.xlane.xlu1 %10105  ;;  %v17926_v61 = vpop.xlane.xlu0 %9607 }
 0xbfc   : > { %v10452_v3 = vadd.f32 %v10303_v15, %v19227_v14  ;;  %v19234_v14 = vld [vmem:[#allocation124_spill] sm:$0xff] }
 0xbfe   : > { %v10548_v11 = vsub.f32 %v19229_v13, %v10452_v3  ;;  %v10454_v3 = vadd.f32 %v10307_v40, %v19234_v14  ;;  %v9711_v13 = vsub.f32 %v19235_v8, %v17825_v32 }
 0xc00   : > { %v10550_v41 = vsub.f32 %v19236_v24, %v10454_v3  ;;  %v19241_v24 = vld [vmem:[#allocation129_spill] sm:$0xff] }
 0xc03   : > { %10677 = vxpose.xlu2.b32.cont [8/16] (narrow) %v10545_v2, 16  ;;  %v17928_v2 = vpop.xlane.xlu1 %9628 }
 0xc04   : > { %19228 = vst [vmem:[#allocation26_spill] sm:$0xff] %v17928_v2 }
 0xc0b   : > { %10678 = vxpose.xlu2.b32.cont [9/16] (narrow) %v10546_v45, 16  ;;  %v17933_v45 = vpop.xlane.xlu0 %10093  ;;  %v17938_v15 = vpop.xlane.xlu1 %10114 }
 0xc0c   : > { %19232 = vst [vmem:[#allocation103_spill] sm:$0xff] %v17938_v15 }
 0xc13   : > { %10679 = vxpose.xlu2.b32.cont [10/16] (narrow) %v10547_v42, 16  ;;  %v10549_v42 = vsub.f32 %v19233_v18, %v10453_v38  ;;  %v17948_v6 = vpop.xlane.xlu1 %9637  ;;  %v9876_v38 = vmul.f32 1.442695, %v9711_v13  ;;  %v19238_v18 = vld [vmem:[#allocation128_spill] sm:$0xff]  ;;  %v9882_v13 = vmul.f32 1.442695, %v9714_v31 }
 0xc14   : > { %19237 = vst [vmem:[#allocation47_spill] sm:$0xff] %v17948_v6  ;;  %v10455_v39 = vadd.f32 %v10309_v48, %v19238_v18 }
 0xc15   : > { %11808 = vpow2.f32 %v9876_v38  ;;  %v9717_v38 = vsub.f32 %v19242_v60, %v17868_v33  ;;  %v19247_v60 = vld [vmem:[#allocation22_spill] sm:$0xff] }
 0xc16   : > { %v10551_v53 = vsub.f32 %v19240_v50, %v10455_v39 }
 0xc1b   : > { %10680 = vxpose.xlu2.b32.cont [11/16] (narrow) %v10548_v11, 16  ;;  %v17945_v11 = vpop.xlane.xlu0 %9616 }
 0xc23   : > { %10681 = vxpose.xlu2.b32.cont [12/16] (narrow) %v10549_v42, 16  ;;  %v11803_v42 = vpop.eup %11802  ;;  %v17956_v3 = vpop.xlane.xlu0 %10102 }
 0xc24   : > { %v11805_v40 = vpop.eup %11804  ;;  %v10311_v14 = vmul.f32 0.6931472, %v11803_v42 }
 0xc25   : > { %v10128_v17 = vsel %vm3877_vm0, %v11805_v40, 0.0  ;;  %v11807_v18 = vpop.eup %11806 }
 0xc26   : > { %v10456_v48 = vadd.f32 %v10311_v14, %v19241_v24  ;;  %v11809_v15 = vpop.eup %11808  ;;  %v10313_v42 = vmul.f32 0.6931472, %v11807_v18  ;;  %v10127_v14 = vpop.xlane.xlu2 %10126 }
 0xc27   : > { %v10137_v40 = vsel %vm3877_vm0, %v11809_v15, 0.0 }
 0xc28   : > { %v10552_v39 = vsub.f32 %v19243_v26, %v10456_v48 }
 0xc2b   : > { %10682 = vxpose.xlu2.b32.cont [13/16] (narrow) %v10550_v41, 16  ;;  %v10124_v41 = vpop.xlane.xlu1 %10123  ;;  %v17964_v50 = vpop.xlane.xlu0 %9625 }
 0xc2c   : > { %11810 = vlog2.f32 %v10124_v41  ;;  %19245 = vst [vmem:[#allocation14_spill] sm:$0xff] %v17964_v50 }
 0xc2d   : > { %11812 = vpow2.f32 %v9882_v13  ;;  %v19246_v13 = vld [vmem:[#allocation149_spill] sm:$0xff] }
 0xc2e   : > { %11814 = vlog2.f32 %v10127_v14  ;;  %v9720_v41 = vsub.f32 %v19246_v13, %v17892_v59  ;;  %v19249_v14 = vld [vmem:[#allocation155_spill] sm:$0xff] }
 0xc30   : > { %v9894_v48 = vmul.f32 1.442695, %v9720_v41 }
 0xc32   : > { %10129 = vadd.xlane.f32.xlu0 %v10128_v17  ;;  %v19244_v17 = vld [vmem:[#allocation131_spill] sm:$0xff]  ;;  %v11811_v24 = vpop.eup %11810 }
 0xc33   : > { %10683 = vxpose.xlu2.b32.cont [14/16] (narrow) %v10551_v53, 16  ;;  %v9888_v53 = vmul.f32 1.442695, %v9717_v38  ;;  %v10457_v31 = vadd.f32 %v10313_v42, %v19244_v17  ;;  %v11813_v19 = vpop.eup %11812  ;;  %v10347_v18 = vmul.f32 0.6931472, %v11811_v24  ;;  %v19248_v17 = vld [vmem:[#allocation151_spill] sm:$0xff]  ;;  %v9723_v24 = vsub.f32 %v19249_v14, %v17910_v4 }
 0xc34   : > { %v10146_v15 = vsel %vm3877_vm0, %v11813_v19, 0.0  ;;  %v11815_v42 = vpop.eup %11814 }
 0xc35   : > { %11816 = vpow2.f32 %v9888_v53  ;;  %v10553_v26 = vsub.f32 %v19247_v60, %v10457_v31  ;;  %v10474_v38 = vadd.f32 %v10347_v18, %v17543_v52  ;;  %v9721_v53 = vsub.f32 %v19248_v17, %v17849_v34 }
 0xc36   : > { %11818 = vpow2.f32 %v9894_v48  ;;  %v10349_v13 = vmul.f32 0.6931472, %v11815_v42  ;;  %v9900_v31 = vmul.f32 1.442695, %v9723_v24  ;;  %v19251_v48 = vld [vmem:[#allocation162_spill] sm:$0xff]  ;;  %v19253_v24 = vld [vmem:[#allocation165_spill] sm:$0xff] }
 0xc37   : > { %v10570_v19 = vsub.f32 %v17158_v44, %v10474_v38  ;;  %v9896_v52 = vmul.f32 1.442695, %v9721_v53  ;;  %v9726_v42 = vsub.f32 %v19251_v48, %v17926_v61 }
 0xc38   : > { %v10475_v41 = vadd.f32 %v10349_v13, %v17548_v46 }
 0xc39   : > { %11820 = vpow2.f32 %v9896_v52  ;;  %v9906_v46 = vmul.f32 1.442695, %v9726_v42 }
 0xc3a   : > { %10138 = vadd.xlane.f32.xlu0 %v10137_v40  ;;  %v17971_v40 = vpop.xlane.xlu0 %10111  ;;  %11822 = vpow2.f32 %v9900_v31  ;;  %v10571_v44 = vsub.f32 %v17163_v20, %v10475_v41 }
 0xc3b   : > { %10684 = vxpose.xlu2.b32.cont [15/16] (narrow) %v10552_v39, 16  ;;  %v11817_v39 = vpop.eup %11816 }
 0xc3c   : > { %v10155_v60 = vsel %vm3877_vm0, %v11817_v39, 0.0  ;;  %v11819_v18 = vpop.eup %11818 }
 0xc3d   : > { %v10164_v38 = vsel %vm3877_vm0, %v11819_v18, 0.0 }
 0xc3f   : > { %v11821_v13 = vpop.eup %11820 }
 0xc40   : > { %v11823_v53 = vpop.eup %11822  ;;  %v10167_v20 = vsel %vm3877_vm0, %v11821_v13, 0.0 }
 0xc41   : > { %v10173_v52 = vsel %vm3877_vm0, %v11823_v53, 0.0 }
 0xc42   : > { %10147 = vadd.xlane.f32.xlu0 %v10146_v15  ;;  %v17984_v17 = vpop.xlane.xlu0 %9634 }
 0xc43   : > { %10685 = vxpose.xlu2.b32.end [16/16] (narrow) %v10553_v26, 16  ;;  %v19250_v26 = vld [vmem:[#allocation157_spill] sm:$0xff]  ;;  %19252 = vst [vmem:[#allocation104_spill] sm:$0xff] %v17984_v17 }
 0xc44   : > { %v9724_v15 = vsub.f32 %v19250_v26, %v17872_v36 }
 0xc46   : > { %v9902_v39 = vmul.f32 1.442695, %v9724_v15 }
 0xc48   : > { %11824 = vpow2.f32 %v9902_v39 }
 0xc49   : > { %11826 = vpow2.f32 %v9906_v46 }
 0xc4a   : > { %10156 = vadd.xlane.f32.xlu0 %v10155_v60  ;;  %v9729_v60 = vsub.f32 %v17546_v56, %v17945_v11  ;;  %v17995_v31 = vpop.xlane.xlu0 %10120 }
 0xc4b   : > { %10739 = vxpose.xlu2.b32.start [1/16] (narrow) %v10570_v19, 16  ;;  %v9727_v19 = vsub.f32 %v19253_v24, %v17894_v57 }
 0xc4c   : > { %v9912_v18 = vmul.f32 1.442695, %v9729_v60 }
 0xc4d   : > { %v9908_v41 = vmul.f32 1.442695, %v9727_v19 }
 0xc4e   : > { %v11825_v15 = vpop.eup %11824 }
 0xc4f   : > { %v11827_v42 = vpop.eup %11826  ;;  %11828 = vpow2.f32 %v9908_v41  ;;  %v10176_v39 = vsel %vm3877_vm0, %v11825_v15, 0.0  ;;  %v9735_v41 = vsub.f32 %v17643_v7, %v17984_v17  ;;  %v19256_v7 = vld [vmem:[#allocation134_spill] sm:$0xff] }
 0xc50   : > { %11830 = vpow2.f32 %v9912_v18  ;;  %v10182_v46 = vsel %vm3877_vm0, %v11827_v42, 0.0 }
 0xc52   : > { %10165 = vadd.xlane.f32.xlu0 %v10164_v38  ;;  %v9732_v38 = vsub.f32 %v17600_v12, %v17964_v50  ;;  %v10618_v13 = vpop.trf.xlu0 }
 0xc53   : > { %10740 = vxpose.xlu2.b32.cont [2/16] (narrow) %v10571_v44, 16  ;;  %v9730_v44 = vsub.f32 %v17572_v58, %v17913_v28  ;;  %10666 = vst [vmem:[%s18004_s27] sm:$0xff] %v10618_v13  ;;  %v9736_v13 = vsub.f32 %v17661_v37, %v17948_v6  ;;  %v19255_v37 = vld [vmem:[#allocation77_spill] sm:$0xff] }
 0xc54   : > { %v9918_v19 = vmul.f32 1.442695, %v9732_v38  ;;  %v9924_v38 = vmul.f32 1.442695, %v9735_v41 }
 0xc55   : > { %v9914_v53 = vmul.f32 1.442695, %v9730_v44  ;;  %v11829_v60 = vpop.eup %11828 }
 0xc56   : > { %v10185_v18 = vsel %vm3877_vm0, %v11829_v60, 0.0  ;;  %v9926_v60 = vmul.f32 1.442695, %v9736_v13 }
 0xc57   : > { %11832 = vpow2.f32 %v9914_v53 }
 0xc58   : > { %11834 = vpow2.f32 %v9918_v19 }
 0xc5a   : > { %10168 = vadd.xlane.f32.xlu1 %v10167_v20  ;;  %10174 = vadd.xlane.f32.xlu0 %v10173_v52  ;;  %v11831_v20 = vpop.eup %11830  ;;  %v9733_v52 = vsub.f32 %v17624_v9, %v17928_v2  ;;  %v10619_v42 = vpop.trf.xlu0 }
 0xc5b   : > { %v10191_v15 = vsel %vm3877_vm0, %v11831_v20, 0.0  ;;  %10668 = vst [vmem:[%s18004_s27 + $0x10] sm:$0xff] %v10619_v42 }
 0xc5c   : > { %v9920_v44 = vmul.f32 1.442695, %v9733_v52  ;;  %v10133_v52 = vpop.xlane.xlu1 %10132 }
 0xc5e   : > { %11836 = vpow2.f32 %v9920_v44  ;;  %v10136_v44 = vpop.xlane.xlu2 %10135 }
 0xc5f   : > { %11838 = vpow2.f32 %v9924_v38 }
 0xc60   : > { %11840 = vpow2.f32 %v9926_v60 }
 0xc61   : > { %11842 = vlog2.f32 %v17901_v29 }
 0xc62   : > { %10177 = vadd.xlane.f32.xlu1 %v10176_v39  ;;  %10183 = vadd.xlane.f32.xlu0 %v10182_v46  ;;  %v11833_v39 = vpop.eup %11832  ;;  %11844 = vlog2.f32 %v17860_v43 }
 0xc63   : > { %v11835_v46 = vpop.eup %11834  ;;  %v10194_v53 = vsel %vm3877_vm0, %v11833_v39, 0.0  ;;  %11846 = vlog2.f32 %v17723_v22 }
 0xc64   : > { %v10200_v19 = vsel %vm3877_vm0, %v11835_v46, 0.0  ;;  %v11837_v20 = vpop.eup %11836  ;;  %v18023_v39 = vpop.xlane.xlu1 %10141 }
 0xc65   : > { %v10203_v41 = vsel %vm3877_vm0, %v11837_v20, 0.0 }
 0xc66   : > { %v18025_v46 = vpop.xlane.xlu2 %10144 }
 0xc6a   : > { %10186 = vadd.xlane.f32.xlu1 %v10185_v18  ;;  %10192 = vadd.xlane.f32.xlu0 %v10191_v15  ;;  %v11839_v18 = vpop.eup %11838 }
 0xc6b   : > { %v10209_v15 = vsel %vm3877_vm0, %v11839_v18, 0.0  ;;  %v11841_v42 = vpop.eup %11840 }
 0xc6c   : > { %v10212_v38 = vsel %vm3877_vm0, %v11841_v42, 0.0  ;;  %v18027_v13 = vpop.xlane.xlu1 %10150 }
 0xc72   : > { %10195 = vadd.xlane.f32.xlu1 %v10194_v53  ;;  %10201 = vadd.xlane.f32.xlu0 %v10200_v19  ;;  %v18030_v53 = vpop.xlane.xlu2 %10153  ;;  %v11843_v19 = vpop.eup %11842 }
 0xc73   : > { %v10315_v20 = vmul.f32 0.6931472, %v11843_v19  ;;  %v11845_v42 = vpop.eup %11844 }
 0xc74   : > { %v18032_v60 = vpop.xlane.xlu1 %10159  ;;  %v10317_v6 = vmul.f32 0.6931472, %v11845_v42  ;;  %v11847_v2 = vpop.eup %11846 }
 0xc75   : > { %v10319_v12 = vmul.f32 0.6931472, %v11847_v2 }
 0xc76   : > { %v10459_v17 = vadd.f32 %v10317_v6, %v19256_v7 }
 0xc7a   : > { %10204 = vadd.xlane.f32.xlu1 %v10203_v41  ;;  %10210 = vadd.xlane.f32.xlu0 %v10209_v15  ;;  %v18035_v18 = vpop.xlane.xlu2 %10162  ;;  %v19254_v41 = vld [vmem:[#allocation137_spill] sm:$0xff] }
 0xc7b   : > { %v10458_v15 = vadd.f32 %v10315_v20, %v19254_v41  ;;  %v19257_v20 = vld [vmem:[#allocation86_spill] sm:$0xff] }
 0xc7c   : > { %v10555_v41 = vsub.f32 %v19257_v20, %v10459_v17 }
 0xc7d   : > { %v10554_v29 = vsub.f32 %v19255_v37, %v10458_v15  ;;  %v19258_v15 = vld [vmem:[#allocation136_spill] sm:$0xff] }
 0xc7e   : > { %v10460_v42 = vadd.f32 %v10319_v12, %v19258_v15  ;;  %v19260_v12 = vld [vmem:[#allocation144_spill] sm:$0xff] }
 0xc82   : > { %10213 = vadd.xlane.f32.xlu1 %v10212_v38  ;;  %v10650_v38 = vpop.trf.xlu1  ;;  %v10172_v43 = vpop.xlane.xlu2 %10171 }
 0xc83   : > { %10667 = vst [vmem:[%s18004_s27 + $0x8] sm:$0xff] %v10650_v38 }
 0xc8a   : > { %v10651_v19 = vpop.trf.xlu1 }
 0xc8b   : > { %10669 = vst [vmem:[%s18004_s27 + $0x18] sm:$0xff] %v10651_v19 }
 0xca3   : > { %10702 = vxpose.xlu0.b32.start [1/16] (narrow) %v10554_v29, 16 }
 0xca5   : > { %v10130_v9 = vpop.xlane.xlu0 %10129 }
 0xca6   : > { %11848 = vlog2.f32 %v10130_v9 }
 0xca7   : > { %11850 = vlog2.f32 %v17918_v25  ;;  %v19259_v25 = vld [vmem:[#allocation29_spill] sm:$0xff] }
 0xca8   : > { %11852 = vlog2.f32 %v10133_v52  ;;  %v10556_v52 = vsub.f32 %v19259_v25, %v10460_v42 }
 0xca9   : > { %11854 = vlog2.f32 %v10172_v43 }
 0xcaa   : > { %11856 = vlog2.f32 %v17884_v62 }
 0xcab   : > { %10703 = vxpose.xlu0.b32.cont [2/16] (narrow) %v10555_v41, 16  ;;  %11858 = vlog2.f32 %v10136_v44 }
 0xcac   : > { %v11849_v22 = vpop.eup %11848  ;;  %11860 = vlog2.f32 %v17736_v55 }
 0xcad   : > { %v11851_v37 = vpop.eup %11850  ;;  %v10351_v38 = vmul.f32 0.6931472, %v11849_v22  ;;  %v10139_v6 = vpop.xlane.xlu0 %10138 }
 0xcae   : > { %v11853_v7 = vpop.eup %11852  ;;  %v10321_v19 = vmul.f32 0.6931472, %v11851_v37  ;;  %11862 = vlog2.f32 %v10139_v6  ;;  %v19263_v6 = vld [vmem:[#allocation44_spill] sm:$0xff] }
 0xcaf   : > { %v11855_v29 = vpop.eup %11854  ;;  %v10476_v9 = vadd.f32 %v10351_v38, %v17805_v21  ;;  %v10353_v17 = vmul.f32 0.6931472, %v11853_v7  ;;  %v19261_v21 = vld [vmem:[#allocation31_spill] sm:$0xff]  ;;  %11864 = vlog2.f32 %v17933_v45  ;;  %v19265_v45 = vld [vmem:[#allocation12_spill] sm:$0xff] }
 0xcb0   : > { %v10379_v43 = vmul.f32 0.6931472, %v11855_v29  ;;  %v11857_v20 = vpop.eup %11856  ;;  %v10461_v41 = vadd.f32 %v10321_v19, %v19260_v12  ;;  %11866 = vlog2.f32 %v18023_v39  ;;  %v19264_v19 = vld [vmem:[#allocation143_spill] sm:$0xff] }
 0xcb1   : > { %v10572_v2 = vsub.f32 %v19231_v49, %v10476_v9  ;;  %v10477_v22 = vadd.f32 %v10353_v17, %v17597_v63  ;;  %v11859_v50 = vpop.eup %11858  ;;  %v10323_v37 = vmul.f32 0.6931472, %v11857_v20  ;;  %v19262_v63 = vld [vmem:[#allocation141_spill] sm:$0xff]  ;;  %11868 = vlog2.f32 %v17904_v1  ;;  %v19267_v1 = vld [vmem:[#allocation92_spill] sm:$0xff] }
 0xcb2   : > { %v10490_v62 = vadd.f32 %v10379_v43, %v17714_v54  ;;  %v10557_v44 = vsub.f32 %v19261_v21, %v10461_v41  ;;  %v10355_v42 = vmul.f32 0.6931472, %v11859_v50  ;;  %v11861_v7 = vpop.eup %11860  ;;  %11870 = vlog2.f32 %v18025_v46 }
 0xcb3   : > { %10704 = vxpose.xlu0.b32.cont [3/16] (narrow) %v10556_v52, 16  ;;  %10741 = vxpose.xlu2.b32.cont [3/16] (narrow) %v10572_v2, 16  ;;  %v10573_v49 = vsub.f32 %v17212_v51, %v10477_v22  ;;  %v10462_v29 = vadd.f32 %v10323_v37, %v19262_v63  ;;  %v10325_v50 = vmul.f32 0.6931472, %v11861_v7  ;;  %v19266_v22 = vld [vmem:[#allocation153_spill] sm:$0xff]  ;;  %11872 = vlog2.f32 %v17749_v35  ;;  %v19268_v63 = vld [vmem:[#allocation148_spill] sm:$0xff] }
 0xcb4   : > { %v10586_v38 = vsub.f32 %v17425_v5, %v10490_v62  ;;  %v10478_v9 = vadd.f32 %v10355_v42, %v17602_v27  ;;  %v11863_v55 = vpop.eup %11862 }
 0xcb5   : > { %v10148_v15 = vpop.xlane.xlu0 %10147  ;;  %v10558_v51 = vsub.f32 %v19263_v6, %v10462_v29  ;;  %v10357_v25 = vmul.f32 0.6931472, %v11863_v55  ;;  %v11865_v52 = vpop.eup %11864  ;;  %v10463_v17 = vadd.f32 %v10325_v50, %v19264_v19  ;;  %v19269_v29 = vld [vmem:[#allocation174_spill] sm:$0xff] }
 0xcb6   : > { %v10574_v5 = vsub.f32 %v17217_v30, %v10478_v9  ;;  %v11867_v43 = vpop.eup %11866  ;;  %v10327_v20 = vmul.f32 0.6931472, %v11865_v52  ;;  %v10181_v6 = vpop.xlane.xlu2 %10180  ;;  %v19271_v52 = vld [vmem:[#allocation132_spill] sm:$0xff] }
 0xcb7   : > { %v10479_v27 = vadd.f32 %v10357_v25, %v17825_v32  ;;  %v10559_v39 = vsub.f32 %v19265_v45, %v10463_v17  ;;  %v10359_v12 = vmul.f32 0.6931472, %v11867_v43  ;;  %v11869_v41 = vpop.eup %11868  ;;  %v19272_v43 = vld [vmem:[#allocation150_spill] sm:$0xff] }
 0xcb8   : > { %v10464_v62 = vadd.f32 %v10327_v20, %v19266_v22  ;;  %v11871_v37 = vpop.eup %11870  ;;  %v10329_v42 = vmul.f32 0.6931472, %v11869_v41  ;;  %v19273_v41 = vld [vmem:[#allocation98_spill] sm:$0xff] }
 0xcb9   : > { %v10575_v30 = vsub.f32 %v19235_v8, %v10479_v27  ;;  %v10480_v32 = vadd.f32 %v10359_v12, %v17640_v23 }
 0xcba   : > { %v10560_v46 = vsub.f32 %v19267_v1, %v10464_v62  ;;  %v10465_v23 = vadd.f32 %v10329_v42, %v19268_v63 }
 0xcbb   : > { %10705 = vxpose.xlu0.b32.cont [4/16] (narrow) %v10557_v44, 16  ;;  %10742 = vxpose.xlu2.b32.cont [4/16] (narrow) %v10573_v49, 16  ;;  %v10361_v49 = vmul.f32 0.6931472, %v11871_v37  ;;  %v10576_v8 = vsub.f32 %v17261_v47, %v10480_v32  ;;  %v19274_v37 = vld [vmem:[#allocation160_spill] sm:$0xff] }
 0xcbc   : > { %10771 = vxpose.xlu1.b32.start [1/16] (narrow) %v10586_v38, 16  ;;  %v11873_v38 = vpop.eup %11872 }
 0xcbd   : > { %v18059_v54 = vpop.xlane.xlu0 %10156  ;;  %v10481_v9 = vadd.f32 %v10361_v49, %v19269_v29  ;;  %v19276_v49 = vld [vmem:[#allocation94_spill] sm:$0xff] }
 0xcbe   : > { %v19279_v29 = vld [vmem:[#allocation138_spill] sm:$0xff] }
 0xcbf   : > { %v10577_v19 = vsub.f32 %v19271_v52, %v10481_v9  ;;  %v10190_v52 = vpop.xlane.xlu2 %10189 }
 0xcc3   : > { %10706 = vxpose.xlu0.b32.cont [5/16] (narrow) %v10558_v51, 16  ;;  %10743 = vxpose.xlu2.b32.cont [5/16] (narrow) %v10574_v5, 16  ;;  %v19270_v51 = vld [vmem:[#allocation95_spill] sm:$0xff] }
 0xcc4   : > { %v10561_v25 = vsub.f32 %v19270_v51, %v10465_v23  ;;  %v19282_v51 = vld [vmem:[#allocation178_spill] sm:$0xff] }
 0xcc5   : > { %v18067_v2 = vpop.xlane.xlu0 %10165 }
 0xccb   : > { %10707 = vxpose.xlu0.b32.cont [6/16] (narrow) %v10559_v39, 16  ;;  %10744 = vxpose.xlu2.b32.cont [6/16] (narrow) %v10575_v30, 16 }
 0xccd   : > { %v18075_v21 = vpop.xlane.xlu1 %10168  ;;  %v10175_v44 = vpop.xlane.xlu0 %10174 }
 0xcce   : > { %11874 = vlog2.f32 %v10175_v44 }
 0xccf   : > { %11876 = vlog2.f32 %v10148_v15  ;;  %v10331_v15 = vmul.f32 0.6931472, %v11873_v38 }
 0xcd1   : > { %v10466_v45 = vadd.f32 %v10331_v15, %v19272_v43  ;;  %v19281_v15 = vld [vmem:[#allocation154_spill] sm:$0xff] }
 0xcd3   : > { %10708 = vxpose.xlu0.b32.cont [7/16] (narrow) %v10560_v46, 16  ;;  %10745 = vxpose.xlu2.b32.cont [7/16] (narrow) %v10576_v8, 16  ;;  %v10562_v22 = vsub.f32 %v19273_v41, %v10466_v45  ;;  %v19275_v46 = vld [vmem:[#allocation177_spill] sm:$0xff] }
 0xcd4   : > { %v11875_v7 = vpop.eup %11874 }
 0xcd5   : > { %v10178_v55 = vpop.xlane.xlu1 %10177  ;;  %v11877_v50 = vpop.eup %11876  ;;  %v10381_v35 = vmul.f32 0.6931472, %v11875_v7  ;;  %v19277_v7 = vld [vmem:[#allocation46_spill] sm:$0xff] }
 0xcd6   : > { %11878 = vlog2.f32 %v10178_v55  ;;  %v10363_v5 = vmul.f32 0.6931472, %v11877_v50  ;;  %v19280_v55 = vld [vmem:[#allocation159_spill] sm:$0xff] }
 0xcd7   : > { %11880 = vlog2.f32 %v17956_v3  ;;  %v10491_v47 = vadd.f32 %v10381_v35, %v17910_v4  ;;  %v10184_v4 = vpop.xlane.xlu0 %10183 }
 0xcd8   : > { %11882 = vlog2.f32 %v18027_v13  ;;  %v10482_v39 = vadd.f32 %v10363_v5, %v17846_v16 }
 0xcd9   : > { %11884 = vlog2.f32 %v10181_v6  ;;  %v10587_v17 = vsub.f32 %v19249_v14, %v10491_v47 }
 0xcda   : > { %11886 = vlog2.f32 %v17921_v0  ;;  %v10578_v44 = vsub.f32 %v19239_v10, %v10482_v39 }
 0xcdb   : > { %10709 = vxpose.xlu0.b32.cont [8/16] (narrow) %v10561_v25, 16  ;;  %10746 = vxpose.xlu2.b32.cont [8/16] (narrow) %v10577_v19, 16  ;;  %11888 = vlog2.f32 %v18030_v53 }
 0xcdc   : > { %v11879_v27 = vpop.eup %11878  ;;  %10772 = vxpose.xlu1.b32.cont [2/16] (narrow) %v10587_v17, 16  ;;  %11890 = vlog2.f32 %v10184_v4 }
 0xcdd   : > { %v11881_v3 = vpop.eup %11880  ;;  %v10383_v13 = vmul.f32 0.6931472, %v11879_v27  ;;  %v10187_v38 = vpop.xlane.xlu1 %10186  ;;  %11892 = vlog2.f32 %v19277_v7  ;;  %v19283_v27 = vld [vmem:[#allocation102_spill] sm:$0xff]  ;;  %v19292_v7 = vld [vmem:[#allocation100_spill] sm:$0xff] }
 0xcde   : > { %v11883_v20 = vpop.eup %11882  ;;  %v10333_v14 = vmul.f32 0.6931472, %v11881_v3  ;;  %11894 = vlog2.f32 %v18059_v54  ;;  %v19284_v3 = vld [vmem:[#allocation140_spill] sm:$0xff] }
 0xcdf   : > { %v11885_v12 = vpop.eup %11884  ;;  %v10492_v30 = vadd.f32 %v10383_v13, %v17872_v36  ;;  %v10365_v62 = vmul.f32 0.6931472, %v11883_v20  ;;  %11896 = vlog2.f32 %v10187_v38  ;;  %v10193_v41 = vpop.xlane.xlu0 %10192 }
 0xce0   : > { %v10385_v16 = vmul.f32 0.6931472, %v11885_v12  ;;  %v10467_v1 = vadd.f32 %v10333_v14, %v19274_v37  ;;  %v11887_v0 = vpop.eup %11886  ;;  %11898 = vlog2.f32 %v17971_v40  ;;  %v19286_v14 = vld [vmem:[#allocation103_spill] sm:$0xff] }
 0xce1   : > { %v10588_v32 = vsub.f32 %v19250_v26, %v10492_v30  ;;  %v10483_v36 = vadd.f32 %v10365_v62, %v19275_v46  ;;  %v11889_v42 = vpop.eup %11888  ;;  %v19278_v26 = vld [vmem:[#allocation99_spill] sm:$0xff]  ;;  %v10335_v10 = vmul.f32 0.6931472, %v11887_v0  ;;  %11900 = vlog2.f32 %v18032_v60 }
 0xce2   : > { %v10493_v8 = vadd.f32 %v10385_v16, %v19276_v49  ;;  %v11891_v53 = vpop.eup %11890  ;;  %v10563_v63 = vsub.f32 %v19278_v26, %v10467_v1  ;;  %v10367_v23 = vmul.f32 0.6931472, %v11889_v42  ;;  %11902 = vlog2.f32 %v10190_v52  ;;  %v19288_v16 = vld [vmem:[#allocation142_spill] sm:$0xff]  ;;  %v19293_v26 = vld [vmem:[#allocation108_spill] sm:$0xff] }
 0xce3   : > { %10710 = vxpose.xlu0.b32.cont [9/16] (narrow) %v10562_v22, 16  ;;  %10747 = vxpose.xlu2.b32.cont [9/16] (narrow) %v10578_v44, 16  ;;  %v10579_v9 = vsub.f32 %v19279_v29, %v10483_v36  ;;  %v10387_v6 = vmul.f32 0.6931472, %v11891_v53  ;;  %v11893_v35 = vpop.eup %11892  ;;  %v10468_v47 = vadd.f32 %v10335_v10, %v19281_v15  ;;  %11904 = vlog2.f32 %v19286_v14  ;;  %v19290_v36 = vld [vmem:[#allocation179_spill] sm:$0xff] }
 0xce4   : > { %10773 = vxpose.xlu1.b32.cont [3/16] (narrow) %v10588_v32, 16  ;;  %v10589_v50 = vsub.f32 %v19280_v55, %v10493_v8  ;;  %v10484_v25 = vadd.f32 %v10367_v23, %v19282_v51  ;;  %v11895_v5 = vpop.eup %11894  ;;  %v10337_v17 = vmul.f32 0.6931472, %v11893_v35  ;;  %11906 = vlog2.f32 %v18035_v18  ;;  %v19291_v8 = vld [vmem:[#allocation24_spill] sm:$0xff]  ;;  %v19294_v23 = vld [vmem:[#allocation145_spill] sm:$0xff] }
 0xce5   : > { %v10494_v54 = vadd.f32 %v10387_v6, %v17926_v61  ;;  %v11897_v19 = vpop.eup %11896  ;;  %v10564_v43 = vsub.f32 %v19283_v27, %v10468_v47  ;;  %v10369_v45 = vmul.f32 0.6931472, %v11895_v5  ;;  %v19285_v61 = vld [vmem:[#allocation156_spill] sm:$0xff]  ;;  %11908 = vlog2.f32 %v10193_v41  ;;  %v10196_v38 = vpop.xlane.xlu1 %10195  ;;  %v19296_v35 = vld [vmem:[#allocation161_spill] sm:$0xff] }
 0xce6   : > { %v10580_v39 = vsub.f32 %v19284_v3, %v10484_v25  ;;  %v10389_v20 = vmul.f32 0.6931472, %v11897_v19  ;;  %v11899_v4 = vpop.eup %11898  ;;  %v10469_v12 = vadd.f32 %v10337_v17, %v19285_v61  ;;  %11910 = vlog2.f32 %v19292_v7  ;;  %v19297_v47 = vld [vmem:[#allocation180_spill] sm:$0xff]  ;;  %v10199_v5 = vpop.xlane.xlu2 %10198 }
 0xce7   : > { %v10590_v13 = vsub.f32 %v19251_v48, %v10494_v54  ;;  %v10485_v40 = vadd.f32 %v10369_v45, %v17868_v33  ;;  %v11901_v30 = vpop.eup %11900  ;;  %v10339_v62 = vmul.f32 0.6931472, %v11899_v4  ;;  %v19287_v48 = vld [vmem:[#allocation106_spill] sm:$0xff]  ;;  %v19289_v33 = vld [vmem:[#allocation167_spill] sm:$0xff]  ;;  %11912 = vlog2.f32 %v18067_v2  ;;  %v19298_v19 = vld [vmem:[#allocation112_spill] sm:$0xff]  ;;  %v10202_v61 = vpop.xlane.xlu0 %10201 }
 0xce8   : > { %v10495_v60 = vadd.f32 %v10389_v20, %v17894_v57  ;;  %v11903_v22 = vpop.eup %11902  ;;  %v10565_v32 = vsub.f32 %v19287_v48, %v10469_v12  ;;  %v10371_v44 = vmul.f32 0.6931472, %v11901_v30  ;;  %11914 = vlog2.f32 %v10196_v38  ;;  %v19303_v48 = vld [vmem:[#allocation170_spill] sm:$0xff] }
 0xce9   : > { %v10581_v37 = vsub.f32 %v19288_v16, %v10485_v40  ;;  %v10391_v1 = vmul.f32 0.6931472, %v11903_v22  ;;  %v10470_v57 = vadd.f32 %v10339_v62, %v19289_v33  ;;  %v11905_v46 = vpop.eup %11904  ;;  %11916 = vlog2.f32 %v17995_v31  ;;  %v19301_v40 = vld [vmem:[#allocation115_spill] sm:$0xff] }
 0xcea   : > { %v10591_v0 = vsub.f32 %v19253_v24, %v10495_v60  ;;  %v10486_v42 = vadd.f32 %v10371_v44, %v19290_v36  ;;  %v11907_v49 = vpop.eup %11906  ;;  %v10341_v24 = vmul.f32 0.6931472, %v11905_v46  ;;  %11918 = vlog2.f32 %v18075_v21  ;;  %v19306_v33 = vld [vmem:[#allocation151_spill] sm:$0xff]  ;;  %v19307_v46 = vld [vmem:[#allocation168_spill] sm:$0xff] }
 0xceb   : > { %10711 = vxpose.xlu0.b32.cont [10/16] (narrow) %v10563_v63, 16  ;;  %10748 = vxpose.xlu2.b32.cont [10/16] (narrow) %v10579_v9, 16  ;;  %v10496_v18 = vadd.f32 %v10391_v1, %v19291_v8  ;;  %v11909_v53 = vpop.eup %11908  ;;  %v10566_v63 = vsub.f32 %v19293_v26, %v10470_v57  ;;  %v10373_v10 = vmul.f32 0.6931472, %v11907_v49  ;;  %v19295_v9 = vld [vmem:[#allocation166_spill] sm:$0xff]  ;;  %11920 = vlog2.f32 %v10199_v5  ;;  %v19305_v1 = vld [vmem:[#allocation117_spill] sm:$0xff] }
 0xcec   : > { %10774 = vxpose.xlu1.b32.cont [4/16] (narrow) %v10589_v50, 16  ;;  %v10582_v29 = vsub.f32 %v19294_v23, %v10486_v42  ;;  %v10393_v50 = vmul.f32 0.6931472, %v11909_v53  ;;  %v11911_v6 = vpop.eup %11910  ;;  %v10471_v15 = vadd.f32 %v10341_v24, %v19296_v35  ;;  %11922 = vlog2.f32 %v10202_v61  ;;  %v19308_v49 = vld [vmem:[#allocation14_spill] sm:$0xff] }
 0xced   : > { %v10592_v55 = vsub.f32 %v19295_v9, %v10496_v18  ;;  %v10487_v51 = vadd.f32 %v10373_v10, %v19297_v47  ;;  %v11913_v25 = vpop.eup %11912  ;;  %v10343_v54 = vmul.f32 0.6931472, %v11911_v6  ;;  %v10205_v16 = vpop.xlane.xlu1 %10204  ;;  %v19309_v18 = vld [vmem:[#allocation169_spill] sm:$0xff]  ;;  %v19310_v26 = vld [vmem:[#allocation26_spill] sm:$0xff]  ;;  %v19313_v47 = vld [vmem:[#allocation172_spill] sm:$0xff] }
 0xcee   : > { %v10497_v2 = vadd.f32 %v10393_v50, %v17945_v11  ;;  %v11915_v52 = vpop.eup %11914  ;;  %v10567_v17 = vsub.f32 %v19298_v19, %v10471_v15  ;;  %v10375_v27 = vmul.f32 0.6931472, %v11913_v25  ;;  %11924 = vlog2.f32 %v10205_v16  ;;  %v19312_v50 = vld [vmem:[#allocation64_spill] sm:$0xff]  ;;  %v19315_v19 = vld [vmem:[#allocation173_spill] sm:$0xff] }
 0xcef   : > { %v11917_v11 = vpop.eup %11916  ;;  %v10211_v24 = vpop.xlane.xlu0 %10210 }
 0xcf0   : > { %v10593_v3 = vsub.f32 %v17546_v56, %v10497_v2  ;;  %v10488_v31 = vadd.f32 %v10375_v27, %v17892_v59  ;;  %v11919_v4 = vpop.eup %11918  ;;  %v10345_v60 = vmul.f32 0.6931472, %v11917_v11  ;;  %v19302_v56 = vld [vmem:[#allocation149_spill] sm:$0xff]  ;;  %v19314_v2 = vld [vmem:[#allocation104_spill] sm:$0xff]  ;;  %v19318_v11 = vld [vmem:[#allocation42_spill] sm:$0xff] }
 0xcf1   : > { %v11921_v12 = vpop.eup %11920  ;;  %v10377_v41 = vmul.f32 0.6931472, %v11919_v4 }
 0xcf2   : > { %v10584_v22 = vsub.f32 %v19302_v56, %v10488_v31  ;;  %v10397_v14 = vmul.f32 0.6931472, %v11921_v12  ;;  %v10473_v59 = vadd.f32 %v10345_v60, %v19303_v48 }
 0xcf3   : > { %10712 = vxpose.xlu0.b32.cont [11/16] (narrow) %v10564_v43, 16  ;;  %10749 = vxpose.xlu2.b32.cont [11/16] (narrow) %v10580_v39, 16  ;;  %v19299_v43 = vld [vmem:[#allocation147_spill] sm:$0xff]  ;;  %v10395_v39 = vmul.f32 0.6931472, %v11915_v52 }
 0xcf4   : > { %10775 = vxpose.xlu1.b32.cont [5/16] (narrow) %v10590_v13, 16  ;;  %v10583_v45 = vsub.f32 %v19299_v43, %v10487_v51  ;;  %v19300_v13 = vld [vmem:[#allocation163_spill] sm:$0xff] }
 0xcf5   : > { %v10472_v20 = vadd.f32 %v10343_v54, %v19300_v13  ;;  %v10498_v21 = vadd.f32 %v10395_v39, %v17913_v28  ;;  %v19304_v28 = vld [vmem:[#allocation97_spill] sm:$0xff]  ;;  %v10214_v35 = vpop.xlane.xlu1 %10213  ;;  %v19316_v43 = vld [vmem:[#allocation47_spill] sm:$0xff] }
 0xcf6   : > { %v10499_v44 = vadd.f32 %v10397_v14, %v19304_v28  ;;  %v19317_v13 = vld [vmem:[#allocation175_spill] sm:$0xff] }
 0xcf7   : > { %v10568_v30 = vsub.f32 %v19301_v40, %v10472_v20  ;;  %v10594_v62 = vsub.f32 %v17572_v58, %v10498_v21  ;;  %v10208_v58 = vpop.xlane.xlu2 %10207  ;;  %v19319_v21 = vld [vmem:[#allocation176_spill] sm:$0xff] }
 0xcf8   : > { %v10595_v36 = vsub.f32 %v19307_v46, %v10499_v44  ;;  %11926 = vlog2.f32 %v10208_v58 }
 0xcf9   : > { %11928 = vlog2.f32 %v10211_v24 }
 0xcfa   : > { %11930 = vlog2.f32 %v10214_v35 }
 0xcfb   : > { %10713 = vxpose.xlu0.b32.cont [12/16] (narrow) %v10565_v32, 16  ;;  %10750 = vxpose.xlu2.b32.cont [12/16] (narrow) %v10581_v37, 16  ;;  %v10489_v32 = vadd.f32 %v10377_v41, %v17849_v34  ;;  %v11923_v37 = vpop.eup %11922 }
 0xcfc   : > { %10776 = vxpose.xlu1.b32.cont [6/16] (narrow) %v10591_v0, 16  ;;  %v10569_v0 = vsub.f32 %v19305_v1, %v10473_v59  ;;  %v10399_v42 = vmul.f32 0.6931472, %v11923_v37  ;;  %v11925_v34 = vpop.eup %11924 }
 0xcfd   : > { %v10585_v57 = vsub.f32 %v19306_v33, %v10489_v32  ;;  %v10401_v53 = vmul.f32 0.6931472, %v11925_v34 }
 0xcfe   : > { %v10500_v8 = vadd.f32 %v10399_v42, %v19308_v49  ;;  %v11927_v10 = vpop.eup %11926 }
 0xcff   : > { %v10217_v7 = vpop.xlane.xlu2 %10216  ;;  %v10403_v23 = vmul.f32 0.6931472, %v11927_v10  ;;  %v11929_v15 = vpop.eup %11928 }
 0xd00   : > { %v10596_v38 = vsub.f32 %v19309_v18, %v10500_v8  ;;  %v10405_v25 = vmul.f32 0.6931472, %v11929_v15  ;;  %v11931_v54 = vpop.eup %11930  ;;  %11932 = vlog2.f32 %v10217_v7 }
 0xd01   : > { %v10502_v6 = vadd.f32 %v10403_v23, %v19312_v50  ;;  %v10407_v27 = vmul.f32 0.6931472, %v11931_v54 }
 0xd02   : > { %v10503_v52 = vadd.f32 %v10405_v25, %v19314_v2 }
 0xd03   : > { %10714 = vxpose.xlu0.b32.cont [13/16] (narrow) %v10566_v63, 16  ;;  %10751 = vxpose.xlu2.b32.cont [13/16] (narrow) %v10582_v29, 16  ;;  %v10501_v63 = vadd.f32 %v10401_v53, %v19310_v26  ;;  %v19311_v29 = vld [vmem:[#allocation171_spill] sm:$0xff]  ;;  %v10598_v51 = vsub.f32 %v19313_v47, %v10502_v6 }
 0xd04   : > { %10777 = vxpose.xlu1.b32.cont [7/16] (narrow) %v10592_v55, 16 }
 0xd05   : > { %v10597_v9 = vsub.f32 %v19311_v29, %v10501_v63 }
 0xd07   : > { %v10686_v55 = vpop.trf.xlu2 }
 0xd08   : > { %11512 = vst [vmem:[%s18004_s27 + $0x20] sm:$0xff] %v10686_v55 }
 0xd0b   : > { %10715 = vxpose.xlu0.b32.cont [14/16] (narrow) %v10567_v17, 16  ;;  %10752 = vxpose.xlu2.b32.cont [14/16] (narrow) %v10583_v45, 16  ;;  %v10599_v17 = vsub.f32 %v19315_v19, %v10503_v52  ;;  %v10504_v45 = vadd.f32 %v10407_v27, %v19316_v43 }
 0xd0c   : > { %10778 = vxpose.xlu1.b32.cont [8/16] (narrow) %v10593_v3, 16  ;;  %v11933_v3 = vpop.eup %11932 }
 0xd0d   : > { %v10409_v39 = vmul.f32 0.6931472, %v11933_v3  ;;  %v10600_v20 = vsub.f32 %v19317_v13, %v10504_v45 }
 0xd0f   : > { %v10687_v5 = vpop.trf.xlu2  ;;  %v10505_v31 = vadd.f32 %v10409_v39, %v19318_v11 }
 0xd10   : > { %11514 = vst [vmem:[%s18004_s27 + $0x30] sm:$0xff] %v10687_v5 }
 0xd11   : > { %v10601_v61 = vsub.f32 %v19319_v21, %v10505_v31 }
 0xd13   : > { %10716 = vxpose.xlu0.b32.cont [15/16] (narrow) %v10568_v30, 16  ;;  %10753 = vxpose.xlu2.b32.cont [15/16] (narrow) %v10584_v22, 16 }
 0xd14   : > { %10779 = vxpose.xlu1.b32.cont [9/16] (narrow) %v10594_v62, 16 }
 0xd1b   : > { %10717 = vxpose.xlu0.b32.end [16/16] (narrow) %v10569_v0, 16  ;;  %10754 = vxpose.xlu2.b32.end [16/16] (narrow) %v10585_v57, 16 }
 0xd1c   : > { %10780 = vxpose.xlu1.b32.cont [10/16] (narrow) %v10595_v36, 16 }
 0xd24   : > { %10781 = vxpose.xlu1.b32.cont [11/16] (narrow) %v10596_v38, 16 }
 0xd2c   : > { %10782 = vxpose.xlu1.b32.cont [12/16] (narrow) %v10597_v9, 16 }
 0xd34   : > { %10783 = vxpose.xlu1.b32.cont [13/16] (narrow) %v10598_v51, 16 }
 0xd3c   : > { %10784 = vxpose.xlu1.b32.cont [14/16] (narrow) %v10599_v17, 16  ;;  %v10755_v12 = vpop.trf.xlu2 }
 0xd3d   : > { %11516 = vst [vmem:[%s18004_s27 + $0x40] sm:$0xff] %v10755_v12 }
 0xd44   : > { %10785 = vxpose.xlu1.b32.cont [15/16] (narrow) %v10600_v20, 16  ;;  %v10756_v30 = vpop.trf.xlu2 }
 0xd45   : > { %11518 = vst [vmem:[%s18004_s27 + $0x50] sm:$0xff] %v10756_v30 }
 0xd47   : > { %v10718_v4 = vpop.trf.xlu0 }
 0xd48   : > { %11513 = vst [vmem:[%s18004_s27 + $0x28] sm:$0xff] %v10718_v4 }
 0xd4c   : > { %10786 = vxpose.xlu1.b32.end [16/16] (narrow) %v10601_v61, 16 }
 0xd4f   : > { %v10719_v40 = vpop.trf.xlu0 }
 0xd50   : > { %11515 = vst [vmem:[%s18004_s27 + $0x38] sm:$0xff] %v10719_v40 }
 0xd78   : > { %v10787_v60 = vpop.trf.xlu1 }
 0xd79   : > { %11517 = vst [vmem:[%s18004_s27 + $0x48] sm:$0xff] %v10787_v60 }
 0xd80   : > { %v10788_v41 = vpop.trf.xlu1 }
 0xd81   : > { %11519 = vst [vmem:[%s18004_s27 + $0x58] sm:$0xff] %v10788_v41 }
 0xd82 PF: > { %s13_s9 = sadd.s32 1, %s11977_s9  }
 0xd83   : > { %p10_p8 = scmp.ge.s32.totalorder %s13_s9, 4  }
 0xd85   :  { %12 = sbr.rel (!%p10_p8) target bundleno = 1 (0x1), region = 65 }
 0xd8a   :  { %10832 = vsyncpa [#allocation3], 1 }
 0xd8b   :  { %10834 = vsyncpa [#allocation3 + $0x1], 1 }

</bundles_post_ra>
